<compile_context>
chip_gen: v7x
topology: tpu7x:2x2x1
jax: 0.10.0
libtpu: 0.0.40
codegen_flags: <defaults>
</compile_context>

<pallas_src>
import functools
import math

import jax
import jax.numpy as jnp
from jax.experimental import pallas as pl
from jax.experimental.pallas import tpu as pltpu

_ACTOR_H1 = 512  # actor first-hidden width == split point of the fused first layer


def _evaluate_kernel(x_ref, a_ref, nhiv_ref,
                     w1b_ref,
                     aw2_ref, ab2_ref, aw3_ref, ab3_ref,
                     cw2_ref, cb2_ref, cw3_ref, cb3_ref,
                     cw4_ref, cb4_ref,
                     out_ref, *, act_dtype):
    """One batch tile; the batch rides the lane axis for every matmul/output.

    x:(tB,S) f32, a:(tB,A) f32, weights (out,in) bf16 (aw3/cw4 f32), biases (out,1) f32.
    out:(2,tB) f32 -- row 0 = -0.5*(a-mean)^T Sigma^-1 (a-mean), row 1 = V(s).
    """
    f32 = jnp.float32
    bf16 = jnp.bfloat16
    tB = x_ref.shape[0]

    # Cast the state in-kernel and append a ones column so the fused first-layer
    # bias (folded as an extra weight column of w1b) comes for free from the MXU.
    x1 = jnp.concatenate(
        [x_ref[...].astype(bf16), jnp.ones((tB, 1), bf16)], axis=1)     # (tB, S+1)

    # Fused first layer: actor(512) + critic(1024) share the same input x.
    # Contract the shared (S+1) axis of both operands -> (1536, tB), batch on lanes.
    h1 = jax.lax.dot_general(w1b_ref[...], x1, (((1,), (1,)), ((), ())),
                             preferred_element_type=f32)                 # (1536, tB)

    # Slice per half before activating -> never hold both a full f32 and a full
    # low-precision copy of the (1536, tB) intermediate.
    ha = jnp.tanh(h1[:_ACTOR_H1, :])                                     # (512, tB) f32
    hc = jnp.tanh(h1[_ACTOR_H1:, :].astype(act_dtype))                   # (1024, tB)

    # ---- actor tail (kept f32-precise: it feeds the log-prob quadratic form) ----
    ha = jnp.tanh(jnp.dot(aw2_ref[...], ha.astype(bf16),
                          preferred_element_type=f32) + ab2_ref[...])    # (256, tB) f32
    mean = jnp.tanh(jnp.dot(aw3_ref[...], ha, preferred_element_type=f32)
                    + ab3_ref[...])                                      # (A, tB) f32

    # ---- critic tail (bf16 activations on v6e/v7x: EUP/tanh is the scarce slot) ----
    hc = jnp.tanh((jnp.dot(cw2_ref[...], hc.astype(bf16),
                           preferred_element_type=f32)
                   + cb2_ref[...]).astype(act_dtype))                    # (512, tB)
    hc = jnp.tanh((jnp.dot(cw3_ref[...], hc.astype(bf16),
                           preferred_element_type=f32)
                   + cb3_ref[...]).astype(act_dtype))                    # (256, tB)
    # Final critic layer has a single output unit: broadcast-multiply + sublane
    # reduce (VPU/XLU) instead of an M=1 MXU matmul.
    value = (jnp.sum(hc.astype(f32) * cw4_ref[...], axis=0, keepdims=True)
             + cb4_ref[...])                                             # (1, tB) f32

    # ---- -0.5*(a-mean)^T Sigma^-1 (a-mean); distribution constants in wrapper ----
    diff = a_ref[...].T - mean                                           # (A, tB) f32
    nhm = jnp.sum(diff * diff * nhiv_ref[...], axis=0, keepdims=True)    # (1, tB)

    # Single lane-dense store of both per-sample results.
    out_ref[...] = jnp.concatenate([nhm, value], axis=0)                 # (2, tB)


def prepare_params(params):
    """One-time conversion of torch-style (in,out)/(1,out) params to kernel layout.

    Hoisted out of the per-call path: fusion / transposes / bf16 casts run once
    and the results are reused across evaluate() calls.
    """
    (aw1, ab1, aw2, ab2, aw3, ab3,
     cw1, cb1, cw2, cb2, cw3, cb3, cw4, cb4) = params
    bf16, f32 = jnp.bfloat16, jnp.float32
    # Fuse the two first layers (shared input) and fold their biases in as an
    # extra weight column; the kernel appends a matching ones column to x.
    w1 = jnp.concatenate([aw1, cw1], axis=1)                   # (S, 1536)
    b1 = jnp.concatenate([ab1, cb1], axis=1)                   # (1, 1536)
    w1b = jnp.concatenate([w1, b1], axis=0).T.astype(bf16)     # (1536, S+1)
    return (
        w1b,
        aw2.T.astype(bf16), ab2.T.astype(f32),                 # (256,512),  (256,1)
        aw3.T.astype(f32),  ab3.T.astype(f32),                 # (A,256) f32, (A,1)
        cw2.T.astype(bf16), cb2.T.astype(f32),                 # (512,1024), (512,1)
        cw3.T.astype(bf16), cb3.T.astype(f32),                 # (256,512),  (256,1)
        cw4.astype(f32),    cb4.T.astype(f32),                 # (256,1),    (1,1)
    )


def default_tuning():
    """Generation-specific (batch tile, VMEM limit, bf16 activations)."""
    kind = ""
    try:
        kind = jax.devices()[0].device_kind.lower()
    except Exception:
        pass
    # bf16 EUP/VPU only on v6e / v7x; v5e and older keep f32 activations.
    bf16_act = ("v6" in kind) or ("v7" in kind) or ("7x" in kind)
    if ("v7" in kind) or ("7x" in kind):
        return 1024, 48 * 1024 * 1024, bf16_act    # v7x: 64 MiB physical VMEM
    return 1024, 96 * 1024 * 1024, bf16_act        # v5e/v6e: 128 MiB physical VMEM


@functools.partial(jax.jit, static_argnames=("block_b", "vmem_limit_bytes", "bf16_act"))
def actor_critic_evaluate(state, action, kparams, action_var, *,
                          block_b=None, vmem_limit_bytes=None, bf16_act=None):
    """Pallas equivalent of ActorCritic.evaluate(state, action).

    state:(B,S) f32, action:(B,A) f32, kparams = prepare_params(params).
    Returns (action_logprobs (B,), state_value (B,), dist_entropy (B,)).
    """
    if block_b is None or vmem_limit_bytes is None or bf16_act is None:
        d_block, d_vmem, d_bf16 = default_tuning()
        block_b = d_block if block_b is None else block_b
        vmem_limit_bytes = d_vmem if vmem_limit_bytes is None else vmem_limit_bytes
        bf16_act = d_bf16 if bf16_act is None else bf16_act

    B, S = state.shape
    A = action.shape[-1]

    # Batch tile: lane-aligned (multiple of 128) and capped at ~half the batch so
    # the grid has >= 2 steps whenever B allows -- with the "parallel" batch axis
    # the two TensorCores on v7x each take half; no effect on v5e/v6e (1 TC).
    if B <= 128:
        tB = B                                     # single full block (lane dim == full dim)
    else:
        half = pl.cdiv(B, 2)
        tB = max(128, min(block_b, 128 * pl.cdiv(half, 128)))
    n_blocks = pl.cdiv(B, tB)                      # last block may be partial (masked store)

    action_var = action_var.astype(jnp.float32)
    nhiv = (-0.5 / action_var).reshape(A, 1)       # -0.5 * diag(Sigma^-1)

    kernel = functools.partial(
        _evaluate_kernel,
        act_dtype=jnp.bfloat16 if bf16_act else jnp.float32)

    # Weights/biases: full-shape blocks with a constant index_map -> VMEM-resident.
    w_specs = [pl.BlockSpec(p.shape, lambda i: (0, 0)) for p in kparams]

    out = pl.pallas_call(
        kernel,
        out_shape=jax.ShapeDtypeStruct((2, B), jnp.float32),
        grid_spec=pltpu.PrefetchScalarGridSpec(
            num_scalar_prefetch=0,
            grid=(n_blocks,),
            in_specs=[
                pl.BlockSpec((tB, S), lambda i: (i, 0)),   # state tile (f32; cast in-kernel)
                pl.BlockSpec((tB, A), lambda i: (i, 0)),   # action tile
                pl.BlockSpec((A, 1), lambda i: (0, 0)),    # -0.5 / var
                *w_specs,
            ],
            out_specs=pl.BlockSpec((2, tB), lambda i: (0, i)),
        ),
        compiler_params=pltpu.CompilerParams(
            dimension_semantics=("parallel",),
            vmem_limit_bytes=vmem_limit_bytes,
        ),
    )(state.astype(jnp.float32), action.astype(jnp.float32), nhiv, *kparams)

    # MultivariateNormal(diag) constants depend only on action_var -> computed here.
    log2pi = math.log(2.0 * math.pi)
    sum_log_var = jnp.sum(jnp.log(action_var))
    logp = out[0] - 0.5 * (A * log2pi + sum_log_var)
    value = out[1]
    ent = jnp.full((B,), 0.5 * A * (1.0 + log2pi), jnp.float32) + 0.5 * sum_log_var
    return logp, value, ent


def init_params(key, state_dim, action_dim):
    """Deterministic init mimicking torch.nn.Linear (U(-1/sqrt(in), 1/sqrt(in)))."""
    sizes = [
        # actor
        (state_dim, 512), (512, 256), (256, action_dim),
        # critic
        (state_dim, 1024), (1024, 512), (512, 256), (256, 1),
    ]
    params = []
    for (fan_in, fan_out) in sizes:
        key, kw, kb = jax.random.split(key, 3)
        bound = 1.0 / math.sqrt(fan_in)
        w = jax.random.uniform(kw, (fan_in, fan_out), jnp.float32, -bound, bound)
        b = jax.random.uniform(kb, (1, fan_out), jnp.float32, -bound, bound)
        params.extend([w, b])
    return params


def _reference_evaluate(state, action, params, action_var):
    """Pure-JAX f32 reference for correctness checking."""
    (aw1, ab1, aw2, ab2, aw3, ab3,
     cw1, cb1, cw2, cb2, cw3, cb3, cw4, cb4) = params
    h = jnp.tanh(state @ aw1 + ab1)
    h = jnp.tanh(h @ aw2 + ab2)
    mean = jnp.tanh(h @ aw3 + ab3)

    v = jnp.tanh(state @ cw1 + cb1)
    v = jnp.tanh(v @ cw2 + cb2)
    v = jnp.tanh(v @ cw3 + cb3)
    value = (v @ cw4 + cb4)[:, 0]

    k = action.shape[-1]
    log2pi = math.log(2.0 * math.pi)
    sum_log_var = jnp.sum(jnp.log(action_var))
    maha = jnp.sum((action - mean) ** 2 / action_var, axis=-1)
    logp = -0.5 * (k * log2pi + sum_log_var + maha)
    ent = jnp.full((state.shape[0],), 0.5 * k * (1.0 + log2pi)) + 0.5 * sum_log_var
    return logp, value, ent


# TODO(synk): act()'s MultivariateNormal.sample() (stochastic action draw) is not
# implemented in-kernel; only the deterministic evaluate() math is kernelized.

if __name__ == "__main__":
    # Small shapes consistent with the module: batch=8, state_dim=32, action_dim=4.
    B, S, A = 8, 32, 4
    action_std = 0.5

    key = jax.random.PRNGKey(0)
    kp, ks, ka = jax.random.split(key, 3)

    params = init_params(kp, S, A)
    kparams = prepare_params(params)   # one-time weight prep, hoisted out of the call path
    state = jax.random.normal(ks, (B, S), jnp.float32)
    action = jax.random.normal(ka, (B, A), jnp.float32)
    action_var = jnp.full((A,), action_std * action_std, jnp.float32)

    logp, value, ent = jax.block_until_ready(
        actor_critic_evaluate(state, action, kparams, action_var))

    ref_logp, ref_value, ref_ent = _reference_evaluate(state, action, params, action_var)
    # bf16 weights / activations with f32 accumulation: compare against the f32
    # reference with loosened tolerances (actor final layer kept f32 for log-prob).
    assert jnp.allclose(logp, ref_logp, atol=1.5e-1, rtol=5e-2), (logp, ref_logp)
    assert jnp.allclose(value, ref_value, atol=2e-2, rtol=2e-2), (value, ref_value)
    assert jnp.allclose(ent, ref_ent, atol=1e-5, rtol=1e-5), (ent, ref_ent)

    print("KERNEL_OK")
</pallas_src>

<mosaic_0001>
module attributes {stable_mosaic.version = 11 : i64} {
  func.func @_evaluate_kernel(%arg0: i32, %arg1: memref<8x32xf32, #tpu.memory_space<vmem>>, %arg2: memref<8x4xf32, #tpu.memory_space<vmem>>, %arg3: memref<4x1xf32, #tpu.memory_space<vmem>>, %arg4: memref<1536x33xbf16, #tpu.memory_space<vmem>>, %arg5: memref<256x512xbf16, #tpu.memory_space<vmem>>, %arg6: memref<256x1xf32, #tpu.memory_space<vmem>>, %arg7: memref<4x256xf32, #tpu.memory_space<vmem>>, %arg8: memref<4x1xf32, #tpu.memory_space<vmem>>, %arg9: memref<512x1024xbf16, #tpu.memory_space<vmem>>, %arg10: memref<512x1xf32, #tpu.memory_space<vmem>>, %arg11: memref<256x512xbf16, #tpu.memory_space<vmem>>, %arg12: memref<256x1xf32, #tpu.memory_space<vmem>>, %arg13: memref<256x1xf32, #tpu.memory_space<vmem>>, %arg14: memref<1x1xf32, #tpu.memory_space<vmem>>, %arg15: memref<2x8xf32, #tpu.memory_space<vmem>>) attributes {dimension_semantics = [#tpu.dimension_semantics<parallel>], iteration_bounds = array<i64: 1>, scalar_prefetch = 0 : i64, scratch_operands = 0 : i64, tpu.core_type = #tpu.core_type<tc>, window_params = [{transform_indices = @transform_0, window_bounds = array<i64: 8, 32>}, {transform_indices = @transform_1, window_bounds = array<i64: 8, 4>}, {pipeline_mode = #tpu.pipeline_mode<synchronous>, transform_indices = @transform_2, window_bounds = array<i64: 4, 1>}, {pipeline_mode = #tpu.pipeline_mode<synchronous>, transform_indices = @transform_3, window_bounds = array<i64: 1536, 33>}, {pipeline_mode = #tpu.pipeline_mode<synchronous>, transform_indices = @transform_4, window_bounds = array<i64: 256, 512>}, {pipeline_mode = #tpu.pipeline_mode<synchronous>, transform_indices = @transform_5, window_bounds = array<i64: 256, 1>}, {pipeline_mode = #tpu.pipeline_mode<synchronous>, transform_indices = @transform_6, window_bounds = array<i64: 4, 256>}, {pipeline_mode = #tpu.pipeline_mode<synchronous>, transform_indices = @transform_7, window_bounds = array<i64: 4, 1>}, {pipeline_mode = #tpu.pipeline_mode<synchronous>, transform_indices = @transform_8, window_bounds = array<i64: 512, 1024>}, {pipeline_mode = #tpu.pipeline_mode<synchronous>, transform_indices = @transform_9, window_bounds = array<i64: 512, 1>}, {pipeline_mode = #tpu.pipeline_mode<synchronous>, transform_indices = @transform_10, window_bounds = array<i64: 256, 512>}, {pipeline_mode = #tpu.pipeline_mode<synchronous>, transform_indices = @transform_11, window_bounds = array<i64: 256, 1>}, {pipeline_mode = #tpu.pipeline_mode<synchronous>, transform_indices = @transform_12, window_bounds = array<i64: 256, 1>}, {pipeline_mode = #tpu.pipeline_mode<synchronous>, transform_indices = @transform_13, window_bounds = array<i64: 1, 1>}, {transform_indices = @transform_14, window_bounds = array<i64: 2, 8>}]} {
    %c0 = arith.constant 0 : index
    %c0_0 = arith.constant 0 : index
    %0 = vector.load %arg1[%c0, %c0_0] : memref<8x32xf32, #tpu.memory_space<vmem>>, vector<8x32xf32>
    %1 = arith.truncf %0 : vector<8x32xf32> to vector<8x32xbf16>
    %cst = arith.constant 1.000000e+00 : bf16
    %2 = vector.broadcast %cst : bf16 to vector<8x1xbf16>
    %3 = tpu.concatenate %1, %2 in 1 : vector<8x32xbf16>, vector<8x1xbf16> -> vector<8x33xbf16>
    %c0_1 = arith.constant 0 : index
    %c0_2 = arith.constant 0 : index
    %4 = vector.load %arg4[%c0_1, %c0_2] : memref<1536x33xbf16, #tpu.memory_space<vmem>>, vector<1536x33xbf16>
    %cst_3 = arith.constant dense<0.000000e+00> : vector<1536x8xf32>
    %5 = tpu.matmul %4, %3, %cst_3 {dimension_numbers = #tpu.dot_dimension_numbers<[1], [1], [0], [0], [0, 0, 1, 0], [], []>} : vector<1536x33xbf16>, vector<8x33xbf16>, vector<1536x8xf32> -> vector<1536x8xf32>
    %6 = vector.extract_strided_slice %5 {offsets = [0, 0], sizes = [512, 8], strides = [1, 1]} : vector<1536x8xf32> to vector<512x8xf32>
    %7 = math.tanh %6 : vector<512x8xf32>
    %8 = vector.extract_strided_slice %5 {offsets = [512, 0], sizes = [1024, 8], strides = [1, 1]} : vector<1536x8xf32> to vector<1024x8xf32>
    %9 = math.tanh %8 : vector<1024x8xf32>
    %c0_4 = arith.constant 0 : index
    %c0_5 = arith.constant 0 : index
    %10 = vector.load %arg5[%c0_4, %c0_5] : memref<256x512xbf16, #tpu.memory_space<vmem>>, vector<256x512xbf16>
    %11 = arith.truncf %7 : vector<512x8xf32> to vector<512x8xbf16>
    %cst_6 = arith.constant dense<0.000000e+00> : vector<256x8xf32>
    %12 = tpu.matmul %10, %11, %cst_6 {dimension_numbers = #tpu.dot_dimension_numbers<[1], [0], [0], [1], [0, 0, 1, 1], [], []>} : vector<256x512xbf16>, vector<512x8xbf16>, vector<256x8xf32> -> vector<256x8xf32>
    %c0_7 = arith.constant 0 : index
    %c0_8 = arith.constant 0 : index
    %13 = vector.load %arg6[%c0_7, %c0_8] : memref<256x1xf32, #tpu.memory_space<vmem>>, vector<256x1xf32>
    %14 = vector.broadcast %13 : vector<256x1xf32> to vector<256x8xf32>
    %15 = arith.addf %12, %14 : vector<256x8xf32>
    %16 = math.tanh %15 : vector<256x8xf32>
    %c0_9 = arith.constant 0 : index
    %c0_10 = arith.constant 0 : index
    %17 = vector.load %arg7[%c0_9, %c0_10] : memref<4x256xf32, #tpu.memory_space<vmem>>, vector<4x256xf32>
    %cst_11 = arith.constant dense<0.000000e+00> : vector<4x8xf32>
    %18 = tpu.matmul %17, %16, %cst_11 {dimension_numbers = #tpu.dot_dimension_numbers<[1], [0], [0], [1], [0, 0, 1, 1], [], []>} : vector<4x256xf32>, vector<256x8xf32>, vector<4x8xf32> -> vector<4x8xf32>
    %c0_12 = arith.constant 0 : index
    %c0_13 = arith.constant 0 : index
    %19 = vector.load %arg8[%c0_12, %c0_13] : memref<4x1xf32, #tpu.memory_space<vmem>>, vector<4x1xf32>
    %20 = vector.broadcast %19 : vector<4x1xf32> to vector<4x8xf32>
    %21 = arith.addf %18, %20 : vector<4x8xf32>
    %22 = math.tanh %21 : vector<4x8xf32>
    %c0_14 = arith.constant 0 : index
    %c0_15 = arith.constant 0 : index
    %23 = vector.load %arg9[%c0_14, %c0_15] : memref<512x1024xbf16, #tpu.memory_space<vmem>>, vector<512x1024xbf16>
    %24 = arith.truncf %9 : vector<1024x8xf32> to vector<1024x8xbf16>
    %cst_16 = arith.constant dense<0.000000e+00> : vector<512x8xf32>
    %25 = tpu.matmul %23, %24, %cst_16 {dimension_numbers = #tpu.dot_dimension_numbers<[1], [0], [0], [1], [0, 0, 1, 1], [], []>} : vector<512x1024xbf16>, vector<1024x8xbf16>, vector<512x8xf32> -> vector<512x8xf32>
    %c0_17 = arith.constant 0 : index
    %c0_18 = arith.constant 0 : index
    %26 = vector.load %arg10[%c0_17, %c0_18] : memref<512x1xf32, #tpu.memory_space<vmem>>, vector<512x1xf32>
    %27 = vector.broadcast %26 : vector<512x1xf32> to vector<512x8xf32>
    %28 = arith.addf %25, %27 : vector<512x8xf32>
    %29 = math.tanh %28 : vector<512x8xf32>
    %c0_19 = arith.constant 0 : index
    %c0_20 = arith.constant 0 : index
    %30 = vector.load %arg11[%c0_19, %c0_20] : memref<256x512xbf16, #tpu.memory_space<vmem>>, vector<256x512xbf16>
    %31 = arith.truncf %29 : vector<512x8xf32> to vector<512x8xbf16>
    %cst_21 = arith.constant dense<0.000000e+00> : vector<256x8xf32>
    %32 = tpu.matmul %30, %31, %cst_21 {dimension_numbers = #tpu.dot_dimension_numbers<[1], [0], [0], [1], [0, 0, 1, 1], [], []>} : vector<256x512xbf16>, vector<512x8xbf16>, vector<256x8xf32> -> vector<256x8xf32>
    %c0_22 = arith.constant 0 : index
    %c0_23 = arith.constant 0 : index
    %33 = vector.load %arg12[%c0_22, %c0_23] : memref<256x1xf32, #tpu.memory_space<vmem>>, vector<256x1xf32>
    %34 = vector.broadcast %33 : vector<256x1xf32> to vector<256x8xf32>
    %35 = arith.addf %32, %34 : vector<256x8xf32>
    %36 = math.tanh %35 : vector<256x8xf32>
    %c0_24 = arith.constant 0 : index
    %c0_25 = arith.constant 0 : index
    %37 = vector.load %arg13[%c0_24, %c0_25] : memref<256x1xf32, #tpu.memory_space<vmem>>, vector<256x1xf32>
    %38 = vector.broadcast %37 : vector<256x1xf32> to vector<256x8xf32>
    %39 = arith.mulf %36, %38 : vector<256x8xf32>
    %cst_26 = arith.constant dense<0.000000e+00> : vector<8xf32>
    %40 = vector.multi_reduction <add>, %39, %cst_26 [0] : vector<256x8xf32> to vector<8xf32>
    %41 = vector.shape_cast %40 : vector<8xf32> to vector<1x8xf32>
    %c0_27 = arith.constant 0 : index
    %c0_28 = arith.constant 0 : index
    %42 = vector.load %arg14[%c0_27, %c0_28] : memref<1x1xf32, #tpu.memory_space<vmem>>, vector<1x1xf32>
    %43 = vector.broadcast %42 : vector<1x1xf32> to vector<1x8xf32>
    %44 = arith.addf %41, %43 : vector<1x8xf32>
    %c0_29 = arith.constant 0 : index
    %c0_30 = arith.constant 0 : index
    %45 = vector.load %arg2[%c0_29, %c0_30] : memref<8x4xf32, #tpu.memory_space<vmem>>, vector<8x4xf32>
    %46 = tpu.transpose %45, [1, 0] : vector<8x4xf32> -> vector<4x8xf32>
    %47 = arith.subf %46, %22 : vector<4x8xf32>
    %48 = arith.mulf %47, %47 : vector<4x8xf32>
    %c0_31 = arith.constant 0 : index
    %c0_32 = arith.constant 0 : index
    %49 = vector.load %arg3[%c0_31, %c0_32] : memref<4x1xf32, #tpu.memory_space<vmem>>, vector<4x1xf32>
    %50 = vector.broadcast %49 : vector<4x1xf32> to vector<4x8xf32>
    %51 = arith.mulf %48, %50 : vector<4x8xf32>
    %cst_33 = arith.constant dense<0.000000e+00> : vector<8xf32>
    %52 = vector.multi_reduction <add>, %51, %cst_33 [0] : vector<4x8xf32> to vector<8xf32>
    %53 = vector.shape_cast %52 : vector<8xf32> to vector<1x8xf32>
    %54 = tpu.concatenate %53, %44 in 0 : vector<1x8xf32>, vector<1x8xf32> -> vector<2x8xf32>
    %c0_34 = arith.constant 0 : index
    %c0_35 = arith.constant 0 : index
    %55 = vector.load %arg15[%c0_34, %c0_35] : memref<2x8xf32, #tpu.memory_space<vmem>>, vector<2x8xf32>
    tpu.vector_store %arg15[%c0_34, %c0_35], %54 {strides = array<i32>} : memref<2x8xf32, #tpu.memory_space<vmem>>, vector<2x8xf32>,
    return
  }
  func.func @transform_0(%arg0: i32) -> (i32, i32) {
    %c0_i32 = arith.constant 0 : i32
    %c0_i32_0 = arith.constant 0 : i32
    return %arg0, %c0_i32 : i32, i32
  }
  func.func @transform_1(%arg0: i32) -> (i32, i32) {
    %c0_i32 = arith.constant 0 : i32
    %c0_i32_0 = arith.constant 0 : i32
    return %arg0, %c0_i32 : i32, i32
  }
  func.func @transform_2(%arg0: i32) -> (i32, i32) {
    %c0_i32 = arith.constant 0 : i32
    %c0_i32_0 = arith.constant 0 : i32
    %c0_i32_1 = arith.constant 0 : i32
    return %c0_i32, %c0_i32_0 : i32, i32
  }
  func.func @transform_3(%arg0: i32) -> (i32, i32) {
    %c0_i32 = arith.constant 0 : i32
    %c0_i32_0 = arith.constant 0 : i32
    %c0_i32_1 = arith.constant 0 : i32
    return %c0_i32, %c0_i32_0 : i32, i32
  }
  func.func @transform_4(%arg0: i32) -> (i32, i32) {
    %c0_i32 = arith.constant 0 : i32
    %c0_i32_0 = arith.constant 0 : i32
    %c0_i32_1 = arith.constant 0 : i32
    return %c0_i32, %c0_i32_0 : i32, i32
  }
  func.func @transform_5(%arg0: i32) -> (i32, i32) {
    %c0_i32 = arith.constant 0 : i32
    %c0_i32_0 = arith.constant 0 : i32
    %c0_i32_1 = arith.constant 0 : i32
    return %c0_i32, %c0_i32_0 : i32, i32
  }
  func.func @transform_6(%arg0: i32) -> (i32, i32) {
    %c0_i32 = arith.constant 0 : i32
    %c0_i32_0 = arith.constant 0 : i32
    %c0_i32_1 = arith.constant 0 : i32
    return %c0_i32, %c0_i32_0 : i32, i32
  }
  func.func @transform_7(%arg0: i32) -> (i32, i32) {
    %c0_i32 = arith.constant 0 : i32
    %c0_i32_0 = arith.constant 0 : i32
    %c0_i32_1 = arith.constant 0 : i32
    return %c0_i32, %c0_i32_0 : i32, i32
  }
  func.func @transform_8(%arg0: i32) -> (i32, i32) {
    %c0_i32 = arith.constant 0 : i32
    %c0_i32_0 = arith.constant 0 : i32
    %c0_i32_1 = arith.constant 0 : i32
    return %c0_i32, %c0_i32_0 : i32, i32
  }
  func.func @transform_9(%arg0: i32) -> (i32, i32) {
    %c0_i32 = arith.constant 0 : i32
    %c0_i32_0 = arith.constant 0 : i32
    %c0_i32_1 = arith.constant 0 : i32
    return %c0_i32, %c0_i32_0 : i32, i32
  }
  func.func @transform_10(%arg0: i32) -> (i32, i32) {
    %c0_i32 = arith.constant 0 : i32
    %c0_i32_0 = arith.constant 0 : i32
    %c0_i32_1 = arith.constant 0 : i32
    return %c0_i32, %c0_i32_0 : i32, i32
  }
  func.func @transform_11(%arg0: i32) -> (i32, i32) {
    %c0_i32 = arith.constant 0 : i32
    %c0_i32_0 = arith.constant 0 : i32
    %c0_i32_1 = arith.constant 0 : i32
    return %c0_i32, %c0_i32_0 : i32, i32
  }
  func.func @transform_12(%arg0: i32) -> (i32, i32) {
    %c0_i32 = arith.constant 0 : i32
    %c0_i32_0 = arith.constant 0 : i32
    %c0_i32_1 = arith.constant 0 : i32
    return %c0_i32, %c0_i32_0 : i32, i32
  }
  func.func @transform_13(%arg0: i32) -> (i32, i32) {
    %c0_i32 = arith.constant 0 : i32
    %c0_i32_0 = arith.constant 0 : i32
    %c0_i32_1 = arith.constant 0 : i32
    return %c0_i32, %c0_i32_0 : i32, i32
  }
  func.func @transform_14(%arg0: i32) -> (i32, i32) {
    %c0_i32 = arith.constant 0 : i32
    %c0_i32_0 = arith.constant 0 : i32
    return %c0_i32, %arg0 : i32, i32
  }
}

</mosaic_0001>

<bundles_post_ra>
// kernel: actor_critic_evaluate.1
= control target key start
LH: loop header
LB: loop body
LE: loop exit
PB: predicated region body
PF: predicated region fallthrough
CT: control target
= control target key end

     0   :  { %s12913_s0 = inlined_call_operand.hbm [shape: f32[8,32], index: 0, kind: input, shape index: {}]   ;;  %s12914_s1 = inlined_call_operand.hbm [shape: f32[8,4], index: 1, kind: input, shape index: {}]   ;;  %s12915_s2 = inlined_call_operand.hbm [shape: f32[4,1], index: 2, kind: input, shape index: {}]   ;;  %s12916_s3 = inlined_call_operand.hbm [shape: bf16[1536,33], index: 3, kind: input, shape index: {}]   ;;  %s12917_s4 = inlined_call_operand.hbm [shape: bf16[256,512], index: 4, kind: input, shape index: {}]   ;;  %s12918_s5 = inlined_call_operand.hbm [shape: f32[256,1], index: 5, kind: input, shape index: {}]   ;;  %s12919_s6 = inlined_call_operand.hbm [shape: f32[4,256], index: 6, kind: input, shape index: {}]   ;;  %s12920_s7 = inlined_call_operand.hbm [shape: f32[4,1], index: 7, kind: input, shape index: {}]   ;;  %s12921_s8 = inlined_call_operand.hbm [shape: bf16[512,1024], index: 8, kind: input, shape index: {}]   ;;  %s12922_s9 = inlined_call_operand.hbm [shape: f32[512,1], index: 9, kind: input, shape index: {}]   ;;  %s12923_s10 = inlined_call_operand.hbm [shape: bf16[256,512], index: 10, kind: input, shape index: {}]   ;;  %s12924_s11 = inlined_call_operand.hbm [shape: f32[256,1], index: 11, kind: input, shape index: {}]   ;;  %s12925_s12 = inlined_call_operand.hbm [shape: f32[256,1], index: 12, kind: input, shape index: {}]   ;;  %s12926_s13 = inlined_call_operand.<no memory space> [shape: f32[1,1], index: 13, kind: input, shape index: {}]   ;;  %s12927_s14 = inlined_call_operand.hbm [shape: f32[2,8], index: 14, kind: output, shape index: {}]  }
   0x1   :  { %v19_v0 = vstv %s12926_s13 }
   0x2   :  { %20 = vst [vmem:[#allocation2] sm:$0x1] %v19_v0 }
   0x3   :  { %21 = vsyncpa [#allocation4], 0 }
   0x4   :  { %22 = vsyncpa [#allocation7], 0 }
   0x5   :  { %23 = vsyncpa [#allocation10], 0 }
   0x6   :  { %24 = vsyncpa [#allocation13], 0 }
   0x7   :  { %25 = vsyncpa [#allocation16], 0 }
   0x8   :  { %26 = vsyncpa [#allocation19], 0 }
   0x9   :  { %27 = vsyncpa [#allocation22], 0 }
   0xa   :  { %28 = vsyncpa [#allocation5], 0  ;;  %s10849_s15 = smov [#allocation6]   ;;  %s10850_s17 = smov [#allocation9]  }
   0xb   :  { %s45_s16 = sshll.u32 %s10849_s15, 4  ;;  %s64_s18 = sshll.u32 %s10850_s17, 4  ;;  %s46_s16 = int_to_ptr.vmem [resolvable:$true] %s45_s16  ;;  %s10950_s18 = int_to_ptr.vmem [resolvable:$true] %s64_s18 }
   0xc   :  { %s10525_s13 = scalar_lea.hbm %s12914_s1, 128 }
   0xd   :  { %p10526_p0 = scmp.ne.s32.totalorder %s12914_s1, %s10525_s13  ;;  %p10529_p1 = scmp.lt.u32.totalorder %s10525_s13, %s12914_s1 }
   0xf   :  { %p10531_p2 = pnand %p10529_p1, %p10526_p0 }
  0x11   :  { %10534 = shalt.err (!%p10531_p2)
}
  0x12   :  { %s10535_s25 = scalar_lea.vmem %s46_s16, 128  ;;  %p10540_p4 = scmp.lt.s32.totalorder %s46_s16, %s46_s16 }
  0x13   :  { %p10536_p3 = scmp.ne.s32.totalorder %s46_s16, %s10535_s25  ;;  %p10541_p5 = scmp.lt.s32.totalorder %s10535_s25, %s10535_s25 }
  0x15   :  { %p10542_p6 = por %p10541_p5, %p10540_p4 }
  0x17   :  { %p10543_p7 = pnand %p10542_p6, %p10536_p3 }
  0x19   :  { %10546 = shalt.err (!%p10543_p7)
}
  0x1a   :  { %48 = dma.hbm_to_vmem [thread:$0]  %s12914_s1, 128, %s46_s16, [#allocation7]  }
  0x1b   :  { %s10547_s30 = scalar_lea.hbm %s12916_s3, 12288 }
  0x1c   :  { %p10548_p8 = scmp.ne.s32.totalorder %s12916_s3, %s10547_s30  ;;  %p10551_p9 = scmp.lt.u32.totalorder %s10547_s30, %s12916_s3 }
  0x1e   :  { %p10553_p10 = pnand %p10551_p9, %p10548_p8 }
  0x20   :  { %10556 = shalt.err (!%p10553_p10)
}
  0x21   :  { %s10557_s13 = scalar_lea.vmem %s10950_s18, 12288  ;;  %p10562_p12 = scmp.lt.s32.totalorder %s10950_s18, %s10950_s18 }
  0x22   :  { %p10558_p11 = scmp.ne.s32.totalorder %s10950_s18, %s10557_s13  ;;  %p10563_p13 = scmp.lt.s32.totalorder %s10557_s13, %s10557_s13 }
  0x24   :  { %p10564_p0 = por %p10563_p13, %p10562_p12 }
  0x26   :  { %p10565_p1 = pnand %p10564_p0, %p10558_p11 }
  0x28   :  { %10568 = shalt.err (!%p10565_p1)
}
  0x29   :  { %s10851_s1 = smov 64   ;;  %s10852_s16 = smov 4  }
  0x2a   :  { %70 = dma.hbm_to_vmem [thread:$0]  %s12916_s3, 12288, %s10950_s18, [#allocation10], %s10851_s1, %s10851_s1, %s10852_s16  }
  0x2b   :  { %s10853_s23 = smov [#allocation12]   ;;  %s10569_s27 = scalar_lea.hbm %s12918_s5, 4096 }
  0x2c   :  { %s88_s24 = sshll.u32 %s10853_s23, 4  ;;  %p10570_p2 = scmp.ne.s32.totalorder %s12918_s5, %s10569_s27  ;;  %s89_s24 = int_to_ptr.vmem [resolvable:$true] %s88_s24 }
  0x2d   :  { %p10573_p3 = scmp.lt.u32.totalorder %s10569_s27, %s12918_s5 }
  0x2f   :  { %p10575_p4 = pnand %p10573_p3, %p10570_p2 }
  0x31   :  { %10578 = shalt.err (!%p10575_p4)
}
  0x32   :  { %s10579_s17 = scalar_lea.vmem %s89_s24, 4096  ;;  %p10584_p6 = scmp.lt.s32.totalorder %s89_s24, %s89_s24 }
  0x33   :  { %p10580_p5 = scmp.ne.s32.totalorder %s89_s24, %s10579_s17  ;;  %p10585_p7 = scmp.lt.s32.totalorder %s10579_s17, %s10579_s17 }
  0x35   :  { %p10586_p8 = por %p10585_p7, %p10584_p6 }
  0x37   :  { %p10587_p9 = pnand %p10586_p8, %p10580_p5 }
  0x39   :  { %10590 = shalt.err (!%p10587_p9)
}
  0x3a   :  { %s10854_s3 = smov 128   ;;  %s10855_s18 = smov 8  }
  0x3b   :  { %94 = dma.hbm_to_vmem [thread:$0]  %s12918_s5, 4096, %s89_s24, [#allocation13], %s10854_s3, %s10854_s3, %s10855_s18  }
  0x3c   :  { %s10856_s13 = smov [#allocation15]   ;;  %s10857_s16 = smov [#allocation18]  }
  0x3d   :  { %s111_s1 = sshll.u32 %s10856_s13, 4  ;;  %s132_s21 = sshll.u32 %s10857_s16, 4  ;;  %s112_s1 = int_to_ptr.vmem [resolvable:$true] %s111_s1  ;;  %s133_s21 = int_to_ptr.vmem [resolvable:$true] %s132_s21 }
  0x3e   :  { %s10591_s25 = scalar_lea.hbm %s12920_s7, 64 }
  0x3f   :  { %p10592_p10 = scmp.ne.s32.totalorder %s12920_s7, %s10591_s25  ;;  %p10595_p11 = scmp.lt.u32.totalorder %s10591_s25, %s12920_s7 }
  0x41   :  { %p10597_p12 = pnand %p10595_p11, %p10592_p10 }
  0x43   :  { %10600 = shalt.err (!%p10597_p12)
}
  0x44   :  { %s10601_s5 = scalar_lea.vmem %s112_s1, 64  ;;  %p10606_p0 = scmp.lt.s32.totalorder %s112_s1, %s112_s1 }
  0x45   :  { %p10602_p13 = scmp.ne.s32.totalorder %s112_s1, %s10601_s5  ;;  %p10607_p1 = scmp.lt.s32.totalorder %s10601_s5, %s10601_s5 }
  0x47   :  { %p10608_p2 = por %p10607_p1, %p10606_p0 }
  0x49   :  { %p10609_p3 = pnand %p10608_p2, %p10602_p13 }
  0x4b   :  { %10612 = shalt.err (!%p10609_p3)
}
  0x4c   :  { %114 = dma.hbm_to_vmem [thread:$0]  %s12920_s7, 64, %s112_s1, [#allocation16]  }
  0x4d   :  { %s10613_s19 = scalar_lea.hbm %s12922_s9, 8192 }
  0x4e   :  { %p10614_p4 = scmp.ne.s32.totalorder %s12922_s9, %s10613_s19  ;;  %p10617_p5 = scmp.lt.u32.totalorder %s10613_s19, %s12922_s9 }
  0x50   :  { %p10619_p6 = pnand %p10617_p5, %p10614_p4 }
  0x52   :  { %10622 = shalt.err (!%p10619_p6)
}
  0x53   :  { %s10623_s23 = scalar_lea.vmem %s133_s21, 8192  ;;  %p10628_p8 = scmp.lt.s32.totalorder %s133_s21, %s133_s21 }
  0x54   :  { %p10624_p7 = scmp.ne.s32.totalorder %s133_s21, %s10623_s23  ;;  %p10629_p9 = scmp.lt.s32.totalorder %s10623_s23, %s10623_s23 }
  0x56   :  { %p10630_p10 = por %p10629_p9, %p10628_p8 }
  0x58   :  { %p10631_p11 = pnand %p10630_p10, %p10624_p7 }
  0x5a   :  { %10634 = shalt.err (!%p10631_p11)
}
  0x5b   :  { %138 = dma.hbm_to_vmem [thread:$0]  %s12922_s9, 8192, %s133_s21, [#allocation19], %s10854_s3, %s10854_s3, %s10855_s18  }
  0x5c   :  { %s10858_s25 = smov [#allocation21]   ;;  %s10859_s27 = smov [#allocation3]  }
  0x5d   :  { %s156_s26 = sshll.u32 %s10858_s25, 4  ;;  %s35_s28 = sshll.u32 %s10859_s27, 4  ;;  %s157_s26 = int_to_ptr.vmem [resolvable:$true] %s156_s26  ;;  %s36_s28 = int_to_ptr.vmem [resolvable:$true] %s35_s28 }
  0x5e   :  { %s10635_s24 = scalar_lea.hbm %s12924_s11, 4096 }
  0x5f   :  { %p10636_p12 = scmp.ne.s32.totalorder %s12924_s11, %s10635_s24  ;;  %p10639_p13 = scmp.lt.u32.totalorder %s10635_s24, %s12924_s11 }
  0x61   :  { %p10641_p0 = pnand %p10639_p13, %p10636_p12 }
  0x63   :  { %10644 = shalt.err (!%p10641_p0)
}
  0x64   :  { %s10645_s9 = scalar_lea.vmem %s157_s26, 4096  ;;  %p10650_p2 = scmp.lt.s32.totalorder %s157_s26, %s157_s26 }
  0x65   :  { %p10646_p1 = scmp.ne.s32.totalorder %s157_s26, %s10645_s9  ;;  %p10651_p3 = scmp.lt.s32.totalorder %s10645_s9, %s10645_s9 }
  0x67   :  { %p10652_p4 = por %p10651_p3, %p10650_p2 }
  0x69   :  { %p10653_p5 = pnand %p10652_p4, %p10646_p1 }
  0x6b   :  { %10656 = shalt.err (!%p10653_p5)
}
  0x6c   :  { %162 = dma.hbm_to_vmem [thread:$0]  %s12924_s11, 4096, %s157_s26, [#allocation22], %s10854_s3, %s10854_s3, %s10855_s18  }
  0x6d   :  { %s10657_s22 = scalar_lea.hbm %s12913_s0, 128 }
  0x6e   :  { %p10658_p6 = scmp.ne.s32.totalorder %s12913_s0, %s10657_s22  ;;  %p10661_p7 = scmp.lt.u32.totalorder %s10657_s22, %s12913_s0 }
  0x70   :  { %p10663_p8 = pnand %p10661_p7, %p10658_p6 }
  0x72   :  { %10666 = shalt.err (!%p10663_p8)
}
  0x73   :  { %s10667_s27 = scalar_lea.vmem %s36_s28, 128  ;;  %p10672_p10 = scmp.lt.s32.totalorder %s36_s28, %s36_s28 }
  0x74   :  { %p10668_p9 = scmp.ne.s32.totalorder %s36_s28, %s10667_s27  ;;  %p10673_p11 = scmp.lt.s32.totalorder %s10667_s27, %s10667_s27 }
  0x76   :  { %p10674_p12 = por %p10673_p11, %p10672_p10 }
  0x78   :  { %p10675_p13 = pnand %p10674_p12, %p10668_p9 }
  0x7a   :  { %10678 = shalt.err (!%p10675_p13)
}
  0x7b   :  { %38 = dma.hbm_to_vmem [thread:$0]  %s12913_s0, 128, %s36_s28, [#allocation4]  }
  0x7c   :  { %s10860_s29 = smov [#allocation8]   ;;  %s10861_s24 = smov [#allocation11]  }
  0x7d   :  { %s55_s5 = sshll.u32 %s10860_s29, 4  ;;  %s76_s30 = sshll.u32 %s10861_s24, 4  ;;  %s56_s5 = int_to_ptr.vmem [resolvable:$true] %s55_s5  ;;  %s77_s30 = int_to_ptr.vmem [resolvable:$true] %s76_s30 }
  0x7e   :  { %s10679_s19 = scalar_lea.hbm %s12915_s2, 64 }
  0x7f   :  { %p10680_p0 = scmp.ne.s32.totalorder %s12915_s2, %s10679_s19  ;;  %p10683_p1 = scmp.lt.u32.totalorder %s10679_s19, %s12915_s2 }
  0x81   :  { %p10685_p2 = pnand %p10683_p1, %p10680_p0 }
  0x83   :  { %10688 = shalt.err (!%p10685_p2)
}
  0x84   :  { %s10689_s0 = scalar_lea.vmem %s56_s5, 64  ;;  %p10694_p4 = scmp.lt.s32.totalorder %s56_s5, %s56_s5 }
  0x85   :  { %p10690_p3 = scmp.ne.s32.totalorder %s56_s5, %s10689_s0  ;;  %p10695_p5 = scmp.lt.s32.totalorder %s10689_s0, %s10689_s0 }
  0x87   :  { %p10696_p6 = por %p10695_p5, %p10694_p4 }
  0x89   :  { %p10697_p7 = pnand %p10696_p6, %p10690_p3 }
  0x8b   :  { %10700 = shalt.err (!%p10697_p7)
}
  0x8c   :  { %58 = dma.hbm_to_vmem [thread:$0]  %s12915_s2, 64, %s56_s5, [#allocation7]  }
  0x8d   :  { %s10701_s7 = scalar_lea.hbm %s12917_s4, 8192 }
  0x8e   :  { %p10702_p8 = scmp.ne.s32.totalorder %s12917_s4, %s10701_s7  ;;  %p10705_p9 = scmp.lt.u32.totalorder %s10701_s7, %s12917_s4 }
  0x90   :  { %p10707_p10 = pnand %p10705_p9, %p10702_p8 }
  0x92   :  { %10710 = shalt.err (!%p10707_p10)
}
  0x93   :  { %s10711_s26 = scalar_lea.vmem %s77_s30, 8192  ;;  %p10716_p12 = scmp.lt.s32.totalorder %s77_s30, %s77_s30 }
  0x94   :  { %p10712_p11 = scmp.ne.s32.totalorder %s77_s30, %s10711_s26  ;;  %p10717_p13 = scmp.lt.s32.totalorder %s10711_s26, %s10711_s26 }
  0x96   :  { %p10718_p0 = por %p10717_p13, %p10716_p12 }
  0x98   :  { %p10719_p1 = pnand %p10718_p0, %p10712_p11 }
  0x9a   :  { %10722 = shalt.err (!%p10719_p1)
}
  0x9b   :  { %s10862_s2 = smov 256   ;;  %s10863_s29 = smov 16  }
  0x9c   :  { %82 = dma.hbm_to_vmem [thread:$0]  %s12917_s4, 8192, %s77_s30, [#allocation10], %s10862_s2, %s10862_s2, %s10863_s29  }
  0x9d   :  { %s10864_s15 = smov [#allocation14]   ;;  %s10865_s19 = smov [#allocation17]  }
  0x9e   :  { %s101_s17 = sshll.u32 %s10864_s15, 4  ;;  %s120_s9 = sshll.u32 %s10865_s19, 4  ;;  %s102_s17 = int_to_ptr.vmem [resolvable:$true] %s101_s17  ;;  %s121_s9 = int_to_ptr.vmem [resolvable:$true] %s120_s9 }
  0x9f   :  { %s10723_s13 = scalar_lea.hbm %s12919_s6, 128 }
  0xa0   :  { %p10724_p2 = scmp.ne.s32.totalorder %s12919_s6, %s10723_s13  ;;  %p10727_p3 = scmp.lt.u32.totalorder %s10723_s13, %s12919_s6 }
  0xa2   :  { %p10729_p4 = pnand %p10727_p3, %p10724_p2 }
  0xa4   :  { %10732 = shalt.err (!%p10729_p4)
}
  0xa5   :  { %s10733_s4 = scalar_lea.vmem %s102_s17, 128  ;;  %p10738_p6 = scmp.lt.s32.totalorder %s102_s17, %s102_s17 }
  0xa6   :  { %p10734_p5 = scmp.ne.s32.totalorder %s102_s17, %s10733_s4  ;;  %p10739_p7 = scmp.lt.s32.totalorder %s10733_s4, %s10733_s4 }
  0xa8   :  { %p10740_p8 = por %p10739_p7, %p10738_p6 }
  0xaa   :  { %p10741_p9 = pnand %p10740_p8, %p10734_p5 }
  0xac   :  { %10744 = shalt.err (!%p10741_p9)
}
  0xad   :  { %104 = dma.hbm_to_vmem [thread:$0]  %s12919_s6, 128, %s102_s17, [#allocation13]  }
  0xae   :  { %s10745_s25 = scalar_lea.hbm %s12921_s8, 32768 }
  0xaf   :  { %p10746_p10 = scmp.ne.s32.totalorder %s12921_s8, %s10745_s25  ;;  %p10749_p11 = scmp.lt.u32.totalorder %s10745_s25, %s12921_s8 }
  0xb1   :  { %p10751_p12 = pnand %p10749_p11, %p10746_p10 }
  0xb3   :  { %10754 = shalt.err (!%p10751_p12)
}
  0xb4   :  { %s10755_s24 = scalar_lea.vmem %s121_s9, 32768  ;;  %p10760_p0 = scmp.lt.s32.totalorder %s121_s9, %s121_s9 }
  0xb5   :  { %p10756_p13 = scmp.ne.s32.totalorder %s121_s9, %s10755_s24  ;;  %p10761_p1 = scmp.lt.s32.totalorder %s10755_s24, %s10755_s24 }
  0xb7   :  { %p10762_p2 = por %p10761_p1, %p10760_p0 }
  0xb9   :  { %p10763_p3 = pnand %p10762_p2, %p10756_p13 }
  0xbb   :  { %10766 = shalt.err (!%p10763_p3)
}
  0xbc   :  { %s10866_s6 = smov 512   ;;  %s10867_s15 = smov 32  }
  0xbd   :  { %126 = dma.hbm_to_vmem [thread:$0]  %s12921_s8, 32768, %s121_s9, [#allocation16], %s10866_s6, %s10866_s6, %s10867_s15  }
  0xbe   :  { %s10868_s21 = smov [#allocation20]   ;;  %s10869_s13 = smov [#allocation23]  }
  0xbf   :  { %s144_s20 = sshll.u32 %s10868_s21, 4  ;;  %s168_s0 = sshll.u32 %s10869_s13, 4  ;;  %s145_s20 = int_to_ptr.vmem [resolvable:$true] %s144_s20  ;;  %s169_s0 = int_to_ptr.vmem [resolvable:$true] %s168_s0 }
  0xc0   :  { %s10767_s22 = scalar_lea.hbm %s12923_s10, 8192 }
  0xc1   :  { %p10768_p4 = scmp.ne.s32.totalorder %s12923_s10, %s10767_s22  ;;  %p10771_p5 = scmp.lt.u32.totalorder %s10767_s22, %s12923_s10 }
  0xc3   :  { %p10773_p6 = pnand %p10771_p5, %p10768_p4 }
  0xc5   :  { %10776 = shalt.err (!%p10773_p6)
}
  0xc6   :  { %s10777_s8 = scalar_lea.vmem %s145_s20, 8192  ;;  %p10782_p8 = scmp.lt.s32.totalorder %s145_s20, %s145_s20 }
  0xc7   :  { %p10778_p7 = scmp.ne.s32.totalorder %s145_s20, %s10777_s8  ;;  %p10783_p9 = scmp.lt.s32.totalorder %s10777_s8, %s10777_s8 }
  0xc9   :  { %p10784_p10 = por %p10783_p9, %p10782_p8 }
  0xcb   :  { %p10785_p11 = pnand %p10784_p10, %p10778_p7 }
  0xcd   :  { %10788 = shalt.err (!%p10785_p11)
}
  0xce   :  { %150 = dma.hbm_to_vmem [thread:$0]  %s12923_s10, 8192, %s145_s20, [#allocation19], %s10862_s2, %s10862_s2, %s10863_s29  }
  0xcf   :  { %s10789_s11 = scalar_lea.hbm %s12925_s12, 4096 }
  0xd0   :  { %p10790_p12 = scmp.ne.s32.totalorder %s12925_s12, %s10789_s11  ;;  %p10793_p13 = scmp.lt.u32.totalorder %s10789_s11, %s12925_s12 }
  0xd2   :  { %p10795_p0 = pnand %p10793_p13, %p10790_p12 }
  0xd4   :  { %10798 = shalt.err (!%p10795_p0)
}
  0xd5   :  { %s10799_s15 = scalar_lea.vmem %s169_s0, 4096  ;;  %p10804_p2 = scmp.lt.s32.totalorder %s169_s0, %s169_s0 }
  0xd6   :  { %p10800_p1 = scmp.ne.s32.totalorder %s169_s0, %s10799_s15  ;;  %p10805_p3 = scmp.lt.s32.totalorder %s10799_s15, %s10799_s15 }
  0xd8   :  { %p10806_p4 = por %p10805_p3, %p10804_p2 }
  0xda   :  { %p10807_p5 = pnand %p10806_p4, %p10800_p1 }
  0xdc   :  { %10810 = shalt.err (!%p10807_p5)
}
  0xdd   :  { %174 = dma.hbm_to_vmem [thread:$0]  %s12925_s12, 4096, %s169_s0, [#allocation22], %s10854_s3, %s10854_s3, %s10855_s18  }
  0xde   :  { %10833 = dma.done.wait [#allocation4], 128  }
  0xdf   :  { %10834 = vsyncadd [#allocation4], 4294967168 }
  0xe0   :  { %10835 = dma.done.wait [#allocation7], 192  }
  0xe1   :  { %10836 = vsyncadd [#allocation7], 4294967104 }
  0xe2   :  { %10837 = dma.done.wait [#allocation10], 20480  }
  0xe3   :  { %10838 = vsyncadd [#allocation10], 4294946816 }
  0xe4   :  { %10839 = dma.done.wait [#allocation13], 4224  }
  0xe5   :  { %10840 = vsyncadd [#allocation13], 4294963072 }
  0xe6   :  { %10841 = dma.done.wait [#allocation16], 32832  }
  0xe7   :  { %10842 = vsyncadd [#allocation16], 4294934464 }
  0xe8   :  { %10843 = dma.done.wait [#allocation19], 16384  }
  0xe9   :  { %10844 = vsyncadd [#allocation19], 4294950912 }
  0xea   :  { %10845 = dma.done.wait [#allocation22], 8192  }
  0xeb   :  { %10846 = vsyncadd [#allocation22], 4294959104  ;;  %v218_v1 = vld [vmem:[#allocation3] sm:$0xff]  ;;  %vm220_vm0 = vcmask 261120   ;;  %vm896_vm1 = vcmask 269312   ;;  %v9594_v3 = vld [vmem:[#allocation9] sm:$0xff]  }
  0xec   :  { %v219_v2 = vpack.c.bf16 %v218_v1, %v218_v1  ;;  %8927 = vmatprep.mubr.msk.bf16.mxu0 %vm896_vm1, %v9594_v3  ;;  %v9595_v6 = vld [vmem:[#allocation9 + $0x8] sm:$0xff]   ;;  %v9596_v7 = vld [vmem:[#allocation9 + $0x10] sm:$0xff]   ;;  %v9597_v8 = vld [vmem:[#allocation9 + $0x18] sm:$0xff]   ;;  %v12928_v36 = vmov 0   ;;  %vm7613_vm2 = vcmask 64512   ;;  %vm7736_vm3 = vcmask 60416  }
  0xed   :  { %v9598_v9 = vld [vmem:[#allocation9 + $0x20] sm:$0xff]   ;;  %v9599_v10 = vld [vmem:[#allocation9 + $0x28] sm:$0xff]   ;;  %v9600_v11 = vld [vmem:[#allocation9 + $0x30] sm:$0xff]   ;;  %9592 = vset.pattern.permute.xlu0 %v12928_v36  ;;  %9593 = vset.pattern.permute.xlu1 %v12928_v36  ;;  %s10871_s12 = smov [#allocation24]   ;;  %vm7744_vm4 = vcmask 1040384   ;;  %vm7746_vm5 = vcmask 58368  }
  0xee   :  { %v223_v4 = vsel %vm220_vm0, %v219_v2, 1065369472  ;;  %v9601_v12 = vld [vmem:[#allocation9 + $0x38] sm:$0xff]   ;;  %v9602_v13 = vld [vmem:[#allocation9 + $0x40] sm:$0xff]   ;;  %v9603_v14 = vld [vmem:[#allocation9 + $0x48] sm:$0xff]   ;;  %s7754_s3 = sshll.u32 %s10871_s12, 4  ;;  %s7755_s3 = int_to_ptr.vmem [resolvable:$true] %s7754_s3 }
  0xef   :  { %9567 = vmatprep.subr.msk.bf16.mxu0 %vm896_vm1, %v223_v4  ;;  %v1185_v5 = vsel %vm896_vm1, %v223_v4, 0  ;;  %v9604_v15 = vld [vmem:[#allocation9 + $0x50] sm:$0xff]   ;;  %v9605_v16 = vld [vmem:[#allocation9 + $0x58] sm:$0xff]   ;;  %v9606_v17 = vld [vmem:[#allocation9 + $0x60] sm:$0xff]   ;;  %s10811_s18 = scalar_lea.vmem %s7755_s3, 32  ;;  %p10816_p7 = scmp.lt.s32.totalorder %s7755_s3, %s7755_s3 }
  0xf0   :  { %8926 = vmatpush3.bf16.xpose.msra.mxu0 %v1185_v5  ;;  %v9607_v18 = vld [vmem:[#allocation9 + $0x68] sm:$0xff]   ;;  %v9608_v19 = vld [vmem:[#allocation9 + $0x70] sm:$0xff]   ;;  %v9609_v20 = vld [vmem:[#allocation9 + $0x78] sm:$0xff]   ;;  %p10812_p6 = scmp.ne.s32.totalorder %s7755_s3, %s10811_s18  ;;  %p10817_p8 = scmp.lt.s32.totalorder %s10811_s18, %s10811_s18 }
  0xf1   :  { %v9610_v21 = vld [vmem:[#allocation9 + $0x80] sm:$0xff]   ;;  %v9611_v22 = vld [vmem:[#allocation9 + $0x88] sm:$0xff]   ;;  %v9612_v23 = vld [vmem:[#allocation9 + $0x90] sm:$0xff]   ;;  %5207 = vmatprep.subr.bf16.mxu0 %v12928_v36 }
  0xf2   :  { %v9613_v24 = vld [vmem:[#allocation9 + $0x98] sm:$0xff]   ;;  %v9614_v25 = vld [vmem:[#allocation9 + $0xa0] sm:$0xff]   ;;  %v9615_v26 = vld [vmem:[#allocation9 + $0xa8] sm:$0xff]   ;;  %p10818_p9 = por %p10817_p8, %p10816_p7 }
  0xf3   :  { %v9616_v27 = vld [vmem:[#allocation9 + $0xb0] sm:$0xff]   ;;  %v9617_v28 = vld [vmem:[#allocation9 + $0xb8] sm:$0xff]   ;;  %v9618_v29 = vld [vmem:[#allocation9 + $0xc0] sm:$0xff]  }
  0xf4   :  { %v9619_v30 = vld [vmem:[#allocation9 + $0xc8] sm:$0xff]   ;;  %v9620_v31 = vld [vmem:[#allocation9 + $0xd0] sm:$0xff]   ;;  %v9621_v32 = vld [vmem:[#allocation9 + $0xd8] sm:$0xff]   ;;  %p10819_p10 = pnand %p10818_p9, %p10812_p6 }
  0xf5   :  { %v9622_v33 = vld [vmem:[#allocation9 + $0xe0] sm:$0xff]   ;;  %v9623_v34 = vld [vmem:[#allocation9 + $0xe8] sm:$0xff]   ;;  %v9624_v35 = vld [vmem:[#allocation9 + $0xf0] sm:$0xff]  }
  0xf6   :  { %v2292_v37 = vld [vmem:[#allocation12 + $0x80] sm:$0xff]  ;;  %v9625_v38 = vld [vmem:[#allocation9 + $0xf8] sm:$0xff]   ;;  %v2293_v40 = vld [vmem:[#allocation12 + $0x88] sm:$0xff] }
  0xf7   :  { %8928 = vmatmul.mubr.msk.bf16.vlgmr.msra.gmra.mrb[0].mxu0 %vm896_vm1, %v9595_v6  ;;  %2390 = vperm.xlu0 %9592, %v2292_v37   ;;  %v9626_v39 = vld [vmem:[#allocation9 + $0x100] sm:$0xff]   ;;  %v2294_v42 = vld [vmem:[#allocation12 + $0x90] sm:$0xff]  ;;  %v2277_v43 = vld [vmem:[#allocation12 + $0x8] sm:$0xff] }
  0xf8   :  { %8931 = vmatprep.mubr.msk.bf16.mxu0 %vm896_vm1, %v9596_v7  ;;  %v2276_v41 = vld [vmem:[#allocation12] sm:$0xff]  ;;  %v9627_v44 = vld [vmem:[#allocation9 + $0x108] sm:$0xff]   ;;  %v9628_v45 = vld [vmem:[#allocation9 + $0x110] sm:$0xff]  }
  0xf9   :  { %2310 = vperm.xlu1 %9593, %v2276_v41   ;;  %v2278_v46 = vld [vmem:[#allocation12 + $0x10] sm:$0xff]  ;;  %v2295_v47 = vld [vmem:[#allocation12 + $0x98] sm:$0xff]  ;;  %v2296_v48 = vld [vmem:[#allocation12 + $0xa0] sm:$0xff] }
  0xfa   :  { %v2279_v49 = vld [vmem:[#allocation12 + $0x18] sm:$0xff]  ;;  %v9630_v51 = vld [vmem:[#allocation9 + $0x120] sm:$0xff]   ;;  %v2297_v53 = vld [vmem:[#allocation12 + $0xa8] sm:$0xff] }
  0xfb   :  { %2395 = vperm.xlu0 %9592, %v2293_v40   ;;  %v9629_v50 = vld [vmem:[#allocation9 + $0x118] sm:$0xff]   ;;  %v2280_v52 = vld [vmem:[#allocation12 + $0x20] sm:$0xff]  ;;  %v2298_v54 = vld [vmem:[#allocation12 + $0xb0] sm:$0xff] }
  0xfc   :  { %v2281_v55 = vld [vmem:[#allocation12 + $0x28] sm:$0xff]  ;;  %v9632_v57 = vld [vmem:[#allocation9 + $0x130] sm:$0xff]   ;;  %v2299_v59 = vld [vmem:[#allocation12 + $0xb8] sm:$0xff] }
  0xfd   :  { %2315 = vperm.xlu1 %9593, %v2277_v43   ;;  %v9631_v56 = vld [vmem:[#allocation9 + $0x128] sm:$0xff]   ;;  %v2282_v58 = vld [vmem:[#allocation12 + $0x30] sm:$0xff]  ;;  %v2300_v60 = vld [vmem:[#allocation12 + $0xc0] sm:$0xff] }
  0xfe   :  { %v2283_v61 = vld [vmem:[#allocation12 + $0x38] sm:$0xff]  ;;  %v9634_v63 = vld [vmem:[#allocation9 + $0x140] sm:$0xff]   ;;  %v2301_v1 = vld [vmem:[#allocation12 + $0xc8] sm:$0xff] }
  0xff   :  { %8932 = vmatmul.mubr.msk.bf16.gmra.mrb[4].mxu0 %vm896_vm1, %v9597_v8  ;;  %2400 = vperm.xlu0 %9592, %v2294_v42   ;;  %v9633_v62 = vld [vmem:[#allocation9 + $0x138] sm:$0xff]   ;;  %v2284_v0 = vld [vmem:[#allocation12 + $0x40] sm:$0xff]  ;;  %v2302_v2 = vld [vmem:[#allocation12 + $0xd0] sm:$0xff] }
 0x100   :  { %8935 = vmatprep.mubr.msk.bf16.mxu0 %vm896_vm1, %v9598_v9  ;;  %v2285_v3 = vld [vmem:[#allocation12 + $0x48] sm:$0xff]  ;;  %v9636_v5 = vld [vmem:[#allocation9 + $0x150] sm:$0xff]   ;;  %v2303_v7 = vld [vmem:[#allocation12 + $0xd8] sm:$0xff] }
 0x101   :  { %2405 = vperm.xlu1 %9593, %v2295_v47   ;;  %v9635_v4 = vld [vmem:[#allocation9 + $0x148] sm:$0xff]   ;;  %v2286_v6 = vld [vmem:[#allocation12 + $0x50] sm:$0xff]  ;;  %v2304_v9 = vld [vmem:[#allocation12 + $0xe0] sm:$0xff] }
 0x102   :  { %v9662_v8 = vld [vmem:[#allocation11 + $0x4] ss:$16 sps:$4 sm:$0xff]   ;;  %v3565_v40 = vld [vmem:[#allocation18 + $0xb0] sm:$0xff]  ;;  %v9647_v42 = vld [vmem:[#allocation9 + $0x1a8] sm:$0xff]  }
 0x103   :  { %2320 = vperm.xlu0 %9592, %v2278_v46   ;;  %2820 = vmatprep.mubr.bf16.mxu1 %v9662_v8  ;;  %v9646_v37 = vld [vmem:[#allocation9 + $0x1a0] sm:$0xff]   ;;  %v3548_v41 = vld [vmem:[#allocation18 + $0x28] sm:$0xff]  ;;  %v3567_v47 = vld [vmem:[#allocation18 + $0xc0] sm:$0xff] }
 0x104   :  { %v9648_v43 = vld [vmem:[#allocation9 + $0x1b0] sm:$0xff]  }
 0x105   :  { %2325 = vperm.xlu1 %9593, %v2279_v49  }
 0x107   :  { %8936 = vmatmul.mubr.msk.bf16.gmra.mrb[8].mxu0 %vm896_vm1, %v9599_v10  ;;  %2410 = vperm.xlu0 %9592, %v2296_v48   ;;  %v2287_v10 = vld [vmem:[#allocation12 + $0x58] sm:$0xff]  ;;  %v3550_v48 = vld [vmem:[#allocation18 + $0x38] sm:$0xff] }
 0x108   :  { %8939 = vmatprep.mubr.msk.bf16.mxu0 %vm896_vm1, %v9600_v11  ;;  %v9637_v11 = vld [vmem:[#allocation9 + $0x158] sm:$0xff]  }
 0x109   :  { %2415 = vperm.xlu1 %9593, %v2297_v53  }
 0x10b   :  { %2330 = vperm.xlu0 %9592, %v2280_v52   ;;  %v9650_v52 = vld [vmem:[#allocation9 + $0x1c0] sm:$0xff]  }
 0x10d   :  { %2335 = vperm.xlu1 %9593, %v2281_v55   ;;  %v3568_v55 = vld [vmem:[#allocation18 + $0xc8] sm:$0xff] }
 0x10f   :  { %8940 = vmatmul.mubr.msk.bf16.gmra.mrb[12].mxu0 %vm896_vm1, %v9601_v12  ;;  %2420 = vperm.xlu0 %9592, %v2298_v54   ;;  %v9638_v12 = vld [vmem:[#allocation9 + $0x160] sm:$0xff]   ;;  %v3551_v54 = vld [vmem:[#allocation18 + $0x40] sm:$0xff] }
 0x110   :  { %8943 = vmatprep.mubr.msk.bf16.mxu0 %vm896_vm1, %v9602_v13  ;;  %v2288_v13 = vld [vmem:[#allocation12 + $0x60] sm:$0xff] }
 0x111   :  { %2425 = vperm.xlu1 %9593, %v2299_v59  }
 0x113   :  { %2340 = vperm.xlu0 %9592, %v2282_v58   ;;  %v3552_v58 = vld [vmem:[#allocation18 + $0x48] sm:$0xff] }
 0x115   :  { %2345 = vperm.xlu1 %9593, %v2283_v61  }
 0x117   :  { %8944 = vmatmul.mubr.msk.bf16.gmra.mrb[16].mxu0 %vm896_vm1, %v9603_v14  ;;  %2430 = vperm.xlu0 %9592, %v2300_v60   ;;  %v2305_v14 = vld [vmem:[#allocation12 + $0xe8] sm:$0xff] }
 0x118   :  { %8947 = vmatprep.mubr.msk.bf16.mxu0 %vm896_vm1, %v9604_v15  ;;  %v2306_v15 = vld [vmem:[#allocation12 + $0xf0] sm:$0xff]  ;;  %v9651_v60 = vld [vmem:[#allocation9 + $0x1c8] sm:$0xff]  }
 0x119   :  { %2435 = vperm.xlu1 %9593, %v2301_v1  }
 0x11b   :  { %2350 = vperm.xlu0 %9592, %v2284_v0  }
 0x11d   :  { %2355 = vperm.xlu1 %9593, %v2285_v3   ;;  %v3570_v3 = vld [vmem:[#allocation18 + $0xd8] sm:$0xff] }
 0x11f   :  { %8948 = vmatmul.mubr.msk.bf16.gmra.mrb[20].mxu0 %vm896_vm1, %v9605_v16  ;;  %2440 = vperm.xlu0 %9592, %v2302_v2   ;;  %v2289_v16 = vld [vmem:[#allocation12 + $0x68] sm:$0xff]  ;;  %v3553_v2 = vld [vmem:[#allocation18 + $0x50] sm:$0xff] }
 0x120   :  { %8951 = vmatprep.mubr.msk.bf16.mxu0 %vm896_vm1, %v9606_v17  ;;  %v9639_v17 = vld [vmem:[#allocation9 + $0x168] sm:$0xff]  }
 0x121   :  { %2445 = vperm.xlu1 %9593, %v2303_v7  }
 0x123   :  { %2360 = vperm.xlu0 %9592, %v2286_v6  }
 0x125   :  { %2365 = vperm.xlu1 %9593, %v2287_v10   ;;  %v3554_v10 = vld [vmem:[#allocation18 + $0x58] sm:$0xff] }
 0x127   :  { %8952 = vmatmul.mubr.msk.bf16.gmra.mrb[24].mxu0 %vm896_vm1, %v9607_v18  ;;  %2450 = vperm.xlu0 %9592, %v2304_v9   ;;  %v9640_v18 = vld [vmem:[#allocation9 + $0x170] sm:$0xff]  }
 0x128   :  { %8955 = vmatprep.mubr.msk.bf16.mxu0 %vm896_vm1, %v9608_v19  ;;  %v2290_v19 = vld [vmem:[#allocation12 + $0x70] sm:$0xff] }
 0x129   :  { %2455 = vperm.xlu1 %9593, %v2305_v14   ;;  %v3571_v9 = vld [vmem:[#allocation18 + $0xe0] sm:$0xff]  ;;  %v9654_v14 = vld [vmem:[#allocation9 + $0x1e0] sm:$0xff]  }
 0x12b   :  { %2370 = vperm.xlu0 %9592, %v2288_v13  }
 0x12d   :  { %2375 = vperm.xlu1 %9593, %v2289_v16  }
 0x12f   :  { %8956 = vmatmul.mubr.msk.bf16.gmra.mrb[28].mxu0 %vm896_vm1, %v9609_v20  ;;  %2460 = vperm.xlu0 %9592, %v2306_v15   ;;  %v2307_v20 = vld [vmem:[#allocation12 + $0xf8] sm:$0xff] }
 0x130   :  { %8959 = vmatprep.mubr.msk.bf16.mxu0 %vm896_vm1, %v9610_v21  ;;  %v3559_v21 = vld [vmem:[#allocation18 + $0x80] sm:$0xff] }
 0x131   :  { %2465 = vperm.xlu1 %9593, %v2307_v20  }
 0x133   :  { %2380 = vperm.xlu0 %9592, %v2290_v19   ;;  %v3572_v19 = vld [vmem:[#allocation18 + $0xe8] sm:$0xff] }
 0x137   :  { %8960 = vmatmul.mubr.msk.bf16.gmra.mrb[32].mxu0 %vm896_vm1, %v9611_v22  ;;  %v2291_v22 = vld [vmem:[#allocation12 + $0x78] sm:$0xff]  ;;  %3689 = vperm.xlu0 %9592, %v3559_v21  }
 0x138   :  { %8963 = vmatprep.mubr.msk.bf16.mxu0 %vm896_vm1, %v9612_v23  ;;  %v9641_v23 = vld [vmem:[#allocation9 + $0x178] sm:$0xff]   ;;  %2385 = vperm.xlu1 %9593, %v2291_v22  }
 0x13f   :  { %8964 = vmatmul.mubr.msk.bf16.gmra.mrb[36].mxu0 %vm896_vm1, %v9613_v24  ;;  %v9642_v24 = vld [vmem:[#allocation9 + $0x180] sm:$0xff]  }
 0x140   :  { %8967 = vmatprep.mubr.msk.bf16.mxu0 %vm896_vm1, %v9614_v25  ;;  %v3543_v25 = vld [vmem:[#allocation18] sm:$0xff] }
 0x141   :  { %3609 = vperm.xlu0 %9592, %v3543_v25   ;;  %v3573_v25 = vld [vmem:[#allocation18 + $0xf0] sm:$0xff] }
 0x147   :  { %8968 = vmatmul.mubr.msk.bf16.gmra.mrb[40].mxu0 %vm896_vm1, %v9615_v26  ;;  %v3560_v26 = vld [vmem:[#allocation18 + $0x88] sm:$0xff] }
 0x148   :  { %8971 = vmatprep.mubr.msk.bf16.mxu0 %vm896_vm1, %v9616_v27  ;;  %3694 = vperm.xlu1 %9593, %v3560_v26   ;;  %v3561_v27 = vld [vmem:[#allocation18 + $0x90] sm:$0xff]  ;;  %v3556_v26 = vld [vmem:[#allocation18 + $0x68] sm:$0xff] }
 0x149   :  { %3699 = vperm.xlu0 %9592, %v3561_v27  }
 0x14f   :  { %8972 = vmatmul.mubr.msk.bf16.gmra.mrb[44].mxu0 %vm896_vm1, %v9617_v28  ;;  %v3544_v28 = vld [vmem:[#allocation18 + $0x8] sm:$0xff] }
 0x150   :  { %8975 = vmatprep.mubr.msk.bf16.mxu0 %vm896_vm1, %v9618_v29  ;;  %v9643_v29 = vld [vmem:[#allocation9 + $0x188] sm:$0xff]   ;;  %3614 = vperm.xlu1 %9593, %v3544_v28  }
 0x151   :  { %v9655_v28 = vld [vmem:[#allocation9 + $0x1e8] sm:$0xff]  }
 0x157   :  { %8976 = vmatmul.mubr.msk.bf16.gmra.mrb[48].mxu0 %vm896_vm1, %v9619_v30  ;;  %v9644_v30 = vld [vmem:[#allocation9 + $0x190] sm:$0xff]  }
 0x158   :  { %8979 = vmatprep.mubr.msk.bf16.mxu0 %vm896_vm1, %v9620_v31  ;;  %v3545_v31 = vld [vmem:[#allocation18 + $0x10] sm:$0xff] }
 0x159   :  { %3619 = vperm.xlu0 %9592, %v3545_v31  }
 0x15f   :  { %8980 = vmatmul.mubr.msk.bf16.gmra.mrb[52].mxu0 %vm896_vm1, %v9621_v32  ;;  %v3562_v32 = vld [vmem:[#allocation18 + $0x98] sm:$0xff] }
 0x160   :  { %8983 = vmatprep.mubr.msk.bf16.mxu0 %vm896_vm1, %v9622_v33  ;;  %3704 = vperm.xlu1 %9593, %v3562_v32   ;;  %v3563_v33 = vld [vmem:[#allocation18 + $0xa0] sm:$0xff] }
 0x161   :  { %3709 = vperm.xlu0 %9592, %v3563_v33  }
 0x167   :  { %8984 = vmatmul.mubr.msk.bf16.gmra.mrb[56].mxu0 %vm896_vm1, %v9623_v34  ;;  %v3546_v34 = vld [vmem:[#allocation18 + $0x18] sm:$0xff] }
 0x168   :  { %8987 = vmatprep.mubr.msk.bf16.mxu0 %vm896_vm1, %v9624_v35  ;;  %v9645_v35 = vld [vmem:[#allocation9 + $0x198] sm:$0xff]   ;;  %3624 = vperm.xlu1 %9593, %v3546_v34  }
 0x169   :  { %v3557_v34 = vld [vmem:[#allocation18 + $0x70] sm:$0xff] }
 0x16f   :  { %8988 = vmatmul.mubr.msk.bf16.gmra.mrb[60].mxu0 %vm896_vm1, %v9625_v38  ;;  %v3547_v38 = vld [vmem:[#allocation18 + $0x20] sm:$0xff] }
 0x170   :  { %8991 = vmatprep.mubr.msk.bf16.mxu0 %vm896_vm1, %v9626_v39  ;;  %v3564_v39 = vld [vmem:[#allocation18 + $0xa8] sm:$0xff]  ;;  %3629 = vperm.xlu0 %9592, %v3547_v38  }
 0x171   :  { %3714 = vperm.xlu1 %9593, %v3564_v39  }
 0x174   :  { %3719 = vperm.xlu0 %9592, %v3565_v40  }
 0x175   :  { %3634 = vperm.xlu1 %9593, %v3548_v41  }
 0x177   :  { %8992 = vmatmul.mubr.msk.bf16.gmra.mrb[64].mxu0 %vm896_vm1, %v9627_v44  ;;  %v3549_v44 = vld [vmem:[#allocation18 + $0x30] sm:$0xff] }
 0x178   :  { %8995 = vmatprep.mubr.msk.bf16.mxu0 %vm896_vm1, %v9628_v45  ;;  %v3566_v45 = vld [vmem:[#allocation18 + $0xb8] sm:$0xff]  ;;  %3639 = vperm.xlu0 %9592, %v3549_v44  }
 0x179   :  { %3724 = vperm.xlu1 %9593, %v3566_v45   ;;  %v9657_v45 = vld [vmem:[#allocation9 + $0x1f8] sm:$0xff]  }
 0x17c   :  { %3729 = vperm.xlu0 %9592, %v3567_v47   ;;  %v9658_v47 = vld [vmem:[#allocation9 + $0x200] sm:$0xff]  }
 0x17d   :  { %3644 = vperm.xlu1 %9593, %v3550_v48  }
 0x17f   :  { %8996 = vmatmul.mubr.msk.bf16.gmra.mrb[68].mxu0 %vm896_vm1, %v9629_v50  ;;  %v9649_v50 = vld [vmem:[#allocation9 + $0x1b8] sm:$0xff]  }
 0x180   :  { %8999 = vmatprep.mubr.msk.bf16.mxu0 %vm896_vm1, %v9630_v51  ;;  %3649 = vperm.xlu0 %9592, %v3551_v54  }
 0x181   :  { %3734 = vperm.xlu1 %9593, %v3568_v55  }
 0x185   :  { %3654 = vperm.xlu1 %9593, %v3552_v58  }
 0x187   :  { %9000 = vmatmul.mubr.msk.bf16.gmra.mrb[72].mxu0 %vm896_vm1, %v9631_v56 }
 0x188   :  { %9003 = vmatprep.mubr.msk.bf16.mxu0 %vm896_vm1, %v9632_v57  ;;  %v3569_v57 = vld [vmem:[#allocation18 + $0xd0] sm:$0xff] }
 0x189   :  { %3739 = vperm.xlu0 %9592, %v3569_v57   ;;  %3744 = vperm.xlu1 %9593, %v3570_v3   ;;  %v11249_v57 = vpop.permute.xlu0 %2390 }
 0x18d   :  { %3659 = vperm.xlu0 %9592, %v3553_v2   ;;  %3664 = vperm.xlu1 %9593, %v3554_v10   ;;  %v9663_v2 = vld [vmem:[#allocation9 + $0x210] sm:$0xff]   ;;  %v3577_v10 = vld [vmem:[#allocation18 + $0x110] sm:$0xff] }
 0x18f   :  { %9004 = vmatmul.mubr.msk.bf16.gmra.mrb[76].mxu0 %vm896_vm1, %v9633_v62  ;;  %v9652_v62 = vld [vmem:[#allocation9 + $0x1d0] sm:$0xff]  }
 0x190   :  { %9007 = vmatprep.mubr.msk.bf16.mxu0 %vm896_vm1, %v9634_v63 }
 0x191   :  { %3749 = vperm.xlu0 %9592, %v3571_v9   ;;  %3754 = vperm.xlu1 %9593, %v3572_v19  }
 0x195   :  { %3674 = vperm.xlu1 %9593, %v3556_v26   ;;  %v3578_v26 = vld [vmem:[#allocation18 + $0x118] sm:$0xff] }
 0x197   :  { %9008 = vmatmul.mubr.msk.bf16.gmra.mrb[80].mxu0 %vm896_vm1, %v9635_v4 }
 0x198   :  { %9011 = vmatprep.mubr.msk.bf16.mxu0 %vm896_vm1, %v9636_v5 }
 0x19f   :  { %9012 = vmatmul.mubr.msk.bf16.gmra.mrb[84].mxu0 %vm896_vm1, %v9637_v11 }
 0x1a0   :  { %9015 = vmatprep.mubr.msk.bf16.mxu0 %vm896_vm1, %v9638_v12  ;;  %v9653_v12 = vld [vmem:[#allocation9 + $0x1d8] sm:$0xff]  }
 0x1a7   :  { %9016 = vmatmul.mubr.msk.bf16.gmra.mrb[88].mxu0 %vm896_vm1, %v9639_v17 }
 0x1a8   :  { %9019 = vmatprep.mubr.msk.bf16.mxu0 %vm896_vm1, %v9640_v18  ;;  %v3555_v18 = vld [vmem:[#allocation18 + $0x60] sm:$0xff] }
 0x1a9   :  { %3669 = vperm.xlu0 %9592, %v3555_v18   ;;  %v11255_v18 = vpop.permute.xlu1 %2310 }
 0x1ad   :  { %3759 = vperm.xlu0 %9592, %v3573_v25   ;;  %v3595_v25 = vld [vmem:[#allocation18 + $0x1a0] sm:$0xff] }
 0x1af   :  { %9020 = vmatmul.mubr.msk.bf16.gmra.mrb[92].mxu0 %vm896_vm1, %v9641_v23 }
 0x1b0   :  { %9023 = vmatprep.mubr.msk.bf16.mxu0 %vm896_vm1, %v9642_v24 }
 0x1b1   :  { %3679 = vperm.xlu0 %9592, %v3557_v34  }
 0x1b7   :  { %9024 = vmatmul.mubr.msk.bf16.gmra.mrb[96].mxu0 %vm896_vm1, %v9643_v29 }
 0x1b8   :  { %9027 = vmatprep.mubr.msk.bf16.mxu0 %vm896_vm1, %v9644_v30  ;;  %v9656_v30 = vld [vmem:[#allocation9 + $0x1f0] sm:$0xff]  }
 0x1bf   :  { %9028 = vmatmul.mubr.msk.bf16.gmra.mrb[100].mxu0 %vm896_vm1, %v9645_v35  ;;  %v3574_v35 = vld [vmem:[#allocation18 + $0xf8] sm:$0xff] }
 0x1c0   :  { %9031 = vmatprep.mubr.msk.bf16.mxu0 %vm896_vm1, %v9646_v37  ;;  %3764 = vperm.xlu1 %9593, %v3574_v35  }
 0x1c7   :  { %9032 = vmatmul.mubr.msk.bf16.gmra.mrb[104].mxu0 %vm896_vm1, %v9647_v42  ;;  %v3591_v42 = vld [vmem:[#allocation18 + $0x180] sm:$0xff] }
 0x1c8   :  { %9035 = vmatprep.mubr.msk.bf16.mxu0 %vm896_vm1, %v9648_v43  ;;  %v3558_v43 = vld [vmem:[#allocation18 + $0x78] sm:$0xff]  ;;  %3849 = vperm.xlu0 %9592, %v3591_v42   ;;  %v11262_v42 = vpop.permute.xlu1 %2315 }
 0x1c9   :  { %3684 = vperm.xlu1 %9593, %v3558_v43   ;;  %v3579_v43 = vld [vmem:[#allocation18 + $0x120] sm:$0xff] }
 0x1ca   :  { %v8929_v46 = vpop.f32.mrb[0].mxu0 }
 0x1cb   :  { %9883 = vtanh.f32 %v8929_v46  ;;  %v1221_v49 = vpop.f32.mrb[1].mxu0 }
 0x1cc   :  { %9885 = vtanh.f32 %v1221_v49  ;;  %v8930_v51 = vpop.f32.mrb[2].mxu0 }
 0x1cd   :  { %9887 = vtanh.f32 %v8930_v51  ;;  %v1224_v53 = vpop.f32.mrb[3].mxu0  ;;  %v3575_v51 = vld [vmem:[#allocation18 + $0x100] sm:$0xff] }
 0x1ce   :  { %9889 = vtanh.f32 %v1224_v53  ;;  %3769 = vperm.xlu0 %9592, %v3575_v51  }
 0x1cf   :  { %9036 = vmatmul.mubr.msk.bf16.gmra.mrb[108].mxu0 %vm896_vm1, %v9649_v50 }
 0x1d0   :  { %9039 = vmatprep.mubr.msk.bf16.mxu0 %vm896_vm1, %v9650_v52  ;;  %v3592_v52 = vld [vmem:[#allocation18 + $0x188] sm:$0xff] }
 0x1d1   :  { %3854 = vperm.xlu1 %9593, %v3592_v52   ;;  %v9669_v52 = vld [vmem:[#allocation9 + $0x228] sm:$0xff]  }
 0x1d2   :  { %v8933_v56 = vpop.f32.mrb[4].mxu0 }
 0x1d3   :  { %9891 = vtanh.f32 %v8933_v56  ;;  %v1237_v59 = vpop.f32.mrb[5].mxu0 }
 0x1d4   :  { %9893 = vtanh.f32 %v1237_v59  ;;  %v8934_v61 = vpop.f32.mrb[6].mxu0  ;;  %v3593_v59 = vld [vmem:[#allocation18 + $0x190] sm:$0xff] }
 0x1d5   :  { %v11193_v63 = vpop.eup %9883  ;;  %9895 = vtanh.f32 %v8934_v61  ;;  %v1240_v0 = vpop.f32.mrb[7].mxu0  ;;  %3859 = vperm.xlu0 %9592, %v3593_v59  }
 0x1d6   :  { %v11195_v1 = vpop.eup %9885  ;;  %9897 = vtanh.f32 %v1240_v0 }
 0x1d7   :  { %v11197_v4 = vpop.eup %9887  ;;  %9040 = vmatmul.mubr.msk.bf16.gmra.mrb[112].mxu0 %vm896_vm1, %v9651_v60  ;;  %v3576_v60 = vld [vmem:[#allocation18 + $0x108] sm:$0xff] }
 0x1d8   :  { %v11200_v5 = vpop.eup %9889  ;;  %v2245_v6 = vpack.c.bf16 %v11197_v4, %v11193_v63  ;;  %9043 = vmatprep.mubr.msk.bf16.mxu0 %vm896_vm1, %v9652_v62  ;;  %v9659_v62 = vld [vmem:[#allocation9 + $0x208] sm:$0xff]   ;;  %3774 = vperm.xlu1 %9593, %v3576_v60   ;;  %v9673_v63 = vld [vmem:[#allocation9 + $0x230] sm:$0xff]   ;;  %v11274_v4 = vpop.permute.xlu1 %2405 }
 0x1d9   :  { %v2244_v7 = vpack.c.bf16 %v11200_v5, %v11195_v1  ;;  %3779 = vperm.xlu0 %9592, %v3577_v10  }
 0x1da   :  { %v8937_v8 = vpop.f32.mrb[8].mxu0 }
 0x1db   :  { %9899 = vtanh.f32 %v8937_v8  ;;  %v1253_v11 = vpop.f32.mrb[9].mxu0 }
 0x1dc   :  { %9901 = vtanh.f32 %v1253_v11  ;;  %v8938_v13 = vpop.f32.mrb[10].mxu0  ;;  %v3594_v11 = vld [vmem:[#allocation18 + $0x198] sm:$0xff]  ;;  %v11283_v10 = vpop.permute.xlu1 %2325 }
 0x1dd   :  { %v11207_v15 = vpop.eup %9891  ;;  %9903 = vtanh.f32 %v8938_v13  ;;  %v1256_v16 = vpop.f32.mrb[11].mxu0  ;;  %3864 = vperm.xlu1 %9593, %v3594_v11   ;;  %3869 = vperm.xlu0 %9592, %v3595_v25   ;;  %v3582_v11 = vld [vmem:[#allocation18 + $0x138] sm:$0xff]  ;;  %v3600_v25 = vld [vmem:[#allocation18 + $0x1c8] sm:$0xff] }
 0x1de   :  { %v11209_v17 = vpop.eup %9893  ;;  %9905 = vtanh.f32 %v1256_v16  ;;  %v11252_v13 = vpop.permute.xlu0 %2395 }
 0x1df   :  { %v11211_v20 = vpop.eup %9895  ;;  %9044 = vmatmul.mubr.msk.bf16.gmra.mrb[116].mxu0 %vm896_vm1, %v9653_v12 }
 0x1e0   :  { %v11214_v21 = vpop.eup %9897  ;;  %v2247_v22 = vpack.c.bf16 %v11211_v20, %v11207_v15  ;;  %9047 = vmatprep.mubr.msk.bf16.mxu0 %vm896_vm1, %v9654_v14  ;;  %v9678_v20 = vld [vmem:[#allocation9 + $0x240] sm:$0xff]  }
 0x1e1   :  { %v2246_v23 = vpack.c.bf16 %v11214_v21, %v11209_v17  ;;  %3784 = vperm.xlu1 %9593, %v3578_v26   ;;  %3789 = vperm.xlu0 %9592, %v3579_v43   ;;  %v3599_v21 = vld [vmem:[#allocation18 + $0x1c0] sm:$0xff] }
 0x1e2   :  { %v8941_v24 = vpop.f32.mrb[12].mxu0  ;;  %v11260_v35 = vpop.permute.xlu0 %2400 }
 0x1e3   :  { %9907 = vtanh.f32 %v8941_v24  ;;  %v1269_v27 = vpop.f32.mrb[13].mxu0 }
 0x1e4   :  { %9909 = vtanh.f32 %v1269_v27  ;;  %v8942_v29 = vpop.f32.mrb[14].mxu0 }
 0x1e5   :  { %v11221_v31 = vpop.eup %9899  ;;  %9911 = vtanh.f32 %v8942_v29  ;;  %v1272_v32 = vpop.f32.mrb[15].mxu0 }
 0x1e6   :  { %v11223_v33 = vpop.eup %9901  ;;  %9913 = vtanh.f32 %v1272_v32 }
 0x1e7   :  { %v11225_v37 = vpop.eup %9903  ;;  %9048 = vmatmul.mubr.msk.bf16.gmra.mrb[120].mxu0 %vm896_vm1, %v9655_v28  ;;  %v9664_v28 = vld [vmem:[#allocation9 + $0x218] sm:$0xff]  }
 0x1e8   :  { %v11228_v38 = vpop.eup %9905  ;;  %v2249_v39 = vpack.c.bf16 %v11225_v37, %v11221_v31  ;;  %9051 = vmatprep.mubr.msk.bf16.mxu0 %vm896_vm1, %v9656_v30  ;;  %v9668_v30 = vld [vmem:[#allocation9 + $0x220] sm:$0xff]   ;;  %v9683_v37 = vld [vmem:[#allocation9 + $0x250] sm:$0xff]  }
 0x1e9   :  { %v2248_v40 = vpack.c.bf16 %v11228_v38, %v11223_v33 }
 0x1ea   :  { %v8945_v41 = vpop.f32.mrb[16].mxu0 }
 0x1eb   :  { %9915 = vtanh.f32 %v8945_v41  ;;  %v1285_v44 = vpop.f32.mrb[17].mxu0 }
 0x1ec   :  { %9917 = vtanh.f32 %v1285_v44  ;;  %v8946_v46 = vpop.f32.mrb[18].mxu0  ;;  %v3596_v44 = vld [vmem:[#allocation18 + $0x1a8] sm:$0xff] }
 0x1ed   :  { %v11235_v48 = vpop.eup %9907  ;;  %9919 = vtanh.f32 %v8946_v46  ;;  %v1288_v49 = vpop.f32.mrb[19].mxu0  ;;  %3874 = vperm.xlu1 %9593, %v3596_v44  }
 0x1ee   :  { %v11237_v50 = vpop.eup %9909  ;;  %9921 = vtanh.f32 %v1288_v49  ;;  %v3580_v49 = vld [vmem:[#allocation18 + $0x128] sm:$0xff] }
 0x1ef   :  { %v11239_v53 = vpop.eup %9911  ;;  %9052 = vmatmul.mubr.msk.bf16.gmra.mrb[124].mxu0 %vm896_vm1, %v9657_v45 }
 0x1f0   :  { %v11242_v54 = vpop.eup %9913  ;;  %v2251_v55 = vpack.c.bf16 %v11239_v53, %v11235_v48  ;;  %9055 = vmatprep.mubr.msk.bf16.mxu0 %vm896_vm1, %v9658_v47  ;;  %v3597_v47 = vld [vmem:[#allocation18 + $0x1b0] sm:$0xff] }
 0x1f1   :  { %v2250_v56 = vpack.c.bf16 %v11242_v54, %v11237_v50  ;;  %3879 = vperm.xlu0 %9592, %v3597_v47   ;;  %3794 = vperm.xlu1 %9593, %v3580_v49   ;;  %v9660_v54 = vld [vmem:[#allocation11] ss:$16 sps:$4 sm:$0xff]  }
 0x1f2   :  { %v8949_v58 = vpop.f32.mrb[20].mxu0  ;;  %v9688_v53 = vld [vmem:[#allocation9 + $0x260] sm:$0xff]  }
 0x1f3   :  { %9923 = vtanh.f32 %v8949_v58  ;;  %v1301_v61 = vpop.f32.mrb[21].mxu0  ;;  %v11269_v58 = vpop.permute.xlu0 %2320 }
 0x1f4   :  { %9925 = vtanh.f32 %v1301_v61  ;;  %v8950_v0 = vpop.f32.mrb[22].mxu0 }
 0x1f5   :  { %v9916_v3 = vpop.eup %9915  ;;  %9927 = vtanh.f32 %v8950_v0  ;;  %v1304_v8 = vpop.f32.mrb[23].mxu0  ;;  %v3598_v0 = vld [vmem:[#allocation18 + $0x1b8] sm:$0xff] }
 0x1f6   :  { %v9918_v9 = vpop.eup %9917  ;;  %9929 = vtanh.f32 %v1304_v8  ;;  %3884 = vperm.xlu1 %9593, %v3598_v0  }
 0x1f7   :  { %v9920_v12 = vpop.eup %9919  ;;  %9056 = vmatmul.mubr.msk.bf16.gmra.mrb[128].mxu0 %vm896_vm1, %v9659_v62  ;;  %v3581_v62 = vld [vmem:[#allocation18 + $0x130] sm:$0xff]  ;;  %v11281_v8 = vpop.permute.xlu0 %2410 }
 0x1f8   :  { %v9922_v14 = vpop.eup %9921  ;;  %v2253_v16 = vpack.c.bf16 %v9920_v12, %v9916_v3  ;;  %9059 = vmatprep.mubr.msk.bf16.mxu0 %vm896_vm1, %v9663_v2  ;;  %3799 = vperm.xlu0 %9592, %v3581_v62  }
 0x1f9   :  { %v2252_v19 = vpack.c.bf16 %v9922_v14, %v9918_v9  ;;  %v9674_v14 = vld [vmem:[#allocation9 + $0x238] sm:$0xff]  }
 0x1fa   :  { %v8953_v24 = vpop.f32.mrb[24].mxu0  ;;  %3804 = vperm.xlu1 %9593, %v3582_v11  }
 0x1fb   :  { %9931 = vtanh.f32 %v8953_v24  ;;  %v1317_v27 = vpop.f32.mrb[25].mxu0  ;;  %8442 = vmatprep.subr.bf16.mxu1 %v2252_v19 }
 0x1fc   :  { %9933 = vtanh.f32 %v1317_v27  ;;  %v8954_v29 = vpop.f32.mrb[26].mxu0  ;;  %8443 = vmatpush3.bf16.msra.mxu1 %v2244_v7  ;;  %3889 = vperm.xlu0 %9592, %v3599_v21   ;;  %v11289_v27 = vpop.permute.xlu0 %2330  ;;  %v9667_v21 = vld [vmem:[#allocation11 + $0x20] ss:$16 sps:$4 sm:$0xff]  }
 0x1fd   :  { %v9924_v32 = vpop.eup %9923  ;;  %9935 = vtanh.f32 %v8954_v29  ;;  %v1320_v34 = vpop.f32.mrb[27].mxu0  ;;  %8444 = vmatprep.subr.bf16.mxu1 %v2253_v16 }
 0x1fe   :  { %v9926_v41 = vpop.eup %9925  ;;  %9937 = vtanh.f32 %v1320_v34  ;;  %3894 = vperm.xlu1 %9593, %v3600_v25  }
 0x1ff   :  { %v9928_v45 = vpop.eup %9927  ;;  %9060 = vmatmul.mubr.msk.bf16.gmra.mrb[132].mxu0 %vm896_vm1, %v9664_v28  ;;  %v3601_v28 = vld [vmem:[#allocation18 + $0x1d0] sm:$0xff] }
 0x200   :  { %v9930_v1 = vpop.eup %9929  ;;  %8445 = vmatpush3.bf16.msra.mxu1 %v2245_v6  ;;  %v2255_v5 = vpack.c.bf16 %v9928_v45, %v9924_v32  ;;  %9063 = vmatprep.mubr.msk.bf16.mxu0 %vm896_vm1, %v9668_v30  ;;  %v3584_v32 = vld [vmem:[#allocation18 + $0x148] sm:$0xff]  ;;  %v11302_v45 = vpop.permute.xlu0 %2420 }
 0x201   :  { %v2254_v7 = vpack.c.bf16 %v9930_v1, %v9926_v41  ;;  %v9679_v41 = vld [vmem:[#allocation9 + $0x248] sm:$0xff]   ;;  %12947 = vst [vmem:[#allocation33_spill] sm:$0xff] %v11302_v45 }
 0x202   :  { %v8957_v46 = vpop.f32.mrb[28].mxu0  ;;  %3814 = vperm.xlu1 %9593, %v3584_v32  }
 0x203   :  { %9939 = vtanh.f32 %v8957_v46  ;;  %v1333_v51 = vpop.f32.mrb[29].mxu0  ;;  %8446 = vmatprep.subr.bf16.mxu1 %v2254_v7  ;;  %v3602_v7 = vld [vmem:[#allocation18 + $0x1d8] sm:$0xff] }
 0x204   :  { %9941 = vtanh.f32 %v1333_v51  ;;  %v8958_v59 = vpop.f32.mrb[30].mxu0  ;;  %8447 = vmatpush3.bf16.msra.mxu1 %v2246_v23  ;;  %v9665_v46 = vld [vmem:[#allocation11 + $0x24] ss:$16 sps:$4 sm:$0xff]  }
 0x205   :  { %v9932_v6 = vpop.eup %9931  ;;  %9943 = vtanh.f32 %v8958_v59  ;;  %v1336_v60 = vpop.f32.mrb[31].mxu0  ;;  %8448 = vmatprep.subr.bf16.mxu1 %v2255_v5  ;;  %v3586_v59 = vld [vmem:[#allocation18 + $0x158] sm:$0xff] }
 0x206   :  { %v9934_v61 = vpop.eup %9933  ;;  %9945 = vtanh.f32 %v1336_v60  ;;  %3904 = vperm.xlu1 %9593, %v3602_v7   ;;  %v11321_v60 = vpop.permute.xlu0 %2340 }
 0x207   :  { %v9936_v2 = vpop.eup %9935  ;;  %9064 = vmatmul.mubr.msk.bf16.gmra.mrb[136].mxu0 %vm896_vm1, %v9669_v52  ;;  %v3603_v52 = vld [vmem:[#allocation18 + $0x1e0] sm:$0xff] }
 0x208   :  { %v9938_v3 = vpop.eup %9937  ;;  %8449 = vmatpush3.bf16.msra.mxu1 %v2247_v22  ;;  %v2257_v17 = vpack.c.bf16 %v9936_v2, %v9932_v6  ;;  %9067 = vmatprep.mubr.msk.bf16.mxu0 %vm896_vm1, %v9673_v63  ;;  %v3583_v22 = vld [vmem:[#allocation18 + $0x140] sm:$0xff]  ;;  %v9684_v6 = vld [vmem:[#allocation9 + $0x258] sm:$0xff]  }
 0x209   :  { %v2256_v23 = vpack.c.bf16 %v9938_v3, %v9934_v61  ;;  %3809 = vperm.xlu0 %9592, %v3583_v22   ;;  %v3587_v61 = vld [vmem:[#allocation18 + $0x160] sm:$0xff]  ;;  %v3604_v3 = vld [vmem:[#allocation18 + $0x1e8] sm:$0xff]  ;;  %v3605_v22 = vld [vmem:[#allocation18 + $0x1f0] sm:$0xff] }
 0x20a   :  { %v8961_v9 = vpop.f32.mrb[32].mxu0  ;;  %3824 = vperm.xlu1 %9593, %v3586_v59   ;;  %v9694_v59 = vld [vmem:[#allocation9 + $0x278] sm:$0xff]  }
 0x20b   :  { %8450 = vmatprep.subr.bf16.mxu1 %v2256_v23  ;;  %9947 = vtanh.f32 %v8961_v9  ;;  %v1349_v12 = vpop.f32.mrb[33].mxu0  ;;  %v9670_v9 = vld [vmem:[#allocation11 + $0x44] ss:$16 sps:$4 sm:$0xff]  }
 0x20c   :  { %8451 = vmatpush3.bf16.msra.mxu1 %v2248_v40  ;;  %9949 = vtanh.f32 %v1349_v12  ;;  %v8962_v15 = vpop.f32.mrb[34].mxu0  ;;  %v11295_v40 = vpop.permute.xlu1 %2415 }
 0x20d   :  { %v9940_v16 = vpop.eup %9939  ;;  %8452 = vmatprep.subr.bf16.mxu1 %v2257_v17  ;;  %9951 = vtanh.f32 %v8962_v15  ;;  %v1352_v19 = vpop.f32.mrb[35].mxu0  ;;  %3899 = vperm.xlu0 %9592, %v3601_v28  }
 0x20e   :  { %v9942_v24 = vpop.eup %9941  ;;  %9953 = vtanh.f32 %v1352_v19  ;;  %3914 = vperm.xlu1 %9593, %v3604_v3  }
 0x20f   :  { %v9944_v26 = vpop.eup %9943  ;;  %9068 = vmatmul.mubr.msk.bf16.gmra.mrb[140].mxu0 %vm896_vm1, %v9674_v14  ;;  %v11339_v14 = vpop.permute.xlu0 %2430 }
 0x210   :  { %v9946_v33 = vpop.eup %9945  ;;  %8453 = vmatpush3.bf16.msra.mxu1 %v2249_v39  ;;  %v2259_v38 = vpack.c.bf16 %v9944_v26, %v9940_v16  ;;  %9071 = vmatprep.mubr.msk.bf16.mxu0 %vm896_vm1, %v9678_v20  ;;  %v3585_v39 = vld [vmem:[#allocation18 + $0x150] sm:$0xff]  ;;  %v11306_v5 = vpop.permute.xlu1 %2335  ;;  %12949 = vst [vmem:[#allocation35_spill] sm:$0xff] %v11339_v14  ;;  %v3588_v16 = vld [vmem:[#allocation18 + $0x168] sm:$0xff] }
 0x211   :  { %v2258_v29 = vpack.c.bf16 %v9946_v33, %v9942_v24  ;;  %3819 = vperm.xlu0 %9592, %v3585_v39   ;;  %v9689_v24 = vld [vmem:[#allocation9 + $0x268] sm:$0xff]   ;;  %v9693_v26 = vld [vmem:[#allocation9 + $0x270] sm:$0xff]   ;;  %v3589_v33 = vld [vmem:[#allocation18 + $0x170] sm:$0xff] }
 0x212   :  { %v8965_v30 = vpop.f32.mrb[36].mxu0  ;;  %3834 = vperm.xlu1 %9593, %v3588_v16  }
 0x213   :  { %8454 = vmatprep.subr.bf16.mxu1 %v2258_v29  ;;  %9955 = vtanh.f32 %v8965_v30  ;;  %v1365_v34 = vpop.f32.mrb[37].mxu0  ;;  %v3606_v30 = vld [vmem:[#allocation18 + $0x1f8] sm:$0xff] }
 0x214   :  { %8455 = vmatpush3.bf16.msra.mxu1 %v2250_v56  ;;  %9957 = vtanh.f32 %v1365_v34  ;;  %v8966_v31 = vpop.f32.mrb[38].mxu0  ;;  %v9672_v34 = vld [vmem:[#allocation11 + $0x40] ss:$16 sps:$4 sm:$0xff]  }
 0x215   :  { %v11300_v43 = vpop.eup %9947  ;;  %8456 = vmatprep.subr.bf16.mxu1 %v2259_v38  ;;  %9959 = vtanh.f32 %v8966_v31  ;;  %v1368_v44 = vpop.f32.mrb[39].mxu0  ;;  %3909 = vperm.xlu0 %9592, %v3603_v52  }
 0x216   :  { %v11304_v1 = vpop.eup %9949  ;;  %9961 = vtanh.f32 %v1368_v44  ;;  %3924 = vperm.xlu1 %9593, %v3606_v30  }
 0x217   :  { %v11308_v50 = vpop.eup %9951  ;;  %9072 = vmatmul.mubr.msk.bf16.gmra.mrb[144].mxu0 %vm896_vm1, %v9679_v41  ;;  %v11350_v41 = vpop.permute.xlu0 %2350 }
 0x218   :  { %v11311_v56 = vpop.eup %9953  ;;  %8457 = vmatpush3.bf16.msra.mxu1 %v2251_v55  ;;  %v2261_v47 = vpack.c.bf16 %v11308_v50, %v11300_v43  ;;  %9075 = vmatprep.mubr.msk.bf16.mxu0 %vm896_vm1, %v9683_v37  ;;  %v11323_v55 = vpop.permute.xlu1 %2425  ;;  %v9675_v37 = vld [vmem:[#allocation11 + $0x64] ss:$16 sps:$4 sm:$0xff]  }
 0x219   :  { %v2260_v49 = vpack.c.bf16 %v11311_v56, %v11304_v1  ;;  %12948 = vst [vmem:[#allocation34_spill] sm:$0xff] %v11323_v55  ;;  %3829 = vperm.xlu0 %9592, %v3587_v61   ;;  %v9713_v50 = vld [vmem:[#allocation9 + $0x2b0] sm:$0xff]  }
 0x21a   :  { %v8969_v51 = vpop.f32.mrb[40].mxu0 }
 0x21b   :  { %2821 = vmatmul.mubr.bf16.vlgmr.msra.gmra.mrb[0].mxu1 %v9660_v54  ;;  %9963 = vtanh.f32 %v8969_v51  ;;  %v1381_v63 = vpop.f32.mrb[41].mxu0  ;;  %v3590_v51 = vld [vmem:[#allocation18 + $0x178] sm:$0xff] }
 0x21c   :  { %2828 = vmatprep.mubr.bf16.mxu1 %v9665_v46  ;;  %9965 = vtanh.f32 %v1381_v63  ;;  %v8970_v48 = vpop.f32.mrb[42].mxu0  ;;  %v11341_v20 = vpop.permute.xlu1 %2345  ;;  %v3143_v46 = vld [vmem:[#allocation15] sm:$0xf]  ;;  %3844 = vperm.xlu1 %9593, %v3590_v51  }
 0x21d   :  { %v11325_v62 = vpop.eup %9955  ;;  %9967 = vtanh.f32 %v8970_v48  ;;  %v1384_v0 = vpop.f32.mrb[43].mxu0  ;;  %3919 = vperm.xlu0 %9592, %v3605_v22   ;;  %v6524_v48 = vld [vmem:[#allocation21 + $0x8] sm:$0xff]  ;;  %v9677_v22 = vld [vmem:[#allocation11 + $0x60] ss:$16 sps:$4 sm:$0xff]  }
 0x21e   :  { %v11327_v2 = vpop.eup %9957  ;;  %9969 = vtanh.f32 %v1384_v0  ;;  %v11363_v0 = vpop.permute.xlu0 %2440 }
 0x21f   :  { %v11329_v17 = vpop.eup %9959  ;;  %9076 = vmatmul.mubr.msk.bf16.gmra.mrb[148].mxu0 %vm896_vm1, %v9684_v6  ;;  %v9698_v6 = vld [vmem:[#allocation9 + $0x280] sm:$0xff]   ;;  %12951 = vst [vmem:[#allocation37_spill] sm:$0xff] %v11363_v0 }
 0x220   :  { %v11332_v23 = vpop.eup %9961  ;;  %v2263_v11 = vpack.c.bf16 %v11329_v17, %v11325_v62  ;;  %9079 = vmatprep.mubr.msk.bf16.mxu0 %vm896_vm1, %v9688_v53  ;;  %v11357_v44 = vpop.permute.xlu1 %2435  ;;  %v9718_v17 = vld [vmem:[#allocation9 + $0x2c0] sm:$0xff]  }
 0x221   :  { %v2262_v12 = vpack.c.bf16 %v11332_v23, %v11327_v2  ;;  %3839 = vperm.xlu0 %9592, %v3589_v33   ;;  %12950 = vst [vmem:[#allocation36_spill] sm:$0xff] %v11357_v44  ;;  %v6526_v33 = vld [vmem:[#allocation21 + $0x18] sm:$0xff]  ;;  %v6535_v2 = vld [vmem:[#allocation21 + $0x60] sm:$0xff] }
 0x222   :  { %v8973_v15 = vpop.f32.mrb[44].mxu0 }
 0x223   :  { %2829 = vmatmul.mubr.bf16.gmra.mrb[4].mxu1 %v9667_v21  ;;  %9971 = vtanh.f32 %v8973_v15  ;;  %v1397_v19 = vpop.f32.mrb[45].mxu0 }
 0x224   :  { %9973 = vtanh.f32 %v1397_v19  ;;  %v8974_v25 = vpop.f32.mrb[46].mxu0  ;;  %2836 = vmatprep.mubr.bf16.mxu1 %v9670_v9  ;;  %v11367_v21 = vpop.permute.xlu1 %2355  ;;  %v6523_v9 = vld [vmem:[#allocation21] sm:$0xff]  ;;  %v9680_v19 = vld [vmem:[#allocation11 + $0x84] ss:$16 sps:$4 sm:$0xff]  }
 0x225   :  { %v11343_v38 = vpop.eup %9963  ;;  %9975 = vtanh.f32 %v8974_v25  ;;  %v1400_v28 = vpop.f32.mrb[47].mxu0  ;;  %3146 = vperm.xlu0 %9592, %v3143_v46   ;;  %6557 = vperm.xlu1 %9593, %v6523_v9   ;;  %v9703_v46 = vld [vmem:[#allocation9 + $0x290] sm:$0xff]  }
 0x226   :  { %v11345_v29 = vpop.eup %9965  ;;  %9977 = vtanh.f32 %v1400_v28  ;;  %v6525_v28 = vld [vmem:[#allocation21 + $0x10] sm:$0xff] }
 0x227   :  { %v11347_v32 = vpop.eup %9967  ;;  %9080 = vmatmul.mubr.msk.bf16.gmra.mrb[152].mxu0 %vm896_vm1, %v9689_v24  ;;  %v9682_v9 = vld [vmem:[#allocation11 + $0x80] ss:$16 sps:$4 sm:$0xff]   ;;  %v9704_v24 = vld [vmem:[#allocation9 + $0x298] sm:$0xff]  }
 0x228   :  { %v11352_v31 = vpop.eup %9969  ;;  %v2265_v39 = vpack.c.bf16 %v11347_v32, %v11343_v38  ;;  %9083 = vmatprep.mubr.msk.bf16.mxu0 %vm896_vm1, %v9693_v26  ;;  %v11381_v51 = vpop.permute.xlu1 %2445  ;;  %v6541_v38 = vld [vmem:[#allocation21 + $0x90] sm:$0xff] }
 0x229   :  { %v2264_v7 = vpack.c.bf16 %v11352_v31, %v11345_v29  ;;  %6562 = vperm.xlu0 %9592, %v6524_v48   ;;  %12952 = vst [vmem:[#allocation38_spill] sm:$0xff] %v11381_v51  ;;  %6567 = vperm.xlu1 %9593, %v6525_v28   ;;  %v6527_v48 = vld [vmem:[#allocation21 + $0x20] sm:$0xff]  ;;  %v6530_v28 = vld [vmem:[#allocation21 + $0x38] sm:$0xff] }
 0x22a   :  { %v8977_v54 = vpop.f32.mrb[48].mxu0 }
 0x22b   :  { %9979 = vtanh.f32 %v8977_v54  ;;  %v1413_v52 = vpop.f32.mrb[49].mxu0  ;;  %2837 = vmatmul.mubr.bf16.gmra.mrb[8].mxu1 %v9672_v34  ;;  %v9699_v34 = vld [vmem:[#allocation9 + $0x288] sm:$0xff]  }
 0x22c   :  { %9981 = vtanh.f32 %v1413_v52  ;;  %v8978_v63 = vpop.f32.mrb[50].mxu0  ;;  %2844 = vmatprep.mubr.bf16.mxu1 %v9675_v37  ;;  %v11379_v37 = vpop.permute.xlu0 %2360  ;;  %v6528_v52 = vld [vmem:[#allocation21 + $0x28] sm:$0xff] }
 0x22d   :  { %v11361_v53 = vpop.eup %9971  ;;  %9983 = vtanh.f32 %v8978_v63  ;;  %v1416_v61 = vpop.f32.mrb[51].mxu0  ;;  %6572 = vperm.xlu0 %9592, %v6526_v33   ;;  %v9685_v33 = vld [vmem:[#allocation11 + $0xa4] ss:$16 sps:$4 sm:$0xff]   ;;  %6577 = vperm.xlu1 %9593, %v6527_v48  }
 0x22e   :  { %v11365_v3 = vpop.eup %9973  ;;  %9985 = vtanh.f32 %v1416_v61  ;;  %v11387_v36 = vpop.permute.xlu1 %2365 }
 0x22f   :  { %v11369_v15 = vpop.eup %9975  ;;  %9084 = vmatmul.mubr.msk.bf16.gmra.mrb[156].mxu0 %vm896_vm1, %v9694_v59 }
 0x230   :  { %v11372_v16 = vpop.eup %9977  ;;  %9087 = vmatprep.mubr.msk.bf16.mxu0 %vm896_vm1, %v9698_v6 }
 0x231   :  { %v2266_v25 = vpack.c.bf16 %v11372_v16, %v11365_v3  ;;  %6582 = vperm.xlu0 %9592, %v6528_v52   ;;  %v12959_v16 = vpack.c.bf16 %v11369_v15, %v11361_v53  ;;  %v12961_v53 = vmov 0   ;;  %v9724_v15 = vld [vmem:[#allocation9 + $0x2d8] sm:$0xff]  }
 0x232   :  { %v8981_v26 = vpop.f32.mrb[52].mxu0 }
 0x233   :  { %9987 = vtanh.f32 %v8981_v26  ;;  %v1429_v30 = vpop.f32.mrb[53].mxu0  ;;  %2845 = vmatmul.mubr.bf16.gmra.mrb[12].mxu1 %v9677_v22 }
 0x234   :  { %9989 = vtanh.f32 %v1429_v30  ;;  %v8982_v54 = vpop.f32.mrb[54].mxu0  ;;  %2852 = vmatprep.mubr.bf16.mxu1 %v9680_v19  ;;  %v11385_v30 = vpop.permute.xlu0 %2450 }
 0x235   :  { %v9980_v59 = vpop.eup %9979  ;;  %9991 = vtanh.f32 %v8982_v54  ;;  %v1432_v63 = vpop.f32.mrb[55].mxu0  ;;  %12953 = vst [vmem:[#allocation39_spill] sm:$0xff] %v11385_v30  ;;  %6592 = vperm.xlu0 %9592, %v6530_v28  }
 0x236   :  { %v9982_v6 = vpop.eup %9981  ;;  %9993 = vtanh.f32 %v1432_v63 }
 0x237   :  { %v9984_v61 = vpop.eup %9983  ;;  %9088 = vmatmul.mubr.msk.bf16.gmra.mrb[160].mxu0 %vm896_vm1, %v9699_v34  ;;  %v6529_v34 = vld [vmem:[#allocation21 + $0x30] sm:$0xff] }
 0x238   :  { %v9986_v22 = vpop.eup %9985  ;;  %v2269_v26 = vpack.c.bf16 %v9984_v61, %v9980_v59  ;;  %9091 = vmatprep.mubr.msk.bf16.mxu0 %vm896_vm1, %v9703_v46  ;;  %v9708_v46 = vld [vmem:[#allocation9 + $0x2a0] sm:$0xff]   ;;  %6587 = vperm.xlu1 %9593, %v6529_v34   ;;  %v6532_v61 = vld [vmem:[#allocation21 + $0x48] sm:$0xff]  ;;  %v9709_v34 = vld [vmem:[#allocation9 + $0x2a8] sm:$0xff]  }
 0x239   :  { %v2268_v19 = vpack.c.bf16 %v9986_v22, %v9982_v6  ;;  %v9687_v22 = vld [vmem:[#allocation11 + $0xa0] ss:$16 sps:$4 sm:$0xff]   ;;  %6602 = vperm.xlu0 %9592, %v6532_v61   ;;  %v6536_v61 = vld [vmem:[#allocation21 + $0x68] sm:$0xff] }
 0x23a   :  { %v8985_v54 = vpop.f32.mrb[56].mxu0 }
 0x23b   :  { %9995 = vtanh.f32 %v8985_v54  ;;  %v1445_v63 = vpop.f32.mrb[57].mxu0  ;;  %2853 = vmatmul.mubr.bf16.gmra.mrb[16].mxu1 %v9682_v9  ;;  %8554 = vmatprep.subr.bf16.mxu1 %v2268_v19  ;;  %v11393_v19 = vpop.permute.xlu0 %2370  ;;  %v6531_v54 = vld [vmem:[#allocation21 + $0x40] sm:$0xff] }
 0x23c   :  { %9997 = vtanh.f32 %v1445_v63  ;;  %v8986_v52 = vpop.f32.mrb[58].mxu0  ;;  %8555 = vmatpush3.bf16.msra.mxu1 %v2260_v49  ;;  %2860 = vmatprep.mubr.bf16.mxu1 %v9685_v33  ;;  %v9690_v49 = vld [vmem:[#allocation11 + $0xc4] ss:$16 sps:$4 sm:$0xff]  }
 0x23d   :  { %v9988_v59 = vpop.eup %9987  ;;  %9999 = vtanh.f32 %v8986_v52  ;;  %v1448_v6 = vpop.f32.mrb[59].mxu0  ;;  %8556 = vmatprep.subr.bf16.mxu1 %v2269_v26  ;;  %6597 = vperm.xlu1 %9593, %v6531_v54   ;;  %v6534_v63 = vld [vmem:[#allocation21 + $0x58] sm:$0xff]  ;;  %v6533_v52 = vld [vmem:[#allocation21 + $0x50] sm:$0xff] }
 0x23e   :  { %v9990_v48 = vpop.eup %9989  ;;  %10001 = vtanh.f32 %v1448_v6  ;;  %v11399_v26 = vpop.permute.xlu1 %2455  ;;  %6612 = vperm.xlu0 %9592, %v6534_v63   ;;  %v9695_v54 = vld [vmem:[#allocation11 + $0xe4] ss:$16 sps:$4 sm:$0xff]  }
 0x23f   :  { %v9992_v9 = vpop.eup %9991  ;;  %9092 = vmatmul.mubr.msk.bf16.gmra.mrb[164].mxu0 %vm896_vm1, %v9704_v24  ;;  %12954 = vst [vmem:[#allocation40_spill] sm:$0xff] %v11399_v26 }
 0x240   :  { %v9994_v1 = vpop.eup %9993  ;;  %8557 = vmatpush3.bf16.msra.mxu1 %v2261_v47  ;;  %v2271_v56 = vpack.c.bf16 %v9992_v9, %v9988_v59  ;;  %9095 = vmatprep.mubr.msk.bf16.mxu0 %vm896_vm1, %v9708_v46  ;;  %v11404_v59 = vpop.permute.xlu0 %2460 }
 0x241   :  { %v2270_v33 = vpack.c.bf16 %v9994_v1, %v9990_v48  ;;  %12955 = vst [vmem:[#allocation41_spill] sm:$0xff] %v11404_v59  ;;  %6607 = vperm.xlu1 %9593, %v6533_v52  }
 0x242   :  { %v8989_v28 = vpop.f32.mrb[60].mxu0  ;;  %v11406_v48 = vpop.permute.xlu1 %2375  ;;  %6622 = vperm.xlu0 %9592, %v6536_v61  }
 0x243   :  { %10003 = vtanh.f32 %v8989_v28  ;;  %v1461_v24 = vpop.f32.mrb[61].mxu0  ;;  %2861 = vmatmul.mubr.bf16.gmra.mrb[20].mxu1 %v9687_v22  ;;  %8558 = vmatprep.subr.bf16.mxu1 %v2270_v33  ;;  %v9692_v22 = vld [vmem:[#allocation11 + $0xc0] ss:$16 sps:$4 sm:$0xff]   ;;  %v9714_v28 = vld [vmem:[#allocation9 + $0x2b8] sm:$0xff]  }
 0x244   :  { %10005 = vtanh.f32 %v1461_v24  ;;  %v8990_v43 = vpop.f32.mrb[62].mxu0  ;;  %8559 = vmatpush3.bf16.msra.mxu1 %v2262_v12  ;;  %2868 = vmatprep.mubr.bf16.mxu1 %v9690_v49  ;;  %v6538_v49 = vld [vmem:[#allocation21 + $0x78] sm:$0xff]  ;;  %v11413_v63 = vpop.permute.xlu0 %2380  ;;  %v6537_v24 = vld [vmem:[#allocation21 + $0x70] sm:$0xff] }
 0x245   :  { %v9996_v47 = vpop.eup %9995  ;;  %10007 = vtanh.f32 %v8990_v43  ;;  %v1464_v46 = vpop.f32.mrb[63].mxu0  ;;  %8560 = vmatprep.subr.bf16.mxu1 %v2271_v56  ;;  %6617 = vperm.xlu1 %9593, %v6535_v2  }
 0x246   :  { %v9998_v6 = vpop.eup %9997  ;;  %10009 = vtanh.f32 %v1464_v46  ;;  %6632 = vperm.xlu0 %9592, %v6538_v49   ;;  %v9697_v46 = vld [vmem:[#allocation11 + $0xe0] ss:$16 sps:$4 sm:$0xff]  }
 0x247   :  { %v10000_v9 = vpop.eup %9999  ;;  %9096 = vmatmul.mubr.msk.bf16.gmra.mrb[168].mxu0 %vm896_vm1, %v9709_v34 }
 0x248   :  { %v10002_v23 = vpop.eup %10001  ;;  %8561 = vmatpush3.bf16.msra.mxu1 %v2263_v11  ;;  %v2273_v12 = vpack.c.bf16 %v10000_v9, %v9996_v47  ;;  %9099 = vmatprep.mubr.msk.bf16.mxu0 %vm896_vm1, %v9713_v50  ;;  %v11418_v11 = vpop.permute.xlu1 %2465  ;;  %v6540_v50 = vld [vmem:[#allocation21 + $0x88] sm:$0xff] }
 0x249   :  { %v2272_v1 = vpack.c.bf16 %v10002_v23, %v9998_v6  ;;  %12956 = vst [vmem:[#allocation42_spill] sm:$0xff] %v11418_v11  ;;  %6627 = vperm.xlu1 %9593, %v6537_v24   ;;  %v6539_v6 = vld [vmem:[#allocation21 + $0x80] sm:$0xff]  ;;  %v11425_v9 = vpop.permute.xlu0 %3689  ;;  %v6542_v23 = vld [vmem:[#allocation21 + $0x98] sm:$0xff] }
 0x24a   :  { %v8993_v56 = vpop.f32.mrb[64].mxu0  ;;  %12957 = vst [vmem:[#allocation43_spill] sm:$0xff] %v11425_v9  ;;  %6642 = vperm.xlu0 %9592, %v6540_v50   ;;  %v9702_v24 = vld [vmem:[#allocation11 + $0x100] ss:$16 sps:$4 sm:$0xff]   ;;  %v9746_v9 = vld [vmem:[#allocation11 + $0x48] ss:$16 sps:$4 sm:$0xff]  }
 0x24b   :  { %10011 = vtanh.f32 %v8993_v56  ;;  %v1477_v33 = vpop.f32.mrb[65].mxu0  ;;  %2869 = vmatmul.mubr.bf16.gmra.mrb[24].mxu1 %v9692_v22  ;;  %8562 = vmatprep.subr.bf16.mxu1 %v2272_v1 }
 0x24c   :  { %10013 = vtanh.f32 %v1477_v33  ;;  %v8994_v62 = vpop.f32.mrb[66].mxu0  ;;  %8563 = vmatpush3.bf16.msra.mxu1 %v2264_v7  ;;  %2876 = vmatprep.mubr.bf16.mxu1 %v9695_v54  ;;  %v9700_v7 = vld [vmem:[#allocation11 + $0x104] ss:$16 sps:$4 sm:$0xff]   ;;  %v11427_v2 = vpop.permute.xlu1 %2385  ;;  %v9719_v54 = vld [vmem:[#allocation9 + $0x2c8] sm:$0xff]  }
 0x24d   :  { %v10004_v34 = vpop.eup %10003  ;;  %10015 = vtanh.f32 %v8994_v62  ;;  %v1480_v52 = vpop.f32.mrb[67].mxu0  ;;  %8564 = vmatprep.subr.bf16.mxu1 %v2273_v12  ;;  %6637 = vperm.xlu1 %9593, %v6539_v6   ;;  %v6544_v33 = vld [vmem:[#allocation21 + $0xa8] sm:$0xff]  ;;  %v6545_v6 = vld [vmem:[#allocation21 + $0xb0] sm:$0xff] }
 0x24e   :  { %v10006_v43 = vpop.eup %10005  ;;  %10017 = vtanh.f32 %v1480_v52  ;;  %6652 = vperm.xlu0 %9592, %v6542_v23   ;;  %v11433_v62 = vpop.permute.xlu0 %3609 }
 0x24f   :  { %v10008_v47 = vpop.eup %10007  ;;  %9100 = vmatmul.mubr.msk.bf16.gmra.mrb[172].mxu0 %vm896_vm1, %v9714_v28  ;;  %12958 = vst [vmem:[#allocation44_spill] sm:$0xff] %v11433_v62 }
 0x250   :  { %v10010_v29 = vpop.eup %10009  ;;  %8565 = vmatpush3.bf16.msra.mxu1 %v2265_v39  ;;  %v2275_v31 = vpack.c.bf16 %v10008_v47, %v10004_v34  ;;  %9103 = vmatprep.mubr.msk.bf16.mxu0 %vm896_vm1, %v9718_v17  ;;  %v9723_v39 = vld [vmem:[#allocation9 + $0x2d0] sm:$0xff]   ;;  %v11439_v52 = vpop.permute.xlu1 %3694  ;;  %v6546_v47 = vld [vmem:[#allocation21 + $0xb8] sm:$0xff] }
 0x251   :  { %v2274_v61 = vpack.c.bf16 %v10010_v29, %v10006_v43  ;;  %6647 = vperm.xlu1 %9593, %v6541_v38   ;;  %v6543_v17 = vld [vmem:[#allocation21 + $0xa0] sm:$0xff]  ;;  %v9705_v34 = vld [vmem:[#allocation11 + $0x124] ss:$16 sps:$4 sm:$0xff]   ;;  %12960 = vst [vmem:[#allocation45_spill] sm:$0xff] %v11439_v52 }
 0x252   :  { %v8997_v22 = vpop.f32.mrb[68].mxu0  ;;  %6662 = vperm.xlu0 %9592, %v6544_v33  }
 0x253   :  { %10019 = vtanh.f32 %v8997_v22  ;;  %v1493_v12 = vpop.f32.mrb[69].mxu0  ;;  %2877 = vmatmul.mubr.bf16.gmra.mrb[28].mxu1 %v9697_v46  ;;  %8566 = vmatprep.subr.bf16.mxu1 %v2274_v61  ;;  %v9728_v61 = vld [vmem:[#allocation9 + $0x2e0] sm:$0xff]   ;;  %v11442_v22 = vpop.permute.xlu0 %3699 }
 0x254   :  { %10021 = vtanh.f32 %v1493_v12  ;;  %v8998_v32 = vpop.f32.mrb[70].mxu0  ;;  %8567 = vmatpush3.bf16.msra.mxu1 %v2266_v25  ;;  %2884 = vmatprep.mubr.bf16.mxu1 %v9700_v7  ;;  %12962 = vst [vmem:[#allocation46_spill] sm:$0xff] %v11442_v22  ;;  %v11444_v12 = vpop.permute.xlu1 %3614 }
 0x255   :  { %v10012_v1 = vpop.eup %10011  ;;  %10023 = vtanh.f32 %v8998_v32  ;;  %v1496_v56 = vpop.f32.mrb[71].mxu0  ;;  %8568 = vmatprep.subr.bf16.mxu1 %v2275_v31  ;;  %6657 = vperm.xlu1 %9593, %v6543_v17   ;;  %12963 = vst [vmem:[#allocation47_spill] sm:$0xff] %v11444_v12  ;;  %v9707_v32 = vld [vmem:[#allocation11 + $0x120] ss:$16 sps:$4 sm:$0xff]   ;;  %v9777_v12 = vld [vmem:[#allocation11 + $0x1ac] ss:$16 sps:$4 sm:$0xff]  }
 0x256   :  { %v10014_v49 = vpop.eup %10013  ;;  %10025 = vtanh.f32 %v1496_v56  ;;  %6672 = vperm.xlu0 %9592, %v6546_v47  }
 0x257   :  { %v10016_v28 = vpop.eup %10015  ;;  %9104 = vmatmul.mubr.msk.bf16.gmra.mrb[176].mxu0 %vm896_vm1, %v9719_v54  ;;  %v6548_v54 = vld [vmem:[#allocation21 + $0xc8] sm:$0xff] }
 0x258   :  { %v10018_v3 = vpop.eup %10017  ;;  %8569 = vmatpush3.bf16.msra.mxu1 %v12959_v16  ;;  %v3480_v25 = vpack.c.bf16 %v10016_v28, %v10012_v1  ;;  %9107 = vmatprep.mubr.msk.bf16.mxu0 %vm896_vm1, %v9723_v39  ;;  %v6547_v39 = vld [vmem:[#allocation21 + $0xc0] sm:$0xff]  ;;  %v6549_v16 = vld [vmem:[#allocation21 + $0xd0] sm:$0xff] }
 0x259   :  { %v3479_v43 = vpack.c.bf16 %v10018_v3, %v10014_v49  ;;  %6667 = vperm.xlu1 %9593, %v6545_v6   ;;  %v9710_v49 = vld [vmem:[#allocation11 + $0x144] ss:$16 sps:$4 sm:$0xff]   ;;  %v11449_v3 = vpop.permute.xlu0 %3619 }
 0x25a   :  { %v9001_v50 = vpop.f32.mrb[72].mxu0  ;;  %6682 = vperm.xlu0 %9592, %v6548_v54   ;;  %12964 = vst [vmem:[#allocation48_spill] sm:$0xff] %v11449_v3  ;;  %v9715_v54 = vld [vmem:[#allocation11 + $0x164] ss:$16 sps:$4 sm:$0xff]  }
 0x25b   :  { %10027 = vtanh.f32 %v9001_v50  ;;  %v1509_v46 = vpop.f32.mrb[73].mxu0  ;;  %2885 = vmatmul.mubr.bf16.gmra.mrb[32].mxu1 %v9702_v24  ;;  %5208 = vmatpush1.bf16.msra.mxu0 %v3479_v43  ;;  %v6550_v24 = vld [vmem:[#allocation21 + $0xd8] sm:$0xff]  ;;  %v11452_v43 = vpop.permute.xlu1 %3704 }
 0x25c   :  { %10029 = vtanh.f32 %v1509_v46  ;;  %v9002_v29 = vpop.f32.mrb[74].mxu0  ;;  %5209 = vmatprep.subr.bf16.mxu0 %v12961_v53  ;;  %2892 = vmatprep.mubr.bf16.mxu1 %v9705_v34  ;;  %v9729_v34 = vld [vmem:[#allocation9 + $0x2e8] sm:$0xff]   ;;  %12965 = vst [vmem:[#allocation49_spill] sm:$0xff] %v11452_v43  ;;  %v9733_v46 = vld [vmem:[#allocation9 + $0x2f0] sm:$0xff]  }
 0x25d   :  { %v10020_v31 = vpop.eup %10019  ;;  %10031 = vtanh.f32 %v9002_v29  ;;  %v1512_v7 = vpop.f32.mrb[75].mxu0  ;;  %6677 = vperm.xlu1 %9593, %v6547_v39   ;;  %v6552_v29 = vld [vmem:[#allocation21 + $0xe8] sm:$0xff] }
 0x25e   :  { %v10022_v23 = vpop.eup %10021  ;;  %10033 = vtanh.f32 %v1512_v7  ;;  %6692 = vperm.xlu0 %9592, %v6550_v24   ;;  %v6551_v7 = vld [vmem:[#allocation21 + $0xe0] sm:$0xff]  ;;  %v6553_v24 = vld [vmem:[#allocation21 + $0xf0] sm:$0xff] }
 0x25f   :  { %v10024_v38 = vpop.eup %10023  ;;  %5210 = vmatpush1.bf16.msra.mxu0 %v3480_v25 }
 0x260   :  { %v10026_v1 = vpop.eup %10025  ;;  %5211 = vmatprep.subr.bf16.mxu0 %v12961_v53  ;;  %v3482_v56 = vpack.c.bf16 %v10024_v38, %v10020_v31  ;;  %9108 = vmatmul.mubr.msk.bf16.gmra.mrb[180].mxu0 %vm896_vm1, %v9724_v15  ;;  %v9712_v31 = vld [vmem:[#allocation11 + $0x140] ss:$16 sps:$4 sm:$0xff]  }
 0x261   :  { %v3481_v33 = vpack.c.bf16 %v10026_v1, %v10022_v23  ;;  %9111 = vmatprep.mubr.msk.bf16.mxu0 %vm896_vm1, %v9728_v61  ;;  %6687 = vperm.xlu1 %9593, %v6549_v16   ;;  %v11459_v1 = vld [vmem:[#allocation17] sm:$0xff]  ;;  %v9734_v16 = vld [vmem:[#allocation9 + $0x2f8] sm:$0xff]  }
 0x262   :  { %v9005_v28 = vpop.f32.mrb[76].mxu0  ;;  %6702 = vperm.xlu0 %9592, %v6552_v29   ;;  %v9717_v29 = vld [vmem:[#allocation11 + $0x160] ss:$16 sps:$4 sm:$0xff]  }
 0x263   :  { %10035 = vtanh.f32 %v9005_v28  ;;  %v1525_v17 = vpop.f32.mrb[77].mxu0  ;;  %2893 = vmatmul.mubr.bf16.gmra.mrb[36].mxu1 %v9707_v32  ;;  %5212 = vmatpush1.bf16.msra.mxu0 %v3481_v33  ;;  %v11457_v32 = vpop.permute.xlu0 %3709  ;;  %v6554_v33 = vld [vmem:[#allocation21 + $0xf8] sm:$0xff] }
 0x264   :  { %10037 = vtanh.f32 %v1525_v17  ;;  %v9006_v25 = vpop.f32.mrb[78].mxu0  ;;  %5213 = vmatprep.subr.bf16.mxu0 %v12961_v53  ;;  %2900 = vmatprep.mubr.bf16.mxu1 %v9710_v49  ;;  %12966 = vst [vmem:[#allocation50_spill] sm:$0xff] %v11457_v32  ;;  %v11461_v49 = vld [vmem:[#allocation17 + $0x20] sm:$0xff] }
 0x265   :  { %v10028_v50 = vpop.eup %10027  ;;  %10039 = vtanh.f32 %v9006_v25  ;;  %v1528_v47 = vpop.f32.mrb[79].mxu0  ;;  %6697 = vperm.xlu1 %9593, %v6551_v7  }
 0x266   :  { %v10030_v6 = vpop.eup %10029  ;;  %10041 = vtanh.f32 %v1528_v47  ;;  %6712 = vperm.xlu0 %9592, %v6554_v33  }
 0x267   :  { %v10032_v15 = vpop.eup %10031  ;;  %5214 = vmatpush1.bf16.msra.mxu0 %v3482_v56  ;;  %v11463_v56 = vpop.permute.xlu1 %3624 }
 0x268   :  { %v10034_v61 = vpop.eup %10033  ;;  %5215 = vmatprep.subr.bf16.mxu0 %v12961_v53  ;;  %v3484_v23 = vpack.c.bf16 %v10032_v15, %v10028_v50  ;;  %9112 = vmatmul.mubr.msk.bf16.gmra.mrb[184].mxu0 %vm896_vm1, %v9729_v34  ;;  %12967 = vst [vmem:[#allocation51_spill] sm:$0xff] %v11463_v56  ;;  %v8026_v50 = vcombine.high %v11459_v1, %v11461_v49  ;;  %v11468_v15 = vpop.permute.xlu0 %3629 }
 0x269   :  { %v3483_v38 = vpack.c.bf16 %v10034_v61, %v10030_v6  ;;  %9115 = vmatprep.mubr.msk.bf16.mxu0 %vm896_vm1, %v9733_v46  ;;  %6707 = vperm.xlu1 %9593, %v6553_v24   ;;  %v7390_v46 = vld [vmem:[#allocation23 + $0x8] sm:$0xff]  ;;  %12968 = vst [vmem:[#allocation52_spill] sm:$0xff] %v11468_v15  ;;  %v7391_v24 = vld [vmem:[#allocation23 + $0x10] sm:$0xff] }
 0x26a   :  { %v9009_v39 = vpop.f32.mrb[80].mxu0  ;;  %7428 = vperm.xlu0 %9592, %v7390_v46   ;;  %v7394_v46 = vld [vmem:[#allocation23 + $0x28] sm:$0xff] }
 0x26b   :  { %10043 = vtanh.f32 %v9009_v39  ;;  %v1541_v28 = vpop.f32.mrb[81].mxu0  ;;  %2901 = vmatmul.mubr.bf16.gmra.mrb[40].mxu1 %v9712_v31  ;;  %5216 = vmatpush1.bf16.msra.mxu0 %v3483_v38  ;;  %v7389_v31 = vld [vmem:[#allocation23] sm:$0xff]  ;;  %v11472_v38 = vpop.permute.xlu1 %3714 }
 0x26c   :  { %10045 = vtanh.f32 %v1541_v28  ;;  %v9010_v17 = vpop.f32.mrb[82].mxu0  ;;  %5217 = vmatprep.subr.bf16.mxu0 %v12961_v53  ;;  %2908 = vmatprep.mubr.bf16.mxu1 %v9715_v54  ;;  %v9720_v54 = vld [vmem:[#allocation11 + $0x184] ss:$16 sps:$4 sm:$0xff]   ;;  %12969 = vst [vmem:[#allocation53_spill] sm:$0xff] %v11472_v38 }
 0x26d   :  { %v10036_v25 = vpop.eup %10035  ;;  %10047 = vtanh.f32 %v9010_v17  ;;  %v1544_v34 = vpop.f32.mrb[83].mxu0  ;;  %7423 = vperm.xlu1 %9593, %v7389_v31   ;;  %v7392_v28 = vld [vmem:[#allocation23 + $0x18] sm:$0xff]  ;;  %v7393_v31 = vld [vmem:[#allocation23 + $0x20] sm:$0xff] }
 0x26e   :  { %v10038_v47 = vpop.eup %10037  ;;  %10049 = vtanh.f32 %v1544_v34  ;;  %v11475_v34 = vpop.permute.xlu0 %3719  ;;  %7438 = vperm.xlu0 %9592, %v7392_v28   ;;  %v7396_v28 = vld [vmem:[#allocation23 + $0x38] sm:$0xff] }
 0x26f   :  { %v10040_v6 = vpop.eup %10039  ;;  %5218 = vmatpush1.bf16.msra.mxu0 %v3484_v23  ;;  %12970 = vst [vmem:[#allocation54_spill] sm:$0xff] %v11475_v34 }
 0x270   :  { %v10042_v7 = vpop.eup %10041  ;;  %5219 = vmatprep.subr.bf16.mxu0 %v12961_v53  ;;  %v3486_v61 = vpack.c.bf16 %v10040_v6, %v10036_v25  ;;  %9116 = vmatmul.mubr.msk.bf16.gmra.mrb[188].mxu0 %vm896_vm1, %v9734_v16 }
 0x271   :  { %v3485_v39 = vpack.c.bf16 %v10042_v7, %v10038_v47  ;;  %5239 = vmatprep.mubr.bf16.mxu0 %v8026_v50  ;;  %v11477_v47 = vpop.permute.xlu1 %3634  ;;  %7433 = vperm.xlu1 %9593, %v7391_v24  }
 0x272   :  { %v9013_v33 = vpop.f32.mrb[84].mxu0  ;;  %12971 = vst [vmem:[#allocation55_spill] sm:$0xff] %v11477_v47  ;;  %7448 = vperm.xlu0 %9592, %v7394_v46   ;;  %v11480_v24 = vpop.permute.xlu0 %3639  ;;  %v9774_v47 = vld [vmem:[#allocation11 + $0x18c] ss:$16 sps:$4 sm:$0xff]  }
 0x273   :  { %10051 = vtanh.f32 %v9013_v33  ;;  %v1557_v23 = vpop.f32.mrb[85].mxu0  ;;  %2909 = vmatmul.mubr.bf16.gmra.mrb[44].mxu1 %v9717_v29  ;;  %5220 = vmatpush1.bf16.msra.mxu0 %v3485_v39  ;;  %v9722_v29 = vld [vmem:[#allocation11 + $0x180] ss:$16 sps:$4 sm:$0xff]   ;;  %v9725_v39 = vld [vmem:[#allocation11 + $0x1a4] ss:$16 sps:$4 sm:$0xff]   ;;  %12972 = vst [vmem:[#allocation56_spill] sm:$0xff] %v11480_v24 }
 0x274   :  { %10053 = vtanh.f32 %v1557_v23  ;;  %v9014_v17 = vpop.f32.mrb[86].mxu0  ;;  %5221 = vmatprep.subr.bf16.mxu0 %v12961_v53  ;;  %2916 = vmatprep.mubr.bf16.mxu1 %v9720_v54 }
 0x275   :  { %v10044_v25 = vpop.eup %10043  ;;  %10055 = vtanh.f32 %v9014_v17  ;;  %v1560_v16 = vpop.f32.mrb[87].mxu0  ;;  %7443 = vperm.xlu1 %9593, %v7393_v31   ;;  %v9727_v31 = vld [vmem:[#allocation11 + $0x1a0] ss:$16 sps:$4 sm:$0xff]  }
 0x276   :  { %v10046_v50 = vpop.eup %10045  ;;  %10057 = vtanh.f32 %v1560_v16  ;;  %v7395_v16 = vld [vmem:[#allocation23 + $0x30] sm:$0xff]  ;;  %v11483_v34 = vpop.permute.xlu1 %3724  ;;  %7458 = vperm.xlu0 %9592, %v7396_v28   ;;  %v7400_v28 = vld [vmem:[#allocation23 + $0x58] sm:$0xff] }
 0x277   :  { %v10048_v6 = vpop.eup %10047  ;;  %5222 = vmatpush1.bf16.msra.mxu0 %v3486_v61  ;;  %12973 = vst [vmem:[#allocation57_spill] sm:$0xff] %v11483_v34  ;;  %v11486_v38 = vpop.permute.xlu0 %3729 }
 0x278   :  { %v10050_v7 = vpop.eup %10049  ;;  %5223 = vmatprep.subr.bf16.mxu0 %v12961_v53  ;;  %v3488_v54 = vpack.c.bf16 %v10048_v6, %v10044_v25  ;;  %v7398_v6 = vld [vmem:[#allocation23 + $0x48] sm:$0xff]  ;;  %12974 = vst [vmem:[#allocation58_spill] sm:$0xff] %v11486_v38 }
 0x279   :  { %v3487_v33 = vpack.c.bf16 %v10050_v7, %v10046_v50  ;;  %7453 = vperm.xlu1 %9593, %v7395_v16   ;;  %v7397_v7 = vld [vmem:[#allocation23 + $0x40] sm:$0xff]  ;;  %v9735_v38 = vld [vmem:[#allocation11 + $0x1e4] ss:$16 sps:$4 sm:$0xff]  }
 0x27a   :  { %v9017_v23 = vpop.f32.mrb[88].mxu0  ;;  %7468 = vperm.xlu0 %9592, %v7398_v6   ;;  %v11488_v34 = vpop.permute.xlu1 %3644 }
 0x27b   :  { %10059 = vtanh.f32 %v9017_v23  ;;  %v1573_v17 = vpop.f32.mrb[89].mxu0  ;;  %2917 = vmatmul.mubr.bf16.gmra.mrb[48].mxu1 %v9722_v29  ;;  %5224 = vmatpush1.bf16.msra.mxu0 %v3487_v33  ;;  %12975 = vst [vmem:[#allocation59_spill] sm:$0xff] %v11488_v34 }
 0x27c   :  { %10061 = vtanh.f32 %v1573_v17  ;;  %v9018_v61 = vpop.f32.mrb[90].mxu0  ;;  %5225 = vmatprep.subr.bf16.mxu0 %v12961_v53  ;;  %2924 = vmatprep.mubr.bf16.mxu1 %v9725_v39  ;;  %v9730_v17 = vld [vmem:[#allocation11 + $0x1c4] ss:$16 sps:$4 sm:$0xff]  }
 0x27d   :  { %v10052_v25 = vpop.eup %10051  ;;  %10063 = vtanh.f32 %v9018_v61  ;;  %v1576_v50 = vpop.f32.mrb[91].mxu0  ;;  %7463 = vperm.xlu1 %9593, %v7397_v7  }
 0x27e   :  { %v10054_v46 = vpop.eup %10053  ;;  %10065 = vtanh.f32 %v1576_v50  ;;  %7478 = vperm.xlu0 %9592, %v7400_v28   ;;  %v7404_v28 = vld [vmem:[#allocation23 + $0x78] sm:$0xff] }
 0x27f   :  { %v10056_v29 = vpop.eup %10055  ;;  %5226 = vmatpush1.bf16.msra.mxu0 %v3488_v54  ;;  %v7399_v54 = vld [vmem:[#allocation23 + $0x50] sm:$0xff] }
 0x280   :  { %v10058_v33 = vpop.eup %10057  ;;  %5227 = vmatprep.subr.bf16.mxu0 %v12961_v53  ;;  %v3490_v23 = vpack.c.bf16 %v10056_v29, %v10052_v25  ;;  %v7402_v29 = vld [vmem:[#allocation23 + $0x68] sm:$0xff] }
 0x281   :  { %v3489_v39 = vpack.c.bf16 %v10058_v33, %v10054_v46  ;;  %7473 = vperm.xlu1 %9593, %v7399_v54   ;;  %v9732_v33 = vld [vmem:[#allocation11 + $0x1c0] ss:$16 sps:$4 sm:$0xff]  }
 0x282   :  { %v9021_v61 = vpop.f32.mrb[92].mxu0  ;;  %7488 = vperm.xlu0 %9592, %v7402_v29   ;;  %v7403_v54 = vld [vmem:[#allocation23 + $0x70] sm:$0xff]  ;;  %v7405_v29 = vld [vmem:[#allocation23 + $0x80] sm:$0xff] }
 0x283   :  { %10067 = vtanh.f32 %v9021_v61  ;;  %v1589_v16 = vpop.f32.mrb[93].mxu0  ;;  %2925 = vmatmul.mubr.bf16.gmra.mrb[52].mxu1 %v9727_v31  ;;  %5228 = vmatpush1.bf16.msra.mxu0 %v3489_v39  ;;  %v11491_v61 = vpop.permute.xlu0 %3649  ;;  %v7401_v31 = vld [vmem:[#allocation23 + $0x60] sm:$0xff] }
 0x284   :  { %10069 = vtanh.f32 %v1589_v16  ;;  %v9022_v50 = vpop.f32.mrb[94].mxu0  ;;  %5229 = vmatprep.subr.bf16.mxu0 %v12961_v53  ;;  %2932 = vmatprep.mubr.bf16.mxu1 %v9730_v17  ;;  %12976 = vst [vmem:[#allocation60_spill] sm:$0xff] %v11491_v61  ;;  %v11494_v17 = vpop.permute.xlu1 %3734 }
 0x285   :  { %v10060_v25 = vpop.eup %10059  ;;  %10071 = vtanh.f32 %v9022_v50  ;;  %v1592_v46 = vpop.f32.mrb[95].mxu0  ;;  %12977 = vst [vmem:[#allocation61_spill] sm:$0xff] %v11494_v17  ;;  %7483 = vperm.xlu1 %9593, %v7401_v31  }
 0x286   :  { %v10062_v6 = vpop.eup %10061  ;;  %10073 = vtanh.f32 %v1592_v46  ;;  %7498 = vperm.xlu0 %9592, %v7404_v28  }
 0x287   :  { %v10064_v7 = vpop.eup %10063  ;;  %5230 = vmatpush1.bf16.msra.mxu0 %v3490_v23  ;;  %v11497_v46 = vpop.permute.xlu0 %3739 }
 0x288   :  { %v10066_v39 = vpop.eup %10065  ;;  %5231 = vmatprep.subr.bf16.mxu0 %v12961_v53  ;;  %v3492_v16 = vpack.c.bf16 %v10064_v7, %v10060_v25  ;;  %12978 = vst [vmem:[#allocation62_spill] sm:$0xff] %v11497_v46  ;;  %v11499_v43 = vpop.permute.xlu1 %3654  ;;  %v7406_v25 = vld [vmem:[#allocation23 + $0x88] sm:$0xff]  ;;  %v7407_v46 = vld [vmem:[#allocation23 + $0x90] sm:$0xff] }
 0x289   :  { %v3491_v50 = vpack.c.bf16 %v10066_v39, %v10062_v6  ;;  %12979 = vst [vmem:[#allocation63_spill] sm:$0xff] %v11499_v43  ;;  %7493 = vperm.xlu1 %9593, %v7403_v54   ;;  %v9737_v6 = vld [vmem:[#allocation11 + $0x1e0] ss:$16 sps:$4 sm:$0xff]   ;;  %v9740_v39 = vld [vmem:[#allocation11 + $0xc] ss:$16 sps:$4 sm:$0xff]  }
 0x28a   :  { %7508 = vperm.xlu0 %9592, %v7406_v25   ;;  %v3235_v54 = vld [vmem:[#allocation17 + $0x60] sm:$0xff]  ;;  %v9738_v25 = vld [vmem:[#allocation11 + $0x8] ss:$16 sps:$4 sm:$0xff]  }
 0x28b   :  { %2933 = vmatmul.mubr.bf16.gmra.mrb[56].mxu1 %v9732_v33  ;;  %5232 = vmatpush1.bf16.msra.mxu0 %v3491_v50  ;;  %v11502_v28 = vpop.permute.xlu0 %3659 }
 0x28c   :  { %5233 = vmatprep.subr.bf16.mxu0 %v12961_v53  ;;  %2940 = vmatprep.mubr.bf16.mxu1 %v9735_v38  ;;  %v7408_v38 = vld [vmem:[#allocation23 + $0x98] sm:$0xff]  ;;  %12980 = vst [vmem:[#allocation64_spill] sm:$0xff] %v11502_v28  ;;  %v11505_v17 = vpop.permute.xlu1 %3744 }
 0x28d   :  { %v10068_v23 = vpop.eup %10067  ;;  %7503 = vperm.xlu1 %9593, %v7405_v29   ;;  %12981 = vst [vmem:[#allocation65_spill] sm:$0xff] %v11505_v17  ;;  %v9741_v29 = vld [vmem:[#allocation11 + $0x2c] ss:$16 sps:$4 sm:$0xff]   ;;  %v9743_v17 = vld [vmem:[#allocation11 + $0x28] ss:$16 sps:$4 sm:$0xff]  }
 0x28e   :  { %v10070_v32 = vpop.eup %10069  ;;  %7518 = vperm.xlu0 %9592, %v7408_v38   ;;  %v7414_v38 = vld [vmem:[#allocation23 + $0xc8] sm:$0xff] }
 0x28f   :  { %v10072_v7 = vpop.eup %10071  ;;  %5234 = vmatpush1.bf16.msra.mxu0 %v3492_v16  ;;  %v3231_v16 = vld [vmem:[#allocation17 + $0x40] sm:$0xff] }
 0x290   :  { %v10074_v31 = vpop.eup %10073  ;;  %5235 = vmatprep.subr.bf16.mxu0 %v12961_v53  ;;  %v3494_v33 = vpack.c.bf16 %v10072_v7, %v10068_v23  ;;  %v8025_v23 = vcombine.low %v11459_v1, %v11461_v49  ;;  %v8034_v7 = vcombine.high %v3231_v16, %v3235_v54  ;;  %v7411_v1 = vld [vmem:[#allocation23 + $0xb0] sm:$0xff]  ;;  %v3239_v49 = vld [vmem:[#allocation17 + $0x80] sm:$0xff] }
 0x291   :  { %v3493_v50 = vpack.c.bf16 %v10074_v31, %v10070_v32  ;;  %7513 = vperm.xlu1 %9593, %v7407_v46   ;;  %v7410_v32 = vld [vmem:[#allocation23 + $0xa8] sm:$0xff]  ;;  %v11510_v31 = vpop.permute.xlu0 %3749  ;;  %v3243_v46 = vld [vmem:[#allocation17 + $0xa0] sm:$0xff] }
 0x292   :  { %12982 = vst [vmem:[#allocation66_spill] sm:$0xff] %v11510_v31  ;;  %7528 = vperm.xlu0 %9592, %v7410_v32   ;;  %v8042_v22 = vcombine.high %v3239_v49, %v3243_v46  ;;  %v7413_v32 = vld [vmem:[#allocation23 + $0xc0] sm:$0xff] }
 0x293   :  { %2941 = vmatmul.mubr.bf16.gmra.mrb[60].mxu1 %v9737_v6  ;;  %5236 = vmatpush1.bf16.msra.mxu0 %v3493_v50  ;;  %v7409_v6 = vld [vmem:[#allocation23 + $0xa0] sm:$0xff]  ;;  %v7412_v50 = vld [vmem:[#allocation23 + $0xb8] sm:$0xff] }
 0x294   :  { %5237 = vmatprep.subr.bf16.mxu0 %v12961_v53  ;;  %2981 = vmatprep.mubr.bf16.mxu1 %v9740_v39  ;;  %v11512_v39 = vpop.permute.xlu1 %3664 }
 0x295   :  { %12983 = vst [vmem:[#allocation67_spill] sm:$0xff] %v11512_v39  ;;  %7523 = vperm.xlu1 %9593, %v7409_v6   ;;  %v11514_v52 = vpop.permute.xlu0 %3669  ;;  %v3247_v6 = vld [vmem:[#allocation17 + $0xc0] sm:$0xff] }
 0x296   :  { %7538 = vperm.xlu0 %9592, %v7412_v50   ;;  %12984 = vst [vmem:[#allocation68_spill] sm:$0xff] %v11514_v52  ;;  %v9765_v52 = vld [vmem:[#allocation11 + $0x12c] ss:$16 sps:$4 sm:$0xff]  }
 0x297   :  { %5238 = vmatpush1.bf16.msra.mxu0 %v3494_v33  ;;  %v8033_v33 = vcombine.low %v3231_v16, %v3235_v54  ;;  %v3251_v16 = vld [vmem:[#allocation17 + $0xe0] sm:$0xff] }
 0x298   :  { %5496 = vmatprep.subr.bf16.mxu0 %v12961_v53  ;;  %v11516_v31 = vpop.permute.xlu1 %3754 }
 0x299   :  { %7533 = vperm.xlu1 %9593, %v7411_v1   ;;  %12985 = vst [vmem:[#allocation69_spill] sm:$0xff] %v11516_v31  ;;  %v11518_v54 = vpop.permute.xlu0 %3759  ;;  %v7418_v1 = vld [vmem:[#allocation23 + $0xe8] sm:$0xff]  ;;  %v8050_v31 = vcombine.high %v3247_v6, %v3251_v16 }
 0x29a   :  { %5240 = vmatmul.mubr.bf16.vlgmr.msra.gmra.mrb[192].mxu0 %v8025_v23  ;;  %v9744_v23 = vld [vmem:[#allocation11 + $0x4c] ss:$16 sps:$4 sm:$0xff]   ;;  %7548 = vperm.xlu0 %9592, %v7414_v38   ;;  %12986 = vst [vmem:[#allocation70_spill] sm:$0xff] %v11518_v54  ;;  %v9749_v54 = vld [vmem:[#allocation11 + $0x68] ss:$16 sps:$4 sm:$0xff]  }
 0x29b   :  { %2982 = vmatmul.mubr.bf16.vlgmr.msra.gmra.mrb[64].mxu1 %v9738_v25  ;;  %5247 = vmatprep.mubr.bf16.mxu0 %v8034_v7  ;;  %v7416_v25 = vld [vmem:[#allocation23 + $0xd8] sm:$0xff]  ;;  %v7415_v7 = vld [vmem:[#allocation23 + $0xd0] sm:$0xff]  ;;  %v7417_v38 = vld [vmem:[#allocation23 + $0xe0] sm:$0xff] }
 0x29c   :  { %2989 = vmatprep.mubr.bf16.mxu1 %v9741_v29  ;;  %v8041_v29 = vcombine.low %v3239_v49, %v3243_v46  ;;  %v11520_v50 = vpop.permute.xlu1 %3674  ;;  %v3259_v49 = vld [vmem:[#allocation17 + $0x120] sm:$0xff] }
 0x29d   :  { %7543 = vperm.xlu1 %9593, %v7413_v32   ;;  %12987 = vst [vmem:[#allocation71_spill] sm:$0xff] %v11520_v50  ;;  %v7419_v32 = vld [vmem:[#allocation23 + $0xf0] sm:$0xff] }
 0x29e   :  { %7558 = vperm.xlu0 %9592, %v7416_v25   ;;  %v8049_v25 = vcombine.low %v3247_v6, %v3251_v16  ;;  %v9752_v6 = vld [vmem:[#allocation11 + $0x88] ss:$16 sps:$4 sm:$0xff]  }
 0x2a0   :  { %v11524_v46 = vpop.permute.xlu1 %3764 }
 0x2a1   :  { %7553 = vperm.xlu1 %9593, %v7415_v7   ;;  %12989 = vst [vmem:[#allocation73_spill] sm:$0xff] %v11524_v46  ;;  %v7683_v7 = vld [vmem:[#allocation2] sm:$0x1]  ;;  %v3271_v46 = vld [vmem:[#allocation17 + $0x180] sm:$0xff] }
 0x2a2   :  { %5248 = vmatmul.mubr.bf16.gmra.mrb[196].mxu0 %v8033_v33  ;;  %v9747_v33 = vld [vmem:[#allocation11 + $0x6c] ss:$16 sps:$4 sm:$0xff]   ;;  %7568 = vperm.xlu0 %9592, %v7418_v1  }
 0x2a3   :  { %2990 = vmatmul.mubr.bf16.gmra.mrb[68].mxu1 %v9743_v17  ;;  %5255 = vmatprep.mubr.bf16.mxu0 %v8042_v22  ;;  %v7420_v22 = vld [vmem:[#allocation23 + $0xf8] sm:$0xff]  ;;  %v11522_v17 = vpop.permute.xlu0 %3679  ;;  %v7729_v1 = vld [vmem:[#allocation8] sm:$0xf] }
 0x2a4   :  { %2997 = vmatprep.mubr.bf16.mxu1 %v9744_v23  ;;  %12988 = vst [vmem:[#allocation72_spill] sm:$0xff] %v11522_v17  ;;  %v3255_v23 = vld [vmem:[#allocation17 + $0x100] sm:$0xff] }
 0x2a5   :  { %7563 = vperm.xlu1 %9593, %v7417_v38   ;;  %v8058_v50 = vcombine.high %v3255_v23, %v3259_v49 }
 0x2a6   :  { %7578 = vperm.xlu0 %9592, %v7420_v22   ;;  %v8057_v22 = vcombine.low %v3255_v23, %v3259_v49  ;;  %v9758_v49 = vld [vmem:[#allocation11 + $0xc8] ss:$16 sps:$4 sm:$0xff]  }
 0x2a7   :  { %v11526_v38 = vpop.permute.xlu0 %3849 }
 0x2a8   :  { %12990 = vst [vmem:[#allocation74_spill] sm:$0xff] %v11526_v38  ;;  %v3275_v38 = vld [vmem:[#allocation17 + $0x1a0] sm:$0xff] }
 0x2a9   :  { %7573 = vperm.xlu1 %9593, %v7419_v32   ;;  %v9753_v32 = vld [vmem:[#allocation11 + $0xac] ss:$16 sps:$4 sm:$0xff]   ;;  %v8074_v17 = vcombine.high %v3271_v46, %v3275_v38  ;;  %v8073_v23 = vcombine.low %v3271_v46, %v3275_v38 }
 0x2aa   :  { %5256 = vmatmul.mubr.bf16.gmra.mrb[200].mxu0 %v8041_v29  ;;  %v9750_v29 = vld [vmem:[#allocation11 + $0x8c] ss:$16 sps:$4 sm:$0xff]   ;;  %7686 = vperm.xlu0 %9592, %v7683_v7  }
 0x2ab   :  { %2998 = vmatmul.mubr.bf16.gmra.mrb[72].mxu1 %v9746_v9  ;;  %5263 = vmatprep.mubr.bf16.mxu0 %v8050_v31  ;;  %v11528_v9 = vpop.permute.xlu1 %3684  ;;  %v3263_v31 = vld [vmem:[#allocation17 + $0x140] sm:$0xff] }
 0x2ac   :  { %3005 = vmatprep.mubr.bf16.mxu1 %v9747_v33  ;;  %12991 = vst [vmem:[#allocation75_spill] sm:$0xff] %v11528_v9  ;;  %v3267_v33 = vld [vmem:[#allocation17 + $0x160] sm:$0xff] }
 0x2ad   :  { %7732 = vperm.xlu1 %9593, %v7729_v1   ;;  %v8066_v16 = vcombine.high %v3263_v31, %v3267_v33  ;;  %v8065_v7 = vcombine.low %v3263_v31, %v3267_v33  ;;  %v9756_v9 = vld [vmem:[#allocation11 + $0xcc] ss:$16 sps:$4 sm:$0xff]  }
 0x2ae   :  { %v3287_v31 = vld [vmem:[#allocation17 + $0x200] sm:$0xff] }
 0x2af   :  { %v3291_v33 = vld [vmem:[#allocation17 + $0x220] sm:$0xff] }
 0x2b0   :  { %v9762_v46 = vld [vmem:[#allocation11 + $0x10c] ss:$16 sps:$4 sm:$0xff]  }
 0x2b2   :  { %5264 = vmatmul.mubr.bf16.gmra.mrb[204].mxu0 %v8049_v25  ;;  %v9755_v25 = vld [vmem:[#allocation11 + $0xa8] ss:$16 sps:$4 sm:$0xff]  }
 0x2b3   :  { %3006 = vmatmul.mubr.bf16.gmra.mrb[76].mxu1 %v9749_v54  ;;  %5271 = vmatprep.mubr.bf16.mxu0 %v8058_v50  ;;  %v3279_v54 = vld [vmem:[#allocation17 + $0x1c0] sm:$0xff] }
 0x2b4   :  { %3013 = vmatprep.mubr.bf16.mxu1 %v9750_v29  ;;  %v3283_v50 = vld [vmem:[#allocation17 + $0x1e0] sm:$0xff] }
 0x2b5   :  { %v8082_v1 = vcombine.high %v3279_v54, %v3283_v50  ;;  %v9759_v29 = vld [vmem:[#allocation11 + $0xec] ss:$16 sps:$4 sm:$0xff]  }
 0x2ba   :  { %5272 = vmatmul.mubr.bf16.gmra.mrb[208].mxu0 %v8057_v22  ;;  %v9025_v22 = vpop.f32.mrb[96].mxu0 }
 0x2bb   :  { %3014 = vmatmul.mubr.bf16.gmra.mrb[80].mxu1 %v9752_v6  ;;  %5279 = vmatprep.mubr.bf16.mxu0 %v8066_v16  ;;  %v1605_v6 = vpop.f32.mrb[97].mxu0 }
 0x2bc   :  { %3021 = vmatprep.mubr.bf16.mxu1 %v9753_v32  ;;  %v9026_v16 = vpop.f32.mrb[98].mxu0  ;;  %10075 = vtanh.f32 %v1605_v6  ;;  %v8089_v6 = vcombine.low %v3287_v31, %v3291_v33 }
 0x2bd   :  { %v1608_v32 = vpop.f32.mrb[99].mxu0  ;;  %10077 = vtanh.f32 %v9025_v22 }
 0x2be   :  { %10079 = vtanh.f32 %v1608_v32  ;;  %v9029_v38 = vpop.f32.mrb[100].mxu0 }
 0x2bf   :  { %10081 = vtanh.f32 %v9026_v16 }
 0x2c2   :  { %5280 = vmatmul.mubr.bf16.gmra.mrb[212].mxu0 %v8065_v7  ;;  %v8081_v7 = vcombine.low %v3279_v54, %v3283_v50  ;;  %v9764_v50 = vld [vmem:[#allocation11 + $0x108] ss:$16 sps:$4 sm:$0xff]  }
 0x2c3   :  { %3022 = vmatmul.mubr.bf16.gmra.mrb[84].mxu1 %v9755_v25  ;;  %5287 = vmatprep.mubr.bf16.mxu0 %v8074_v17  ;;  %v9761_v17 = vld [vmem:[#allocation11 + $0xe8] ss:$16 sps:$4 sm:$0xff]   ;;  %v1621_v25 = vpop.f32.mrb[101].mxu0 }
 0x2c4   :  { %3029 = vmatprep.mubr.bf16.mxu1 %v9756_v9  ;;  %v8090_v9 = vcombine.high %v3287_v31, %v3291_v33  ;;  %10083 = vtanh.f32 %v1621_v25  ;;  %v3303_v25 = vld [vmem:[#allocation17 + $0x280] sm:$0xff] }
 0x2c5   :  { %10085 = vtanh.f32 %v9029_v38  ;;  %v3307_v31 = vld [vmem:[#allocation17 + $0x2a0] sm:$0xff] }
 0x2c6   :  { %v10076_v54 = vpop.eup %10075 }
 0x2c7   :  { %v10078_v32 = vpop.eup %10077 }
 0x2c8   :  { %v10080_v16 = vpop.eup %10079 }
 0x2ca   :  { %5288 = vmatmul.mubr.bf16.gmra.mrb[216].mxu0 %v8073_v23  ;;  %v3295_v23 = vld [vmem:[#allocation17 + $0x240] sm:$0xff] }
 0x2cb   :  { %3030 = vmatmul.mubr.bf16.gmra.mrb[88].mxu1 %v9758_v49  ;;  %5295 = vmatprep.mubr.bf16.mxu0 %v8082_v1  ;;  %v3299_v49 = vld [vmem:[#allocation17 + $0x260] sm:$0xff]  ;;  %v9030_v1 = vpop.f32.mrb[102].mxu0 }
 0x2cc   :  { %3037 = vmatprep.mubr.bf16.mxu1 %v9759_v29  ;;  %v1624_v29 = vpop.f32.mrb[103].mxu0  ;;  %v8098_v22 = vcombine.high %v3295_v23, %v3299_v49 }
 0x2cd   :  { %10087 = vtanh.f32 %v1624_v29  ;;  %v8097_v29 = vcombine.low %v3295_v23, %v3299_v49  ;;  %v3311_v49 = vld [vmem:[#allocation17 + $0x2c0] sm:$0xff] }
 0x2ce   :  { %10089 = vtanh.f32 %v9030_v1 }
 0x2d2   :  { %5296 = vmatmul.mubr.bf16.gmra.mrb[220].mxu0 %v8081_v7  ;;  %v10082_v7 = vpop.eup %10081 }
 0x2d3   :  { %3038 = vmatmul.mubr.bf16.gmra.mrb[92].mxu1 %v9761_v17  ;;  %5303 = vmatprep.mubr.bf16.mxu0 %v8090_v9  ;;  %v9033_v17 = vpop.f32.mrb[104].mxu0  ;;  %v11530_v9 = vpack.c.bf16 %v10080_v16, %v10076_v54  ;;  %v11534_v1 = vpack.c.bf16 %v10082_v7, %v10078_v32  ;;  %v9767_v54 = vld [vmem:[#allocation11 + $0x128] ss:$16 sps:$4 sm:$0xff]   ;;  %v8106_v16 = vcombine.high %v3303_v25, %v3307_v31  ;;  %v3315_v32 = vld [vmem:[#allocation17 + $0x2e0] sm:$0xff] }
 0x2d4   :  { %3045 = vmatprep.mubr.bf16.mxu1 %v9762_v46  ;;  %v1637_v46 = vpop.f32.mrb[105].mxu0 }
 0x2d5   :  { %12992 = vst [vmem:[#allocation76_spill] sm:$0xff] %v11530_v9  ;;  %5497 = vmatpush1.bf16.msra.mxu0 %v11530_v9  ;;  %v9034_v33 = vpop.f32.mrb[106].mxu0  ;;  %10091 = vtanh.f32 %v1637_v46  ;;  %12993 = vst [vmem:[#allocation77_spill] sm:$0xff] %v11534_v1 }
 0x2d6   :  { %v1640_v38 = vpop.f32.mrb[107].mxu0  ;;  %5498 = vmatprep.subr.bf16.mxu0 %v12961_v53  ;;  %10093 = vtanh.f32 %v9033_v17 }
 0x2d7   :  { %10095 = vtanh.f32 %v1640_v38  ;;  %v9037_v39 = vpop.f32.mrb[108].mxu0  ;;  %v8105_v38 = vcombine.low %v3303_v25, %v3307_v31  ;;  %v3319_v25 = vld [vmem:[#allocation17 + $0x300] sm:$0xff] }
 0x2d8   :  { %10097 = vtanh.f32 %v9034_v33  ;;  %v1653_v23 = vpop.f32.mrb[109].mxu0  ;;  %v3323_v31 = vld [vmem:[#allocation17 + $0x320] sm:$0xff] }
 0x2d9   :  { %5499 = vmatpush1.bf16.msra.mxu0 %v11534_v1  ;;  %v9038_v7 = vpop.f32.mrb[110].mxu0  ;;  %10099 = vtanh.f32 %v1653_v23 }
 0x2da   :  { %5304 = vmatmul.mubr.bf16.gmra.mrb[224].mxu0 %v8089_v6  ;;  %v10084_v6 = vpop.eup %10083  ;;  %5500 = vmatprep.subr.bf16.mxu0 %v12961_v53  ;;  %v1656_v17 = vpop.f32.mrb[111].mxu0  ;;  %10101 = vtanh.f32 %v9037_v39 }
 0x2db   :  { %3046 = vmatmul.mubr.bf16.gmra.mrb[96].mxu1 %v9764_v50  ;;  %5311 = vmatprep.mubr.bf16.mxu0 %v8098_v22  ;;  %v10086_v50 = vpop.eup %10085  ;;  %v9768_v22 = vld [vmem:[#allocation11 + $0x14c] ss:$16 sps:$4 sm:$0xff]   ;;  %10103 = vtanh.f32 %v1656_v17  ;;  %v9041_v43 = vpop.f32.mrb[112].mxu0 }
 0x2dc   :  { %3053 = vmatprep.mubr.bf16.mxu1 %v9765_v52  ;;  %v10088_v52 = vpop.eup %10087  ;;  %10105 = vtanh.f32 %v9038_v7  ;;  %v1669_v39 = vpop.f32.mrb[113].mxu0 }
 0x2dd   :  { %v10090_v46 = vpop.eup %10089  ;;  %v11538_v28 = vpack.c.bf16 %v10088_v52, %v10084_v6  ;;  %v9770_v6 = vld [vmem:[#allocation11 + $0x148] ss:$16 sps:$4 sm:$0xff]   ;;  %v8114_v52 = vcombine.high %v3311_v49, %v3315_v32  ;;  %10107 = vtanh.f32 %v1669_v39 }
 0x2de   :  { %v11542_v33 = vpack.c.bf16 %v10090_v46, %v10086_v50  ;;  %v9042_v50 = vpop.f32.mrb[114].mxu0  ;;  %10109 = vtanh.f32 %v9041_v43 }
 0x2df   :  { %12994 = vst [vmem:[#allocation78_spill] sm:$0xff] %v11538_v28  ;;  %5501 = vmatpush1.bf16.msra.mxu0 %v11538_v28  ;;  %v1672_v46 = vpop.f32.mrb[115].mxu0 }
 0x2e0   :  { %5502 = vmatprep.subr.bf16.mxu0 %v12961_v53  ;;  %12995 = vst [vmem:[#allocation79_spill] sm:$0xff] %v11542_v33  ;;  %10111 = vtanh.f32 %v1672_v46  ;;  %v9045_v43 = vpop.f32.mrb[116].mxu0  ;;  %v3327_v46 = vld [vmem:[#allocation17 + $0x340] sm:$0xff] }
 0x2e1   :  { %10113 = vtanh.f32 %v9042_v50 }
 0x2e2   :  { %5312 = vmatmul.mubr.bf16.gmra.mrb[228].mxu0 %v8097_v29  ;;  %v10092_v29 = vpop.eup %10091  ;;  %10115 = vtanh.f32 %v9045_v43 }
 0x2e3   :  { %3054 = vmatmul.mubr.bf16.gmra.mrb[100].mxu1 %v9767_v54  ;;  %5319 = vmatprep.mubr.bf16.mxu0 %v8106_v16  ;;  %v10094_v54 = vpop.eup %10093  ;;  %v9771_v16 = vld [vmem:[#allocation11 + $0x16c] ss:$16 sps:$4 sm:$0xff]  }
 0x2e4   :  { %3061 = vmatprep.mubr.bf16.mxu1 %v9768_v22  ;;  %5503 = vmatpush1.bf16.msra.mxu0 %v11542_v33  ;;  %v10096_v22 = vpop.eup %10095 }
 0x2e5   :  { %5504 = vmatprep.subr.bf16.mxu0 %v12961_v53  ;;  %v10098_v23 = vpop.eup %10097  ;;  %v11546_v61 = vpack.c.bf16 %v10096_v22, %v10092_v29 }
 0x2e6   :  { %v11550_v7 = vpack.c.bf16 %v10098_v23, %v10094_v54  ;;  %v10100_v29 = vpop.eup %10099  ;;  %v1685_v23 = vpop.f32.mrb[117].mxu0 }
 0x2e7   :  { %12996 = vst [vmem:[#allocation80_spill] sm:$0xff] %v11546_v61  ;;  %v9046_v50 = vpop.f32.mrb[118].mxu0  ;;  %10117 = vtanh.f32 %v1685_v23  ;;  %v3335_v23 = vld [vmem:[#allocation17 + $0x380] sm:$0xff] }
 0x2e8   :  { %5505 = vmatpush1.bf16.msra.mxu0 %v11546_v61  ;;  %12997 = vst [vmem:[#allocation81_spill] sm:$0xff] %v11550_v7  ;;  %10119 = vtanh.f32 %v9046_v50  ;;  %v3339_v50 = vld [vmem:[#allocation17 + $0x3a0] sm:$0xff] }
 0x2e9   :  { %5506 = vmatprep.subr.bf16.mxu0 %v12961_v53  ;;  %v8137_v33 = vcombine.low %v3335_v23, %v3339_v50 }
 0x2ea   :  { %5320 = vmatmul.mubr.bf16.gmra.mrb[232].mxu0 %v8105_v38  ;;  %v8113_v38 = vcombine.low %v3311_v49, %v3315_v32 }
 0x2eb   :  { %3062 = vmatmul.mubr.bf16.gmra.mrb[104].mxu1 %v9770_v6  ;;  %5327 = vmatprep.mubr.bf16.mxu0 %v8114_v52  ;;  %v9773_v6 = vld [vmem:[#allocation11 + $0x168] ss:$16 sps:$4 sm:$0xff]   ;;  %v8122_v52 = vcombine.high %v3319_v25, %v3323_v31 }
 0x2ec   :  { %3069 = vmatprep.mubr.bf16.mxu1 %v9771_v16  ;;  %v10102_v16 = vpop.eup %10101  ;;  %5507 = vmatpush1.bf16.msra.mxu0 %v11550_v7 }
 0x2ed   :  { %v10104_v39 = vpop.eup %10103  ;;  %5508 = vmatprep.subr.bf16.mxu0 %v12961_v53 }
 0x2ee   :  { %v8458_v17 = vpop.f32.mrb[0].mxu1  ;;  %v10106_v54 = vpop.eup %10105  ;;  %v11558_v32 = vpack.c.bf16 %v10104_v39, %v10100_v29  ;;  %v9776_v39 = vld [vmem:[#allocation11 + $0x188] ss:$16 sps:$4 sm:$0xff]  }
 0x2ef   :  { %v8459_v22 = vpop.f32.mrb[1].mxu1  ;;  %v11562_v56 = vpack.c.bf16 %v10106_v54, %v10102_v16 }
 0x2f0   :  { %v11552_v34 = vadd.f32 %v8459_v22, %v8458_v17  ;;  %v8461_v24 = vpop.f32.mrb[2].mxu1  ;;  %12998 = vst [vmem:[#allocation82_spill] sm:$0xff] %v11558_v32  ;;  %v3331_v17 = vld [vmem:[#allocation17 + $0x360] sm:$0xff]  ;;  %5509 = vmatpush1.bf16.msra.mxu0 %v11558_v32  ;;  %v1688_v22 = vpop.f32.mrb[119].mxu0 }
 0x2f1   :  { %v8462_v15 = vpop.f32.mrb[3].mxu1  ;;  %5510 = vmatprep.subr.bf16.mxu0 %v12961_v53  ;;  %12999 = vst [vmem:[#allocation83_spill] sm:$0xff] %v11562_v56  ;;  %10121 = vtanh.f32 %v1688_v22  ;;  %v9049_v16 = vpop.f32.mrb[120].mxu0 }
 0x2f2   :  { %v11556_v49 = vadd.f32 %v8462_v15, %v8461_v24  ;;  %5328 = vmatmul.mubr.bf16.gmra.mrb[236].mxu0 %v8113_v38  ;;  %v8121_v24 = vcombine.low %v3319_v25, %v3323_v31  ;;  %v10108_v38 = vpop.eup %10107  ;;  %v1701_v43 = vpop.f32.mrb[121].mxu0  ;;  %10123 = vtanh.f32 %v9049_v16 }
 0x2f3   :  { %3070 = vmatmul.mubr.bf16.gmra.mrb[108].mxu1 %v9773_v6  ;;  %5335 = vmatprep.mubr.bf16.mxu0 %v8122_v52  ;;  %v8130_v6 = vcombine.high %v3327_v46, %v3331_v17  ;;  %v10110_v52 = vpop.eup %10109  ;;  %10125 = vtanh.f32 %v1701_v43  ;;  %v3343_v43 = vld [vmem:[#allocation17 + $0x3c0] sm:$0xff] }
 0x2f4   :  { %3077 = vmatprep.mubr.bf16.mxu1 %v9774_v47  ;;  %5511 = vmatpush1.bf16.msra.mxu0 %v11562_v56  ;;  %v10112_v62 = vpop.eup %10111  ;;  %v9780_v56 = vld [vmem:[#allocation11 + $0x1cc] ss:$16 sps:$4 sm:$0xff]  }
 0x2f5   :  { %5512 = vmatprep.subr.bf16.mxu0 %v12961_v53  ;;  %v10114_v25 = vpop.eup %10113  ;;  %v11570_v54 = vpack.c.bf16 %v10112_v62, %v10108_v38  ;;  %v9779_v62 = vld [vmem:[#allocation11 + $0x1a8] ss:$16 sps:$4 sm:$0xff]   ;;  %v8138_v38 = vcombine.high %v3335_v23, %v3339_v50 }
 0x2f6   :  { %v8464_v15 = vpop.f32.mrb[4].mxu1  ;;  %v11574_v22 = vpack.c.bf16 %v10114_v25, %v10110_v52 }
 0x2f7   :  { %v8465_v29 = vpop.f32.mrb[5].mxu1  ;;  %13000 = vst [vmem:[#allocation84_spill] sm:$0xff] %v11570_v54 }
 0x2f8   :  { %v11564_v47 = vadd.f32 %v8465_v29, %v8464_v15  ;;  %v8467_v3 = vpop.f32.mrb[6].mxu1  ;;  %5513 = vmatpush1.bf16.msra.mxu0 %v11570_v54  ;;  %v9050_v15 = vpop.f32.mrb[122].mxu0  ;;  %13001 = vst [vmem:[#allocation85_spill] sm:$0xff] %v11574_v22 }
 0x2f9   :  { %v8468_v32 = vpop.f32.mrb[7].mxu1  ;;  %v1704_v29 = vpop.f32.mrb[123].mxu0  ;;  %5514 = vmatprep.subr.bf16.mxu0 %v12961_v53  ;;  %10127 = vtanh.f32 %v9050_v15 }
 0x2fa   :  { %v11568_v31 = vadd.f32 %v8468_v32, %v8467_v3  ;;  %5336 = vmatmul.mubr.bf16.gmra.mrb[240].mxu0 %v8121_v24  ;;  %v8129_v32 = vcombine.low %v3327_v46, %v3331_v17  ;;  %10129 = vtanh.f32 %v1704_v29  ;;  %v9053_v17 = vpop.f32.mrb[124].mxu0 }
 0x2fb   :  { %3078 = vmatmul.mubr.bf16.gmra.mrb[112].mxu1 %v9776_v39  ;;  %5343 = vmatprep.mubr.bf16.mxu0 %v8130_v6  ;;  %v10116_v39 = vpop.eup %10115  ;;  %v1717_v16 = vpop.f32.mrb[125].mxu0  ;;  %10131 = vtanh.f32 %v9053_v17  ;;  %v3351_v17 = vld [vmem:[#allocation17 + $0x400] sm:$0xff] }
 0x2fc   :  { %3085 = vmatprep.mubr.bf16.mxu1 %v9777_v12  ;;  %5515 = vmatpush1.bf16.msra.mxu0 %v11574_v22  ;;  %v10118_v54 = vpop.eup %10117  ;;  %10133 = vtanh.f32 %v1717_v16  ;;  %v3355_v16 = vld [vmem:[#allocation17 + $0x420] sm:$0xff] }
 0x2fd   :  { %5516 = vmatprep.subr.bf16.mxu0 %v12961_v53  ;;  %v10120_v52 = vpop.eup %10119 }
 0x2fe   :  { %v8470_v3 = vpop.f32.mrb[8].mxu1  ;;  %v10122_v25 = vpop.eup %10121  ;;  %v11584_v61 = vpack.c.bf16 %v10120_v52, %v10116_v39 }
 0x2ff   :  { %v8471_v24 = vpop.f32.mrb[9].mxu1  ;;  %v11582_v15 = vpack.c.bf16 %v10122_v25, %v10118_v54 }
 0x300   :  { %v11576_v6 = vadd.f32 %v8471_v24, %v8470_v3  ;;  %v8473_v12 = vpop.f32.mrb[10].mxu1  ;;  %v3347_v3 = vld [vmem:[#allocation17 + $0x3e0] sm:$0xff]  ;;  %v9054_v24 = vpop.f32.mrb[126].mxu0  ;;  %13003 = vst [vmem:[#allocation87_spill] sm:$0xff] %v11584_v61 }
 0x301   :  { %v8474_v7 = vpop.f32.mrb[11].mxu1  ;;  %13002 = vst [vmem:[#allocation86_spill] sm:$0xff] %v11582_v15  ;;  %v1720_v22 = vpop.f32.mrb[127].mxu0  ;;  %5517 = vmatpush1.bf16.msra.mxu0 %v11582_v15  ;;  %10135 = vtanh.f32 %v9054_v24 }
 0x302   :  { %v11580_v46 = vadd.f32 %v8474_v7, %v8473_v12  ;;  %5344 = vmatmul.mubr.bf16.gmra.mrb[244].mxu0 %v8129_v32  ;;  %v9782_v32 = vld [vmem:[#allocation11 + $0x1c8] ss:$16 sps:$4 sm:$0xff]   ;;  %v8146_v12 = vcombine.high %v3343_v43, %v3347_v3  ;;  %5518 = vmatprep.subr.bf16.mxu0 %v12961_v53  ;;  %10137 = vtanh.f32 %v1720_v22  ;;  %v8145_v22 = vcombine.low %v3343_v43, %v3347_v3  ;;  %v3359_v43 = vld [vmem:[#allocation17 + $0x440] sm:$0xff] }
 0x303   :  { %3086 = vmatmul.mubr.bf16.gmra.mrb[116].mxu1 %v9779_v62  ;;  %5351 = vmatprep.mubr.bf16.mxu0 %v8138_v38  ;;  %v9783_v38 = vld [vmem:[#allocation11 + $0x1ec] ss:$16 sps:$4 sm:$0xff]  }
 0x304   :  { %3093 = vmatprep.mubr.bf16.mxu1 %v9780_v56  ;;  %v10124_v56 = vpop.eup %10123  ;;  %v3363_v3 = vld [vmem:[#allocation17 + $0x460] sm:$0xff] }
 0x305   :  { %v10126_v25 = vpop.eup %10125  ;;  %5519 = vmatpush1.bf16.msra.mxu0 %v11584_v61  ;;  %v8153_v61 = vcombine.low %v3351_v17, %v3355_v16 }
 0x306   :  { %v8476_v29 = vpop.f32.mrb[12].mxu1  ;;  %v10128_v52 = vpop.eup %10127  ;;  %5520 = vmatprep.subr.bf16.mxu0 %v12961_v53 }
 0x307   :  { %v8477_v7 = vpop.f32.mrb[13].mxu1  ;;  %v10130_v50 = vpop.eup %10129  ;;  %v11596_v24 = vpack.c.bf16 %v10128_v52, %v10124_v56 }
 0x308   :  { %v11588_v62 = vadd.f32 %v8477_v7, %v8476_v29  ;;  %v8479_v54 = vpop.f32.mrb[14].mxu1  ;;  %v11593_v29 = vpack.c.bf16 %v10130_v50, %v10126_v25  ;;  %v11608_v52 = vpop.f32.mrb[128].mxu0 }
 0x309   :  { %v8480_v39 = vpop.f32.mrb[15].mxu1  ;;  %13005 = vst [vmem:[#allocation89_spill] sm:$0xff] %v11596_v24  ;;  %13007 = vst [vmem:[#allocation91_spill] sm:$0xff] %v11608_v52 }
 0x30a   :  { %v11590_v23 = vadd.f32 %v8480_v39, %v8479_v54  ;;  %5352 = vmatmul.mubr.bf16.gmra.mrb[248].mxu0 %v8137_v33  ;;  %13004 = vst [vmem:[#allocation88_spill] sm:$0xff] %v11593_v29  ;;  %v9785_v54 = vld [vmem:[#allocation11 + $0x1e8] ss:$16 sps:$4 sm:$0xff]   ;;  %v8154_v39 = vcombine.high %v3351_v17, %v3355_v16  ;;  %v10132_v33 = vpop.eup %10131  ;;  %v3367_v16 = vld [vmem:[#allocation17 + $0x480] sm:$0xff] }
 0x30b   :  { %3094 = vmatmul.mubr.bf16.gmra.mrb[120].mxu1 %v9782_v32  ;;  %5359 = vmatprep.mubr.bf16.mxu0 %v8146_v12  ;;  %v10134_v12 = vpop.eup %10133 }
 0x30c   :  { %3101 = vmatprep.mubr.bf16.mxu1 %v9783_v38  ;;  %5521 = vmatpush1.bf16.msra.mxu0 %v11593_v29  ;;  %v10136_v25 = vpop.eup %10135 }
 0x30d   :  { %5522 = vmatprep.subr.bf16.mxu0 %v12961_v53  ;;  %v10138_v56 = vpop.eup %10137 }
 0x30e   :  { %v8482_v7 = vpop.f32.mrb[16].mxu1 }
 0x30f   :  { %v8483_v15 = vpop.f32.mrb[17].mxu1 }
 0x310   :  { %v11598_v28 = vadd.f32 %v8483_v15, %v8482_v7  ;;  %v8485_v32 = vpop.f32.mrb[18].mxu1  ;;  %5523 = vmatpush1.bf16.msra.mxu0 %v11596_v24  ;;  %v11605_v15 = vpack.c.bf16 %v10138_v56, %v10134_v12  ;;  %v11610_v7 = vpack.c.bf16 %v10136_v25, %v10132_v33  ;;  %v3371_v25 = vld [vmem:[#allocation17 + $0x4a0] sm:$0xff]  ;;  %v8161_v24 = vcombine.low %v3359_v43, %v3363_v3 }
 0x311   :  { %v8486_v38 = vpop.f32.mrb[19].mxu1  ;;  %5524 = vmatprep.subr.bf16.mxu0 %v12961_v53 }
 0x312   :  { %v11602_v50 = vadd.f32 %v8486_v38, %v8485_v32  ;;  %5360 = vmatmul.mubr.bf16.gmra.mrb[252].mxu0 %v8145_v22  ;;  %13006 = vst [vmem:[#allocation90_spill] sm:$0xff] %v11605_v15  ;;  %13008 = vst [vmem:[#allocation92_spill] sm:$0xff] %v11610_v7  ;;  %v11612_v32 = vpop.f32.mrb[129].mxu0  ;;  %v8162_v38 = vcombine.high %v3359_v43, %v3363_v3  ;;  %v3379_v43 = vld [vmem:[#allocation17 + $0x4e0] sm:$0xff] }
 0x313   :  { %3102 = vmatmul.mubr.bf16.gmra.mrb[124].mxu1 %v9785_v54  ;;  %5367 = vmatprep.mubr.bf16.mxu0 %v8154_v39  ;;  %13009 = vst [vmem:[#allocation93_spill] sm:$0xff] %v11612_v32  ;;  %v11614_v54 = vpop.f32.mrb[130].mxu0 }
 0x314   :  { %13010 = vst [vmem:[#allocation94_spill] sm:$0xff] %v11614_v54  ;;  %5525 = vmatpush1.bf16.msra.mxu0 %v11605_v15  ;;  %v11622_v33 = vpop.f32.mrb[131].mxu0 }
 0x315   :  { %5526 = vmatprep.subr.bf16.mxu0 %v12961_v53  ;;  %13011 = vst [vmem:[#allocation95_spill] sm:$0xff] %v11622_v33  ;;  %v11624_v17 = vpop.f32.mrb[132].mxu0 }
 0x316   :  { %v8488_v29 = vpop.f32.mrb[20].mxu1  ;;  %13012 = vst [vmem:[#allocation96_spill] sm:$0xff] %v11624_v17 }
 0x317   :  { %v8489_v22 = vpop.f32.mrb[21].mxu1 }
 0x318   :  { %v11616_v39 = vadd.f32 %v8489_v22, %v8488_v29  ;;  %v8491_v1 = vpop.f32.mrb[22].mxu1  ;;  %5527 = vmatpush1.bf16.msra.mxu0 %v11610_v7  ;;  %v11627_v29 = vpop.f32.mrb[133].mxu0 }
 0x319   :  { %v8492_v12 = vpop.f32.mrb[23].mxu1  ;;  %13013 = vst [vmem:[#allocation97_spill] sm:$0xff] %v11627_v29  ;;  %v11629_v22 = vpop.f32.mrb[134].mxu0 }
 0x31a   :  { %v11620_v56 = vadd.f32 %v8492_v12, %v8491_v1  ;;  %5368 = vmatmul.mubr.bf16.gmra.mrb[0].mxu0 %v8153_v61  ;;  %13014 = vst [vmem:[#allocation98_spill] sm:$0xff] %v11629_v22  ;;  %v11631_v9 = vpop.f32.mrb[135].mxu0  ;;  %v8170_v12 = vcombine.high %v3367_v16, %v3371_v25  ;;  %v3375_v22 = vld [vmem:[#allocation17 + $0x4c0] sm:$0xff] }
 0x31b   :  { %5375 = vmatprep.mubr.bf16.mxu0 %v8162_v38  ;;  %13015 = vst [vmem:[#allocation99_spill] sm:$0xff] %v11631_v9  ;;  %v11633_v61 = vpop.f32.mrb[136].mxu0  ;;  %v8178_v33 = vcombine.high %v3375_v22, %v3379_v43 }
 0x31c   :  { %13016 = vst [vmem:[#allocation100_spill] sm:$0xff] %v11633_v61  ;;  %v11639_v7 = vpop.f32.mrb[137].mxu0  ;;  %v8169_v61 = vcombine.low %v3367_v16, %v3371_v25  ;;  %v3383_v16 = vld [vmem:[#allocation17 + $0x500] sm:$0xff] }
 0x31d   :  { %13017 = vst [vmem:[#allocation101_spill] sm:$0xff] %v11639_v7  ;;  %v11641_v29 = vpop.f32.mrb[138].mxu0  ;;  %v3387_v25 = vld [vmem:[#allocation17 + $0x520] sm:$0xff] }
 0x31e   :  { %v8494_v15 = vpop.f32.mrb[24].mxu1  ;;  %13018 = vst [vmem:[#allocation102_spill] sm:$0xff] %v11641_v29  ;;  %v11643_v3 = vpop.f32.mrb[139].mxu0  ;;  %v8186_v11 = vcombine.high %v3383_v16, %v3387_v25 }
 0x31f   :  { %v8495_v1 = vpop.f32.mrb[25].mxu1  ;;  %13019 = vst [vmem:[#allocation103_spill] sm:$0xff] %v11643_v3  ;;  %v11645_v9 = vpop.f32.mrb[140].mxu0 }
 0x320   :  { %v11635_v53 = vadd.f32 %v8495_v1, %v8494_v15  ;;  %v8497_v38 = vpop.f32.mrb[26].mxu1  ;;  %13020 = vst [vmem:[#allocation104_spill] sm:$0xff] %v11645_v9  ;;  %v11647_v15 = vpop.f32.mrb[141].mxu0 }
 0x321   :  { %v8498_v17 = vpop.f32.mrb[27].mxu1  ;;  %13021 = vst [vmem:[#allocation105_spill] sm:$0xff] %v11647_v15 }
 0x322   :  { %v11637_v54 = vadd.f32 %v8498_v17, %v8497_v38  ;;  %5376 = vmatmul.mubr.bf16.gmra.mrb[4].mxu0 %v8161_v24  ;;  %v11649_v17 = vpop.f32.mrb[142].mxu0 }
 0x323   :  { %5383 = vmatprep.mubr.bf16.mxu0 %v8170_v12  ;;  %13022 = vst [vmem:[#allocation106_spill] sm:$0xff] %v11649_v17  ;;  %v11653_v12 = vpop.f32.mrb[143].mxu0 }
 0x324   :  { %13023 = vst [vmem:[#allocation107_spill] sm:$0xff] %v11653_v12  ;;  %v11655_v7 = vpop.f32.mrb[144].mxu0 }
 0x325   :  { %13024 = vst [vmem:[#allocation108_spill] sm:$0xff] %v11655_v7  ;;  %v11659_v9 = vpop.f32.mrb[145].mxu0 }
 0x326   :  { %v8500_v52 = vpop.f32.mrb[28].mxu1  ;;  %13025 = vst [vmem:[#allocation109_spill] sm:$0xff] %v11659_v9  ;;  %v11661_v15 = vpop.f32.mrb[146].mxu0 }
 0x327   :  { %v8501_v1 = vpop.f32.mrb[29].mxu1  ;;  %13026 = vst [vmem:[#allocation110_spill] sm:$0xff] %v11661_v15  ;;  %v11663_v3 = vpop.f32.mrb[147].mxu0 }
 0x328   :  { %v11651_v24 = vadd.f32 %v8501_v1, %v8500_v52  ;;  %v8503_v38 = vpop.f32.mrb[30].mxu1  ;;  %13027 = vst [vmem:[#allocation111_spill] sm:$0xff] %v11663_v3  ;;  %v8177_v1 = vcombine.low %v3375_v22, %v3379_v43  ;;  %v11665_v17 = vpop.f32.mrb[148].mxu0  ;;  %v3391_v3 = vld [vmem:[#allocation17 + $0x540] sm:$0xff] }
 0x329   :  { %v8504_v29 = vpop.f32.mrb[31].mxu1  ;;  %13028 = vst [vmem:[#allocation112_spill] sm:$0xff] %v11665_v17  ;;  %v3395_v22 = vld [vmem:[#allocation17 + $0x560] sm:$0xff] }
 0x32a   :  { %v11657_v32 = vadd.f32 %v8504_v29, %v8503_v38  ;;  %5384 = vmatmul.mubr.bf16.gmra.mrb[8].mxu0 %v8169_v61  ;;  %v11669_v61 = vpop.f32.mrb[149].mxu0 }
 0x32b   :  { %5391 = vmatprep.mubr.bf16.mxu0 %v8178_v33  ;;  %13029 = vst [vmem:[#allocation113_spill] sm:$0xff] %v11669_v61  ;;  %v11673_v7 = vpop.f32.mrb[150].mxu0  ;;  %v8194_v61 = vcombine.high %v3391_v3, %v3395_v22 }
 0x32c   :  { %13030 = vst [vmem:[#allocation114_spill] sm:$0xff] %v11673_v7  ;;  %v11675_v15 = vpop.f32.mrb[151].mxu0 }
 0x32d   :  { %13031 = vst [vmem:[#allocation115_spill] sm:$0xff] %v11675_v15  ;;  %v11677_v43 = vpop.f32.mrb[152].mxu0 }
 0x32e   :  { %v8506_v52 = vpop.f32.mrb[32].mxu1  ;;  %13032 = vst [vmem:[#allocation116_spill] sm:$0xff] %v11677_v43  ;;  %v11679_v17 = vpop.f32.mrb[153].mxu0 }
 0x32f   :  { %v8507_v12 = vpop.f32.mrb[33].mxu1  ;;  %13033 = vst [vmem:[#allocation117_spill] sm:$0xff] %v11679_v17  ;;  %v11681_v9 = vpop.f32.mrb[154].mxu0 }
 0x330   :  { %v11667_v59 = vadd.f32 %v8507_v12, %v8506_v52  ;;  %v8509_v29 = vpop.f32.mrb[34].mxu1  ;;  %v8185_v52 = vcombine.low %v3383_v16, %v3387_v25  ;;  %13034 = vst [vmem:[#allocation118_spill] sm:$0xff] %v11681_v9  ;;  %v3399_v25 = vld [vmem:[#allocation17 + $0x580] sm:$0xff] }
 0x331   :  { %v8510_v38 = vpop.f32.mrb[35].mxu1  ;;  %v3403_v9 = vld [vmem:[#allocation17 + $0x5a0] sm:$0xff] }
 0x332   :  { %v11671_v33 = vadd.f32 %v8510_v38, %v8509_v29  ;;  %5392 = vmatmul.mubr.bf16.gmra.mrb[12].mxu0 %v8177_v1  ;;  %v11683_v29 = vpop.f32.mrb[155].mxu0 }
 0x333   :  { %5399 = vmatprep.mubr.bf16.mxu0 %v8186_v11  ;;  %13035 = vst [vmem:[#allocation119_spill] sm:$0xff] %v11683_v29  ;;  %v11687_v11 = vpop.f32.mrb[156].mxu0  ;;  %v8193_v29 = vcombine.low %v3391_v3, %v3395_v22  ;;  %v3407_v22 = vld [vmem:[#allocation17 + $0x5c0] sm:$0xff] }
 0x334   :  { %13036 = vst [vmem:[#allocation120_spill] sm:$0xff] %v11687_v11  ;;  %v11689_v15 = vpop.f32.mrb[157].mxu0 }
 0x335   :  { %13037 = vst [vmem:[#allocation121_spill] sm:$0xff] %v11689_v15  ;;  %v11693_v43 = vpop.f32.mrb[158].mxu0  ;;  %v8202_v15 = vcombine.high %v3399_v25, %v3403_v9 }
 0x336   :  { %v8512_v12 = vpop.f32.mrb[36].mxu1  ;;  %13038 = vst [vmem:[#allocation122_spill] sm:$0xff] %v11693_v43  ;;  %v11695_v16 = vpop.f32.mrb[159].mxu0 }
 0x337   :  { %v8513_v26 = vpop.f32.mrb[37].mxu1  ;;  %13039 = vst [vmem:[#allocation123_spill] sm:$0xff] %v11695_v16  ;;  %v11697_v17 = vpop.f32.mrb[160].mxu0 }
 0x338   :  { %v11685_v1 = vadd.f32 %v8513_v26, %v8512_v12  ;;  %v8515_v38 = vpop.f32.mrb[38].mxu1  ;;  %13040 = vst [vmem:[#allocation124_spill] sm:$0xff] %v11697_v17  ;;  %v11699_v26 = vpop.f32.mrb[161].mxu0 }
 0x339   :  { %v8516_v7 = vpop.f32.mrb[39].mxu1  ;;  %13041 = vst [vmem:[#allocation125_spill] sm:$0xff] %v11699_v26  ;;  %v11701_v11 = vpop.f32.mrb[162].mxu0 }
 0x33a   :  { %v11691_v30 = vadd.f32 %v8516_v7, %v8515_v38  ;;  %5400 = vmatmul.mubr.bf16.gmra.mrb[16].mxu0 %v8185_v52  ;;  %13042 = vst [vmem:[#allocation126_spill] sm:$0xff] %v11701_v11  ;;  %v11703_v7 = vpop.f32.mrb[163].mxu0  ;;  %v3411_v11 = vld [vmem:[#allocation17 + $0x5e0] sm:$0xff] }
 0x33b   :  { %5407 = vmatprep.mubr.bf16.mxu0 %v8194_v61  ;;  %13043 = vst [vmem:[#allocation127_spill] sm:$0xff] %v11703_v7  ;;  %v11707_v61 = vpop.f32.mrb[164].mxu0  ;;  %v8201_v7 = vcombine.low %v3399_v25, %v3403_v9  ;;  %v3415_v25 = vld [vmem:[#allocation17 + $0x600] sm:$0xff] }
 0x33c   :  { %13044 = vst [vmem:[#allocation128_spill] sm:$0xff] %v11707_v61  ;;  %v11709_v16 = vpop.f32.mrb[165].mxu0 }
 0x33d   :  { %13045 = vst [vmem:[#allocation129_spill] sm:$0xff] %v11709_v16  ;;  %v11713_v17 = vpop.f32.mrb[166].mxu0  ;;  %v8210_v16 = vcombine.high %v3407_v22, %v3411_v11 }
 0x33e   :  { %v8518_v12 = vpop.f32.mrb[40].mxu1  ;;  %13046 = vst [vmem:[#allocation130_spill] sm:$0xff] %v11713_v17  ;;  %v11715_v3 = vpop.f32.mrb[167].mxu0 }
 0x33f   :  { %v8519_v51 = vpop.f32.mrb[41].mxu1  ;;  %13047 = vst [vmem:[#allocation131_spill] sm:$0xff] %v11715_v3  ;;  %v11717_v26 = vpop.f32.mrb[168].mxu0 }
 0x340   :  { %v11705_v52 = vadd.f32 %v8519_v51, %v8518_v12  ;;  %v8521_v38 = vpop.f32.mrb[42].mxu1  ;;  %13048 = vst [vmem:[#allocation132_spill] sm:$0xff] %v11717_v26  ;;  %v11719_v51 = vpop.f32.mrb[169].mxu0 }
 0x341   :  { %v8522_v43 = vpop.f32.mrb[43].mxu1  ;;  %13049 = vst [vmem:[#allocation133_spill] sm:$0xff] %v11719_v51  ;;  %v11721_v61 = vpop.f32.mrb[170].mxu0 }
 0x342   :  { %v11711_v0 = vadd.f32 %v8522_v43, %v8521_v38  ;;  %5408 = vmatmul.mubr.bf16.gmra.mrb[20].mxu0 %v8193_v29  ;;  %13050 = vst [vmem:[#allocation134_spill] sm:$0xff] %v11721_v61  ;;  %v11723_v43 = vpop.f32.mrb[171].mxu0  ;;  %v3419_v61 = vld [vmem:[#allocation17 + $0x620] sm:$0xff] }
 0x343   :  { %5415 = vmatprep.mubr.bf16.mxu0 %v8202_v15  ;;  %13051 = vst [vmem:[#allocation135_spill] sm:$0xff] %v11723_v43  ;;  %v11727_v15 = vpop.f32.mrb[172].mxu0  ;;  %v8209_v43 = vcombine.low %v3407_v22, %v3411_v11  ;;  %v3423_v22 = vld [vmem:[#allocation17 + $0x640] sm:$0xff] }
 0x344   :  { %13053 = vst [vmem:[#allocation137_spill] sm:$0xff] %v11727_v15  ;;  %v11729_v3 = vpop.f32.mrb[173].mxu0 }
 0x345   :  { %13054 = vst [vmem:[#allocation138_spill] sm:$0xff] %v11729_v3  ;;  %v11733_v26 = vpop.f32.mrb[174].mxu0  ;;  %v8218_v3 = vcombine.high %v3415_v25, %v3419_v61 }
 0x346   :  { %v8524_v12 = vpop.f32.mrb[44].mxu1  ;;  %13056 = vst [vmem:[#allocation140_spill] sm:$0xff] %v11733_v26  ;;  %v11735_v9 = vpop.f32.mrb[175].mxu0 }
 0x347   :  { %v8525_v44 = vpop.f32.mrb[45].mxu1  ;;  %13057 = vst [vmem:[#allocation141_spill] sm:$0xff] %v11735_v9  ;;  %v11737_v51 = vpop.f32.mrb[176].mxu0 }
 0x348   :  { %v11725_v29 = vadd.f32 %v8525_v44, %v8524_v12  ;;  %v8527_v38 = vpop.f32.mrb[46].mxu1  ;;  %13058 = vst [vmem:[#allocation142_spill] sm:$0xff] %v11737_v51  ;;  %v11739_v44 = vpop.f32.mrb[177].mxu0 }
 0x349   :  { %v8528_v17 = vpop.f32.mrb[47].mxu1  ;;  %13059 = vst [vmem:[#allocation143_spill] sm:$0xff] %v11739_v44  ;;  %v11741_v15 = vpop.f32.mrb[178].mxu0 }
 0x34a   :  { %13052 = vst [vmem:[#allocation136_spill] sm:$0xff] %v11725_v29  ;;  %v11731_v14 = vadd.f32 %v8528_v17, %v8527_v38  ;;  %5416 = vmatmul.mubr.bf16.gmra.mrb[24].mxu0 %v8201_v7  ;;  %13060 = vst [vmem:[#allocation144_spill] sm:$0xff] %v11741_v15  ;;  %v11743_v17 = vpop.f32.mrb[179].mxu0  ;;  %v3427_v15 = vld [vmem:[#allocation17 + $0x660] sm:$0xff] }
 0x34b   :  { %5423 = vmatprep.mubr.bf16.mxu0 %v8210_v16  ;;  %13061 = vst [vmem:[#allocation145_spill] sm:$0xff] %v11743_v17  ;;  %v11747_v16 = vpop.f32.mrb[180].mxu0  ;;  %v8217_v17 = vcombine.low %v3415_v25, %v3419_v61  ;;  %v3431_v25 = vld [vmem:[#allocation17 + $0x680] sm:$0xff] }
 0x34c   :  { %13055 = vst [vmem:[#allocation139_spill] sm:$0xff] %v11731_v14  ;;  %13063 = vst [vmem:[#allocation147_spill] sm:$0xff] %v11747_v16  ;;  %v11749_v9 = vpop.f32.mrb[181].mxu0 }
 0x34d   :  { %13064 = vst [vmem:[#allocation148_spill] sm:$0xff] %v11749_v9  ;;  %v11753_v51 = vpop.f32.mrb[182].mxu0  ;;  %v8226_v9 = vcombine.high %v3423_v22, %v3427_v15 }
 0x34e   :  { %v8530_v12 = vpop.f32.mrb[48].mxu1  ;;  %13066 = vst [vmem:[#allocation150_spill] sm:$0xff] %v11753_v51  ;;  %v11755_v11 = vpop.f32.mrb[183].mxu0 }
 0x34f   :  { %v8531_v55 = vpop.f32.mrb[49].mxu1  ;;  %13067 = vst [vmem:[#allocation151_spill] sm:$0xff] %v11755_v11  ;;  %v11757_v44 = vpop.f32.mrb[184].mxu0 }
 0x350   :  { %v11745_v7 = vadd.f32 %v8531_v55, %v8530_v12  ;;  %v8533_v38 = vpop.f32.mrb[50].mxu1  ;;  %13068 = vst [vmem:[#allocation152_spill] sm:$0xff] %v11757_v44  ;;  %v11759_v55 = vpop.f32.mrb[185].mxu0 }
 0x351   :  { %v8534_v26 = vpop.f32.mrb[51].mxu1  ;;  %13069 = vst [vmem:[#allocation153_spill] sm:$0xff] %v11759_v55  ;;  %v11761_v16 = vpop.f32.mrb[186].mxu0 }
 0x352   :  { %13062 = vst [vmem:[#allocation146_spill] sm:$0xff] %v11745_v7  ;;  %v11751_v14 = vadd.f32 %v8534_v26, %v8533_v38  ;;  %5424 = vmatmul.mubr.bf16.gmra.mrb[28].mxu0 %v8209_v43  ;;  %13070 = vst [vmem:[#allocation154_spill] sm:$0xff] %v11761_v16  ;;  %v11763_v26 = vpop.f32.mrb[187].mxu0  ;;  %v3435_v16 = vld [vmem:[#allocation17 + $0x6a0] sm:$0xff] }
 0x353   :  { %5431 = vmatprep.mubr.bf16.mxu0 %v8218_v3  ;;  %13071 = vst [vmem:[#allocation155_spill] sm:$0xff] %v11763_v26  ;;  %v11767_v3 = vpop.f32.mrb[188].mxu0  ;;  %v8225_v26 = vcombine.low %v3423_v22, %v3427_v15 }
 0x354   :  { %13065 = vst [vmem:[#allocation149_spill] sm:$0xff] %v11751_v14  ;;  %13073 = vst [vmem:[#allocation157_spill] sm:$0xff] %v11767_v3  ;;  %v11769_v11 = vpop.f32.mrb[189].mxu0 }
 0x355   :  { %13074 = vst [vmem:[#allocation158_spill] sm:$0xff] %v11769_v11  ;;  %v11773_v44 = vpop.f32.mrb[190].mxu0 }
 0x356   :  { %v8536_v12 = vpop.f32.mrb[52].mxu1  ;;  %13076 = vst [vmem:[#allocation160_spill] sm:$0xff] %v11773_v44  ;;  %v11775_v61 = vpop.f32.mrb[191].mxu0 }
 0x357   :  { %v8537_v7 = vpop.f32.mrb[53].mxu1  ;;  %13077 = vst [vmem:[#allocation161_spill] sm:$0xff] %v11775_v61 }
 0x358   :  { %v11765_v43 = vadd.f32 %v8537_v7, %v8536_v12  ;;  %v8539_v38 = vpop.f32.mrb[54].mxu1  ;;  %v8234_v12 = vcombine.high %v3431_v25, %v3435_v16 }
 0x359   :  { %v8540_v51 = vpop.f32.mrb[55].mxu1 }
 0x35a   :  { %13072 = vst [vmem:[#allocation156_spill] sm:$0xff] %v11765_v43  ;;  %v11771_v14 = vadd.f32 %v8540_v51, %v8539_v38  ;;  %5432 = vmatmul.mubr.bf16.gmra.mrb[32].mxu0 %v8217_v17  ;;  %v3439_v51 = vld [vmem:[#allocation17 + $0x6c0] sm:$0xff] }
 0x35b   :  { %5439 = vmatprep.mubr.bf16.mxu0 %v8226_v9  ;;  %v3443_v17 = vld [vmem:[#allocation17 + $0x6e0] sm:$0xff]  ;;  %v8233_v9 = vcombine.low %v3431_v25, %v3435_v16 }
 0x35c   :  { %13075 = vst [vmem:[#allocation159_spill] sm:$0xff] %v11771_v14  ;;  %v8242_v61 = vcombine.high %v3439_v51, %v3443_v17 }
 0x35e   :  { %v8542_v55 = vpop.f32.mrb[56].mxu1 }
 0x35f   :  { %v8543_v7 = vpop.f32.mrb[57].mxu1 }
 0x360   :  { %v11777_v43 = vadd.f32 %v8543_v7, %v8542_v55  ;;  %v8545_v3 = vpop.f32.mrb[58].mxu1  ;;  %v3447_v55 = vld [vmem:[#allocation17 + $0x700] sm:$0xff] }
 0x361   :  { %v8546_v29 = vpop.f32.mrb[59].mxu1  ;;  %v3451_v7 = vld [vmem:[#allocation17 + $0x720] sm:$0xff] }
 0x362   :  { %13078 = vst [vmem:[#allocation162_spill] sm:$0xff] %v11777_v43  ;;  %v11779_v45 = vadd.f32 %v8546_v29, %v8545_v3  ;;  %5440 = vmatmul.mubr.bf16.gmra.mrb[36].mxu0 %v8225_v26  ;;  %v8241_v3 = vcombine.low %v3439_v51, %v3443_v17  ;;  %v8249_v17 = vcombine.low %v3447_v55, %v3451_v7 }
 0x363   :  { %5447 = vmatprep.mubr.bf16.mxu0 %v8234_v12  ;;  %v8250_v12 = vcombine.high %v3447_v55, %v3451_v7  ;;  %v3467_v55 = vld [vmem:[#allocation17 + $0x7a0] sm:$0xff] }
 0x364   :  { %13079 = vst [vmem:[#allocation163_spill] sm:$0xff] %v11779_v45  ;;  %v2823_v45 = vadd.f32 %v11552_v34, %v11255_v18  ;;  %v2831_v18 = vadd.f32 %v11564_v47, %v11269_v58 }
 0x366   :  { %v8548_v38 = vpop.f32.mrb[60].mxu1 }
 0x367   :  { %v8549_v44 = vpop.f32.mrb[61].mxu1 }
 0x368   :  { %v11781_v11 = vadd.f32 %v8549_v44, %v8548_v38  ;;  %v8551_v14 = vpop.f32.mrb[62].mxu1  ;;  %v2826_v38 = vadd.f32 %v11556_v49, %v11262_v42  ;;  %v2834_v42 = vadd.f32 %v11568_v31, %v11283_v10 }
 0x369   :  { %v8552_v15 = vpop.f32.mrb[63].mxu1 }
 0x36a   :  { %13080 = vst [vmem:[#allocation164_spill] sm:$0xff] %v11781_v11  ;;  %v11783_v22 = vadd.f32 %v8552_v15, %v8551_v14  ;;  %5448 = vmatmul.mubr.bf16.gmra.mrb[40].mxu0 %v8233_v9  ;;  %v3455_v9 = vld [vmem:[#allocation17 + $0x740] sm:$0xff] }
 0x36b   :  { %5455 = vmatprep.mubr.bf16.mxu0 %v8242_v61  ;;  %v3459_v15 = vld [vmem:[#allocation17 + $0x760] sm:$0xff] }
 0x36c   :  { %13081 = vst [vmem:[#allocation165_spill] sm:$0xff] %v11783_v22  ;;  %v8258_v11 = vcombine.high %v3455_v9, %v3459_v15  ;;  %v8257_v47 = vcombine.low %v3455_v9, %v3459_v15 }
 0x36e   :  { %v8570_v29 = vpop.f32.mrb[64].mxu1 }
 0x36f   :  { %v8571_v26 = vpop.f32.mrb[65].mxu1 }
 0x370   :  { %v8572_v16 = vadd.f32 %v8571_v26, %v8570_v29  ;;  %v8573_v25 = vpop.f32.mrb[66].mxu1 }
 0x371   :  { %v8574_v43 = vpop.f32.mrb[67].mxu1 }
 0x372   :  { %v2984_v44 = vadd.f32 %v8572_v16, %v2823_v45  ;;  %v8575_v14 = vadd.f32 %v8574_v43, %v8573_v25  ;;  %5456 = vmatmul.mubr.bf16.gmra.mrb[44].mxu0 %v8241_v3  ;;  %v11793_v3 = vld [vmem:[#allocation14] sm:$0xff] }
 0x373   :  { %5463 = vmatprep.mubr.bf16.mxu0 %v8250_v12  ;;  %v3463_v12 = vld [vmem:[#allocation17 + $0x780] sm:$0xff]  ;;  %v3150_v7 = vcombine.high %v11793_v3, %v11793_v3 }
 0x374   :  { %v2987_v61 = vadd.f32 %v8575_v14, %v2826_v38  ;;  %10139 = vtanh.f32 %v2984_v44  ;;  %v8266_v31 = vcombine.high %v3463_v12, %v3467_v55 }
 0x375   :  { %3216 = vmatprep.mubr.f32.mxu1 %v3150_v7  ;;  %v2850_v7 = vadd.f32 %v11590_v23, %v11341_v20  ;;  %v2855_v20 = vadd.f32 %v11598_v28, %v11350_v41 }
 0x376   :  { %10141 = vtanh.f32 %v2987_v61  ;;  %v8576_v51 = vpop.f32.mrb[68].mxu1  ;;  %v2842_v61 = vadd.f32 %v11580_v46, %v11306_v5  ;;  %v2847_v5 = vadd.f32 %v11588_v62, %v11321_v60 }
 0x377   :  { %v8577_v22 = vpop.f32.mrb[69].mxu1 }
 0x378   :  { %v8578_v34 = vadd.f32 %v8577_v22, %v8576_v51  ;;  %v8579_v45 = vpop.f32.mrb[70].mxu1 }
 0x379   :  { %v8580_v29 = vpop.f32.mrb[71].mxu1 }
 0x37a   :  { %v2992_v49 = vadd.f32 %v8578_v34, %v2831_v18  ;;  %v8581_v43 = vadd.f32 %v8580_v29, %v8579_v45  ;;  %5464 = vmatmul.mubr.bf16.gmra.mrb[48].mxu0 %v8249_v17  ;;  %v3471_v17 = vld [vmem:[#allocation17 + $0x7c0] sm:$0xff] }
 0x37b   :  { %5471 = vmatprep.mubr.bf16.mxu0 %v8258_v11  ;;  %v2839_v11 = vadd.f32 %v11576_v6, %v11289_v27  ;;  %v3475_v18 = vld [vmem:[#allocation17 + $0x7e0] sm:$0xff]  ;;  %v8265_v27 = vcombine.low %v3463_v12, %v3467_v55 }
 0x37c   :  { %v2995_v26 = vadd.f32 %v8581_v43, %v2834_v42  ;;  %10143 = vtanh.f32 %v2992_v49  ;;  %v8274_v29 = vcombine.high %v3471_v17, %v3475_v18  ;;  %v8273_v60 = vcombine.low %v3471_v17, %v3475_v18 }
 0x37e   :  { %10145 = vtanh.f32 %v2995_v26  ;;  %v8582_v58 = vpop.f32.mrb[72].mxu1  ;;  %v11797_v22 = vpop.eup %10139 }
 0x37f   :  { %v8583_v10 = vpop.f32.mrb[73].mxu1 }
 0x380   :  { %v11799_v16 = vpop.eup %10141  ;;  %v8584_v25 = vadd.f32 %v8583_v10, %v8582_v58  ;;  %v8585_v44 = vpop.f32.mrb[74].mxu1  ;;  %v3228_v10 = vld [vmem:[#allocation17 + $0x28] sm:$0xff] }
 0x381   :  { %v8586_v38 = vpop.f32.mrb[75].mxu1  ;;  %v9121_v14 = vpack.c.bf16 %v11799_v16, %v11797_v22  ;;  %v13085_v22 = vld [vmem:[#allocation139_spill] sm:$0xff] }
 0x382   :  { %v3000_v9 = vadd.f32 %v8584_v25, %v2839_v11  ;;  %v8587_v15 = vadd.f32 %v8586_v38, %v8585_v44  ;;  %5472 = vmatmul.mubr.bf16.gmra.mrb[52].mxu0 %v8257_v47  ;;  %v3224_v47 = vld [vmem:[#allocation17 + $0x8] sm:$0xff] }
 0x383   :  { %5479 = vmatprep.mubr.bf16.mxu0 %v8266_v31  ;;  %v8028_v25 = vcombine.high %v3224_v47, %v3228_v10  ;;  %v8027_v41 = vcombine.low %v3224_v47, %v3228_v10  ;;  %v3240_v10 = vld [vmem:[#allocation17 + $0x88] sm:$0xff] }
 0x384   :  { %v3003_v51 = vadd.f32 %v8587_v15, %v2842_v61  ;;  %10147 = vtanh.f32 %v3000_v9  ;;  %v2858_v15 = vadd.f32 %v11602_v50, %v11367_v21  ;;  %v2863_v21 = vadd.f32 %v11616_v39, %v11379_v37 }
 0x386   :  { %10149 = vtanh.f32 %v3003_v51  ;;  %v8588_v34 = vpop.f32.mrb[76].mxu1  ;;  %v11807_v6 = vpop.eup %10143 }
 0x387   :  { %v8589_v45 = vpop.f32.mrb[77].mxu1 }
 0x388   :  { %v11809_v42 = vpop.eup %10145  ;;  %v8590_v46 = vadd.f32 %v8589_v45, %v8588_v34  ;;  %v8591_v49 = vpop.f32.mrb[78].mxu1  ;;  %v3232_v34 = vld [vmem:[#allocation17 + $0x48] sm:$0xff] }
 0x389   :  { %v8592_v43 = vpop.f32.mrb[79].mxu1  ;;  %v9125_v26 = vpack.c.bf16 %v11809_v42, %v11807_v6  ;;  %v13089_v6 = vld [vmem:[#allocation149_spill] sm:$0xff] }
 0x38a   :  { %v3008_v58 = vadd.f32 %v8590_v46, %v2847_v5  ;;  %v8593_v12 = vadd.f32 %v8592_v43, %v8591_v49  ;;  %5480 = vmatmul.mubr.bf16.gmra.mrb[56].mxu0 %v8265_v27  ;;  %v3236_v27 = vld [vmem:[#allocation17 + $0x68] sm:$0xff] }
 0x38b   :  { %5487 = vmatprep.mubr.bf16.mxu0 %v8274_v29  ;;  %v8036_v5 = vcombine.high %v3232_v34, %v3236_v27  ;;  %v8035_v37 = vcombine.low %v3232_v34, %v3236_v27  ;;  %v3248_v34 = vld [vmem:[#allocation17 + $0xc8] sm:$0xff] }
 0x38c   :  { %v3011_v55 = vadd.f32 %v8593_v12, %v2850_v7  ;;  %10151 = vtanh.f32 %v3008_v58  ;;  %v2866_v58 = vadd.f32 %v11620_v56, %v11387_v36  ;;  %v2871_v36 = vadd.f32 %v11635_v53, %v11393_v19  ;;  %v3252_v27 = vld [vmem:[#allocation17 + $0xe8] sm:$0xff] }
 0x38e   :  { %10153 = vtanh.f32 %v3011_v55  ;;  %v8594_v31 = vpop.f32.mrb[80].mxu1  ;;  %v11817_v62 = vpop.eup %10147 }
 0x38f   :  { %v8595_v11 = vpop.f32.mrb[81].mxu1 }
 0x390   :  { %v11819_v44 = vpop.eup %10149  ;;  %v8596_v23 = vadd.f32 %v8595_v11, %v8594_v31  ;;  %v8597_v38 = vpop.f32.mrb[82].mxu1  ;;  %v3244_v31 = vld [vmem:[#allocation17 + $0xa8] sm:$0xff] }
 0x391   :  { %v8598_v61 = vpop.f32.mrb[83].mxu1  ;;  %v9129_v9 = vpack.c.bf16 %v11819_v44, %v11817_v62  ;;  %v8043_v19 = vcombine.low %v3240_v10, %v3244_v31 }
 0x392   :  { %v3016_v51 = vadd.f32 %v8596_v23, %v2855_v20  ;;  %v8599_v17 = vadd.f32 %v8598_v61, %v8597_v38  ;;  %5488 = vmatmul.mubr.bf16.gmra.mrb[60].mxu0 %v8273_v60 }
 0x393   :  { %5528 = vmatprep.mubr.bf16.mxu0 %v8028_v25  ;;  %v8044_v25 = vcombine.high %v3240_v10, %v3244_v31  ;;  %v3260_v10 = vld [vmem:[#allocation17 + $0x128] sm:$0xff] }
 0x394   :  { %v3019_v18 = vadd.f32 %v8599_v17, %v2858_v15  ;;  %10155 = vtanh.f32 %v3016_v51  ;;  %v2874_v15 = vadd.f32 %v11637_v54, %v11406_v48  ;;  %v2879_v48 = vadd.f32 %v11651_v24, %v11413_v63 }
 0x395   :  { %v8051_v63 = vcombine.low %v3248_v34, %v3252_v27 }
 0x396   :  { %10157 = vtanh.f32 %v3019_v18  ;;  %v8600_v45 = vpop.f32.mrb[84].mxu1  ;;  %v11827_v28 = vpop.eup %10151 }
 0x397   :  { %v8601_v29 = vpop.f32.mrb[85].mxu1 }
 0x398   :  { %v11829_v46 = vpop.eup %10153  ;;  %v8602_v50 = vadd.f32 %v8601_v29, %v8600_v45  ;;  %v8603_v49 = vpop.f32.mrb[86].mxu1  ;;  %v8052_v29 = vcombine.high %v3248_v34, %v3252_v27 }
 0x399   :  { %v8604_v43 = vpop.f32.mrb[87].mxu1  ;;  %v9133_v7 = vpack.c.bf16 %v11829_v46, %v11827_v28 }
 0x39a   :  { %v3024_v12 = vadd.f32 %v8602_v50, %v2863_v21  ;;  %v8605_v55 = vadd.f32 %v8604_v43, %v8603_v49  ;;  %5529 = vmatmul.mubr.bf16.vlgmr.msra.gmra.mrb[192].mxu0 %v8027_v41  ;;  %v2882_v43 = vadd.f32 %v11657_v32, %v11427_v2  ;;  %v2887_v2 = vadd.f32 %v11667_v59, %v11249_v57 }
 0x39b   :  { %5536 = vmatprep.mubr.bf16.mxu0 %v8036_v5 }
 0x39c   :  { %v3027_v47 = vadd.f32 %v8605_v55, %v2866_v58  ;;  %10159 = vtanh.f32 %v3024_v12 }
 0x39e   :  { %10161 = vtanh.f32 %v3027_v47  ;;  %v8606_v60 = vpop.f32.mrb[88].mxu1  ;;  %v11837_v39 = vpop.eup %10155  ;;  %v3256_v47 = vld [vmem:[#allocation17 + $0x108] sm:$0xff] }
 0x39f   :  { %v8607_v11 = vpop.f32.mrb[89].mxu1  ;;  %v8059_v57 = vcombine.low %v3256_v47, %v3260_v10 }
 0x3a0   :  { %v11839_v20 = vpop.eup %10157  ;;  %v8608_v56 = vadd.f32 %v8607_v11, %v8606_v60  ;;  %v8609_v23 = vpop.f32.mrb[90].mxu1 }
 0x3a1   :  { %v8610_v38 = vpop.f32.mrb[91].mxu1  ;;  %v9137_v61 = vpack.c.bf16 %v11839_v20, %v11837_v39 }
 0x3a2   :  { %v3032_v51 = vadd.f32 %v8608_v56, %v2871_v36  ;;  %v8611_v17 = vadd.f32 %v8610_v38, %v8609_v23  ;;  %5537 = vmatmul.mubr.bf16.gmra.mrb[196].mxu0 %v8035_v37  ;;  %v8060_v37 = vcombine.high %v3256_v47, %v3260_v10  ;;  %v2890_v23 = vadd.f32 %v11671_v33, %v11252_v13 }
 0x3a3   :  { %5544 = vmatprep.mubr.bf16.mxu0 %v8044_v25  ;;  %v2895_v13 = vadd.f32 %v11685_v1, %v11260_v35 }
 0x3a4   :  { %v3035_v18 = vadd.f32 %v8611_v17, %v2874_v15  ;;  %10163 = vtanh.f32 %v3032_v51  ;;  %v3264_v17 = vld [vmem:[#allocation17 + $0x148] sm:$0xff] }
 0x3a6   :  { %10165 = vtanh.f32 %v3035_v18  ;;  %v8612_v45 = vpop.f32.mrb[92].mxu1  ;;  %v11847_v53 = vpop.eup %10159  ;;  %v3268_v18 = vld [vmem:[#allocation17 + $0x168] sm:$0xff] }
 0x3a7   :  { %v8613_v41 = vpop.f32.mrb[93].mxu1  ;;  %v8067_v35 = vcombine.low %v3264_v17, %v3268_v18 }
 0x3a8   :  { %v11849_v5 = vpop.eup %10161  ;;  %v8614_v54 = vadd.f32 %v8613_v41, %v8612_v45  ;;  %v8615_v21 = vpop.f32.mrb[94].mxu1  ;;  %v8068_v45 = vcombine.high %v3264_v17, %v3268_v18  ;;  %v13083_v18 = vld [vmem:[#allocation136_spill] sm:$0xff] }
 0x3a9   :  { %v8616_v50 = vpop.f32.mrb[95].mxu1  ;;  %v9141_v49 = vpack.c.bf16 %v11849_v5, %v11847_v53  ;;  %v13105_v5 = vld [vmem:[#allocation91_spill] sm:$0xff] }
 0x3aa   :  { %v3040_v58 = vadd.f32 %v8614_v54, %v2879_v48  ;;  %v8617_v12 = vadd.f32 %v8616_v50, %v8615_v21  ;;  %5545 = vmatmul.mubr.bf16.gmra.mrb[200].mxu0 %v8043_v19  ;;  %v2898_v54 = vadd.f32 %v11691_v30, %v11274_v4 }
 0x3ab   :  { %5552 = vmatprep.mubr.bf16.mxu0 %v8052_v29 }
 0x3ac   :  { %v3043_v55 = vadd.f32 %v8617_v12, %v2882_v43  ;;  %10167 = vtanh.f32 %v3040_v58  ;;  %v3272_v58 = vld [vmem:[#allocation17 + $0x188] sm:$0xff] }
 0x3ad   :  { %v3276_v12 = vld [vmem:[#allocation17 + $0x1a8] sm:$0xff] }
 0x3ae   :  { %10169 = vtanh.f32 %v3043_v55  ;;  %v8618_v31 = vpop.f32.mrb[96].mxu1  ;;  %v11857_v24 = vpop.eup %10163  ;;  %v8076_v10 = vcombine.high %v3272_v58, %v3276_v12 }
 0x3af   :  { %v8619_v60 = vpop.f32.mrb[97].mxu1 }
 0x3b0   :  { %v11859_v11 = vpop.eup %10165  ;;  %v8620_v32 = vadd.f32 %v8619_v60, %v8618_v31  ;;  %v8621_v25 = vpop.f32.mrb[98].mxu1 }
 0x3b1   :  { %v8622_v36 = vpop.f32.mrb[99].mxu1  ;;  %v9145_v56 = vpack.c.bf16 %v11859_v11, %v11857_v24 }
 0x3b2   :  { %v3048_v38 = vadd.f32 %v8620_v32, %v2887_v2  ;;  %v8623_v15 = vadd.f32 %v8622_v36, %v8621_v25  ;;  %5553 = vmatmul.mubr.bf16.gmra.mrb[204].mxu0 %v8051_v63  ;;  %v2903_v63 = vadd.f32 %v11705_v52, %v11281_v8  ;;  %v2906_v2 = vadd.f32 %v11711_v0, %v11295_v40  ;;  %v13082_v0 = vld [vmem:[#allocation33_spill] sm:$0xff] }
 0x3b3   :  { %5560 = vmatprep.mubr.bf16.mxu0 %v8060_v37  ;;  %v8075_v52 = vcombine.low %v3272_v58, %v3276_v12 }
 0x3b4   :  { %v3051_v51 = vadd.f32 %v8623_v15, %v2890_v23  ;;  %10171 = vtanh.f32 %v3048_v38  ;;  %v3280_v23 = vld [vmem:[#allocation17 + $0x1c8] sm:$0xff] }
 0x3b5   :  { %v3284_v38 = vld [vmem:[#allocation17 + $0x1e8] sm:$0xff] }
 0x3b6   :  { %10173 = vtanh.f32 %v3051_v51  ;;  %v8624_v34 = vpop.f32.mrb[100].mxu1  ;;  %v11867_v59 = vpop.eup %10167  ;;  %v8084_v17 = vcombine.high %v3280_v23, %v3284_v38 }
 0x3b7   :  { %v8625_v27 = vpop.f32.mrb[101].mxu1 }
 0x3b8   :  { %v11869_v19 = vpop.eup %10169  ;;  %v8626_v33 = vadd.f32 %v8625_v27, %v8624_v34  ;;  %v8627_v41 = vpop.f32.mrb[102].mxu1  ;;  %v2911_v34 = vadd.f32 %v13083_v18, %v13082_v0  ;;  %v13090_v0 = vld [vmem:[#allocation37_spill] sm:$0xff]  ;;  %v13091_v18 = vld [vmem:[#allocation156_spill] sm:$0xff] }
 0x3b9   :  { %v8628_v29 = vpop.f32.mrb[103].mxu1  ;;  %v9149_v48 = vpack.c.bf16 %v11869_v19, %v11867_v59  ;;  %v13111_v59 = vld [vmem:[#allocation76_spill] sm:$0xff] }
 0x3ba   :  { %v3056_v21 = vadd.f32 %v8626_v33, %v2895_v13  ;;  %v8629_v50 = vadd.f32 %v8628_v29, %v8627_v41  ;;  %5561 = vmatmul.mubr.bf16.gmra.mrb[208].mxu0 %v8059_v57  ;;  %v13084_v33 = vld [vmem:[#allocation34_spill] sm:$0xff] }
 0x3bb   :  { %5568 = vmatprep.mubr.bf16.mxu0 %v8068_v45  ;;  %v2914_v16 = vadd.f32 %v13085_v22, %v13084_v33 }
 0x3bc   :  { %v3059_v43 = vadd.f32 %v8629_v50, %v2898_v54  ;;  %10175 = vtanh.f32 %v3056_v21  ;;  %v3288_v54 = vld [vmem:[#allocation17 + $0x208] sm:$0xff] }
 0x3bd   :  { %v3292_v21 = vld [vmem:[#allocation17 + $0x228] sm:$0xff] }
 0x3be   :  { %10177 = vtanh.f32 %v3059_v43  ;;  %v8630_v55 = vpop.f32.mrb[104].mxu1  ;;  %v10172_v1 = vpop.eup %10171  ;;  %v8083_v43 = vcombine.low %v3280_v23, %v3284_v38 }
 0x3bf   :  { %v8631_v47 = vpop.f32.mrb[105].mxu1 }
 0x3c0   :  { %v10174_v31 = vpop.eup %10173  ;;  %v8632_v60 = vadd.f32 %v8631_v47, %v8630_v55  ;;  %v8633_v4 = vpop.f32.mrb[106].mxu1  ;;  %v8092_v55 = vcombine.high %v3288_v54, %v3292_v21  ;;  %v13087_v47 = vld [vmem:[#allocation146_spill] sm:$0xff] }
 0x3c1   :  { %v8634_v30 = vpop.f32.mrb[107].mxu1  ;;  %v9119_v37 = vpack.c.bf16 %v10174_v31, %v10172_v1  ;;  %v13086_v1 = vld [vmem:[#allocation35_spill] sm:$0xff] }
 0x3c2   :  { %v3064_v32 = vadd.f32 %v8632_v60, %v2903_v63  ;;  %v8635_v25 = vadd.f32 %v8634_v30, %v8633_v4  ;;  %5569 = vmatmul.mubr.bf16.gmra.mrb[212].mxu0 %v8067_v35  ;;  %v13088_v30 = vld [vmem:[#allocation36_spill] sm:$0xff] }
 0x3c3   :  { %9120 = vmatprep.subr.bf16.mxu1 %v9119_v37  ;;  %5576 = vmatprep.mubr.bf16.mxu0 %v8076_v10  ;;  %v2919_v10 = vadd.f32 %v13087_v47, %v13086_v1  ;;  %v2922_v42 = vadd.f32 %v13089_v6, %v13088_v30  ;;  %v13094_v47 = vld [vmem:[#allocation39_spill] sm:$0xff]  ;;  %v13097_v6 = vld [vmem:[#allocation40_spill] sm:$0xff] }
 0x3c4   :  { %v3067_v36 = vadd.f32 %v8635_v25, %v2906_v2  ;;  %9122 = vmatpush3.bf16.msra.mxu1 %v9121_v14  ;;  %10179 = vtanh.f32 %v3064_v32  ;;  %v3296_v32 = vld [vmem:[#allocation17 + $0x248] sm:$0xff] }
 0x3c5   :  { %v3300_v25 = vld [vmem:[#allocation17 + $0x268] sm:$0xff] }
 0x3c6   :  { %10181 = vtanh.f32 %v3067_v36  ;;  %v8636_v8 = vpop.f32.mrb[108].mxu1  ;;  %v10176_v15 = vpop.eup %10175 }
 0x3c7   :  { %v8637_v51 = vpop.f32.mrb[109].mxu1 }
 0x3c8   :  { %v10178_v40 = vpop.eup %10177  ;;  %v8638_v57 = vadd.f32 %v8637_v51, %v8636_v8  ;;  %v8639_v27 = vpop.f32.mrb[110].mxu1  ;;  %v8091_v8 = vcombine.low %v3288_v54, %v3292_v21 }
 0x3c9   :  { %v8640_v45 = vpop.f32.mrb[111].mxu1  ;;  %v9123_v13 = vpack.c.bf16 %v10178_v40, %v10176_v15 }
 0x3ca   :  { %v3072_v14 = vadd.f32 %v8638_v57, %v2911_v34  ;;  %v8641_v41 = vadd.f32 %v8640_v45, %v8639_v27  ;;  %5577 = vmatmul.mubr.bf16.gmra.mrb[216].mxu0 %v8075_v52  ;;  %v2927_v34 = vadd.f32 %v13091_v18, %v13090_v0  ;;  %v13092_v45 = vld [vmem:[#allocation38_spill] sm:$0xff] }
 0x3cb   :  { %9124 = vmatprep.subr.bf16.mxu1 %v9123_v13  ;;  %5584 = vmatprep.mubr.bf16.mxu0 %v8084_v17  ;;  %v8100_v17 = vcombine.high %v3296_v32, %v3300_v25  ;;  %v13093_v13 = vld [vmem:[#allocation159_spill] sm:$0xff] }
 0x3cc   :  { %v3075_v29 = vadd.f32 %v8641_v41, %v2914_v16  ;;  %9126 = vmatpush3.bf16.msra.mxu1 %v9125_v26  ;;  %10183 = vtanh.f32 %v3072_v14  ;;  %v2930_v33 = vadd.f32 %v13093_v13, %v13092_v45  ;;  %v3304_v41 = vld [vmem:[#allocation17 + $0x288] sm:$0xff] }
 0x3cd   :  { %v13101_v45 = vld [vmem:[#allocation42_spill] sm:$0xff]  ;;  %v13102_v13 = vld [vmem:[#allocation165_spill] sm:$0xff] }
 0x3ce   :  { %10185 = vtanh.f32 %v3075_v29  ;;  %v8642_v50 = vpop.f32.mrb[112].mxu1  ;;  %v10180_v58 = vpop.eup %10179  ;;  %v3308_v29 = vld [vmem:[#allocation17 + $0x2a8] sm:$0xff] }
 0x3cf   :  { %v8643_v12 = vpop.f32.mrb[113].mxu1 }
 0x3d0   :  { %v10182_v35 = vpop.eup %10181  ;;  %v8644_v31 = vadd.f32 %v8643_v12, %v8642_v50  ;;  %v8645_v63 = vpop.f32.mrb[114].mxu1 }
 0x3d1   :  { %v8646_v60 = vpop.f32.mrb[115].mxu1  ;;  %v9127_v4 = vpack.c.bf16 %v10182_v35, %v10180_v58  ;;  %v8108_v35 = vcombine.high %v3304_v41, %v3308_v29 }
 0x3d2   :  { %v3080_v26 = vadd.f32 %v8644_v31, %v2919_v10  ;;  %v8647_v37 = vadd.f32 %v8646_v60, %v8645_v63  ;;  %5585 = vmatmul.mubr.bf16.gmra.mrb[220].mxu0 %v8083_v43  ;;  %v8099_v43 = vcombine.low %v3296_v32, %v3300_v25  ;;  %v13095_v10 = vld [vmem:[#allocation162_spill] sm:$0xff]  ;;  %v11915_v60 = vpop.permute.xlu1 %3854 }
 0x3d3   :  { %9128 = vmatprep.subr.bf16.mxu1 %v9127_v4  ;;  %5592 = vmatprep.mubr.bf16.mxu0 %v8092_v55  ;;  %v2935_v31 = vadd.f32 %v13095_v10, %v13094_v47  ;;  %v7694_v63 = vld [vmem:[#allocation6] sm:$0xff]  ;;  %13096 = vst [vmem:[#allocation33_spill] sm:$0xff] %v11915_v60 }
 0x3d4   :  { %v3083_v2 = vadd.f32 %v8647_v37, %v2922_v42  ;;  %9130 = vmatpush3.bf16.msra.mxu1 %v9129_v9  ;;  %10187 = vtanh.f32 %v3080_v26  ;;  %7695 = vxpose.xlu1.b32.start.end [1/1] (short) (narrow) %v7694_v63, 8  ;;  %v13098_v42 = vld [vmem:[#allocation163_spill] sm:$0xff]  ;;  %v3312_v25 = vld [vmem:[#allocation17 + $0x2c8] sm:$0xff] }
 0x3d5   :  { %v11898_v36 = vpop.f32.mrb[244].mxu0  ;;  %v2938_v26 = vadd.f32 %v13098_v42, %v13097_v6  ;;  %v13103_v47 = vld [vmem:[#allocation93_spill] sm:$0xff] }
 0x3d6   :  { %10189 = vtanh.f32 %v3083_v2  ;;  %v8648_v23 = vpop.f32.mrb[116].mxu1  ;;  %v5347_v38 = vpop.f32.mrb[245].mxu0  ;;  %v3348_v60 = vld [vmem:[#allocation17 + $0x3e8] sm:$0xff] }
 0x3d7   :  { %v10184_v52 = vpop.eup %10183  ;;  %v8649_v15 = vpop.f32.mrb[117].mxu1 }
 0x3d8   :  { %v11900_v51 = vpop.f32.mrb[246].mxu0  ;;  %v10186_v40 = vpop.eup %10185  ;;  %v8650_v62 = vadd.f32 %v8649_v15, %v8648_v23  ;;  %v3316_v23 = vld [vmem:[#allocation17 + $0x2e8] sm:$0xff]  ;;  %v8107_v15 = vcombine.low %v3304_v41, %v3308_v29 }
 0x3d9   :  { %v8651_v44 = vpop.f32.mrb[118].mxu1  ;;  %v5350_v9 = vpop.f32.mrb[247].mxu0  ;;  %v9131_v27 = vpack.c.bf16 %v10186_v40, %v10184_v52  ;;  %v8116_v18 = vcombine.high %v3312_v25, %v3316_v23  ;;  %v3320_v41 = vld [vmem:[#allocation17 + $0x308] sm:$0xff] }
 0x3da   :  { %v8652_v57 = vpop.f32.mrb[119].mxu1  ;;  %v3088_v22 = vadd.f32 %v8650_v62, %v2927_v34  ;;  %5593 = vmatmul.mubr.bf16.gmra.mrb[224].mxu0 %v8091_v8  ;;  %v13099_v62 = vld [vmem:[#allocation41_spill] sm:$0xff] }
 0x3db   :  { %v8653_v16 = vadd.f32 %v8652_v57, %v8651_v44  ;;  %9132 = vmatprep.subr.bf16.mxu1 %v9131_v27  ;;  %5600 = vmatprep.mubr.bf16.mxu0 %v8100_v17  ;;  %v13100_v44 = vld [vmem:[#allocation164_spill] sm:$0xff]  ;;  %v3324_v29 = vld [vmem:[#allocation17 + $0x328] sm:$0xff] }
 0x3dc   :  { %9134 = vmatpush3.bf16.msra.mxu1 %v9133_v7  ;;  %10191 = vtanh.f32 %v3088_v22  ;;  %v2943_v9 = vadd.f32 %v13100_v44, %v13099_v62 }
 0x3dd   :  { %v3091_v14 = vadd.f32 %v8653_v16, %v2930_v33  ;;  %v11909_v54 = vpop.f32.mrb[248].mxu0  ;;  %v2946_v33 = vadd.f32 %v13102_v13, %v13101_v45  ;;  %v13119_v45 = vld [vmem:[#allocation79_spill] sm:$0xff] }
 0x3de   :  { %v8654_v21 = vpop.f32.mrb[120].mxu1  ;;  %v5355_v50 = vpop.f32.mrb[249].mxu0 }
 0x3df   :  { %10193 = vtanh.f32 %v3091_v14  ;;  %v10188_v58 = vpop.eup %10187  ;;  %v8655_v12 = vpop.f32.mrb[121].mxu1 }
 0x3e0   :  { %v11911_v55 = vpop.f32.mrb[250].mxu0  ;;  %v10190_v1 = vpop.eup %10189  ;;  %v8656_v28 = vadd.f32 %v8655_v12, %v8654_v21 }
 0x3e1   :  { %v8657_v46 = vpop.f32.mrb[122].mxu1  ;;  %v5358_v7 = vpop.f32.mrb[251].mxu0  ;;  %v9135_v30 = vpack.c.bf16 %v10190_v1, %v10188_v58 }
 0x3e2   :  { %v8658_v4 = vpop.f32.mrb[123].mxu1  ;;  %v3096_v37 = vadd.f32 %v8656_v28, %v2935_v31  ;;  %5601 = vmatmul.mubr.bf16.gmra.mrb[228].mxu0 %v8099_v43  ;;  %v8115_v43 = vcombine.low %v3312_v25, %v3316_v23  ;;  %v13104_v31 = vld [vmem:[#allocation95_spill] sm:$0xff]  ;;  %v8123_v7 = vcombine.low %v3320_v41, %v3324_v29  ;;  %v13108_v23 = vmov 0  }
 0x3e3   :  { %v8659_v2 = vadd.f32 %v8658_v4, %v8657_v46  ;;  %9136 = vmatprep.subr.bf16.mxu1 %v9135_v30  ;;  %5608 = vmatprep.mubr.bf16.mxu0 %v8108_v35  ;;  %v8124_v35 = vcombine.high %v3320_v41, %v3324_v29  ;;  %v3340_v29 = vld [vmem:[#allocation17 + $0x3a8] sm:$0xff] }
 0x3e4   :  { %9138 = vmatpush3.bf16.msra.mxu1 %v9137_v61  ;;  %10195 = vtanh.f32 %v3096_v37  ;;  %v11950_v37 = vld [vmem:[#allocation17 + $0x368] sm:$0xff] }
 0x3e5   :  { %v3099_v32 = vadd.f32 %v8659_v2, %v2938_v26  ;;  %v11922_v38 = vpop.f32.mrb[252].mxu0  ;;  %v11948_v26 = vld [vmem:[#allocation17 + $0x348] sm:$0xff] }
 0x3e6   :  { %v8660_v8 = vpop.f32.mrb[124].mxu1  ;;  %v5363_v52 = vpop.f32.mrb[253].mxu0  ;;  %v8132_v11 = vcombine.high %v11948_v26, %v11950_v37 }
 0x3e7   :  { %10197 = vtanh.f32 %v3099_v32  ;;  %v10192_v17 = vpop.eup %10191  ;;  %v8661_v40 = vpop.f32.mrb[125].mxu1 }
 0x3e8   :  { %v11924_v0 = vpop.f32.mrb[254].mxu0  ;;  %v8662_v39 = vadd.f32 %v8661_v40, %v8660_v8  ;;  %v8663_v20 = vpop.f32.mrb[126].mxu1  ;;  %v13112_v40 = vld [vmem:[#allocation97_spill] sm:$0xff] }
 0x3e9   :  { %v10194_v34 = vpop.eup %10193  ;;  %v5366_v61 = vpop.f32.mrb[255].mxu0 }
 0x3ea   :  { %v8664_v57 = vpop.f32.mrb[127].mxu1  ;;  %v9139_v27 = vpack.c.bf16 %v10194_v34, %v10192_v17  ;;  %v3104_v22 = vadd.f32 %v8662_v39, %v2943_v9  ;;  %5609 = vmatmul.mubr.bf16.gmra.mrb[232].mxu0 %v8107_v15  ;;  %v13110_v17 = vld [vmem:[#allocation96_spill] sm:$0xff]  ;;  %v13114_v34 = vld [vmem:[#allocation99_spill] sm:$0xff]  ;;  %v13118_v39 = vld [vmem:[#allocation78_spill] sm:$0xff] }
 0x3eb   :  { %v8665_v16 = vadd.f32 %v8664_v57, %v8663_v20  ;;  %5616 = vmatprep.mubr.bf16.mxu0 %v8116_v18  ;;  %v13113_v18 = vld [vmem:[#allocation98_spill] sm:$0xff] }
 0x3ec   :  { %9140 = vmatprep.subr.bf16.mxu1 %v9139_v27  ;;  %10199 = vtanh.f32 %v3104_v22 }
 0x3ed   :  { %v3107_v14 = vadd.f32 %v8665_v16, %v2946_v33  ;;  %9142 = vmatpush3.bf16.msra.mxu1 %v9141_v49  ;;  %v11933_v21 = vpop.f32.mrb[0].mxu0  ;;  %v13106_v49 = vld [vmem:[#allocation94_spill] sm:$0xff] }
 0x3ee   :  { %v5371_v50 = vpop.f32.mrb[1].mxu0  ;;  %v10196_v58 = vpop.eup %10195 }
 0x3ef   :  { %10201 = vtanh.f32 %v3107_v14  ;;  %v11935_v12 = vpop.f32.mrb[2].mxu0  ;;  %v13122_v14 = vld [vmem:[#allocation80_spill] sm:$0xff]  ;;  %v3336_v50 = vld [vmem:[#allocation17 + $0x388] sm:$0xff] }
 0x3f0   :  { %10203 = vtanh.f32 %v13103_v47  ;;  %v5374_v10 = vpop.f32.mrb[3].mxu0 }
 0x3f1   :  { %v10198_v1 = vpop.eup %10197  ;;  %10205 = vtanh.f32 %v13104_v31  ;;  %v13128_v10 = vld [vmem:[#allocation102_spill] sm:$0xff] }
 0x3f2   :  { %v9143_v53 = vpack.c.bf16 %v10198_v1, %v10196_v58  ;;  %10207 = vtanh.f32 %v13105_v5  ;;  %5617 = vmatmul.mubr.bf16.gmra.mrb[236].mxu0 %v8115_v43  ;;  %v13123_v43 = vld [vmem:[#allocation101_spill] sm:$0xff]  ;;  %v13124_v58 = vld [vmem:[#allocation103_spill] sm:$0xff]  ;;  %v13126_v1 = vld [vmem:[#allocation100_spill] sm:$0xff] }
 0x3f3   :  { %10209 = vtanh.f32 %v13106_v49  ;;  %5624 = vmatprep.mubr.bf16.mxu0 %v8124_v35  ;;  %v13125_v35 = vld [vmem:[#allocation81_spill] sm:$0xff]  ;;  %v13130_v5 = vld [vmem:[#allocation82_spill] sm:$0xff] }
 0x3f4   :  { %9144 = vmatprep.subr.bf16.mxu1 %v9143_v53  ;;  %10211 = vtanh.f32 %v13110_v17 }
 0x3f5   :  { %9146 = vmatpush3.bf16.msra.mxu1 %v9145_v56  ;;  %v11944_v28 = vpop.f32.mrb[4].mxu0  ;;  %10213 = vtanh.f32 %v13112_v40  ;;  %v13162_v40 = vld [vmem:[#allocation90_spill] sm:$0xff] }
 0x3f6   :  { %v5379_v46 = vpop.f32.mrb[5].mxu0  ;;  %v10200_v63 = vpop.eup %10199  ;;  %10215 = vtanh.f32 %v13113_v18 }
 0x3f7   :  { %v11946_v4 = vpop.f32.mrb[6].mxu0  ;;  %10217 = vtanh.f32 %v13114_v34  ;;  %v13131_v46 = vld [vmem:[#allocation105_spill] sm:$0xff]  ;;  %v13138_v34 = vld [vmem:[#allocation84_spill] sm:$0xff] }
 0x3f8   :  { %v5382_v6 = vpop.f32.mrb[7].mxu0  ;;  %10219 = vtanh.f32 %v13123_v43 }
 0x3f9   :  { %v10202_v30 = vpop.eup %10201  ;;  %10221 = vtanh.f32 %v13124_v58  ;;  %v13133_v6 = vld [vmem:[#allocation83_spill] sm:$0xff]  ;;  %v13144_v58 = vld [vmem:[#allocation110_spill] sm:$0xff] }
 0x3fa   :  { %v9147_v42 = vpack.c.bf16 %v10202_v30, %v10200_v63  ;;  %v11952_v2 = vpop.eup %10203  ;;  %5625 = vmatmul.mubr.bf16.gmra.mrb[240].mxu0 %v8123_v7  ;;  %10223 = vtanh.f32 %v13126_v1  ;;  %v13132_v7 = vld [vmem:[#allocation107_spill] sm:$0xff] }
 0x3fb   :  { %v11954_v32 = vpop.eup %10205  ;;  %10225 = vtanh.f32 %v13128_v10 }
 0x3fc   :  { %9148 = vmatprep.subr.bf16.mxu1 %v9147_v42  ;;  %v11956_v24 = vpop.eup %10207  ;;  %10227 = vtanh.f32 %v13131_v46  ;;  %v13134_v42 = vld [vmem:[#allocation104_spill] sm:$0xff] }
 0x3fd   :  { %9150 = vmatpush3.bf16.msra.mxu1 %v9149_v48  ;;  %v11963_v56 = vpop.eup %10209  ;;  %v11965_v25 = vpop.f32.mrb[8].mxu0  ;;  %10229 = vtanh.f32 %v13132_v7  ;;  %v13147_v7 = vld [vmem:[#allocation113_spill] sm:$0xff]  ;;  %v8131_v48 = vcombine.low %v11948_v26, %v11950_v37 }
 0x3fe   :  { %13107 = vst [vmem:[#allocation136_spill] sm:$0xff] %v11965_v25  ;;  %9151 = vmatprep.subr.bf16.mxu1 %v13108_v23  ;;  %v5387_v8 = vpop.f32.mrb[9].mxu0  ;;  %v11989_v61 = vpop.eup %10211  ;;  %10231 = vtanh.f32 %v13134_v42 }
 0x3ff   :  { %v11971_v15 = vpop.f32.mrb[10].mxu0  ;;  %v11991_v57 = vpop.eup %10213  ;;  %v13136_v8 = vld [vmem:[#allocation106_spill] sm:$0xff] }
 0x400   :  { %3217 = vmatmul.mubr.f32.vlgmr.msra.gmra.mrb[128].mxu1 %v11793_v3  ;;  %13109 = vst [vmem:[#allocation34_spill] sm:$0xff] %v11971_v15  ;;  %v5390_v19 = vpop.f32.mrb[11].mxu0  ;;  %v13115_v3 = vld [vmem:[#allocation77_spill] sm:$0xff]  ;;  %v11993_v27 = vpop.eup %10215  ;;  %10233 = vtanh.f32 %v13136_v8 }
 0x401   :  { %9167 = vmatpush1.bf16.msra.mxu1 %v13111_v59  ;;  %5632 = vmatprep.mubr.bf16.mxu1 %v8132_v11  ;;  %v11996_v13 = vpop.eup %10217  ;;  %v13157_v8 = vld [vmem:[#allocation89_spill] sm:$0xff] }
 0x402   :  { %9152 = vmatprep.subr.bf16.mxu1 %v13108_v23  ;;  %v12023_v63 = vpop.eup %10219 }
 0x403   :  { %v12025_v30 = vpop.eup %10221 }
 0x404   :  { %v12033_v59 = vpop.eup %10223 }
 0x405   :  { %9168 = vmatpush1.bf16.msra.mxu1 %v13115_v3  ;;  %v11982_v62 = vpop.f32.mrb[12].mxu0  ;;  %v12039_v18 = vpop.eup %10225 }
 0x406   :  { %13116 = vst [vmem:[#allocation139_spill] sm:$0xff] %v11982_v62  ;;  %9153 = vmatprep.subr.bf16.mxu1 %v13108_v23  ;;  %v5395_v44 = vpop.f32.mrb[13].mxu0 }
 0x407   :  { %v11985_v9 = vpop.f32.mrb[14].mxu0  ;;  %v13139_v44 = vld [vmem:[#allocation109_spill] sm:$0xff] }
 0x408   :  { %13117 = vst [vmem:[#allocation35_spill] sm:$0xff] %v11985_v9  ;;  %v5398_v20 = vpop.f32.mrb[15].mxu0  ;;  %10235 = vtanh.f32 %v13139_v44 }
 0x409   :  { %9169 = vmatpush1.bf16.msra.mxu1 %v13118_v39  ;;  %v13140_v39 = vld [vmem:[#allocation111_spill] sm:$0xff]  ;;  %v12045_v20 = vpop.eup %10227 }
 0x40a   :  { %9154 = vmatprep.subr.bf16.mxu1 %v13108_v23  ;;  %10237 = vtanh.f32 %v13140_v39  ;;  %v13152_v39 = vld [vmem:[#allocation114_spill] sm:$0xff] }
 0x40d   :  { %9170 = vmatpush1.bf16.msra.mxu1 %v13119_v45  ;;  %v11998_v33 = vpop.f32.mrb[16].mxu0 }
 0x40e   :  { %13120 = vst [vmem:[#allocation146_spill] sm:$0xff] %v11998_v33  ;;  %9155 = vmatprep.subr.bf16.mxu1 %v13108_v23  ;;  %v5403_v22 = vpop.f32.mrb[17].mxu0 }
 0x40f   :  { %v12001_v16 = vpop.f32.mrb[18].mxu0  ;;  %v12049_v22 = vpop.eup %10229 }
 0x410   :  { %13121 = vst [vmem:[#allocation36_spill] sm:$0xff] %v12001_v16  ;;  %v5406_v41 = vpop.f32.mrb[19].mxu0  ;;  %v12057_v1 = vpop.eup %10231 }
 0x411   :  { %9171 = vmatpush1.bf16.msra.mxu1 %v13122_v14  ;;  %v13141_v14 = vld [vmem:[#allocation85_spill] sm:$0xff]  ;;  %v13142_v41 = vld [vmem:[#allocation108_spill] sm:$0xff] }
 0x412   :  { %9156 = vmatprep.subr.bf16.mxu1 %v13108_v23  ;;  %10239 = vtanh.f32 %v13142_v41 }
 0x413   :  { %10241 = vtanh.f32 %v13144_v58 }
 0x414   :  { %10243 = vtanh.f32 %v13147_v7 }
 0x415   :  { %9172 = vmatpush1.bf16.msra.mxu1 %v13125_v35  ;;  %v12013_v47 = vpop.f32.mrb[20].mxu0 }
 0x416   :  { %13127 = vst [vmem:[#allocation149_spill] sm:$0xff] %v12013_v47  ;;  %9157 = vmatprep.subr.bf16.mxu1 %v13108_v23  ;;  %v5411_v31 = vpop.f32.mrb[21].mxu0 }
 0x417   :  { %v12017_v53 = vpop.f32.mrb[22].mxu0 }
 0x418   :  { %13129 = vst [vmem:[#allocation37_spill] sm:$0xff] %v12017_v53  ;;  %v5414_v49 = vpop.f32.mrb[23].mxu0  ;;  %v13205_v53 = vld [vmem:[#allocation132_spill] sm:$0xff] }
 0x419   :  { %9173 = vmatpush1.bf16.msra.mxu1 %v13130_v5  ;;  %v12063_v5 = vpop.eup %10233  ;;  %v13146_v49 = vld [vmem:[#allocation86_spill] sm:$0xff] }
 0x41a   :  { %9158 = vmatprep.subr.bf16.mxu1 %v13108_v23  ;;  %v12069_v42 = vpop.eup %10235 }
 0x41d   :  { %9174 = vmatpush1.bf16.msra.mxu1 %v13133_v6  ;;  %v12029_v11 = vpop.f32.mrb[24].mxu0  ;;  %v13148_v6 = vld [vmem:[#allocation115_spill] sm:$0xff] }
 0x41e   :  { %13135 = vst [vmem:[#allocation156_spill] sm:$0xff] %v12029_v11  ;;  %9159 = vmatprep.subr.bf16.mxu1 %v13108_v23  ;;  %v5419_v17 = vpop.f32.mrb[25].mxu0  ;;  %10245 = vtanh.f32 %v13148_v6  ;;  %v13155_v6 = vld [vmem:[#allocation117_spill] sm:$0xff]  ;;  %v13204_v11 = vld [vmem:[#allocation135_spill] sm:$0xff] }
 0x41f   :  { %v12035_v19 = vpop.f32.mrb[26].mxu0  ;;  %v12073_v17 = vpop.eup %10237 }
 0x420   :  { %13137 = vst [vmem:[#allocation38_spill] sm:$0xff] %v12035_v19  ;;  %v5422_v3 = vpop.f32.mrb[27].mxu0  ;;  %v12081_v41 = vpop.eup %10239  ;;  %v3476_v19 = vld [vmem:[#allocation17 + $0x7e8] sm:$0xff] }
 0x421   :  { %9175 = vmatpush1.bf16.msra.mxu1 %v13138_v34  ;;  %v13149_v34 = vld [vmem:[#allocation87_spill] sm:$0xff]  ;;  %v13150_v3 = vld [vmem:[#allocation112_spill] sm:$0xff] }
 0x422   :  { %9160 = vmatprep.subr.bf16.mxu1 %v13108_v23  ;;  %10247 = vtanh.f32 %v13150_v3 }
 0x423   :  { %10249 = vtanh.f32 %v13152_v39 }
 0x424   :  { %10251 = vtanh.f32 %v13155_v6 }
 0x425   :  { %9176 = vmatpush1.bf16.msra.mxu1 %v13141_v14  ;;  %v12053_v43 = vpop.f32.mrb[28].mxu0 }
 0x426   :  { %13143 = vst [vmem:[#allocation159_spill] sm:$0xff] %v12053_v43  ;;  %9161 = vmatprep.subr.bf16.mxu1 %v13108_v23  ;;  %v5427_v35 = vpop.f32.mrb[29].mxu0 }
 0x427   :  { %v12059_v10 = vpop.f32.mrb[30].mxu0  ;;  %v13158_v35 = vld [vmem:[#allocation116_spill] sm:$0xff] }
 0x428   :  { %13145 = vst [vmem:[#allocation39_spill] sm:$0xff] %v12059_v10  ;;  %v5430_v46 = vpop.f32.mrb[31].mxu0 }
 0x429   :  { %9177 = vmatpush1.bf16.msra.mxu1 %v13146_v49  ;;  %v12087_v49 = vpop.eup %10241  ;;  %v13154_v46 = vld [vmem:[#allocation88_spill] sm:$0xff] }
 0x42a   :  { %9162 = vmatprep.subr.bf16.mxu1 %v13108_v23  ;;  %v12093_v3 = vpop.eup %10243 }
 0x42d   :  { %9178 = vmatpush1.bf16.msra.mxu1 %v13149_v34  ;;  %v12077_v44 = vpop.f32.mrb[32].mxu0  ;;  %v13156_v34 = vld [vmem:[#allocation119_spill] sm:$0xff] }
 0x42e   :  { %13151 = vst [vmem:[#allocation162_spill] sm:$0xff] %v12077_v44  ;;  %9163 = vmatprep.subr.bf16.mxu1 %v13108_v23  ;;  %v5435_v14 = vpop.f32.mrb[33].mxu0  ;;  %10253 = vtanh.f32 %v13156_v34 }
 0x42f   :  { %v12083_v58 = vpop.f32.mrb[34].mxu0  ;;  %v12097_v14 = vpop.eup %10245  ;;  %10255 = vtanh.f32 %v13158_v35  ;;  %v13163_v35 = vld [vmem:[#allocation121_spill] sm:$0xff] }
 0x430   :  { %13153 = vst [vmem:[#allocation40_spill] sm:$0xff] %v12083_v58  ;;  %v5438_v7 = vpop.f32.mrb[35].mxu0  ;;  %v12105_v6 = vpop.eup %10247 }
 0x431   :  { %9179 = vmatpush1.bf16.msra.mxu1 %v13154_v46  ;;  %v13160_v46 = vld [vmem:[#allocation118_spill] sm:$0xff]  ;;  %v12111_v45 = vpop.eup %10249 }
 0x432   :  { %9164 = vmatprep.subr.bf16.mxu1 %v13108_v23  ;;  %10257 = vtanh.f32 %v13160_v46  ;;  %v13164_v46 = vld [vmem:[#allocation123_spill] sm:$0xff] }
 0x433   :  { %10259 = vtanh.f32 %v13163_v35  ;;  %v13166_v35 = vld [vmem:[#allocation120_spill] sm:$0xff] }
 0x434   :  { %10261 = vtanh.f32 %v13164_v46  ;;  %v13168_v46 = vld [vmem:[#allocation122_spill] sm:$0xff] }
 0x435   :  { %9180 = vmatpush1.bf16.msra.mxu1 %v13157_v8  ;;  %v12101_v31 = vpop.f32.mrb[36].mxu0  ;;  %10263 = vtanh.f32 %v13166_v35  ;;  %v13170_v35 = vpack.c.bf16 %v11954_v32, %v11952_v2 }
 0x436   :  { %13159 = vst [vmem:[#allocation163_spill] sm:$0xff] %v12101_v31  ;;  %9165 = vmatprep.subr.bf16.mxu1 %v13108_v23  ;;  %v5443_v7 = vpop.f32.mrb[37].mxu0  ;;  %10265 = vtanh.f32 %v13168_v46  ;;  %v8139_v46 = vcombine.low %v3336_v50, %v3340_v29 }
 0x437   :  { %v12107_v34 = vpop.f32.mrb[38].mxu0  ;;  %v12117_v7 = vpop.eup %10251 }
 0x438   :  { %13161 = vst [vmem:[#allocation41_spill] sm:$0xff] %v12107_v34  ;;  %v5446_v8 = vpop.f32.mrb[39].mxu0  ;;  %v12123_v52 = vpop.eup %10253 }
 0x439   :  { %9181 = vmatpush1.bf16.msra.mxu1 %v13162_v40  ;;  %v13165_v40 = vld [vmem:[#allocation92_spill] sm:$0xff]  ;;  %v8140_v8 = vcombine.high %v3336_v50, %v3340_v29  ;;  %v12131_v58 = vpop.eup %10255  ;;  %v13175_v29 = vpack.c.bf16 %v11993_v27, %v11989_v61 }
 0x43a   :  { %9166 = vmatprep.subr.bf16.mxu1 %v13108_v23 }
 0x43c   :  { %v12137_v39 = vpop.eup %10257 }
 0x43d   :  { %9182 = vmatpush1.bf16.msra.mxu1 %v13165_v40  ;;  %v12127_v34 = vpop.f32.mrb[40].mxu0 }
 0x43e   :  { %13167 = vst [vmem:[#allocation164_spill] sm:$0xff] %v12127_v34  ;;  %5785 = vmatprep.subr.bf16.mxu1 %v13108_v23  ;;  %v5451_v31 = vpop.f32.mrb[41].mxu0  ;;  %v3344_v34 = vld [vmem:[#allocation17 + $0x3c8] sm:$0xff] }
 0x43f   :  { %v12133_v26 = vpop.f32.mrb[42].mxu0  ;;  %v12143_v31 = vpop.eup %10259  ;;  %v8148_v37 = vcombine.high %v3344_v34, %v3348_v60 }
 0x440   :  { %13169 = vst [vmem:[#allocation42_spill] sm:$0xff] %v12133_v26  ;;  %5633 = vmatmul.mubr.bf16.vlgmr.msra.gmra.mrb[132].mxu1 %v8131_v48  ;;  %v5454_v40 = vpop.f32.mrb[43].mxu0  ;;  %v12147_v26 = vpop.eup %10261 }
 0x441   :  { %5640 = vmatprep.mubr.bf16.mxu1 %v8140_v8  ;;  %5786 = vmatpush1.bf16.msra.mxu1 %v13170_v35  ;;  %v13171_v8 = vpack.c.bf16 %v11963_v56, %v11956_v24  ;;  %v12155_v32 = vpop.eup %10263  ;;  %v13174_v24 = vpack.c.bf16 %v11996_v13, %v11991_v57  ;;  %v3352_v56 = vld [vmem:[#allocation17 + $0x408] sm:$0xff] }
 0x442   :  { %5787 = vmatprep.subr.bf16.mxu1 %v13108_v23  ;;  %v12161_v50 = vpop.eup %10265 }
 0x445   :  { %5788 = vmatpush1.bf16.msra.mxu1 %v13171_v8  ;;  %v12152_v40 = vpop.f32.mrb[44].mxu0  ;;  %v3356_v8 = vld [vmem:[#allocation17 + $0x428] sm:$0xff] }
 0x446   :  { %13172 = vst [vmem:[#allocation165_spill] sm:$0xff] %v12152_v40  ;;  %5789 = vmatprep.subr.bf16.mxu1 %v13108_v23  ;;  %v5459_v2 = vpop.f32.mrb[45].mxu0  ;;  %v8155_v61 = vcombine.low %v3352_v56, %v3356_v8 }
 0x447   :  { %v12157_v35 = vpop.f32.mrb[46].mxu0  ;;  %v8147_v2 = vcombine.low %v3344_v34, %v3348_v60  ;;  %v13178_v60 = vpack.c.bf16 %v12025_v30, %v12023_v63  ;;  %v3360_v34 = vld [vmem:[#allocation17 + $0x448] sm:$0xff]  ;;  %v13182_v30 = vpack.c.bf16 %v12049_v22, %v12045_v20  ;;  %v13186_v22 = vpack.c.bf16 %v12073_v17, %v12069_v42 }
 0x448   :  { %13173 = vst [vmem:[#allocation93_spill] sm:$0xff] %v12157_v35  ;;  %5641 = vmatmul.mubr.bf16.gmra.mrb[136].mxu1 %v8139_v46  ;;  %v5462_v48 = vpop.f32.mrb[47].mxu0  ;;  %v3526_v35 = vpack.c.bf16 %v12161_v50, %v12155_v32  ;;  %v8156_v46 = vcombine.high %v3352_v56, %v3356_v8  ;;  %v3368_v56 = vld [vmem:[#allocation17 + $0x488] sm:$0xff]  ;;  %v13190_v17 = vpack.c.bf16 %v12097_v14, %v12093_v3 }
 0x449   :  { %5648 = vmatprep.mubr.bf16.mxu1 %v8148_v37  ;;  %5790 = vmatpush1.bf16.msra.mxu1 %v13174_v24  ;;  %v3364_v48 = vld [vmem:[#allocation17 + $0x468] sm:$0xff]  ;;  %v13192_v14 = vpack.c.bf16 %v12123_v52, %v12117_v7  ;;  %v13194_v7 = vpack.c.bf16 %v12147_v26, %v12143_v31 }
 0x44a   :  { %5791 = vmatprep.subr.bf16.mxu1 %v13108_v23  ;;  %v8164_v27 = vcombine.high %v3360_v34, %v3364_v48  ;;  %v3372_v8 = vld [vmem:[#allocation17 + $0x4a8] sm:$0xff] }
 0x44b   :  { %v13195_v31 = vld [vmem:[#allocation125_spill] sm:$0xff] }
 0x44c   :  { %10267 = vtanh.f32 %v13195_v31 }
 0x44d   :  { %5792 = vmatpush1.bf16.msra.mxu1 %v13175_v29  ;;  %v12172_v40 = vpop.f32.mrb[48].mxu0  ;;  %v13179_v29 = vpack.c.bf16 %v12039_v18, %v12033_v59  ;;  %v8163_v59 = vcombine.low %v3360_v34, %v3364_v48  ;;  %v8172_v18 = vcombine.high %v3368_v56, %v3372_v8  ;;  %v3376_v34 = vld [vmem:[#allocation17 + $0x4c8] sm:$0xff] }
 0x44e   :  { %13176 = vst [vmem:[#allocation95_spill] sm:$0xff] %v12172_v40  ;;  %5793 = vmatprep.subr.bf16.mxu1 %v13108_v23  ;;  %v5467_v37 = vpop.f32.mrb[49].mxu0  ;;  %v3380_v48 = vld [vmem:[#allocation17 + $0x4e8] sm:$0xff] }
 0x44f   :  { %v12175_v57 = vpop.f32.mrb[50].mxu0  ;;  %v13183_v37 = vpack.c.bf16 %v12063_v5, %v12057_v1  ;;  %v8171_v1 = vcombine.low %v3368_v56, %v3372_v8  ;;  %v8180_v5 = vcombine.high %v3376_v34, %v3380_v48  ;;  %v3388_v56 = vld [vmem:[#allocation17 + $0x528] sm:$0xff]  ;;  %v13191_v8 = vpack.c.bf16 %v12111_v45, %v12105_v6 }
 0x450   :  { %13177 = vst [vmem:[#allocation91_spill] sm:$0xff] %v12175_v57  ;;  %5649 = vmatmul.mubr.bf16.gmra.mrb[140].mxu1 %v8147_v2  ;;  %v5470_v13 = vpop.f32.mrb[51].mxu0 }
 0x451   :  { %5656 = vmatprep.mubr.bf16.mxu1 %v8156_v46  ;;  %5794 = vmatpush1.bf16.msra.mxu1 %v13178_v60 }
 0x452   :  { %5795 = vmatprep.subr.bf16.mxu1 %v13108_v23 }
 0x455   :  { %5796 = vmatpush1.bf16.msra.mxu1 %v13179_v29  ;;  %v12184_v24 = vpop.f32.mrb[52].mxu0 }
 0x456   :  { %13180 = vst [vmem:[#allocation94_spill] sm:$0xff] %v12184_v24  ;;  %5797 = vmatprep.subr.bf16.mxu1 %v13108_v23  ;;  %v5475_v2 = vpop.f32.mrb[53].mxu0 }
 0x457   :  { %v12187_v46 = vpop.f32.mrb[54].mxu0 }
 0x458   :  { %13181 = vst [vmem:[#allocation96_spill] sm:$0xff] %v12187_v46  ;;  %5657 = vmatmul.mubr.bf16.gmra.mrb[144].mxu1 %v8155_v61  ;;  %v5478_v63 = vpop.f32.mrb[55].mxu0 }
 0x459   :  { %5664 = vmatprep.mubr.bf16.mxu1 %v8164_v27  ;;  %5798 = vmatpush1.bf16.msra.mxu1 %v13182_v30  ;;  %v13187_v27 = vpack.c.bf16 %v12087_v49, %v12081_v41  ;;  %v3384_v30 = vld [vmem:[#allocation17 + $0x508] sm:$0xff]  ;;  %v8179_v41 = vcombine.low %v3376_v34, %v3380_v48 }
 0x45a   :  { %5799 = vmatprep.subr.bf16.mxu1 %v13108_v23  ;;  %v8188_v49 = vcombine.high %v3384_v30, %v3388_v56  ;;  %v8187_v45 = vcombine.low %v3384_v30, %v3388_v56  ;;  %v3408_v30 = vld [vmem:[#allocation17 + $0x5c8] sm:$0xff] }
 0x45b   :  { %v3412_v56 = vld [vmem:[#allocation17 + $0x5e8] sm:$0xff] }
 0x45d   :  { %5800 = vmatpush1.bf16.msra.mxu1 %v13183_v37  ;;  %v12196_v13 = vpop.f32.mrb[56].mxu0 }
 0x45e   :  { %13184 = vst [vmem:[#allocation76_spill] sm:$0xff] %v12196_v13  ;;  %5801 = vmatprep.subr.bf16.mxu1 %v13108_v23  ;;  %v5483_v60 = vpop.f32.mrb[57].mxu0 }
 0x45f   :  { %v12199_v61 = vpop.f32.mrb[58].mxu0  ;;  %v3392_v60 = vld [vmem:[#allocation17 + $0x548] sm:$0xff] }
 0x460   :  { %13185 = vst [vmem:[#allocation97_spill] sm:$0xff] %v12199_v61  ;;  %5665 = vmatmul.mubr.bf16.gmra.mrb[148].mxu1 %v8163_v59  ;;  %v5486_v20 = vpop.f32.mrb[59].mxu0 }
 0x461   :  { %5672 = vmatprep.mubr.bf16.mxu1 %v8172_v18  ;;  %5802 = vmatpush1.bf16.msra.mxu1 %v13186_v22  ;;  %v3396_v20 = vld [vmem:[#allocation17 + $0x568] sm:$0xff]  ;;  %v13193_v22 = vpack.c.bf16 %v12137_v39, %v12131_v58 }
 0x462   :  { %5803 = vmatprep.subr.bf16.mxu1 %v13108_v23  ;;  %v8196_v6 = vcombine.high %v3392_v60, %v3396_v20  ;;  %v8195_v58 = vcombine.low %v3392_v60, %v3396_v20  ;;  %v3420_v60 = vld [vmem:[#allocation17 + $0x628] sm:$0xff] }
 0x463   :  { %v13198_v20 = vld [vmem:[#allocation126_spill] sm:$0xff] }
 0x465   :  { %5804 = vmatpush1.bf16.msra.mxu1 %v13187_v27  ;;  %v12208_v29 = vpop.f32.mrb[60].mxu0  ;;  %v3404_v27 = vld [vmem:[#allocation17 + $0x5a8] sm:$0xff] }
 0x466   :  { %13188 = vst [vmem:[#allocation98_spill] sm:$0xff] %v12208_v29  ;;  %5805 = vmatprep.subr.bf16.mxu1 %v13108_v23  ;;  %v5491_v2 = vpop.f32.mrb[61].mxu0  ;;  %v13201_v29 = vld [vmem:[#allocation128_spill] sm:$0xff] }
 0x467   :  { %v12211_v63 = vpop.f32.mrb[62].mxu0 }
 0x468   :  { %13189 = vst [vmem:[#allocation99_spill] sm:$0xff] %v12211_v63  ;;  %5673 = vmatmul.mubr.bf16.gmra.mrb[152].mxu1 %v8171_v1  ;;  %v5494_v42 = vpop.f32.mrb[63].mxu0  ;;  %v13200_v63 = vld [vmem:[#allocation131_spill] sm:$0xff] }
 0x469   :  { %5680 = vmatprep.mubr.bf16.mxu1 %v8180_v5  ;;  %5806 = vmatpush1.bf16.msra.mxu1 %v13190_v17  ;;  %v3400_v5 = vld [vmem:[#allocation17 + $0x588] sm:$0xff] }
 0x46a   :  { %5807 = vmatprep.subr.bf16.mxu1 %v13108_v23  ;;  %v8204_v39 = vcombine.high %v3400_v5, %v3404_v27 }
 0x46d   :  { %5808 = vmatpush1.bf16.msra.mxu1 %v13191_v8  ;;  %v12220_v59 = vpop.f32.mrb[192].mxu0  ;;  %v8212_v8 = vcombine.high %v3408_v30, %v3412_v56 }
 0x46e   :  { %5809 = vmatprep.subr.bf16.mxu1 %v13108_v23  ;;  %v5532_v18 = vpop.f32.mrb[193].mxu0 }
 0x46f   :  { %v12223_v37 = vpop.f32.mrb[194].mxu0 }
 0x470   :  { %5681 = vmatmul.mubr.bf16.gmra.mrb[156].mxu1 %v8179_v41  ;;  %v5535_v3 = vpop.f32.mrb[195].mxu0  ;;  %v13196_v41 = vld [vmem:[#allocation127_spill] sm:$0xff] }
 0x471   :  { %5688 = vmatprep.mubr.bf16.mxu1 %v8188_v49  ;;  %5810 = vmatpush1.bf16.msra.mxu1 %v13192_v14  ;;  %10269 = vtanh.f32 %v13196_v41  ;;  %v8203_v49 = vcombine.low %v3400_v5, %v3404_v27  ;;  %v13197_v3 = vld [vmem:[#allocation124_spill] sm:$0xff]  ;;  %v3416_v14 = vld [vmem:[#allocation17 + $0x608] sm:$0xff] }
 0x472   :  { %5811 = vmatprep.subr.bf16.mxu1 %v13108_v23  ;;  %10271 = vtanh.f32 %v13197_v3  ;;  %v8219_v31 = vcombine.low %v3416_v14, %v3420_v60  ;;  %v3432_v3 = vld [vmem:[#allocation17 + $0x688] sm:$0xff] }
 0x473   :  { %10273 = vtanh.f32 %v13198_v20  ;;  %v3436_v20 = vld [vmem:[#allocation17 + $0x6a8] sm:$0xff] }
 0x474   :  { %v3444_v27 = vld [vmem:[#allocation17 + $0x6e8] sm:$0xff] }
 0x475   :  { %5812 = vmatpush1.bf16.msra.mxu1 %v13193_v22  ;;  %v12232_v34 = vpop.f32.mrb[196].mxu0 }
 0x476   :  { %5813 = vmatprep.subr.bf16.mxu1 %v13108_v23  ;;  %v5540_v48 = vpop.f32.mrb[197].mxu0 }
 0x477   :  { %v12235_v1 = vpop.f32.mrb[198].mxu0  ;;  %v8220_v48 = vcombine.high %v3416_v14, %v3420_v60 }
 0x478   :  { %5689 = vmatmul.mubr.bf16.gmra.mrb[160].mxu1 %v8187_v45  ;;  %v5543_v52 = vpop.f32.mrb[199].mxu0  ;;  %v12257_v45 = vpop.eup %10267 }
 0x479   :  { %5696 = vmatprep.mubr.bf16.mxu1 %v8196_v6  ;;  %5814 = vmatpush1.bf16.msra.mxu1 %v13194_v7  ;;  %v8211_v6 = vcombine.low %v3408_v30, %v3412_v56 }
 0x47a   :  { %5815 = vmatprep.subr.bf16.mxu1 %v13108_v23 }
 0x47b   :  { %v12259_v22 = vpop.eup %10269 }
 0x47d   :  { %5816 = vmatpush1.bf16.msra.mxu1 %v3526_v35  ;;  %v12244_v2 = vpop.f32.mrb[200].mxu0 }
 0x47e   :  { %6074 = vmatprep.subr.bf16.mxu1 %v13108_v23  ;;  %v5548_v42 = vpop.f32.mrb[201].mxu0 }
 0x47f   :  { %v12247_v17 = vpop.f32.mrb[202].mxu0  ;;  %v3428_v42 = vld [vmem:[#allocation17 + $0x668] sm:$0xff] }
 0x480   :  { %5697 = vmatmul.mubr.bf16.gmra.mrb[164].mxu1 %v8195_v58  ;;  %v5551_v26 = vpop.f32.mrb[203].mxu0 }
 0x481   :  { %5704 = vmatprep.mubr.bf16.mxu1 %v8204_v39  ;;  %v3424_v39 = vld [vmem:[#allocation17 + $0x648] sm:$0xff]  ;;  %v12267_v26 = vpop.eup %10271 }
 0x482   :  { %v12269_v30 = vpop.eup %10273  ;;  %v8228_v56 = vcombine.high %v3424_v39, %v3428_v42 }
 0x485   :  { %v12251_v32 = vpop.f32.mrb[204].mxu0 }
 0x486   :  { %v5556_v35 = vpop.f32.mrb[205].mxu0 }
 0x487   :  { %v12253_v50 = vpop.f32.mrb[206].mxu0 }
 0x488   :  { %5705 = vmatmul.mubr.bf16.gmra.mrb[168].mxu1 %v8203_v49  ;;  %v5559_v18 = vpop.f32.mrb[207].mxu0 }
 0x489   :  { %5712 = vmatprep.mubr.bf16.mxu1 %v8212_v8 }
 0x48d   :  { %v12261_v52 = vpop.f32.mrb[208].mxu0 }
 0x48e   :  { %v5564_v7 = vpop.f32.mrb[209].mxu0 }
 0x48f   :  { %v12263_v5 = vpop.f32.mrb[210].mxu0 }
 0x490   :  { %5713 = vmatmul.mubr.bf16.gmra.mrb[172].mxu1 %v8211_v6  ;;  %v5567_v58 = vpop.f32.mrb[211].mxu0  ;;  %v8227_v6 = vcombine.low %v3424_v39, %v3428_v42 }
 0x491   :  { %5720 = vmatprep.mubr.bf16.mxu1 %v8220_v48  ;;  %v8236_v48 = vcombine.high %v3432_v3, %v3436_v20 }
 0x495   :  { %v12271_v41 = vpop.f32.mrb[212].mxu0 }
 0x496   :  { %v5572_v49 = vpop.f32.mrb[213].mxu0 }
 0x497   :  { %v12273_v8 = vpop.f32.mrb[214].mxu0  ;;  %v13199_v49 = vld [vmem:[#allocation129_spill] sm:$0xff] }
 0x498   :  { %5721 = vmatmul.mubr.bf16.gmra.mrb[176].mxu1 %v8219_v31  ;;  %v5575_v18 = vpop.f32.mrb[215].mxu0  ;;  %10275 = vtanh.f32 %v13199_v49  ;;  %v3440_v31 = vld [vmem:[#allocation17 + $0x6c8] sm:$0xff] }
 0x499   :  { %5728 = vmatprep.mubr.bf16.mxu1 %v8228_v56  ;;  %10277 = vtanh.f32 %v13200_v63  ;;  %v8235_v18 = vcombine.low %v3432_v3, %v3436_v20  ;;  %v8244_v56 = vcombine.high %v3440_v31, %v3444_v27  ;;  %v8243_v61 = vcombine.low %v3440_v31, %v3444_v27 }
 0x49a   :  { %10279 = vtanh.f32 %v13201_v29 }
 0x49d   :  { %v12277_v7 = vpop.f32.mrb[216].mxu0 }
 0x49e   :  { %v5580_v14 = vpop.f32.mrb[217].mxu0 }
 0x49f   :  { %v12279_v60 = vpop.f32.mrb[218].mxu0 }
 0x4a0   :  { %5729 = vmatmul.mubr.bf16.gmra.mrb[180].mxu1 %v8227_v6  ;;  %v5583_v58 = vpop.f32.mrb[219].mxu0  ;;  %v3448_v6 = vld [vmem:[#allocation17 + $0x708] sm:$0xff] }
 0x4a1   :  { %5736 = vmatprep.mubr.bf16.mxu1 %v8236_v48  ;;  %v3452_v48 = vld [vmem:[#allocation17 + $0x728] sm:$0xff] }
 0x4a2   :  { %v13202_v58 = vld [vmem:[#allocation130_spill] sm:$0xff]  ;;  %v12289_v49 = vpop.eup %10275  ;;  %v8252_v3 = vcombine.high %v3448_v6, %v3452_v48  ;;  %v8251_v46 = vcombine.low %v3448_v6, %v3452_v48 }
 0x4a3   :  { %10281 = vtanh.f32 %v13202_v58  ;;  %v12291_v63 = vpop.eup %10277 }
 0x4a4   :  { %v12299_v58 = vpop.eup %10279 }
 0x4a5   :  { %v12283_v35 = vpop.f32.mrb[220].mxu0 }
 0x4a6   :  { %v5588_v39 = vpop.f32.mrb[221].mxu0 }
 0x4a7   :  { %v12285_v42 = vpop.f32.mrb[222].mxu0 }
 0x4a8   :  { %5737 = vmatmul.mubr.bf16.gmra.mrb[184].mxu1 %v8235_v18  ;;  %v5591_v14 = vpop.f32.mrb[223].mxu0 }
 0x4a9   :  { %5744 = vmatprep.mubr.bf16.mxu1 %v8244_v56  ;;  %v3456_v56 = vld [vmem:[#allocation17 + $0x748] sm:$0xff] }
 0x4aa   :  { %v3460_v14 = vld [vmem:[#allocation17 + $0x768] sm:$0xff] }
 0x4ab   :  { %v8260_v31 = vcombine.high %v3456_v56, %v3460_v14  ;;  %v8259_v40 = vcombine.low %v3456_v56, %v3460_v14 }
 0x4ad   :  { %v12293_v20 = vpop.f32.mrb[224].mxu0  ;;  %v12301_v27 = vpop.eup %10281 }
 0x4ae   :  { %v5596_v39 = vpop.f32.mrb[225].mxu0 }
 0x4af   :  { %v12295_v13 = vpop.f32.mrb[226].mxu0 }
 0x4b0   :  { %5745 = vmatmul.mubr.bf16.gmra.mrb[188].mxu1 %v8243_v61  ;;  %v5599_v29 = vpop.f32.mrb[227].mxu0 }
 0x4b1   :  { %5752 = vmatprep.mubr.bf16.mxu1 %v8252_v3  ;;  %v3464_v3 = vld [vmem:[#allocation17 + $0x788] sm:$0xff] }
 0x4b2   :  { %v3468_v29 = vld [vmem:[#allocation17 + $0x7a8] sm:$0xff] }
 0x4b3   :  { %v8268_v44 = vcombine.high %v3464_v3, %v3468_v29 }
 0x4b5   :  { %v12303_v24 = vpop.f32.mrb[228].mxu0 }
 0x4b6   :  { %v5604_v57 = vpop.f32.mrb[229].mxu0 }
 0x4b7   :  { %v12305_v39 = vpop.f32.mrb[230].mxu0  ;;  %v13203_v57 = vld [vmem:[#allocation133_spill] sm:$0xff] }
 0x4b8   :  { %5753 = vmatmul.mubr.bf16.gmra.mrb[192].mxu1 %v8251_v46  ;;  %v5607_v18 = vpop.f32.mrb[231].mxu0  ;;  %10283 = vtanh.f32 %v13203_v57  ;;  %v3472_v46 = vld [vmem:[#allocation17 + $0x7c8] sm:$0xff] }
 0x4b9   :  { %5760 = vmatprep.mubr.bf16.mxu1 %v8260_v31  ;;  %10285 = vtanh.f32 %v13204_v11  ;;  %v8267_v18 = vcombine.low %v3464_v3, %v3468_v29  ;;  %v8276_v31 = vcombine.high %v3472_v46, %v3476_v19  ;;  %v8275_v47 = vcombine.low %v3472_v46, %v3476_v19 }
 0x4ba   :  { %10287 = vtanh.f32 %v13205_v53 }
 0x4bd   :  { %v12309_v10 = vpop.f32.mrb[232].mxu0 }
 0x4be   :  { %v5612_v6 = vpop.f32.mrb[233].mxu0 }
 0x4bf   :  { %v12311_v48 = vpop.f32.mrb[234].mxu0 }
 0x4c0   :  { %5761 = vmatmul.mubr.bf16.gmra.mrb[196].mxu1 %v8259_v40  ;;  %v5615_v43 = vpop.f32.mrb[235].mxu0  ;;  %v13206_v40 = vld [vmem:[#allocation134_spill] sm:$0xff] }
 0x4c1   :  { %5768 = vmatprep.mubr.bf16.mxu1 %v8268_v44  ;;  %v3225_v43 = vld [vmem:[#allocation17 + $0x10] sm:$0xff]  ;;  %10289 = vtanh.f32 %v13206_v40 }
 0x4c2   :  { %v3229_v44 = vld [vmem:[#allocation17 + $0x30] sm:$0xff]  ;;  %v10284_v57 = vpop.eup %10283 }
 0x4c3   :  { %v10286_v16 = vpop.eup %10285  ;;  %v8030_v11 = vcombine.high %v3225_v43, %v3229_v44  ;;  %v8029_v15 = vcombine.low %v3225_v43, %v3229_v44  ;;  %v13209_v43 = vpack.c.bf16 %v12269_v30, %v12267_v26  ;;  %v13213_v26 = vpack.c.bf16 %v12301_v27, %v12299_v58  ;;  %v13214_v30 = vld [vmem:[#allocation137_spill] sm:$0xff]  ;;  %v3265_v27 = vld [vmem:[#allocation17 + $0x150] sm:$0xff] }
 0x4c4   :  { %v10288_v9 = vpop.eup %10287 }
 0x4c5   :  { %v12315_v61 = vpop.f32.mrb[236].mxu0 }
 0x4c6   :  { %v5620_v56 = vpop.f32.mrb[237].mxu0 }
 0x4c7   :  { %v12317_v14 = vpop.f32.mrb[238].mxu0  ;;  %v3531_v56 = vpack.c.bf16 %v10286_v16, %v10284_v57  ;;  %v3241_v16 = vld [vmem:[#allocation17 + $0x90] sm:$0xff] }
 0x4c8   :  { %5769 = vmatmul.mubr.bf16.gmra.mrb[200].mxu1 %v8267_v18  ;;  %v5623_v6 = vpop.f32.mrb[239].mxu0 }
 0x4c9   :  { %5776 = vmatprep.mubr.bf16.mxu1 %v8276_v31  ;;  %v3233_v31 = vld [vmem:[#allocation17 + $0x50] sm:$0xff] }
 0x4ca   :  { %v3237_v6 = vld [vmem:[#allocation17 + $0x70] sm:$0xff] }
 0x4cb   :  { %v10290_v40 = vpop.eup %10289  ;;  %v8038_v19 = vcombine.high %v3233_v31, %v3237_v6  ;;  %v8037_v57 = vcombine.low %v3233_v31, %v3237_v6  ;;  %v13215_v31 = vld [vmem:[#allocation140_spill] sm:$0xff] }
 0x4cc   :  { %v3532_v46 = vpack.c.bf16 %v10290_v40, %v10288_v9  ;;  %v3249_v9 = vld [vmem:[#allocation17 + $0xd0] sm:$0xff] }
 0x4cd   :  { %v12321_v3 = vpop.f32.mrb[240].mxu0 }
 0x4ce   :  { %v5628_v29 = vpop.f32.mrb[241].mxu0 }
 0x4cf   :  { %v12323_v33 = vpop.f32.mrb[242].mxu0  ;;  %v13208_v29 = vpack.c.bf16 %v12259_v22, %v12257_v45  ;;  %v3253_v45 = vld [vmem:[#allocation17 + $0xf0] sm:$0xff]  ;;  %v13212_v22 = vld [vmem:[#allocation141_spill] sm:$0xff] }
 0x4d0   :  { %5777 = vmatmul.mubr.bf16.gmra.mrb[204].mxu1 %v8275_v47  ;;  %v5631_v18 = vpop.f32.mrb[243].mxu0  ;;  %v3245_v47 = vld [vmem:[#allocation17 + $0xb0] sm:$0xff] }
 0x4d1   :  { %5817 = vmatprep.mubr.bf16.mxu1 %v8030_v11  ;;  %v8046_v11 = vcombine.high %v3241_v16, %v3245_v47  ;;  %v8045_v44 = vcombine.low %v3241_v16, %v3245_v47  ;;  %v8054_v18 = vcombine.high %v3249_v9, %v3253_v45 }
 0x4d3   :  { %v8698_v53 = vpop.f32.mrb[128].mxu1 }
 0x4d4   :  { %v8699_v62 = vpop.f32.mrb[129].mxu1 }
 0x4d5   :  { %v12325_v25 = vadd.f32 %v8699_v62, %v8698_v53  ;;  %v13211_v62 = vld [vmem:[#allocation138_spill] sm:$0xff]  ;;  %v8053_v53 = vcombine.low %v3249_v9, %v3253_v45  ;;  %v13216_v9 = vld [vmem:[#allocation143_spill] sm:$0xff] }
 0x4d6   :  { %10291 = vtanh.f32 %v13211_v62  ;;  %v3281_v45 = vld [vmem:[#allocation17 + $0x1d0] sm:$0xff] }
 0x4d7   :  { %13207 = vst [vmem:[#allocation77_spill] sm:$0xff] %v12325_v25  ;;  %10293 = vtanh.f32 %v13212_v22  ;;  %v3285_v22 = vld [vmem:[#allocation17 + $0x1f0] sm:$0xff] }
 0x4d8   :  { %5818 = vmatmul.mubr.bf16.vlgmr.msra.gmra.mrb[208].mxu1 %v8029_v15  ;;  %v13210_v15 = vpack.c.bf16 %v12291_v63, %v12289_v49  ;;  %10295 = vtanh.f32 %v13214_v30  ;;  %v3257_v49 = vld [vmem:[#allocation17 + $0x110] sm:$0xff] }
 0x4d9   :  { %5825 = vmatprep.mubr.bf16.mxu1 %v8038_v19  ;;  %6075 = vmatpush1.bf16.msra.mxu1 %v13208_v29  ;;  %v3261_v63 = vld [vmem:[#allocation17 + $0x130] sm:$0xff]  ;;  %10297 = vtanh.f32 %v13215_v31  ;;  %v13219_v31 = vld [vmem:[#allocation144_spill] sm:$0xff] }
 0x4da   :  { %6076 = vmatprep.subr.bf16.mxu1 %v13108_v23  ;;  %v8062_v19 = vcombine.high %v3257_v49, %v3261_v63  ;;  %v8061_v16 = vcombine.low %v3257_v49, %v3261_v63  ;;  %10299 = vtanh.f32 %v13216_v9  ;;  %v13218_v30 = vld [vmem:[#allocation142_spill] sm:$0xff]  ;;  %v13222_v9 = vld [vmem:[#allocation147_spill] sm:$0xff] }
 0x4db   :  { %v3289_v49 = vld [vmem:[#allocation17 + $0x210] sm:$0xff] }
 0x4dc   :  { %v3293_v63 = vld [vmem:[#allocation17 + $0x230] sm:$0xff] }
 0x4dd   :  { %6077 = vmatpush1.bf16.msra.mxu1 %v13209_v43  ;;  %v3273_v43 = vld [vmem:[#allocation17 + $0x190] sm:$0xff] }
 0x4de   :  { %6078 = vmatprep.subr.bf16.mxu1 %v13108_v23 }
 0x4e0   :  { %5826 = vmatmul.mubr.bf16.gmra.mrb[212].mxu1 %v8037_v57  ;;  %v10292_v6 = vpop.eup %10291 }
 0x4e1   :  { %5833 = vmatprep.mubr.bf16.mxu1 %v8046_v11  ;;  %6079 = vmatpush1.bf16.msra.mxu1 %v13210_v15  ;;  %v10294_v40 = vpop.eup %10293  ;;  %v3277_v15 = vld [vmem:[#allocation17 + $0x1b0] sm:$0xff] }
 0x4e2   :  { %6080 = vmatprep.subr.bf16.mxu1 %v13108_v23  ;;  %v3533_v58 = vpack.c.bf16 %v10294_v40, %v10292_v6  ;;  %v10296_v29 = vpop.eup %10295  ;;  %v8078_v62 = vcombine.high %v3273_v43, %v3277_v15 }
 0x4e3   :  { %v10298_v47 = vpop.eup %10297 }
 0x4e4   :  { %v3534_v11 = vpack.c.bf16 %v10298_v47, %v10296_v29  ;;  %v10300_v6 = vpop.eup %10299 }
 0x4e5   :  { %6081 = vmatpush1.bf16.msra.mxu1 %v13213_v26  ;;  %v8086_v26 = vcombine.high %v3281_v45, %v3285_v22 }
 0x4e6   :  { %6082 = vmatprep.subr.bf16.mxu1 %v13108_v23 }
 0x4e8   :  { %5834 = vmatmul.mubr.bf16.gmra.mrb[216].mxu1 %v8045_v44  ;;  %v13217_v44 = vld [vmem:[#allocation145_spill] sm:$0xff] }
 0x4e9   :  { %5841 = vmatprep.mubr.bf16.mxu1 %v8054_v18  ;;  %6083 = vmatpush1.bf16.msra.mxu1 %v3531_v56  ;;  %v3269_v56 = vld [vmem:[#allocation17 + $0x170] sm:$0xff]  ;;  %10301 = vtanh.f32 %v13217_v44  ;;  %v8077_v18 = vcombine.low %v3273_v43, %v3277_v15 }
 0x4ea   :  { %6084 = vmatprep.subr.bf16.mxu1 %v13108_v23  ;;  %v8070_v57 = vcombine.high %v3265_v27, %v3269_v56  ;;  %10303 = vtanh.f32 %v13218_v30  ;;  %v13221_v43 = vld [vmem:[#allocation151_spill] sm:$0xff] }
 0x4eb   :  { %10305 = vtanh.f32 %v13219_v31  ;;  %v3317_v31 = vld [vmem:[#allocation17 + $0x2f0] sm:$0xff] }
 0x4ed   :  { %6085 = vmatpush1.bf16.msra.mxu1 %v3532_v46  ;;  %v8069_v46 = vcombine.low %v3265_v27, %v3269_v56  ;;  %v3297_v27 = vld [vmem:[#allocation17 + $0x250] sm:$0xff] }
 0x4ee   :  { %6086 = vmatprep.subr.bf16.mxu1 %v13108_v23  ;;  %v3301_v56 = vld [vmem:[#allocation17 + $0x270] sm:$0xff] }
 0x4f0   :  { %5842 = vmatmul.mubr.bf16.gmra.mrb[220].mxu1 %v8053_v53  ;;  %v8085_v53 = vcombine.low %v3281_v45, %v3285_v22  ;;  %v13223_v45 = vld [vmem:[#allocation150_spill] sm:$0xff]  ;;  %v8101_v22 = vcombine.low %v3297_v27, %v3301_v56 }
 0x4f1   :  { %5849 = vmatprep.mubr.bf16.mxu1 %v8062_v19  ;;  %6087 = vmatpush1.bf16.msra.mxu1 %v3533_v58  ;;  %v8094_v19 = vcombine.high %v3289_v49, %v3293_v63 }
 0x4f2   :  { %6088 = vmatprep.subr.bf16.mxu1 %v13108_v23 }
 0x4f3   :  { %v10302_v40 = vpop.eup %10301 }
 0x4f4   :  { %v3535_v58 = vpack.c.bf16 %v10302_v40, %v10300_v6  ;;  %v10304_v29 = vpop.eup %10303  ;;  %v13226_v6 = vld [vmem:[#allocation152_spill] sm:$0xff] }
 0x4f5   :  { %6089 = vmatpush1.bf16.msra.mxu1 %v3534_v11  ;;  %v10306_v47 = vpop.eup %10305  ;;  %v13220_v11 = vld [vmem:[#allocation148_spill] sm:$0xff] }
 0x4f6   :  { %6090 = vmatprep.subr.bf16.mxu1 %v13108_v23  ;;  %10307 = vtanh.f32 %v13220_v11  ;;  %v3536_v15 = vpack.c.bf16 %v10306_v47, %v10304_v29 }
 0x4f7   :  { %10309 = vtanh.f32 %v13221_v43  ;;  %v3321_v43 = vld [vmem:[#allocation17 + $0x310] sm:$0xff] }
 0x4f8   :  { %5850 = vmatmul.mubr.bf16.gmra.mrb[224].mxu1 %v8061_v16  ;;  %v8093_v16 = vcombine.low %v3289_v49, %v3293_v63  ;;  %10311 = vtanh.f32 %v13222_v9  ;;  %v3313_v63 = vld [vmem:[#allocation17 + $0x2d0] sm:$0xff]  ;;  %v13230_v9 = vld [vmem:[#allocation157_spill] sm:$0xff] }
 0x4f9   :  { %5857 = vmatprep.mubr.bf16.mxu1 %v8070_v57  ;;  %6091 = vmatpush1.bf16.msra.mxu1 %v3535_v58  ;;  %v8102_v57 = vcombine.high %v3297_v27, %v3301_v56  ;;  %10313 = vtanh.f32 %v13223_v45  ;;  %v8118_v58 = vcombine.high %v3313_v63, %v3317_v31  ;;  %v13228_v56 = vld [vmem:[#allocation158_spill] sm:$0xff] }
 0x4fa   :  { %6092 = vmatprep.subr.bf16.mxu1 %v13108_v23 }
 0x4fd   :  { %6093 = vmatpush1.bf16.msra.mxu1 %v3536_v15  ;;  %v3325_v15 = vld [vmem:[#allocation17 + $0x330] sm:$0xff] }
 0x4fe   :  { %6094 = vmatprep.subr.bf16.mxu1 %v13108_v23 }
 0x500   :  { %5858 = vmatmul.mubr.bf16.gmra.mrb[228].mxu1 %v8069_v46  ;;  %v3305_v46 = vld [vmem:[#allocation17 + $0x290] sm:$0xff]  ;;  %v10308_v30 = vpop.eup %10307 }
 0x501   :  { %5865 = vmatprep.mubr.bf16.mxu1 %v8078_v62  ;;  %v3309_v62 = vld [vmem:[#allocation17 + $0x2b0] sm:$0xff]  ;;  %v10310_v49 = vpop.eup %10309 }
 0x502   :  { %v8110_v44 = vcombine.high %v3305_v46, %v3309_v62  ;;  %v8109_v40 = vcombine.low %v3305_v46, %v3309_v62  ;;  %v3537_v29 = vpack.c.bf16 %v10310_v49, %v10308_v30  ;;  %v13231_v46 = vld [vmem:[#allocation160_spill] sm:$0xff]  ;;  %v8117_v62 = vcombine.low %v3313_v63, %v3317_v31 }
 0x504   :  { %6095 = vmatpush1.bf16.msra.mxu1 %v3537_v29 }
 0x505   :  { %6096 = vmatprep.subr.bf16.mxu1 %v13108_v23 }
 0x508   :  { %5866 = vmatmul.mubr.bf16.gmra.mrb[232].mxu1 %v8077_v18  ;;  %v13224_v18 = vld [vmem:[#allocation153_spill] sm:$0xff] }
 0x509   :  { %5873 = vmatprep.mubr.bf16.mxu1 %v8086_v26  ;;  %10315 = vtanh.f32 %v13224_v18  ;;  %v13225_v26 = vld [vmem:[#allocation155_spill] sm:$0xff] }
 0x50a   :  { %10317 = vtanh.f32 %v13225_v26 }
 0x50b   :  { %10319 = vtanh.f32 %v13226_v6  ;;  %v3329_v6 = vld [vmem:[#allocation17 + $0x350] sm:$0xff] }
 0x510   :  { %5874 = vmatmul.mubr.bf16.gmra.mrb[236].mxu1 %v8085_v53  ;;  %v13227_v53 = vld [vmem:[#allocation154_spill] sm:$0xff] }
 0x511   :  { %5881 = vmatprep.mubr.bf16.mxu1 %v8094_v19  ;;  %10321 = vtanh.f32 %v13227_v53  ;;  %v10312_v19 = vpop.eup %10311  ;;  %v3333_v53 = vld [vmem:[#allocation17 + $0x370] sm:$0xff] }
 0x512   :  { %v10314_v27 = vpop.eup %10313  ;;  %10323 = vtanh.f32 %v13228_v56  ;;  %v8134_v31 = vcombine.high %v3329_v6, %v3333_v53  ;;  %v3341_v56 = vld [vmem:[#allocation17 + $0x3b0] sm:$0xff] }
 0x513   :  { %v10316_v47 = vpop.eup %10315 }
 0x514   :  { %v10318_v11 = vpop.eup %10317 }
 0x515   :  { %v10320_v45 = vpop.eup %10319 }
 0x518   :  { %5882 = vmatmul.mubr.bf16.gmra.mrb[240].mxu1 %v8093_v16  ;;  %v13229_v16 = vld [vmem:[#allocation161_spill] sm:$0xff] }
 0x519   :  { %5889 = vmatprep.mubr.bf16.mxu1 %v8102_v57  ;;  %10325 = vtanh.f32 %v13229_v16  ;;  %v3538_v57 = vpack.c.bf16 %v10314_v27, %v10312_v19  ;;  %v3337_v27 = vld [vmem:[#allocation17 + $0x390] sm:$0xff]  ;;  %v8133_v16 = vcombine.low %v3329_v6, %v3333_v53 }
 0x51a   :  { %10327 = vtanh.f32 %v13230_v9  ;;  %v3353_v9 = vld [vmem:[#allocation17 + $0x410] sm:$0xff] }
 0x51b   :  { %6097 = vmatpush1.bf16.msra.mxu1 %v3538_v57  ;;  %10329 = vtanh.f32 %v13231_v46  ;;  %v10322_v18 = vpop.eup %10321  ;;  %v3345_v57 = vld [vmem:[#allocation17 + $0x3d0] sm:$0xff] }
 0x51c   :  { %6098 = vmatprep.subr.bf16.mxu1 %v13108_v23  ;;  %v10324_v26 = vpop.eup %10323  ;;  %v3540_v30 = vpack.c.bf16 %v10322_v18, %v10320_v45  ;;  %v3357_v46 = vld [vmem:[#allocation17 + $0x430] sm:$0xff] }
 0x51d   :  { %v8158_v45 = vcombine.high %v3353_v9, %v3357_v46  ;;  %v3377_v53 = vld [vmem:[#allocation17 + $0x4d0] sm:$0xff] }
 0x520   :  { %5890 = vmatmul.mubr.bf16.gmra.mrb[244].mxu1 %v8101_v22  ;;  %v8126_v22 = vcombine.high %v3321_v43, %v3325_v15 }
 0x521   :  { %5897 = vmatprep.mubr.bf16.mxu1 %v8110_v44  ;;  %v3539_v44 = vpack.c.bf16 %v10318_v11, %v10316_v47  ;;  %v8142_v47 = vcombine.high %v3337_v27, %v3341_v56  ;;  %v3349_v11 = vld [vmem:[#allocation17 + $0x3f0] sm:$0xff] }
 0x523   :  { %6099 = vmatpush1.bf16.msra.mxu1 %v3539_v44  ;;  %v10326_v49 = vpop.eup %10325  ;;  %v8157_v44 = vcombine.low %v3353_v9, %v3357_v46  ;;  %v3409_v46 = vld [vmem:[#allocation17 + $0x5d0] sm:$0xff] }
 0x524   :  { %6100 = vmatprep.subr.bf16.mxu1 %v13108_v23  ;;  %v10328_v63 = vpop.eup %10327  ;;  %v3541_v19 = vpack.c.bf16 %v10326_v49, %v10324_v26  ;;  %v3369_v26 = vld [vmem:[#allocation17 + $0x490] sm:$0xff] }
 0x527   :  { %6101 = vmatpush1.bf16.msra.mxu1 %v3540_v30  ;;  %v3373_v30 = vld [vmem:[#allocation17 + $0x4b0] sm:$0xff] }
 0x528   :  { %5898 = vmatmul.mubr.bf16.gmra.mrb[248].mxu1 %v8109_v40  ;;  %v8125_v40 = vcombine.low %v3321_v43, %v3325_v15  ;;  %6102 = vmatprep.subr.bf16.mxu1 %v13108_v23  ;;  %v8141_v43 = vcombine.low %v3337_v27, %v3341_v56  ;;  %v8150_v15 = vcombine.high %v3345_v57, %v3349_v11  ;;  %v3393_v56 = vld [vmem:[#allocation17 + $0x550] sm:$0xff] }
 0x529   :  { %5905 = vmatprep.mubr.bf16.mxu1 %v8118_v58  ;;  %v10330_v58 = vpop.eup %10329  ;;  %v8174_v6 = vcombine.high %v3369_v26, %v3373_v30 }
 0x52a   :  { %v3542_v29 = vpack.c.bf16 %v10330_v58, %v10328_v63  ;;  %v8173_v63 = vcombine.low %v3369_v26, %v3373_v30  ;;  %v3389_v58 = vld [vmem:[#allocation17 + $0x530] sm:$0xff] }
 0x52b   :  { %6103 = vmatpush1.bf16.msra.mxu1 %v3541_v19  ;;  %v3385_v19 = vld [vmem:[#allocation17 + $0x510] sm:$0xff] }
 0x52c   :  { %6104 = vmatprep.subr.bf16.mxu1 %v13108_v23  ;;  %v3361_v23 = vld [vmem:[#allocation17 + $0x450] sm:$0xff]  ;;  %v8190_v27 = vcombine.high %v3385_v19, %v3389_v58 }
 0x52d   :  { %v3425_v30 = vld [vmem:[#allocation17 + $0x650] sm:$0xff] }
 0x52f   :  { %6105 = vmatpush1.bf16.msra.mxu1 %v3542_v29 }
 0x530   :  { %5906 = vmatmul.mubr.bf16.gmra.mrb[252].mxu1 %v8117_v62  ;;  %v8149_v62 = vcombine.low %v3345_v57, %v3349_v11  ;;  %v3401_v11 = vld [vmem:[#allocation17 + $0x590] sm:$0xff] }
 0x531   :  { %5913 = vmatprep.mubr.bf16.mxu1 %v8126_v22  ;;  %v3365_v22 = vld [vmem:[#allocation17 + $0x470] sm:$0xff] }
 0x532   :  { %v8166_v18 = vcombine.high %v3361_v23, %v3365_v22  ;;  %v8165_v49 = vcombine.low %v3361_v23, %v3365_v22  ;;  %v3417_v22 = vld [vmem:[#allocation17 + $0x610] sm:$0xff] }
 0x538   :  { %5914 = vmatmul.mubr.bf16.gmra.mrb[0].mxu1 %v8125_v40  ;;  %v3381_v40 = vld [vmem:[#allocation17 + $0x4f0] sm:$0xff] }
 0x539   :  { %5921 = vmatprep.mubr.bf16.mxu1 %v8134_v31  ;;  %v8182_v31 = vcombine.high %v3377_v53, %v3381_v40  ;;  %v8181_v29 = vcombine.low %v3377_v53, %v3381_v40  ;;  %v3433_v40 = vld [vmem:[#allocation17 + $0x690] sm:$0xff] }
 0x540   :  { %5922 = vmatmul.mubr.bf16.gmra.mrb[132].mxu1 %v8133_v16  ;;  %v3397_v16 = vld [vmem:[#allocation17 + $0x570] sm:$0xff] }
 0x541   :  { %5929 = vmatprep.mubr.bf16.mxu1 %v8142_v47  ;;  %v8189_v47 = vcombine.low %v3385_v19, %v3389_v58  ;;  %v8198_v57 = vcombine.high %v3393_v56, %v3397_v16  ;;  %v3441_v58 = vld [vmem:[#allocation17 + $0x6d0] sm:$0xff] }
 0x548   :  { %5930 = vmatmul.mubr.bf16.gmra.mrb[136].mxu1 %v8141_v43  ;;  %v3405_v43 = vld [vmem:[#allocation17 + $0x5b0] sm:$0xff] }
 0x549   :  { %5937 = vmatprep.mubr.bf16.mxu1 %v8150_v15  ;;  %v8197_v15 = vcombine.low %v3393_v56, %v3397_v16  ;;  %v8206_v9 = vcombine.high %v3401_v11, %v3405_v43  ;;  %v3449_v16 = vld [vmem:[#allocation17 + $0x710] sm:$0xff] }
 0x550   :  { %5938 = vmatmul.mubr.bf16.gmra.mrb[140].mxu1 %v8149_v62  ;;  %v3413_v62 = vld [vmem:[#allocation17 + $0x5f0] sm:$0xff] }
 0x551   :  { %5945 = vmatprep.mubr.bf16.mxu1 %v8158_v45  ;;  %v8205_v45 = vcombine.low %v3401_v11, %v3405_v43  ;;  %v8214_v23 = vcombine.high %v3409_v46, %v3413_v62  ;;  %v3457_v43 = vld [vmem:[#allocation17 + $0x750] sm:$0xff] }
 0x558   :  { %5946 = vmatmul.mubr.bf16.gmra.mrb[144].mxu1 %v8157_v44  ;;  %v3421_v44 = vld [vmem:[#allocation17 + $0x630] sm:$0xff] }
 0x559   :  { %5953 = vmatprep.mubr.bf16.mxu1 %v8166_v18  ;;  %v8213_v18 = vcombine.low %v3409_v46, %v3413_v62  ;;  %v8222_v26 = vcombine.high %v3417_v22, %v3421_v44  ;;  %v3465_v62 = vld [vmem:[#allocation17 + $0x790] sm:$0xff] }
 0x560   :  { %5954 = vmatmul.mubr.bf16.gmra.mrb[148].mxu1 %v8165_v49  ;;  %v3429_v49 = vld [vmem:[#allocation17 + $0x670] sm:$0xff] }
 0x561   :  { %5961 = vmatprep.mubr.bf16.mxu1 %v8174_v6  ;;  %v8221_v6 = vcombine.low %v3417_v22, %v3421_v44  ;;  %v8230_v53 = vcombine.high %v3425_v30, %v3429_v49  ;;  %v3473_v44 = vld [vmem:[#allocation17 + $0x7d0] sm:$0xff] }
 0x568   :  { %5962 = vmatmul.mubr.bf16.gmra.mrb[152].mxu1 %v8173_v63  ;;  %v3437_v63 = vld [vmem:[#allocation17 + $0x6b0] sm:$0xff] }
 0x569   :  { %5969 = vmatprep.mubr.bf16.mxu1 %v8182_v31  ;;  %v8229_v31 = vcombine.low %v3425_v30, %v3429_v49  ;;  %v8238_v19 = vcombine.high %v3433_v40, %v3437_v63  ;;  %v3226_v49 = vld [vmem:[#allocation17 + $0x18] sm:$0xff] }
 0x570   :  { %5970 = vmatmul.mubr.bf16.gmra.mrb[156].mxu1 %v8181_v29  ;;  %v3445_v29 = vld [vmem:[#allocation17 + $0x6f0] sm:$0xff] }
 0x571   :  { %5977 = vmatprep.mubr.bf16.mxu1 %v8190_v27  ;;  %v8237_v27 = vcombine.low %v3433_v40, %v3437_v63  ;;  %v8246_v56 = vcombine.high %v3441_v58, %v3445_v29  ;;  %v3234_v63 = vld [vmem:[#allocation17 + $0x58] sm:$0xff] }
 0x578   :  { %5978 = vmatmul.mubr.bf16.gmra.mrb[160].mxu1 %v8189_v47  ;;  %v3453_v47 = vld [vmem:[#allocation17 + $0x730] sm:$0xff] }
 0x579   :  { %5985 = vmatprep.mubr.bf16.mxu1 %v8198_v57  ;;  %v8245_v57 = vcombine.low %v3441_v58, %v3445_v29  ;;  %v8254_v11 = vcombine.high %v3449_v16, %v3453_v47  ;;  %v3242_v29 = vld [vmem:[#allocation17 + $0x98] sm:$0xff] }
 0x580   :  { %5986 = vmatmul.mubr.bf16.gmra.mrb[164].mxu1 %v8197_v15  ;;  %v3461_v15 = vld [vmem:[#allocation17 + $0x770] sm:$0xff] }
 0x581   :  { %5993 = vmatprep.mubr.bf16.mxu1 %v8206_v9  ;;  %v8253_v9 = vcombine.low %v3449_v16, %v3453_v47  ;;  %v8262_v46 = vcombine.high %v3457_v43, %v3461_v15  ;;  %v3250_v47 = vld [vmem:[#allocation17 + $0xd8] sm:$0xff] }
 0x588   :  { %5994 = vmatmul.mubr.bf16.gmra.mrb[168].mxu1 %v8205_v45  ;;  %v3469_v45 = vld [vmem:[#allocation17 + $0x7b0] sm:$0xff] }
 0x589   :  { %6001 = vmatprep.mubr.bf16.mxu1 %v8214_v23  ;;  %v8261_v23 = vcombine.low %v3457_v43, %v3461_v15  ;;  %v8270_v22 = vcombine.high %v3465_v62, %v3469_v45  ;;  %v3258_v15 = vld [vmem:[#allocation17 + $0x118] sm:$0xff] }
 0x590   :  { %6002 = vmatmul.mubr.bf16.gmra.mrb[172].mxu1 %v8213_v18  ;;  %v3477_v18 = vld [vmem:[#allocation17 + $0x7f0] sm:$0xff] }
 0x591   :  { %6009 = vmatprep.mubr.bf16.mxu1 %v8222_v26  ;;  %v8269_v26 = vcombine.low %v3465_v62, %v3469_v45  ;;  %v8278_v30 = vcombine.high %v3473_v44, %v3477_v18  ;;  %v3266_v45 = vld [vmem:[#allocation17 + $0x158] sm:$0xff] }
 0x598   :  { %6010 = vmatmul.mubr.bf16.gmra.mrb[176].mxu1 %v8221_v6  ;;  %v3230_v6 = vld [vmem:[#allocation17 + $0x38] sm:$0xff] }
 0x599   :  { %6017 = vmatprep.mubr.bf16.mxu1 %v8230_v53  ;;  %v8277_v53 = vcombine.low %v3473_v44, %v3477_v18  ;;  %v8032_v40 = vcombine.high %v3226_v49, %v3230_v6  ;;  %v3274_v18 = vld [vmem:[#allocation17 + $0x198] sm:$0xff] }
 0x5a0   :  { %6018 = vmatmul.mubr.bf16.gmra.mrb[180].mxu1 %v8229_v31  ;;  %v3238_v31 = vld [vmem:[#allocation17 + $0x78] sm:$0xff] }
 0x5a1   :  { %6025 = vmatprep.mubr.bf16.mxu1 %v8238_v19  ;;  %v8031_v19 = vcombine.low %v3226_v49, %v3230_v6  ;;  %v8040_v58 = vcombine.high %v3234_v63, %v3238_v31  ;;  %v3282_v6 = vld [vmem:[#allocation17 + $0x1d8] sm:$0xff] }
 0x5a8   :  { %6026 = vmatmul.mubr.bf16.gmra.mrb[184].mxu1 %v8237_v27  ;;  %v3246_v27 = vld [vmem:[#allocation17 + $0xb8] sm:$0xff] }
 0x5a9   :  { %6033 = vmatprep.mubr.bf16.mxu1 %v8246_v56  ;;  %v8039_v56 = vcombine.low %v3234_v63, %v3238_v31  ;;  %v8048_v16 = vcombine.high %v3242_v29, %v3246_v27  ;;  %v3290_v31 = vld [vmem:[#allocation17 + $0x218] sm:$0xff] }
 0x5b0   :  { %6034 = vmatmul.mubr.bf16.gmra.mrb[188].mxu1 %v8245_v57  ;;  %v3254_v57 = vld [vmem:[#allocation17 + $0xf8] sm:$0xff] }
 0x5b1   :  { %6041 = vmatprep.mubr.bf16.mxu1 %v8254_v11  ;;  %v8047_v11 = vcombine.low %v3242_v29, %v3246_v27  ;;  %v8056_v43 = vcombine.high %v3250_v47, %v3254_v57  ;;  %v3298_v27 = vld [vmem:[#allocation17 + $0x258] sm:$0xff] }
 0x5b8   :  { %6042 = vmatmul.mubr.bf16.gmra.mrb[192].mxu1 %v8253_v9  ;;  %v3262_v9 = vld [vmem:[#allocation17 + $0x138] sm:$0xff] }
 0x5b9   :  { %6049 = vmatprep.mubr.bf16.mxu1 %v8262_v46  ;;  %v8055_v46 = vcombine.low %v3250_v47, %v3254_v57  ;;  %v8064_v62 = vcombine.high %v3258_v15, %v3262_v9  ;;  %v3306_v57 = vld [vmem:[#allocation17 + $0x298] sm:$0xff] }
 0x5c0   :  { %6050 = vmatmul.mubr.bf16.gmra.mrb[196].mxu1 %v8261_v23  ;;  %v3270_v23 = vld [vmem:[#allocation17 + $0x178] sm:$0xff] }
 0x5c1   :  { %6057 = vmatprep.mubr.bf16.mxu1 %v8270_v22  ;;  %v8063_v22 = vcombine.low %v3258_v15, %v3262_v9  ;;  %v8072_v44 = vcombine.high %v3266_v45, %v3270_v23  ;;  %v3314_v9 = vld [vmem:[#allocation17 + $0x2d8] sm:$0xff] }
 0x5c8   :  { %6058 = vmatmul.mubr.bf16.gmra.mrb[200].mxu1 %v8269_v26  ;;  %v3278_v26 = vld [vmem:[#allocation17 + $0x1b8] sm:$0xff] }
 0x5c9   :  { %6065 = vmatprep.mubr.bf16.mxu1 %v8278_v30  ;;  %v8071_v30 = vcombine.low %v3266_v45, %v3270_v23  ;;  %v8080_v49 = vcombine.high %v3274_v18, %v3278_v26  ;;  %v3322_v23 = vld [vmem:[#allocation17 + $0x318] sm:$0xff] }
 0x5d0   :  { %6066 = vmatmul.mubr.bf16.gmra.mrb[204].mxu1 %v8277_v53  ;;  %v3286_v53 = vld [vmem:[#allocation17 + $0x1f8] sm:$0xff] }
 0x5d1   :  { %6106 = vmatprep.mubr.bf16.mxu1 %v8032_v40  ;;  %v8079_v40 = vcombine.low %v3274_v18, %v3278_v26  ;;  %v8088_v63 = vcombine.high %v3282_v6, %v3286_v53  ;;  %v3330_v26 = vld [vmem:[#allocation17 + $0x358] sm:$0xff] }
 0x5d8   :  { %6107 = vmatmul.mubr.bf16.vlgmr.msra.gmra.mrb[208].mxu1 %v8031_v19  ;;  %v3294_v19 = vld [vmem:[#allocation17 + $0x238] sm:$0xff] }
 0x5d9   :  { %6114 = vmatprep.mubr.bf16.mxu1 %v8040_v58  ;;  %v8087_v58 = vcombine.low %v3282_v6, %v3286_v53  ;;  %v8096_v29 = vcombine.high %v3290_v31, %v3294_v19  ;;  %v3338_v53 = vld [vmem:[#allocation17 + $0x398] sm:$0xff] }
 0x5e0   :  { %6115 = vmatmul.mubr.bf16.gmra.mrb[212].mxu1 %v8039_v56  ;;  %v3302_v56 = vld [vmem:[#allocation17 + $0x278] sm:$0xff] }
 0x5e1   :  { %6122 = vmatprep.mubr.bf16.mxu1 %v8048_v16  ;;  %v8095_v16 = vcombine.low %v3290_v31, %v3294_v19  ;;  %v8104_v47 = vcombine.high %v3298_v27, %v3302_v56  ;;  %v3346_v19 = vld [vmem:[#allocation17 + $0x3d8] sm:$0xff] }
 0x5e8   :  { %6123 = vmatmul.mubr.bf16.gmra.mrb[216].mxu1 %v8047_v11  ;;  %v3310_v11 = vld [vmem:[#allocation17 + $0x2b8] sm:$0xff] }
 0x5e9   :  { %6130 = vmatprep.mubr.bf16.mxu1 %v8056_v43  ;;  %v8103_v43 = vcombine.low %v3298_v27, %v3302_v56  ;;  %v8112_v15 = vcombine.high %v3306_v57, %v3310_v11  ;;  %v3354_v56 = vld [vmem:[#allocation17 + $0x418] sm:$0xff] }
 0x5f0   :  { %6131 = vmatmul.mubr.bf16.gmra.mrb[220].mxu1 %v8055_v46  ;;  %v3318_v46 = vld [vmem:[#allocation17 + $0x2f8] sm:$0xff] }
 0x5f1   :  { %6138 = vmatprep.mubr.bf16.mxu1 %v8064_v62  ;;  %v8111_v62 = vcombine.low %v3306_v57, %v3310_v11  ;;  %v8120_v45 = vcombine.high %v3314_v9, %v3318_v46  ;;  %v3362_v11 = vld [vmem:[#allocation17 + $0x458] sm:$0xff] }
 0x5f8   :  { %6139 = vmatmul.mubr.bf16.gmra.mrb[224].mxu1 %v8063_v22  ;;  %v3326_v22 = vld [vmem:[#allocation17 + $0x338] sm:$0xff] }
 0x5f9   :  { %6146 = vmatprep.mubr.bf16.mxu1 %v8072_v44  ;;  %v8119_v44 = vcombine.low %v3314_v9, %v3318_v46  ;;  %v8128_v18 = vcombine.high %v3322_v23, %v3326_v22  ;;  %v3370_v46 = vld [vmem:[#allocation17 + $0x498] sm:$0xff] }
 0x600   :  { %6147 = vmatmul.mubr.bf16.gmra.mrb[228].mxu1 %v8071_v30  ;;  %v3334_v30 = vld [vmem:[#allocation17 + $0x378] sm:$0xff] }
 0x601   :  { %6154 = vmatprep.mubr.bf16.mxu1 %v8080_v49  ;;  %v8127_v49 = vcombine.low %v3322_v23, %v3326_v22  ;;  %v8136_v6 = vcombine.high %v3330_v26, %v3334_v30  ;;  %v3378_v22 = vld [vmem:[#allocation17 + $0x4d8] sm:$0xff] }
 0x608   :  { %6155 = vmatmul.mubr.bf16.gmra.mrb[232].mxu1 %v8079_v40  ;;  %v3342_v40 = vld [vmem:[#allocation17 + $0x3b8] sm:$0xff] }
 0x609   :  { %6162 = vmatprep.mubr.bf16.mxu1 %v8088_v63  ;;  %v8135_v63 = vcombine.low %v3330_v26, %v3334_v30  ;;  %v8144_v31 = vcombine.high %v3338_v53, %v3342_v40  ;;  %v3386_v30 = vld [vmem:[#allocation17 + $0x518] sm:$0xff] }
 0x610   :  { %6163 = vmatmul.mubr.bf16.gmra.mrb[236].mxu1 %v8087_v58  ;;  %v3350_v58 = vld [vmem:[#allocation17 + $0x3f8] sm:$0xff] }
 0x611   :  { %6170 = vmatprep.mubr.bf16.mxu1 %v8096_v29  ;;  %v8143_v29 = vcombine.low %v3338_v53, %v3342_v40  ;;  %v8152_v27 = vcombine.high %v3346_v19, %v3350_v58  ;;  %v3394_v40 = vld [vmem:[#allocation17 + $0x558] sm:$0xff] }
 0x618   :  { %6171 = vmatmul.mubr.bf16.gmra.mrb[240].mxu1 %v8095_v16  ;;  %v3358_v16 = vld [vmem:[#allocation17 + $0x438] sm:$0xff] }
 0x619   :  { %6178 = vmatprep.mubr.bf16.mxu1 %v8104_v47  ;;  %v8151_v47 = vcombine.low %v3346_v19, %v3350_v58  ;;  %v8160_v57 = vcombine.high %v3354_v56, %v3358_v16  ;;  %v3402_v58 = vld [vmem:[#allocation17 + $0x598] sm:$0xff] }
 0x620   :  { %6179 = vmatmul.mubr.bf16.gmra.mrb[244].mxu1 %v8103_v43  ;;  %v3366_v43 = vld [vmem:[#allocation17 + $0x478] sm:$0xff] }
 0x621   :  { %6186 = vmatprep.mubr.bf16.mxu1 %v8112_v15  ;;  %v8159_v15 = vcombine.low %v3354_v56, %v3358_v16  ;;  %v8168_v9 = vcombine.high %v3362_v11, %v3366_v43  ;;  %v3410_v16 = vld [vmem:[#allocation17 + $0x5d8] sm:$0xff] }
 0x628   :  { %6187 = vmatmul.mubr.bf16.gmra.mrb[248].mxu1 %v8111_v62  ;;  %v3374_v62 = vld [vmem:[#allocation17 + $0x4b8] sm:$0xff] }
 0x629   :  { %6194 = vmatprep.mubr.bf16.mxu1 %v8120_v45  ;;  %v8167_v45 = vcombine.low %v3362_v11, %v3366_v43  ;;  %v8176_v23 = vcombine.high %v3370_v46, %v3374_v62  ;;  %v3418_v43 = vld [vmem:[#allocation17 + $0x618] sm:$0xff] }
 0x630   :  { %6195 = vmatmul.mubr.bf16.gmra.mrb[252].mxu1 %v8119_v44  ;;  %v3382_v44 = vld [vmem:[#allocation17 + $0x4f8] sm:$0xff] }
 0x631   :  { %6202 = vmatprep.mubr.bf16.mxu1 %v8128_v18  ;;  %v8175_v18 = vcombine.low %v3370_v46, %v3374_v62  ;;  %v8184_v26 = vcombine.high %v3378_v22, %v3382_v44  ;;  %v3426_v62 = vld [vmem:[#allocation17 + $0x658] sm:$0xff] }
 0x638   :  { %6203 = vmatmul.mubr.bf16.gmra.mrb[0].mxu1 %v8127_v49  ;;  %v3390_v49 = vld [vmem:[#allocation17 + $0x538] sm:$0xff] }
 0x639   :  { %6210 = vmatprep.mubr.bf16.mxu1 %v8136_v6  ;;  %v8183_v6 = vcombine.low %v3378_v22, %v3382_v44  ;;  %v8192_v53 = vcombine.high %v3386_v30, %v3390_v49  ;;  %v3434_v44 = vld [vmem:[#allocation17 + $0x698] sm:$0xff] }
 0x640   :  { %6211 = vmatmul.mubr.bf16.gmra.mrb[132].mxu1 %v8135_v63  ;;  %v3398_v63 = vld [vmem:[#allocation17 + $0x578] sm:$0xff] }
 0x641   :  { %6218 = vmatprep.mubr.bf16.mxu1 %v8144_v31  ;;  %v8191_v31 = vcombine.low %v3386_v30, %v3390_v49  ;;  %v8200_v19 = vcombine.high %v3394_v40, %v3398_v63  ;;  %v3442_v49 = vld [vmem:[#allocation17 + $0x6d8] sm:$0xff] }
 0x648   :  { %6219 = vmatmul.mubr.bf16.gmra.mrb[136].mxu1 %v8143_v29  ;;  %v3406_v29 = vld [vmem:[#allocation17 + $0x5b8] sm:$0xff] }
 0x649   :  { %6226 = vmatprep.mubr.bf16.mxu1 %v8152_v27  ;;  %v8199_v27 = vcombine.low %v3394_v40, %v3398_v63  ;;  %v8208_v56 = vcombine.high %v3402_v58, %v3406_v29  ;;  %v13232_v63 = vld [vmem:[#allocation44_spill] sm:$0xff] }
 0x650   :  { %6227 = vmatmul.mubr.bf16.gmra.mrb[140].mxu1 %v8151_v47  ;;  %v3414_v47 = vld [vmem:[#allocation17 + $0x5f8] sm:$0xff] }
 0x651   :  { %6234 = vmatprep.mubr.bf16.mxu1 %v8160_v57  ;;  %v8207_v57 = vcombine.low %v3402_v58, %v3406_v29  ;;  %v8216_v11 = vcombine.high %v3410_v16, %v3414_v47  ;;  %v3454_v58 = vld [vmem:[#allocation17 + $0x738] sm:$0xff] }
 0x658   :  { %6235 = vmatmul.mubr.bf16.gmra.mrb[144].mxu1 %v8159_v15  ;;  %v3422_v15 = vld [vmem:[#allocation17 + $0x638] sm:$0xff] }
 0x659   :  { %6242 = vmatprep.mubr.bf16.mxu1 %v8168_v9  ;;  %v8215_v9 = vcombine.low %v3410_v16, %v3414_v47  ;;  %v8224_v46 = vcombine.high %v3418_v43, %v3422_v15 }
 0x660   :  { %6243 = vmatmul.mubr.bf16.gmra.mrb[148].mxu1 %v8167_v45  ;;  %v3430_v45 = vld [vmem:[#allocation17 + $0x678] sm:$0xff] }
 0x661   :  { %6250 = vmatprep.mubr.bf16.mxu1 %v8176_v23  ;;  %v8223_v23 = vcombine.low %v3418_v43, %v3422_v15  ;;  %v8232_v22 = vcombine.high %v3426_v62, %v3430_v45 }
 0x668   :  { %6251 = vmatmul.mubr.bf16.gmra.mrb[152].mxu1 %v8175_v18  ;;  %v3438_v18 = vld [vmem:[#allocation17 + $0x6b8] sm:$0xff] }
 0x669   :  { %6258 = vmatprep.mubr.bf16.mxu1 %v8184_v26  ;;  %v8231_v26 = vcombine.low %v3426_v62, %v3430_v45  ;;  %v8240_v30 = vcombine.high %v3434_v44, %v3438_v18  ;;  %v3458_v62 = vld [vmem:[#allocation17 + $0x758] sm:$0xff] }
 0x66a   :  { %v3462_v45 = vld [vmem:[#allocation17 + $0x778] sm:$0xff] }
 0x670   :  { %6259 = vmatmul.mubr.bf16.gmra.mrb[156].mxu1 %v8183_v6  ;;  %v3446_v6 = vld [vmem:[#allocation17 + $0x6f8] sm:$0xff] }
 0x671   :  { %6266 = vmatprep.mubr.bf16.mxu1 %v8192_v53  ;;  %v8239_v53 = vcombine.low %v3434_v44, %v3438_v18  ;;  %v8248_v40 = vcombine.high %v3442_v49, %v3446_v6 }
 0x678   :  { %6267 = vmatmul.mubr.bf16.gmra.mrb[160].mxu1 %v8191_v31  ;;  %v9183_v31 = vadd.f32 %v12220_v59, %v13232_v63 }
 0x679   :  { %6274 = vmatprep.mubr.bf16.mxu1 %v8200_v19  ;;  %v3450_v19 = vld [vmem:[#allocation17 + $0x718] sm:$0xff] }
 0x67a   :  { %v8256_v43 = vcombine.high %v3450_v19, %v3454_v58 }
 0x680   :  { %6275 = vmatmul.mubr.bf16.gmra.mrb[164].mxu1 %v8199_v27  ;;  %v13233_v27 = vld [vmem:[#allocation47_spill] sm:$0xff] }
 0x681   :  { %6282 = vmatprep.mubr.bf16.mxu1 %v8208_v56  ;;  %v9185_v56 = vadd.f32 %v12223_v37, %v13233_v27  ;;  %v3470_v27 = vld [vmem:[#allocation17 + $0x7b8] sm:$0xff] }
 0x688   :  { %6283 = vmatmul.mubr.bf16.gmra.mrb[168].mxu1 %v8207_v57  ;;  %v8247_v57 = vcombine.low %v3442_v49, %v3446_v6  ;;  %v8264_v49 = vcombine.high %v3458_v62, %v3462_v45 }
 0x689   :  { %6290 = vmatprep.mubr.bf16.mxu1 %v8216_v11 }
 0x690   :  { %6291 = vmatmul.mubr.bf16.gmra.mrb[172].mxu1 %v8215_v9 }
 0x691   :  { %6298 = vmatprep.mubr.bf16.mxu1 %v8224_v46  ;;  %v13234_v46 = vld [vmem:[#allocation48_spill] sm:$0xff] }
 0x692   :  { %v9187_v59 = vadd.f32 %v12232_v34, %v13234_v46 }
 0x698   :  { %6299 = vmatmul.mubr.bf16.gmra.mrb[176].mxu1 %v8223_v23 }
 0x699   :  { %6306 = vmatprep.mubr.bf16.mxu1 %v8232_v22  ;;  %v13235_v22 = vld [vmem:[#allocation51_spill] sm:$0xff] }
 0x69a   :  { %v9189_v37 = vadd.f32 %v12235_v1, %v13235_v22 }
 0x6a0   :  { %6307 = vmatmul.mubr.bf16.gmra.mrb[180].mxu1 %v8231_v26  ;;  %v8255_v26 = vcombine.low %v3450_v19, %v3454_v58 }
 0x6a1   :  { %6314 = vmatprep.mubr.bf16.mxu1 %v8240_v30 }
 0x6a8   :  { %6315 = vmatmul.mubr.bf16.gmra.mrb[184].mxu1 %v8239_v53 }
 0x6a9   :  { %6322 = vmatprep.mubr.bf16.mxu1 %v8248_v40  ;;  %v9789_v40 = vld [vmem:[#allocation20 + $0x4] ss:$16 sps:$4 sm:$0xff]  }
 0x6aa   :  { %7067 = vmatprep.mubr.bf16.mxu0 %v9789_v40 }
 0x6ab   :  { %v6108_v29 = vpop.f32.mrb[208].mxu1 }
 0x6ac   :  { %v9184_v16 = vadd.f32 %v9183_v31, %v6108_v29  ;;  %v6110_v47 = vpop.f32.mrb[209].mxu1  ;;  %v13236_v31 = vld [vmem:[#allocation52_spill] sm:$0xff] }
 0x6ad   :  { %v6111_v11 = vpop.f32.mrb[210].mxu1  ;;  %v9191_v1 = vadd.f32 %v12244_v2, %v13236_v31  ;;  %v3466_v29 = vld [vmem:[#allocation17 + $0x798] sm:$0xff] }
 0x6ae   :  { %v9186_v15 = vadd.f32 %v9185_v56, %v6111_v11  ;;  %v6113_v9 = vpop.f32.mrb[211].mxu1  ;;  %10331 = vtanh.f32 %v9184_v16  ;;  %v13237_v56 = vld [vmem:[#allocation55_spill] sm:$0xff]  ;;  %v8263_v11 = vcombine.low %v3458_v62, %v3462_v45 }
 0x6af   :  { %v9193_v16 = vadd.f32 %v12247_v17, %v13237_v56  ;;  %v3478_v17 = vld [vmem:[#allocation17 + $0x7f8] sm:$0xff] }
 0x6b0   :  { %10333 = vtanh.f32 %v9186_v15  ;;  %6323 = vmatmul.mubr.bf16.gmra.mrb[188].mxu1 %v8247_v57  ;;  %v8272_v15 = vcombine.high %v3466_v29, %v3470_v27  ;;  %v13239_v45 = vld [vmem:[#allocation59_spill] sm:$0xff] }
 0x6b1   :  { %6330 = vmatprep.mubr.bf16.mxu1 %v8256_v43 }
 0x6b3   :  { %v6116_v23 = vpop.f32.mrb[212].mxu1 }
 0x6b4   :  { %v9188_v44 = vadd.f32 %v9187_v59, %v6116_v23  ;;  %v6118_v18 = vpop.f32.mrb[213].mxu1  ;;  %v13238_v23 = vld [vmem:[#allocation56_spill] sm:$0xff] }
 0x6b5   :  { %v6119_v30 = vpop.f32.mrb[214].mxu1  ;;  %v9195_v22 = vadd.f32 %v12251_v32, %v13238_v23  ;;  %v9197_v18 = vadd.f32 %v12253_v50, %v13239_v45  ;;  %v13243_v45 = vld [vmem:[#allocation67_spill] sm:$0xff] }
 0x6b6   :  { %v9190_v6 = vadd.f32 %v9189_v37, %v6119_v30  ;;  %v6121_v53 = vpop.f32.mrb[215].mxu1  ;;  %10335 = vtanh.f32 %v9188_v44  ;;  %v3474_v37 = vld [vmem:[#allocation17 + $0x7d8] sm:$0xff] }
 0x6b7   :  { %v8280_v53 = vcombine.high %v3474_v37, %v3478_v17 }
 0x6b8   :  { %10337 = vtanh.f32 %v9190_v6  ;;  %6331 = vmatmul.mubr.bf16.gmra.mrb[192].mxu1 %v8255_v26  ;;  %v12382_v63 = vpop.eup %10331 }
 0x6b9   :  { %6338 = vmatprep.mubr.bf16.mxu1 %v8264_v49  ;;  %v8271_v49 = vcombine.low %v3466_v29, %v3470_v27  ;;  %v13241_v29 = vld [vmem:[#allocation63_spill] sm:$0xff] }
 0x6ba   :  { %v12384_v34 = vpop.eup %10333  ;;  %v9201_v27 = vadd.f32 %v12263_v5, %v13241_v29 }
 0x6bb   :  { %v6124_v19 = vpop.f32.mrb[216].mxu1  ;;  %v6491_v58 = vpack.c.bf16 %v12384_v34, %v12382_v63 }
 0x6bc   :  { %v9192_v47 = vadd.f32 %v9191_v1, %v6124_v19  ;;  %v6126_v57 = vpop.f32.mrb[217].mxu1  ;;  %v13240_v19 = vld [vmem:[#allocation60_spill] sm:$0xff] }
 0x6bd   :  { %v6127_v43 = vpop.f32.mrb[218].mxu1  ;;  %v9199_v56 = vadd.f32 %v12261_v52, %v13240_v19  ;;  %v13242_v52 = vld [vmem:[#allocation64_spill] sm:$0xff] }
 0x6be   :  { %v9194_v9 = vadd.f32 %v9193_v16, %v6127_v43  ;;  %v6129_v46 = vpop.f32.mrb[219].mxu1  ;;  %10339 = vtanh.f32 %v9192_v47 }
 0x6c0   :  { %10341 = vtanh.f32 %v9194_v9  ;;  %6339 = vmatmul.mubr.bf16.gmra.mrb[196].mxu1 %v8263_v11  ;;  %v12392_v2 = vpop.eup %10335  ;;  %v8279_v11 = vcombine.low %v3474_v37, %v3478_v17  ;;  %v9205_v37 = vadd.f32 %v12273_v8, %v13243_v45 }
 0x6c1   :  { %6346 = vmatprep.mubr.bf16.mxu1 %v8272_v15 }
 0x6c2   :  { %v12394_v59 = vpop.eup %10337 }
 0x6c3   :  { %v6132_v44 = vpop.f32.mrb[220].mxu1  ;;  %v6492_v62 = vpack.c.bf16 %v12394_v59, %v12392_v2 }
 0x6c4   :  { %v9196_v26 = vadd.f32 %v9195_v22, %v6132_v44  ;;  %v6134_v30 = vpop.f32.mrb[221].mxu1  ;;  %v9203_v22 = vadd.f32 %v12271_v41, %v13242_v52 }
 0x6c5   :  { %v6135_v6 = vpop.f32.mrb[222].mxu1 }
 0x6c6   :  { %v9198_v40 = vadd.f32 %v9197_v18, %v6135_v6  ;;  %v6137_v31 = vpop.f32.mrb[223].mxu1  ;;  %10343 = vtanh.f32 %v9196_v26 }
 0x6c8   :  { %10345 = vtanh.f32 %v9198_v40  ;;  %6347 = vmatmul.mubr.bf16.gmra.mrb[200].mxu1 %v8271_v49  ;;  %v12402_v32 = vpop.eup %10339  ;;  %v13244_v40 = vld [vmem:[#allocation68_spill] sm:$0xff] }
 0x6c9   :  { %6354 = vmatprep.mubr.bf16.mxu1 %v8280_v53  ;;  %v9207_v41 = vadd.f32 %v12277_v7, %v13244_v40 }
 0x6ca   :  { %v12404_v1 = vpop.eup %10341 }
 0x6cb   :  { %v6140_v16 = vpop.f32.mrb[224].mxu1  ;;  %v6493_v50 = vpack.c.bf16 %v12404_v1, %v12402_v32 }
 0x6cc   :  { %v9200_v47 = vadd.f32 %v9199_v56, %v6140_v16  ;;  %v6142_v57 = vpop.f32.mrb[225].mxu1  ;;  %v13245_v56 = vld [vmem:[#allocation71_spill] sm:$0xff] }
 0x6cd   :  { %v6143_v43 = vpop.f32.mrb[226].mxu1  ;;  %v9209_v8 = vadd.f32 %v12279_v60, %v13245_v56 }
 0x6ce   :  { %v9202_v15 = vadd.f32 %v9201_v27, %v6143_v43  ;;  %v6145_v9 = vpop.f32.mrb[227].mxu1  ;;  %10347 = vtanh.f32 %v9200_v47 }
 0x6d0   :  { %10349 = vtanh.f32 %v9202_v15  ;;  %6355 = vmatmul.mubr.bf16.gmra.mrb[204].mxu1 %v8279_v11  ;;  %v12412_v46 = vpop.eup %10343  ;;  %v13246_v15 = vld [vmem:[#allocation72_spill] sm:$0xff] }
 0x6d1   :  { %v9211_v7 = vadd.f32 %v12283_v35, %v13246_v15  ;;  %v13250_v15 = vld [vmem:[#allocation46_spill] sm:$0xff] }
 0x6d2   :  { %v12414_v23 = vpop.eup %10345 }
 0x6d3   :  { %v6148_v44 = vpop.f32.mrb[228].mxu1  ;;  %v6494_v5 = vpack.c.bf16 %v12414_v23, %v12412_v46 }
 0x6d4   :  { %v9204_v17 = vadd.f32 %v9203_v22, %v6148_v44  ;;  %v6150_v18 = vpop.f32.mrb[229].mxu1  ;;  %v13247_v22 = vld [vmem:[#allocation75_spill] sm:$0xff] }
 0x6d5   :  { %v6151_v26 = vpop.f32.mrb[230].mxu1  ;;  %v9213_v60 = vadd.f32 %v12285_v42, %v13247_v22  ;;  %v13251_v22 = vld [vmem:[#allocation49_spill] sm:$0xff] }
 0x6d6   :  { %v9206_v30 = vadd.f32 %v9205_v37, %v6151_v26  ;;  %v6153_v49 = vpop.f32.mrb[231].mxu1  ;;  %10351 = vtanh.f32 %v9204_v17 }
 0x6d7   :  { %v13248_v49 = vld [vmem:[#allocation43_spill] sm:$0xff] }
 0x6d8   :  { %10353 = vtanh.f32 %v9206_v30  ;;  %v12422_v6 = vpop.eup %10347  ;;  %v9215_v35 = vadd.f32 %v12293_v20, %v13248_v49  ;;  %v9219_v20 = vadd.f32 %v12303_v24, %v13250_v15 }
 0x6da   :  { %v12424_v53 = vpop.eup %10349 }
 0x6db   :  { %v6156_v31 = vpop.f32.mrb[232].mxu1  ;;  %v6495_v19 = vpack.c.bf16 %v12424_v53, %v12422_v6 }
 0x6dc   :  { %v9208_v16 = vadd.f32 %v9207_v41, %v6156_v31  ;;  %v6158_v29 = vpop.f32.mrb[233].mxu1  ;;  %v13249_v31 = vld [vmem:[#allocation45_spill] sm:$0xff] }
 0x6dd   :  { %v6159_v27 = vpop.f32.mrb[234].mxu1  ;;  %v9217_v42 = vadd.f32 %v12295_v13, %v13249_v31  ;;  %v9221_v13 = vadd.f32 %v12305_v39, %v13251_v22 }
 0x6de   :  { %v9210_v47 = vadd.f32 %v9209_v8, %v6159_v27  ;;  %v6161_v57 = vpop.f32.mrb[235].mxu1  ;;  %10355 = vtanh.f32 %v9208_v16 }
 0x6e0   :  { %10357 = vtanh.f32 %v9210_v47  ;;  %v12432_v11 = vpop.eup %10351 }
 0x6e2   :  { %v12434_v43 = vpop.eup %10353 }
 0x6e3   :  { %v6164_v9 = vpop.f32.mrb[236].mxu1  ;;  %v6496_v52 = vpack.c.bf16 %v12434_v43, %v12432_v11 }
 0x6e4   :  { %v9212_v44 = vadd.f32 %v9211_v7, %v6164_v9  ;;  %v6166_v45 = vpop.f32.mrb[237].mxu1 }
 0x6e5   :  { %v6167_v37 = vpop.f32.mrb[238].mxu1 }
 0x6e6   :  { %v9214_v17 = vadd.f32 %v9213_v60, %v6167_v37  ;;  %v6169_v18 = vpop.f32.mrb[239].mxu1  ;;  %10359 = vtanh.f32 %v9212_v44 }
 0x6e8   :  { %10361 = vtanh.f32 %v9214_v17  ;;  %v12442_v26 = vpop.eup %10355 }
 0x6ea   :  { %v12444_v30 = vpop.eup %10357 }
 0x6eb   :  { %v6172_v40 = vpop.f32.mrb[240].mxu1  ;;  %v6497_v41 = vpack.c.bf16 %v12444_v30, %v12442_v26  ;;  %v9792_v30 = vld [vmem:[#allocation20 + $0x24] ss:$16 sps:$4 sm:$0xff]  }
 0x6ec   :  { %v9216_v56 = vadd.f32 %v9215_v35, %v6172_v40  ;;  %v6174_v8 = vpop.f32.mrb[241].mxu1  ;;  %v13252_v35 = vld [vmem:[#allocation50_spill] sm:$0xff] }
 0x6ed   :  { %v6175_v16 = vpop.f32.mrb[242].mxu1  ;;  %v9223_v40 = vadd.f32 %v12309_v10, %v13252_v35  ;;  %v13254_v10 = vld [vmem:[#allocation54_spill] sm:$0xff] }
 0x6ee   :  { %v9218_v29 = vadd.f32 %v9217_v42, %v6175_v16  ;;  %v6177_v27 = vpop.f32.mrb[243].mxu1  ;;  %10363 = vtanh.f32 %v9216_v56  ;;  %v13253_v42 = vld [vmem:[#allocation53_spill] sm:$0xff] }
 0x6ef   :  { %v9225_v56 = vadd.f32 %v12311_v48, %v13253_v42  ;;  %v13255_v48 = vld [vmem:[#allocation57_spill] sm:$0xff]  ;;  %v12480_v42 = vpop.permute.xlu0 %3769 }
 0x6f0   :  { %10365 = vtanh.f32 %v9218_v29  ;;  %v12452_v47 = vpop.eup %10359 }
 0x6f2   :  { %v12454_v57 = vpop.eup %10361 }
 0x6f3   :  { %v6180_v7 = vpop.f32.mrb[244].mxu1  ;;  %v6498_v9 = vpack.c.bf16 %v12454_v57, %v12452_v47  ;;  %v13265_v57 = vld [vmem:[#allocation34_spill] sm:$0xff] }
 0x6f4   :  { %v9220_v60 = vadd.f32 %v9219_v20, %v6180_v7  ;;  %v6182_v44 = vpop.f32.mrb[245].mxu1  ;;  %v9227_v7 = vadd.f32 %v12315_v61, %v13254_v10  ;;  %v13256_v61 = vld [vmem:[#allocation58_spill] sm:$0xff] }
 0x6f5   :  { %v6183_v45 = vpop.f32.mrb[246].mxu1 }
 0x6f6   :  { %v9222_v37 = vadd.f32 %v9221_v13, %v6183_v45  ;;  %v6185_v17 = vpop.f32.mrb[247].mxu1  ;;  %10367 = vtanh.f32 %v9220_v60  ;;  %v9229_v60 = vadd.f32 %v12317_v14, %v13255_v48  ;;  %v13257_v14 = vld [vmem:[#allocation61_spill] sm:$0xff] }
 0x6f8   :  { %10369 = vtanh.f32 %v9222_v37  ;;  %v10364_v18 = vpop.eup %10363 }
 0x6fa   :  { %v10366_v49 = vpop.eup %10365 }
 0x6fb   :  { %v6188_v24 = vpop.f32.mrb[248].mxu1  ;;  %v6499_v31 = vpack.c.bf16 %v10366_v49, %v10364_v18 }
 0x6fc   :  { %v9224_v8 = vadd.f32 %v9223_v40, %v6188_v24  ;;  %v6190_v16 = vpop.f32.mrb[249].mxu1  ;;  %v9233_v40 = vadd.f32 %v12323_v33, %v13257_v14 }
 0x6fd   :  { %v6191_v39 = vpop.f32.mrb[250].mxu1  ;;  %8701 = vmatprep.subr.bf16.mxu0 %v6499_v31  ;;  %v13258_v16 = vld [vmem:[#allocation62_spill] sm:$0xff] }
 0x6fe   :  { %v9226_v29 = vadd.f32 %v9225_v56, %v6191_v39  ;;  %v6193_v27 = vpop.f32.mrb[251].mxu1  ;;  %8702 = vmatpush3.bf16.msra.mxu0 %v6491_v58  ;;  %10371 = vtanh.f32 %v9224_v8  ;;  %v9231_v58 = vadd.f32 %v12321_v3, %v13256_v61  ;;  %v5346_v33 = vadd.f32 %v11898_v36, %v13258_v16  ;;  %v12487_v39 = vpop.permute.xlu0 %3859 }
 0x6ff   :  { %v5370_v16 = vadd.f32 %v11933_v21, %v12480_v42 }
 0x700   :  { %10373 = vtanh.f32 %v9226_v29  ;;  %v10368_v15 = vpop.eup %10367 }
 0x702   :  { %v10370_v20 = vpop.eup %10369 }
 0x703   :  { %v6196_v22 = vpop.f32.mrb[252].mxu1  ;;  %v6500_v13 = vpack.c.bf16 %v10370_v20, %v10368_v15  ;;  %v13259_v15 = vld [vmem:[#allocation65_spill] sm:$0xff] }
 0x704   :  { %v9228_v44 = vadd.f32 %v9227_v7, %v6196_v22  ;;  %v6198_v45 = vpop.f32.mrb[253].mxu1  ;;  %v5349_v20 = vadd.f32 %v11900_v51, %v13259_v15 }
 0x705   :  { %v6199_v37 = vpop.f32.mrb[254].mxu1  ;;  %8703 = vmatprep.subr.bf16.mxu0 %v6500_v13  ;;  %v3780_v13 = vpop.permute.xlu0 %3779 }
 0x706   :  { %v9230_v17 = vadd.f32 %v9229_v60, %v6199_v37  ;;  %v6201_v18 = vpop.f32.mrb[255].mxu1  ;;  %8704 = vmatpush3.bf16.msra.mxu0 %v6492_v62  ;;  %10375 = vtanh.f32 %v9228_v44  ;;  %v3775_v62 = vpop.permute.xlu1 %3774  ;;  %v13260_v60 = vld [vmem:[#allocation66_spill] sm:$0xff] }
 0x707   :  { %v5354_v51 = vadd.f32 %v11909_v54, %v13260_v60 }
 0x708   :  { %10377 = vtanh.f32 %v9230_v17  ;;  %v10372_v63 = vpop.eup %10371  ;;  %v13261_v17 = vld [vmem:[#allocation69_spill] sm:$0xff] }
 0x709   :  { %v5357_v18 = vadd.f32 %v11911_v55, %v13261_v17 }
 0x70a   :  { %v10374_v34 = vpop.eup %10373  ;;  %v12491_v22 = vpop.permute.xlu1 %3864 }
 0x70b   :  { %v6204_v49 = vpop.f32.mrb[0].mxu1  ;;  %v6501_v35 = vpack.c.bf16 %v10374_v34, %v10372_v63 }
 0x70c   :  { %v9232_v24 = vadd.f32 %v9231_v58, %v6204_v49  ;;  %v6206_v31 = vpop.f32.mrb[1].mxu1 }
 0x70d   :  { %v6207_v56 = vpop.f32.mrb[2].mxu1  ;;  %8705 = vmatprep.subr.bf16.mxu0 %v6501_v35  ;;  %v13262_v35 = vld [vmem:[#allocation70_spill] sm:$0xff] }
 0x70e   :  { %v9234_v2 = vadd.f32 %v9233_v40, %v6207_v56  ;;  %v6209_v59 = vpop.f32.mrb[3].mxu1  ;;  %8706 = vmatpush3.bf16.msra.mxu0 %v6493_v50  ;;  %10379 = vtanh.f32 %v9232_v24  ;;  %v3785_v44 = vpop.permute.xlu1 %3784  ;;  %v5362_v55 = vadd.f32 %v11922_v38, %v13262_v35  ;;  %v13263_v24 = vld [vmem:[#allocation73_spill] sm:$0xff] }
 0x70f   :  { %v5365_v31 = vadd.f32 %v11924_v0, %v13263_v24 }
 0x710   :  { %10381 = vtanh.f32 %v9234_v2  ;;  %v10376_v3 = vpop.eup %10375 }
 0x712   :  { %v10378_v8 = vpop.eup %10377  ;;  %v12505_v58 = vpop.permute.xlu1 %3874 }
 0x713   :  { %v6212_v29 = vpop.f32.mrb[132].mxu1  ;;  %v6502_v27 = vpack.c.bf16 %v10378_v8, %v10376_v3 }
 0x714   :  { %v9236_v10 = vadd.f32 %v6212_v29, %v5346_v33  ;;  %v6214_v7 = vpop.f32.mrb[133].mxu1 }
 0x715   :  { %v6215_v32 = vpop.f32.mrb[134].mxu1  ;;  %8707 = vmatprep.subr.bf16.mxu0 %v6502_v27  ;;  %v5373_v27 = vadd.f32 %v11935_v12, %v3775_v62 }
 0x716   :  { %v9238_v1 = vadd.f32 %v6215_v32, %v5349_v20  ;;  %v6217_v50 = vpop.f32.mrb[135].mxu1  ;;  %8708 = vmatpush3.bf16.msra.mxu0 %v6494_v5  ;;  %10383 = vtanh.f32 %v9236_v10  ;;  %v12503_v5 = vpop.permute.xlu0 %3869  ;;  %v5378_v32 = vadd.f32 %v11944_v28, %v3780_v13 }
 0x717   :  { %v3795_v3 = vpop.permute.xlu1 %3794  ;;  %v5381_v50 = vadd.f32 %v11946_v4, %v3785_v44  ;;  %v13264_v44 = vld [vmem:[#allocation136_spill] sm:$0xff] }
 0x718   :  { %10385 = vtanh.f32 %v9238_v1  ;;  %v10380_v36 = vpop.eup %10379 }
 0x71a   :  { %v10382_v48 = vpop.eup %10381  ;;  %v3790_v6 = vpop.permute.xlu0 %3789 }
 0x71b   :  { %v6220_v45 = vpop.f32.mrb[136].mxu1  ;;  %v6503_v37 = vpack.c.bf16 %v10382_v48, %v10380_v36  ;;  %v12519_v10 = vpop.permute.xlu1 %3884 }
 0x71c   :  { %v9240_v63 = vadd.f32 %v6220_v45, %v5354_v51  ;;  %v6222_v34 = vpop.f32.mrb[137].mxu1  ;;  %v9787_v51 = vld [vmem:[#allocation20] ss:$16 sps:$4 sm:$0xff]  }
 0x71d   :  { %v6223_v61 = vpop.f32.mrb[138].mxu1  ;;  %8709 = vmatprep.subr.bf16.mxu0 %v6503_v37  ;;  %v5386_v37 = vadd.f32 %v13264_v44, %v3790_v6  ;;  %v13267_v6 = vld [vmem:[#allocation35_spill] sm:$0xff]  ;;  %v13270_v44 = vld [vmem:[#allocation149_spill] sm:$0xff] }
 0x71e   :  { %v9242_v46 = vadd.f32 %v6223_v61, %v5357_v18  ;;  %v6225_v23 = vpop.f32.mrb[139].mxu1  ;;  %8710 = vmatpush3.bf16.msra.mxu0 %v6495_v19  ;;  %10387 = vtanh.f32 %v9240_v63  ;;  %v12516_v0 = vpop.permute.xlu0 %3879 }
 0x71f   :  { %v3805_v12 = vpop.permute.xlu1 %3804 }
 0x720   :  { %10389 = vtanh.f32 %v9242_v46  ;;  %v10384_v54 = vpop.eup %10383  ;;  %v9790_v46 = vld [vmem:[#allocation20 + $0x20] ss:$16 sps:$4 sm:$0xff]  }
 0x722   :  { %v10386_v49 = vpop.eup %10385  ;;  %v3800_v42 = vpop.permute.xlu0 %3799 }
 0x723   :  { %v6228_v14 = vpop.f32.mrb[140].mxu1  ;;  %v6504_v40 = vpack.c.bf16 %v10386_v49, %v10384_v54  ;;  %v12533_v13 = vpop.permute.xlu1 %3894  ;;  %v9795_v49 = vld [vmem:[#allocation20 + $0x44] ss:$16 sps:$4 sm:$0xff]  }
 0x724   :  { %v9244_v56 = vadd.f32 %v6228_v14, %v5362_v55  ;;  %v6230_v2 = vpop.f32.mrb[141].mxu1 }
 0x725   :  { %v6231_v53 = vpop.f32.mrb[142].mxu1  ;;  %8711 = vmatprep.subr.bf16.mxu0 %v6504_v40  ;;  %v13266_v40 = vld [vmem:[#allocation139_spill] sm:$0xff] }
 0x726   :  { %v9246_v19 = vadd.f32 %v6231_v53, %v5365_v31  ;;  %v6233_v59 = vpop.f32.mrb[143].mxu1  ;;  %8712 = vmatpush3.bf16.msra.mxu0 %v6496_v52  ;;  %10391 = vtanh.f32 %v9244_v56  ;;  %v5394_v24 = vadd.f32 %v13266_v40, %v3800_v42  ;;  %v5397_v53 = vadd.f32 %v13267_v6, %v3805_v12  ;;  %v13272_v6 = vld [vmem:[#allocation156_spill] sm:$0xff] }
 0x727   :  { %v3815_v35 = vpop.permute.xlu1 %3814 }
 0x728   :  { %10393 = vtanh.f32 %v9246_v19  ;;  %v10388_v38 = vpop.eup %10387 }
 0x72a   :  { %v10390_v8 = vpop.eup %10389 }
 0x72b   :  { %v6236_v33 = vpop.f32.mrb[144].mxu1  ;;  %v6505_v29 = vpack.c.bf16 %v10390_v8, %v10388_v38  ;;  %v9793_v8 = vld [vmem:[#allocation20 + $0x40] ss:$16 sps:$4 sm:$0xff]  }
 0x72c   :  { %v9248_v15 = vadd.f32 %v6236_v33, %v5370_v16  ;;  %v6238_v20 = vpop.f32.mrb[145].mxu1 }
 0x72d   :  { %v6239_v11 = vpop.f32.mrb[146].mxu1  ;;  %8713 = vmatprep.subr.bf16.mxu0 %v6505_v29  ;;  %v9798_v29 = vld [vmem:[#allocation20 + $0x64] ss:$16 sps:$4 sm:$0xff]  }
 0x72e   :  { %v9250_v43 = vadd.f32 %v6239_v11, %v5373_v27  ;;  %v6241_v52 = vpop.f32.mrb[147].mxu1  ;;  %8714 = vmatpush3.bf16.msra.mxu0 %v6497_v41  ;;  %10395 = vtanh.f32 %v9248_v15  ;;  %v12529_v41 = vpop.permute.xlu0 %3889  ;;  %v13268_v11 = vld [vmem:[#allocation146_spill] sm:$0xff] }
 0x730   :  { %10397 = vtanh.f32 %v9250_v43  ;;  %v10392_v21 = vpop.eup %10391 }
 0x732   :  { %v10394_v7 = vpop.eup %10393  ;;  %v3810_v34 = vpop.permute.xlu0 %3809 }
 0x733   :  { %v6244_v62 = vpop.f32.mrb[148].mxu1  ;;  %v6506_v1 = vpack.c.bf16 %v10394_v7, %v10392_v21  ;;  %v5402_v43 = vadd.f32 %v13268_v11, %v3810_v34  ;;  %v13269_v7 = vld [vmem:[#allocation36_spill] sm:$0xff] }
 0x734   :  { %v9252_v36 = vadd.f32 %v6244_v62, %v5378_v32  ;;  %v6246_v48 = vpop.f32.mrb[149].mxu1  ;;  %v5405_v32 = vadd.f32 %v13269_v7, %v3815_v35  ;;  %v9804_v35 = vld [vmem:[#allocation20 + $0xa4] ss:$16 sps:$4 sm:$0xff]  }
 0x735   :  { %v6247_v60 = vpop.f32.mrb[150].mxu1  ;;  %8715 = vmatprep.subr.bf16.mxu0 %v6506_v1  ;;  %v9807_v7 = vld [vmem:[#allocation20 + $0xc4] ss:$16 sps:$4 sm:$0xff]  }
 0x736   :  { %v9254_v45 = vadd.f32 %v6247_v60, %v5381_v50  ;;  %v6249_v26 = vpop.f32.mrb[151].mxu1  ;;  %8716 = vmatpush3.bf16.msra.mxu0 %v6498_v9  ;;  %10399 = vtanh.f32 %v9252_v36  ;;  %v5389_v9 = vadd.f32 %v13265_v57, %v3795_v3  ;;  %v12546_v31 = vpop.permute.xlu0 %3899  ;;  %v9796_v50 = vld [vmem:[#allocation20 + $0x60] ss:$16 sps:$4 sm:$0xff]   ;;  %v9801_v60 = vld [vmem:[#allocation20 + $0x84] ss:$16 sps:$4 sm:$0xff]  }
 0x737   :  { %v12551_v3 = vpop.permute.xlu1 %3904 }
 0x738   :  { %10401 = vtanh.f32 %v9254_v45  ;;  %v12531_v28 = vpop.eup %10395 }
 0x739   :  { %7068 = vmatmul.mubr.bf16.vlgmr.msra.gmra.mrb[64].mxu0 %v9787_v51 }
 0x73a   :  { %v12535_v4 = vpop.eup %10397  ;;  %7075 = vmatprep.mubr.bf16.mxu0 %v9792_v30  ;;  %v3820_v15 = vpop.permute.xlu0 %3819 }
 0x73b   :  { %v6252_v17 = vpop.f32.mrb[152].mxu1  ;;  %v6507_v47 = vpack.c.bf16 %v12535_v4, %v12531_v28  ;;  %v3825_v52 = vpop.permute.xlu1 %3824  ;;  %v9817_v28 = vld [vmem:[#allocation20 + $0x140] ss:$16 sps:$4 sm:$0xff]  }
 0x73c   :  { %v9256_v18 = vadd.f32 %v6252_v17, %v5386_v37  ;;  %v6254_v63 = vpop.f32.mrb[153].mxu1  ;;  %v5410_v37 = vadd.f32 %v13270_v44, %v3820_v15  ;;  %v13275_v44 = vld [vmem:[#allocation39_spill] sm:$0xff] }
 0x73d   :  { %v6255_v61 = vpop.f32.mrb[154].mxu1 }
 0x73e   :  { %v9258_v23 = vadd.f32 %v6255_v61, %v5389_v9  ;;  %v6257_v54 = vpop.f32.mrb[155].mxu1  ;;  %10403 = vtanh.f32 %v9256_v18  ;;  %v12561_v51 = vpop.permute.xlu0 %3909  ;;  %v13271_v9 = vld [vmem:[#allocation37_spill] sm:$0xff] }
 0x73f   :  { %v12565_v26 = vpop.permute.xlu1 %3914  ;;  %v5413_v18 = vadd.f32 %v13271_v9, %v3825_v52 }
 0x740   :  { %10405 = vtanh.f32 %v9258_v23  ;;  %v12541_v55 = vpop.eup %10399  ;;  %v9799_v23 = vld [vmem:[#allocation20 + $0x80] ss:$16 sps:$4 sm:$0xff]  }
 0x741   :  { %7076 = vmatmul.mubr.bf16.gmra.mrb[68].mxu0 %v9790_v46 }
 0x742   :  { %v12543_v14 = vpop.eup %10401  ;;  %7083 = vmatprep.mubr.bf16.mxu0 %v9795_v49  ;;  %v3830_v61 = vpop.permute.xlu0 %3829 }
 0x743   :  { %v6260_v56 = vpop.f32.mrb[156].mxu1  ;;  %v6508_v2 = vpack.c.bf16 %v12543_v14, %v12541_v55  ;;  %v3835_v40 = vpop.permute.xlu1 %3834  ;;  %v9820_v55 = vld [vmem:[#allocation20 + $0x160] ss:$16 sps:$4 sm:$0xff]  }
 0x744   :  { %v9260_v19 = vadd.f32 %v6260_v56, %v5394_v24  ;;  %v6262_v59 = vpop.f32.mrb[157].mxu1 }
 0x745   :  { %v6263_v38 = vpop.f32.mrb[158].mxu1 }
 0x746   :  { %v9262_v16 = vadd.f32 %v6263_v38, %v5397_v53  ;;  %v6265_v33 = vpop.f32.mrb[159].mxu1  ;;  %10407 = vtanh.f32 %v9260_v19  ;;  %v5418_v53 = vadd.f32 %v13272_v6, %v3830_v61  ;;  %v12578_v19 = vpop.permute.xlu0 %3919 }
 0x747   :  { %v12583_v15 = vpop.permute.xlu1 %3924 }
 0x748   :  { %10409 = vtanh.f32 %v9262_v16  ;;  %v12553_v27 = vpop.eup %10403 }
 0x749   :  { %7084 = vmatmul.mubr.bf16.gmra.mrb[72].mxu0 %v9793_v8  ;;  %v13273_v8 = vld [vmem:[#allocation38_spill] sm:$0xff] }
 0x74a   :  { %v12555_v20 = vpop.eup %10405  ;;  %7091 = vmatprep.mubr.bf16.mxu0 %v9798_v29  ;;  %v5421_v16 = vadd.f32 %v13273_v8, %v3835_v40  ;;  %v13279_v8 = vld [vmem:[#allocation40_spill] sm:$0xff] }
 0x74b   :  { %v6268_v21 = vpop.f32.mrb[160].mxu1  ;;  %v6509_v42 = vpack.c.bf16 %v12555_v20, %v12553_v27  ;;  %v9823_v27 = vld [vmem:[#allocation20 + $0x180] ss:$16 sps:$4 sm:$0xff]  }
 0x74c   :  { %v9264_v12 = vadd.f32 %v6268_v21, %v5402_v43  ;;  %v6270_v62 = vpop.f32.mrb[161].mxu1  ;;  %v9802_v43 = vld [vmem:[#allocation20 + $0xa0] ss:$16 sps:$4 sm:$0xff]  }
 0x74d   :  { %v6271_v1 = vpop.f32.mrb[162].mxu1 }
 0x74e   :  { %v9266_v36 = vadd.f32 %v6271_v1, %v5405_v32  ;;  %v6273_v48 = vpop.f32.mrb[163].mxu1  ;;  %10411 = vtanh.f32 %v9264_v12  ;;  %v3840_v12 = vpop.permute.xlu0 %3839  ;;  %v13274_v1 = vld [vmem:[#allocation159_spill] sm:$0xff] }
 0x750   :  { %10413 = vtanh.f32 %v9266_v36  ;;  %v12563_v45 = vpop.eup %10407  ;;  %v3845_v36 = vpop.permute.xlu1 %3844 }
 0x751   :  { %7092 = vmatmul.mubr.bf16.gmra.mrb[76].mxu0 %v9796_v50  ;;  %v5426_v50 = vadd.f32 %v13274_v1, %v3840_v12 }
 0x752   :  { %v12567_v30 = vpop.eup %10409  ;;  %7099 = vmatprep.mubr.bf16.mxu0 %v9801_v60 }
 0x753   :  { %v6276_v17 = vpop.f32.mrb[164].mxu1  ;;  %v6510_v57 = vpack.c.bf16 %v12567_v30, %v12563_v45  ;;  %v9826_v45 = vld [vmem:[#allocation20 + $0x1a0] ss:$16 sps:$4 sm:$0xff]  }
 0x754   :  { %v9268_v63 = vadd.f32 %v6276_v17, %v5410_v37  ;;  %v6278_v34 = vpop.f32.mrb[165].mxu1  ;;  %v5429_v37 = vadd.f32 %v13275_v44, %v3845_v36 }
 0x755   :  { %v6279_v46 = vpop.f32.mrb[166].mxu1 }
 0x756   :  { %v9270_v54 = vadd.f32 %v6279_v46, %v5413_v18  ;;  %v6281_v49 = vpop.f32.mrb[167].mxu1  ;;  %10415 = vtanh.f32 %v9268_v63  ;;  %v9805_v63 = vld [vmem:[#allocation20 + $0xc0] ss:$16 sps:$4 sm:$0xff]   ;;  %v9810_v46 = vld [vmem:[#allocation20 + $0xe4] ss:$16 sps:$4 sm:$0xff]  }
 0x757   :  { %v13276_v49 = vld [vmem:[#allocation74_spill] sm:$0xff] }
 0x758   :  { %10417 = vtanh.f32 %v9270_v54  ;;  %v12573_v24 = vpop.eup %10411 }
 0x759   :  { %7100 = vmatmul.mubr.bf16.gmra.mrb[80].mxu0 %v9799_v23 }
 0x75a   :  { %v12575_v56 = vpop.eup %10413  ;;  %7107 = vmatprep.mubr.bf16.mxu0 %v9804_v35  ;;  %v13277_v35 = vld [vmem:[#allocation162_spill] sm:$0xff] }
 0x75b   :  { %v6284_v59 = vpop.f32.mrb[168].mxu1  ;;  %v6511_v38 = vpack.c.bf16 %v12575_v56, %v12573_v24  ;;  %v5434_v40 = vadd.f32 %v13277_v35, %v13276_v49  ;;  %v9816_v49 = vld [vmem:[#allocation20 + $0x124] ss:$16 sps:$4 sm:$0xff]   ;;  %v9829_v24 = vld [vmem:[#allocation20 + $0x1c0] ss:$16 sps:$4 sm:$0xff]  }
 0x75c   :  { %v9272_v33 = vadd.f32 %v6284_v59, %v5418_v53  ;;  %v6286_v29 = vpop.f32.mrb[169].mxu1  ;;  %v13278_v59 = vld [vmem:[#allocation33_spill] sm:$0xff] }
 0x75d   :  { %v6287_v11 = vpop.f32.mrb[170].mxu1 }
 0x75e   :  { %v9274_v52 = vadd.f32 %v6287_v11, %v5421_v16  ;;  %v6289_v21 = vpop.f32.mrb[171].mxu1  ;;  %10419 = vtanh.f32 %v9272_v33  ;;  %v5437_v16 = vadd.f32 %v13279_v8, %v13278_v59 }
 0x760   :  { %10421 = vtanh.f32 %v9274_v52  ;;  %v12585_v32 = vpop.eup %10415 }
 0x761   :  { %7108 = vmatmul.mubr.bf16.gmra.mrb[84].mxu0 %v9802_v43  ;;  %v9808_v43 = vld [vmem:[#allocation20 + $0xe0] ss:$16 sps:$4 sm:$0xff]  }
 0x762   :  { %v12587_v62 = vpop.eup %10417  ;;  %7115 = vmatprep.mubr.bf16.mxu0 %v9807_v7  ;;  %v9813_v7 = vld [vmem:[#allocation20 + $0x104] ss:$16 sps:$4 sm:$0xff]  }
 0x763   :  { %v6292_v48 = vpop.f32.mrb[172].mxu1  ;;  %v6512_v60 = vpack.c.bf16 %v12587_v62, %v12585_v32  ;;  %v9835_v62 = vld [vmem:[#allocation20 + $0x8] ss:$16 sps:$4 sm:$0xff]  }
 0x764   :  { %v9276_v17 = vadd.f32 %v6292_v48, %v5426_v50  ;;  %v6294_v9 = vpop.f32.mrb[173].mxu1  ;;  %v13280_v50 = vld [vmem:[#allocation163_spill] sm:$0xff] }
 0x765   :  { %v6295_v18 = vpop.f32.mrb[174].mxu1  ;;  %v5442_v36 = vadd.f32 %v13280_v50, %v12487_v39 }
 0x766   :  { %v9278_v34 = vadd.f32 %v6295_v18, %v5429_v37  ;;  %v6297_v61 = vpop.f32.mrb[175].mxu1  ;;  %10423 = vtanh.f32 %v9276_v17  ;;  %v13281_v37 = vld [vmem:[#allocation41_spill] sm:$0xff] }
 0x767   :  { %v5445_v17 = vadd.f32 %v13281_v37, %v12491_v22  ;;  %v13283_v22 = vld [vmem:[#allocation42_spill] sm:$0xff] }
 0x768   :  { %10425 = vtanh.f32 %v9278_v34  ;;  %v12593_v23 = vpop.eup %10419  ;;  %v9811_v34 = vld [vmem:[#allocation20 + $0x100] ss:$16 sps:$4 sm:$0xff]  }
 0x769   :  { %7116 = vmatmul.mubr.bf16.gmra.mrb[88].mxu0 %v9805_v63 }
 0x76a   :  { %v12595_v54 = vpop.eup %10421  ;;  %7123 = vmatprep.mubr.bf16.mxu0 %v9810_v46 }
 0x76b   :  { %v6300_v6 = vpop.f32.mrb[176].mxu1  ;;  %v6513_v53 = vpack.c.bf16 %v12595_v54, %v12593_v23  ;;  %v9841_v23 = vld [vmem:[#allocation20 + $0x48] ss:$16 sps:$4 sm:$0xff]   ;;  %v9846_v54 = vld [vmem:[#allocation20 + $0x6c] ss:$16 sps:$4 sm:$0xff]  }
 0x76c   :  { %v9280_v33 = vadd.f32 %v6300_v6, %v5434_v40  ;;  %v6302_v29 = vpop.f32.mrb[177].mxu1  ;;  %v13282_v40 = vld [vmem:[#allocation164_spill] sm:$0xff] }
 0x76d   :  { %v6303_v11 = vpop.f32.mrb[178].mxu1  ;;  %v5450_v6 = vadd.f32 %v13282_v40, %v12503_v5  ;;  %v13287_v40 = vld [vmem:[#allocation91_spill] sm:$0xff] }
 0x76e   :  { %v9282_v52 = vadd.f32 %v6303_v11, %v5437_v16  ;;  %v6305_v21 = vpop.f32.mrb[179].mxu1  ;;  %10427 = vtanh.f32 %v9280_v33  ;;  %v5453_v16 = vadd.f32 %v13283_v22, %v12505_v58 }
 0x770   :  { %10429 = vtanh.f32 %v9282_v52  ;;  %v12603_v12 = vpop.eup %10423 }
 0x771   :  { %7124 = vmatmul.mubr.bf16.gmra.mrb[92].mxu0 %v9808_v43  ;;  %v9814_v43 = vld [vmem:[#allocation20 + $0x120] ss:$16 sps:$4 sm:$0xff]  }
 0x772   :  { %v12605_v1 = vpop.eup %10425  ;;  %7131 = vmatprep.mubr.bf16.mxu0 %v9813_v7  ;;  %v9819_v7 = vld [vmem:[#allocation20 + $0x144] ss:$16 sps:$4 sm:$0xff]  }
 0x773   :  { %v6308_v48 = vpop.f32.mrb[180].mxu1  ;;  %v6514_v44 = vpack.c.bf16 %v12605_v1, %v12603_v12  ;;  %v9850_v12 = vld [vmem:[#allocation20 + $0xa8] ss:$16 sps:$4 sm:$0xff]   ;;  %v9855_v1 = vld [vmem:[#allocation20 + $0xcc] ss:$16 sps:$4 sm:$0xff]  }
 0x774   :  { %v9284_v9 = vadd.f32 %v6308_v48, %v5442_v36  ;;  %v6310_v18 = vpop.f32.mrb[181].mxu1  ;;  %v13284_v36 = vld [vmem:[#allocation165_spill] sm:$0xff] }
 0x775   :  { %v6311_v63 = vpop.f32.mrb[182].mxu1  ;;  %v5458_v58 = vadd.f32 %v13284_v36, %v12516_v0  ;;  %v9828_v36 = vld [vmem:[#allocation20 + $0x1a4] ss:$16 sps:$4 sm:$0xff]  }
 0x776   :  { %v9286_v61 = vadd.f32 %v6311_v63, %v5445_v17  ;;  %v6313_v46 = vpop.f32.mrb[183].mxu1  ;;  %10431 = vtanh.f32 %v9284_v9  ;;  %v13285_v17 = vld [vmem:[#allocation93_spill] sm:$0xff] }
 0x777   :  { %v5461_v9 = vadd.f32 %v13285_v17, %v12519_v10 }
 0x778   :  { %10433 = vtanh.f32 %v9286_v61  ;;  %v10428_v35 = vpop.eup %10427  ;;  %v9822_v61 = vld [vmem:[#allocation20 + $0x164] ss:$16 sps:$4 sm:$0xff]  }
 0x779   :  { %7132 = vmatmul.mubr.bf16.gmra.mrb[96].mxu0 %v9811_v34 }
 0x77a   :  { %v10430_v39 = vpop.eup %10429  ;;  %7139 = vmatprep.mubr.bf16.mxu0 %v9816_v49  ;;  %v13286_v49 = vld [vmem:[#allocation95_spill] sm:$0xff] }
 0x77b   :  { %v6316_v59 = vpop.f32.mrb[184].mxu1  ;;  %v6515_v8 = vpack.c.bf16 %v10430_v39, %v10428_v35  ;;  %v5466_v10 = vadd.f32 %v13286_v49, %v12529_v41  ;;  %v13293_v49 = vld [vmem:[#allocation99_spill] sm:$0xff] }
 0x77c   :  { %v9288_v33 = vadd.f32 %v6316_v59, %v5450_v6  ;;  %v6318_v29 = vpop.f32.mrb[185].mxu1  ;;  %v5469_v6 = vadd.f32 %v13287_v40, %v12533_v13 }
 0x77d   :  { %v6319_v11 = vpop.f32.mrb[186].mxu1  ;;  %8813 = vmatprep.subr.bf16.mxu0 %v6515_v8  ;;  %v13288_v29 = vld [vmem:[#allocation94_spill] sm:$0xff] }
 0x77e   :  { %v9290_v52 = vadd.f32 %v6319_v11, %v5453_v16  ;;  %v6321_v21 = vpop.f32.mrb[187].mxu1  ;;  %8814 = vmatpush3.bf16.msra.mxu0 %v6507_v47  ;;  %10435 = vtanh.f32 %v9288_v33  ;;  %v9825_v16 = vld [vmem:[#allocation20 + $0x184] ss:$16 sps:$4 sm:$0xff]   ;;  %v5474_v13 = vadd.f32 %v13288_v29, %v12546_v31  ;;  %v9852_v29 = vld [vmem:[#allocation20 + $0xac] ss:$16 sps:$4 sm:$0xff]  }
 0x780   :  { %10437 = vtanh.f32 %v9290_v52  ;;  %v10432_v5 = vpop.eup %10431  ;;  %v13289_v52 = vld [vmem:[#allocation96_spill] sm:$0xff] }
 0x781   :  { %7140 = vmatmul.mubr.bf16.gmra.mrb[100].mxu0 %v9814_v43  ;;  %v5477_v21 = vadd.f32 %v13289_v52, %v12551_v3  ;;  %v9859_v52 = vld [vmem:[#allocation20 + $0x108] ss:$16 sps:$4 sm:$0xff]  }
 0x782   :  { %v10434_v50 = vpop.eup %10433  ;;  %7147 = vmatprep.mubr.bf16.mxu0 %v9819_v7 }
 0x783   :  { %v6324_v48 = vpop.f32.mrb[188].mxu1  ;;  %v6516_v37 = vpack.c.bf16 %v10434_v50, %v10432_v5 }
 0x784   :  { %v9292_v18 = vadd.f32 %v6324_v48, %v5458_v58  ;;  %v6326_v63 = vpop.f32.mrb[189].mxu1  ;;  %v13290_v48 = vld [vmem:[#allocation76_spill] sm:$0xff] }
 0x785   :  { %v6327_v34 = vpop.f32.mrb[190].mxu1  ;;  %8815 = vmatprep.subr.bf16.mxu0 %v6516_v37  ;;  %v5482_v3 = vadd.f32 %v13290_v48, %v12561_v51  ;;  %v9873_v48 = vld [vmem:[#allocation20 + $0x18c] ss:$16 sps:$4 sm:$0xff]  }
 0x786   :  { %v9294_v4 = vadd.f32 %v6327_v34, %v5461_v9  ;;  %v6329_v47 = vpop.f32.mrb[191].mxu1  ;;  %8816 = vmatpush3.bf16.msra.mxu0 %v6508_v2  ;;  %10439 = vtanh.f32 %v9292_v18  ;;  %v13291_v9 = vld [vmem:[#allocation97_spill] sm:$0xff] }
 0x787   :  { %v5485_v18 = vadd.f32 %v13291_v9, %v12565_v26 }
 0x788   :  { %10441 = vtanh.f32 %v9294_v4  ;;  %v10436_v0 = vpop.eup %10435  ;;  %v9831_v4 = vld [vmem:[#allocation20 + $0x1c4] ss:$16 sps:$4 sm:$0xff]  }
 0x789   :  { %7148 = vmatmul.mubr.bf16.gmra.mrb[104].mxu0 %v9817_v28 }
 0x78a   :  { %v10438_v46 = vpop.eup %10437  ;;  %7155 = vmatprep.mubr.bf16.mxu0 %v9822_v61  ;;  %v13292_v61 = vld [vmem:[#allocation98_spill] sm:$0xff] }
 0x78b   :  { %v6332_v35 = vpop.f32.mrb[192].mxu1  ;;  %v6517_v39 = vpack.c.bf16 %v10438_v46, %v10436_v0  ;;  %v5490_v26 = vadd.f32 %v13292_v61, %v12578_v19 }
 0x78c   :  { %v9296_v59 = vadd.f32 %v6332_v35, %v5466_v10  ;;  %v6334_v8 = vpop.f32.mrb[193].mxu1  ;;  %v5493_v10 = vadd.f32 %v13293_v49, %v12583_v15  ;;  %v9832_v15 = vld [vmem:[#allocation20 + $0x1e0] ss:$16 sps:$4 sm:$0xff]  }
 0x78d   :  { %v6335_v22 = vpop.f32.mrb[194].mxu1  ;;  %8817 = vmatprep.subr.bf16.mxu0 %v6517_v39 }
 0x78e   :  { %v9298_v14 = vadd.f32 %v6335_v22, %v5469_v6  ;;  %v6337_v2 = vpop.f32.mrb[195].mxu1  ;;  %8818 = vmatpush3.bf16.msra.mxu0 %v6509_v42  ;;  %10443 = vtanh.f32 %v9296_v59  ;;  %v9834_v6 = vld [vmem:[#allocation20 + $0x1e4] ss:$16 sps:$4 sm:$0xff]   ;;  %v9837_v22 = vld [vmem:[#allocation20 + $0xc] ss:$16 sps:$4 sm:$0xff]  }
 0x78f   :  { %v9838_v2 = vld [vmem:[#allocation20 + $0x28] ss:$16 sps:$4 sm:$0xff]  }
 0x790   :  { %10445 = vtanh.f32 %v9298_v14  ;;  %v10440_v41 = vpop.eup %10439 }
 0x791   :  { %7156 = vmatmul.mubr.bf16.gmra.mrb[108].mxu0 %v9820_v55 }
 0x792   :  { %v10442_v33 = vpop.eup %10441  ;;  %7163 = vmatprep.mubr.bf16.mxu0 %v9825_v16  ;;  %v9843_v16 = vld [vmem:[#allocation20 + $0x4c] ss:$16 sps:$4 sm:$0xff]  }
 0x793   :  { %v6340_v11 = vpop.f32.mrb[196].mxu1  ;;  %v6518_v43 = vpack.c.bf16 %v10442_v33, %v10440_v41  ;;  %v9849_v41 = vld [vmem:[#allocation20 + $0x8c] ss:$16 sps:$4 sm:$0xff]   ;;  %v9847_v33 = vld [vmem:[#allocation20 + $0x88] ss:$16 sps:$4 sm:$0xff]  }
 0x794   :  { %v9300_v7 = vadd.f32 %v6340_v11, %v5474_v13  ;;  %v6342_v5 = vpop.f32.mrb[197].mxu1  ;;  %v9858_v13 = vld [vmem:[#allocation20 + $0xec] ss:$16 sps:$4 sm:$0xff]   ;;  %v9856_v11 = vld [vmem:[#allocation20 + $0xe8] ss:$16 sps:$4 sm:$0xff]  }
 0x795   :  { %v6343_v50 = vpop.f32.mrb[198].mxu1  ;;  %8819 = vmatprep.subr.bf16.mxu0 %v6518_v43  ;;  %v9861_v43 = vld [vmem:[#allocation20 + $0x10c] ss:$16 sps:$4 sm:$0xff]  }
 0x796   :  { %v9302_v20 = vadd.f32 %v6343_v50, %v5477_v21  ;;  %v6345_v42 = vpop.f32.mrb[199].mxu1  ;;  %8820 = vmatpush3.bf16.msra.mxu0 %v6510_v57  ;;  %10447 = vtanh.f32 %v9300_v7  ;;  %v9864_v21 = vld [vmem:[#allocation20 + $0x12c] ss:$16 sps:$4 sm:$0xff]   ;;  %v9862_v7 = vld [vmem:[#allocation20 + $0x128] ss:$16 sps:$4 sm:$0xff]  }
 0x797   :  { %v9867_v5 = vld [vmem:[#allocation20 + $0x14c] ss:$16 sps:$4 sm:$0xff]   ;;  %v9865_v50 = vld [vmem:[#allocation20 + $0x148] ss:$16 sps:$4 sm:$0xff]  }
 0x798   :  { %10449 = vtanh.f32 %v9302_v20  ;;  %v10444_v31 = vpop.eup %10443 }
 0x799   :  { %7164 = vmatmul.mubr.bf16.gmra.mrb[112].mxu0 %v9823_v27  ;;  %v9870_v27 = vld [vmem:[#allocation20 + $0x16c] ss:$16 sps:$4 sm:$0xff]  }
 0x79a   :  { %v10446_v58 = vpop.eup %10445  ;;  %7171 = vmatprep.mubr.bf16.mxu0 %v9828_v36  ;;  %v9868_v36 = vld [vmem:[#allocation20 + $0x168] ss:$16 sps:$4 sm:$0xff]  }
 0x79b   :  { %v6348_v37 = vpop.f32.mrb[200].mxu1  ;;  %v6519_v17 = vpack.c.bf16 %v10446_v58, %v10444_v31 }
 0x79c   :  { %v9304_v63 = vadd.f32 %v6348_v37, %v5482_v3  ;;  %v6350_v34 = vpop.f32.mrb[201].mxu1 }
 0x79d   :  { %v6351_v28 = vpop.f32.mrb[202].mxu1  ;;  %8821 = vmatprep.subr.bf16.mxu0 %v6519_v17 }
 0x79e   :  { %v9306_v30 = vadd.f32 %v6351_v28, %v5485_v18  ;;  %v6353_v57 = vpop.f32.mrb[203].mxu1  ;;  %8822 = vmatpush3.bf16.msra.mxu0 %v6511_v38  ;;  %10451 = vtanh.f32 %v9304_v63  ;;  %v9871_v18 = vld [vmem:[#allocation20 + $0x188] ss:$16 sps:$4 sm:$0xff]   ;;  %v9876_v28 = vld [vmem:[#allocation20 + $0x1ac] ss:$16 sps:$4 sm:$0xff]  }
 0x7a0   :  { %10453 = vtanh.f32 %v9306_v30  ;;  %v10448_v51 = vpop.eup %10447 }
 0x7a1   :  { %7172 = vmatmul.mubr.bf16.gmra.mrb[116].mxu0 %v9826_v45 }
 0x7a2   :  { %v10450_v47 = vpop.eup %10449  ;;  %7179 = vmatprep.mubr.bf16.mxu0 %v9831_v4 }
 0x7a3   :  { %v6356_v0 = vpop.f32.mrb[204].mxu1  ;;  %v6520_v46 = vpack.c.bf16 %v10450_v47, %v10448_v51  ;;  %v9874_v51 = vld [vmem:[#allocation20 + $0x1a8] ss:$16 sps:$4 sm:$0xff]  }
 0x7a4   :  { %v9308_v35 = vadd.f32 %v6356_v0, %v5490_v26  ;;  %v6358_v39 = vpop.f32.mrb[205].mxu1  ;;  %v9879_v26 = vld [vmem:[#allocation20 + $0x1cc] ss:$16 sps:$4 sm:$0xff]  }
 0x7a5   :  { %v6359_v40 = vpop.f32.mrb[206].mxu1  ;;  %8823 = vmatprep.subr.bf16.mxu0 %v6520_v46 }
 0x7a6   :  { %v9310_v56 = vadd.f32 %v6359_v40, %v5493_v10  ;;  %v6361_v38 = vpop.f32.mrb[207].mxu1  ;;  %8824 = vmatpush3.bf16.msra.mxu0 %v6512_v60  ;;  %10455 = vtanh.f32 %v9308_v35  ;;  %v9840_v60 = vld [vmem:[#allocation20 + $0x2c] ss:$16 sps:$4 sm:$0xff]   ;;  %v9877_v35 = vld [vmem:[#allocation20 + $0x1c8] ss:$16 sps:$4 sm:$0xff]  }
 0x7a8   :  { %10457 = vtanh.f32 %v9310_v56  ;;  %v10452_v19 = vpop.eup %10451 }
 0x7a9   :  { %7180 = vmatmul.mubr.bf16.gmra.mrb[120].mxu0 %v9829_v24  ;;  %v9882_v24 = vld [vmem:[#allocation20 + $0x1ec] ss:$16 sps:$4 sm:$0xff]  }
 0x7aa   :  { %v10454_v59 = vpop.eup %10453  ;;  %7187 = vmatprep.mubr.bf16.mxu0 %v9834_v6 }
 0x7ab   :  { %v6521_v8 = vpack.c.bf16 %v10454_v59, %v10452_v19  ;;  %v9880_v59 = vld [vmem:[#allocation20 + $0x1e8] ss:$16 sps:$4 sm:$0xff]  }
 0x7ad   :  { %8825 = vmatprep.subr.bf16.mxu0 %v6521_v8 }
 0x7ae   :  { %8826 = vmatpush3.bf16.msra.mxu0 %v6513_v53  ;;  %v9844_v53 = vld [vmem:[#allocation20 + $0x68] ss:$16 sps:$4 sm:$0xff]  }
 0x7b0   :  { %v10456_v55 = vpop.eup %10455 }
 0x7b1   :  { %7188 = vmatmul.mubr.bf16.gmra.mrb[124].mxu0 %v9832_v15 }
 0x7b2   :  { %v10458_v14 = vpop.eup %10457  ;;  %7228 = vmatprep.mubr.bf16.mxu0 %v9837_v22 }
 0x7b3   :  { %v6522_v32 = vpack.c.bf16 %v10458_v14, %v10456_v55 }
 0x7b5   :  { %8827 = vmatprep.subr.bf16.mxu0 %v6522_v32 }
 0x7b6   :  { %8828 = vmatpush3.bf16.msra.mxu0 %v6514_v44  ;;  %v9853_v44 = vld [vmem:[#allocation20 + $0xc8] ss:$16 sps:$4 sm:$0xff]  }
 0x7b9   :  { %7229 = vmatmul.mubr.bf16.vlgmr.msra.gmra.mrb[128].mxu0 %v9835_v62 }
 0x7ba   :  { %7236 = vmatprep.mubr.bf16.mxu0 %v9840_v60 }
 0x7c1   :  { %7237 = vmatmul.mubr.bf16.gmra.mrb[132].mxu0 %v9838_v2 }
 0x7c2   :  { %7244 = vmatprep.mubr.bf16.mxu0 %v9843_v16  ;;  %v12683_v16 = vpop.permute.xlu0 %3146 }
 0x7c3   :  { %13294 = vst [vmem:[#allocation78_spill] sm:$0xff] %v12683_v16 }
 0x7c9   :  { %7245 = vmatmul.mubr.bf16.gmra.mrb[136].mxu0 %v9841_v23 }
 0x7ca   :  { %7252 = vmatprep.mubr.bf16.mxu0 %v9846_v54  ;;  %v12687_v54 = vpop.permute.xlu1 %6557 }
 0x7d1   :  { %7253 = vmatmul.mubr.bf16.gmra.mrb[140].mxu0 %v9844_v53 }
 0x7d2   :  { %7260 = vmatprep.mubr.bf16.mxu0 %v9849_v41 }
 0x7d9   :  { %7261 = vmatmul.mubr.bf16.gmra.mrb[144].mxu0 %v9847_v33  ;;  %v12689_v33 = vpop.permute.xlu0 %6562 }
 0x7da   :  { %7268 = vmatprep.mubr.bf16.mxu0 %v9852_v29 }
 0x7e1   :  { %7269 = vmatmul.mubr.bf16.gmra.mrb[148].mxu0 %v9850_v12 }
 0x7e2   :  { %7276 = vmatprep.mubr.bf16.mxu0 %v9855_v1 }
 0x7e9   :  { %7277 = vmatmul.mubr.bf16.gmra.mrb[152].mxu0 %v9853_v44 }
 0x7ea   :  { %7284 = vmatprep.mubr.bf16.mxu0 %v9858_v13  ;;  %v12695_v13 = vpop.permute.xlu1 %6567 }
 0x7f1   :  { %7285 = vmatmul.mubr.bf16.gmra.mrb[156].mxu0 %v9856_v11  ;;  %v12697_v11 = vpop.permute.xlu0 %6572 }
 0x7f2   :  { %7292 = vmatprep.mubr.bf16.mxu0 %v9861_v43 }
 0x7f9   :  { %7293 = vmatmul.mubr.bf16.gmra.mrb[160].mxu0 %v9859_v52 }
 0x7fa   :  { %7300 = vmatprep.mubr.bf16.mxu0 %v9864_v21 }
 0x801   :  { %7301 = vmatmul.mubr.bf16.gmra.mrb[164].mxu0 %v9862_v7 }
 0x802   :  { %7308 = vmatprep.mubr.bf16.mxu0 %v9867_v5 }
 0x809   :  { %7309 = vmatmul.mubr.bf16.gmra.mrb[168].mxu0 %v9865_v50  ;;  %v12701_v50 = vpop.permute.xlu1 %6577 }
 0x80a   :  { %7316 = vmatprep.mubr.bf16.mxu0 %v9870_v27 }
 0x80c   :  { %v8717_v20 = vpop.f32.mrb[64].mxu0 }
 0x80d   :  { %v8718_v42 = vpop.f32.mrb[65].mxu0 }
 0x80e   :  { %v12661_v31 = vadd.f32 %v8718_v42, %v8717_v20  ;;  %v8720_v58 = vpop.f32.mrb[66].mxu0  ;;  %v12705_v20 = vpop.permute.xlu0 %6582 }
 0x80f   :  { %v8721_v3 = vpop.f32.mrb[67].mxu0 }
 0x810   :  { %v12663_v37 = vadd.f32 %v8721_v3, %v8720_v58  ;;  %v12707_v58 = vpop.permute.xlu1 %6587 }
 0x811   :  { %7317 = vmatmul.mubr.bf16.gmra.mrb[172].mxu0 %v9868_v36 }
 0x812   :  { %7324 = vmatprep.mubr.bf16.mxu0 %v9873_v48 }
 0x814   :  { %v8723_v17 = vpop.f32.mrb[68].mxu0 }
 0x815   :  { %v8724_v9 = vpop.f32.mrb[69].mxu0 }
 0x816   :  { %v12665_v63 = vadd.f32 %v8724_v9, %v8723_v17  ;;  %v8726_v34 = vpop.f32.mrb[70].mxu0  ;;  %v12711_v9 = vpop.permute.xlu0 %6592 }
 0x817   :  { %v8727_v45 = vpop.f32.mrb[71].mxu0 }
 0x818   :  { %v12667_v30 = vadd.f32 %v8727_v45, %v8726_v34  ;;  %v12715_v34 = vpop.permute.xlu1 %6597 }
 0x819   :  { %7325 = vmatmul.mubr.bf16.gmra.mrb[176].mxu0 %v9871_v18 }
 0x81a   :  { %7332 = vmatprep.mubr.bf16.mxu0 %v9876_v28 }
 0x81c   :  { %v8729_v57 = vpop.f32.mrb[72].mxu0 }
 0x81d   :  { %v8730_v4 = vpop.f32.mrb[73].mxu0 }
 0x81e   :  { %v12669_v47 = vadd.f32 %v8730_v4, %v8729_v57  ;;  %v8732_v61 = vpop.f32.mrb[74].mxu0  ;;  %v12717_v57 = vpop.permute.xlu0 %6602 }
 0x81f   :  { %v8733_v0 = vpop.f32.mrb[75].mxu0 }
 0x820   :  { %v12671_v46 = vadd.f32 %v8733_v0, %v8732_v61  ;;  %v12723_v0 = vpop.permute.xlu1 %6607 }
 0x821   :  { %7333 = vmatmul.mubr.bf16.gmra.mrb[180].mxu0 %v9874_v51 }
 0x822   :  { %7340 = vmatprep.mubr.bf16.mxu0 %v9879_v26 }
 0x824   :  { %v8735_v49 = vpop.f32.mrb[76].mxu0 }
 0x825   :  { %v8736_v10 = vpop.f32.mrb[77].mxu0 }
 0x826   :  { %v12673_v39 = vadd.f32 %v8736_v10, %v8735_v49  ;;  %v8738_v40 = vpop.f32.mrb[78].mxu0  ;;  %v12725_v49 = vpop.permute.xlu0 %6612 }
 0x827   :  { %v8739_v56 = vpop.f32.mrb[79].mxu0 }
 0x828   :  { %v12675_v38 = vadd.f32 %v8739_v56, %v8738_v40 }
 0x829   :  { %7341 = vmatmul.mubr.bf16.gmra.mrb[184].mxu0 %v9877_v35 }
 0x82a   :  { %7348 = vmatprep.mubr.bf16.mxu0 %v9882_v24 }
 0x82c   :  { %v8741_v6 = vpop.f32.mrb[80].mxu0 }
 0x82d   :  { %v8742_v19 = vpop.f32.mrb[81].mxu0 }
 0x82e   :  { %v12677_v8 = vadd.f32 %v8742_v19, %v8741_v6  ;;  %v8744_v15 = vpop.f32.mrb[82].mxu0  ;;  %v12729_v6 = vpop.permute.xlu1 %6617 }
 0x82f   :  { %v8745_v22 = vpop.f32.mrb[83].mxu0 }
 0x830   :  { %v12679_v55 = vadd.f32 %v8745_v22, %v8744_v15 }
 0x831   :  { %7349 = vmatmul.mubr.bf16.gmra.mrb[188].mxu0 %v9880_v59  ;;  %v12733_v59 = vpop.permute.xlu0 %6622 }
 0x834   :  { %v8747_v14 = vpop.f32.mrb[84].mxu0 }
 0x835   :  { %v8748_v32 = vpop.f32.mrb[85].mxu0 }
 0x836   :  { %v12681_v62 = vadd.f32 %v8748_v32, %v8747_v14  ;;  %v8750_v60 = vpop.f32.mrb[86].mxu0  ;;  %v12735_v14 = vpop.permute.xlu1 %6627 }
 0x837   :  { %v8751_v2 = vpop.f32.mrb[87].mxu0 }
 0x838   :  { %v12685_v23 = vadd.f32 %v8751_v2, %v8750_v60 }
 0x83c   :  { %v8753_v53 = vpop.f32.mrb[88].mxu0 }
 0x83d   :  { %v8754_v41 = vpop.f32.mrb[89].mxu0 }
 0x83e   :  { %v12691_v29 = vadd.f32 %v8754_v41, %v8753_v53  ;;  %v8756_v12 = vpop.f32.mrb[90].mxu0  ;;  %v12739_v53 = vpop.permute.xlu0 %6632 }
 0x83f   :  { %v8757_v1 = vpop.f32.mrb[91].mxu0 }
 0x840   :  { %v12693_v44 = vadd.f32 %v8757_v1, %v8756_v12  ;;  %v12743_v12 = vpop.permute.xlu1 %6637 }
 0x844   :  { %v8759_v43 = vpop.f32.mrb[92].mxu0 }
 0x845   :  { %v8760_v52 = vpop.f32.mrb[93].mxu0 }
 0x846   :  { %v12699_v21 = vadd.f32 %v8760_v52, %v8759_v43  ;;  %v8762_v7 = vpop.f32.mrb[94].mxu0  ;;  %v12745_v52 = vpop.permute.xlu0 %6642 }
 0x847   :  { %v8763_v5 = vpop.f32.mrb[95].mxu0 }
 0x848   :  { %v12703_v27 = vadd.f32 %v8763_v5, %v8762_v7 }
 0x84c   :  { %v8765_v42 = vpop.f32.mrb[96].mxu0 }
 0x84d   :  { %v8766_v36 = vpop.f32.mrb[97].mxu0 }
 0x84e   :  { %v12709_v48 = vadd.f32 %v8766_v36, %v8765_v42  ;;  %v8768_v3 = vpop.f32.mrb[98].mxu0 }
 0x84f   :  { %v8769_v17 = vpop.f32.mrb[99].mxu0 }
 0x850   :  { %v12713_v18 = vadd.f32 %v8769_v17, %v8768_v3  ;;  %v12751_v3 = vpop.permute.xlu1 %6647  ;;  %v12753_v17 = vpop.permute.xlu0 %6652 }
 0x854   :  { %v8771_v28 = vpop.f32.mrb[100].mxu0 }
 0x855   :  { %v8772_v45 = vpop.f32.mrb[101].mxu0 }
 0x856   :  { %v12719_v4 = vadd.f32 %v8772_v45, %v8771_v28  ;;  %v8774_v51 = vpop.f32.mrb[102].mxu0 }
 0x857   :  { %v8775_v61 = vpop.f32.mrb[103].mxu0 }
 0x858   :  { %v12721_v26 = vadd.f32 %v8775_v61, %v8774_v51 }
 0x85c   :  { %v8777_v10 = vpop.f32.mrb[104].mxu0 }
 0x85d   :  { %v8778_v35 = vpop.f32.mrb[105].mxu0 }
 0x85e   :  { %v12727_v40 = vadd.f32 %v8778_v35, %v8777_v10  ;;  %v8780_v24 = vpop.f32.mrb[106].mxu0  ;;  %v12757_v35 = vpop.permute.xlu1 %6657 }
 0x85f   :  { %v8781_v56 = vpop.f32.mrb[107].mxu0 }
 0x860   :  { %v12731_v19 = vadd.f32 %v8781_v56, %v8780_v24  ;;  %v12761_v56 = vpop.permute.xlu0 %6662 }
 0x864   :  { %v8783_v15 = vpop.f32.mrb[108].mxu0 }
 0x865   :  { %v8784_v22 = vpop.f32.mrb[109].mxu0 }
 0x866   :  { %v12737_v32 = vadd.f32 %v8784_v22, %v8783_v15  ;;  %v8786_v60 = vpop.f32.mrb[110].mxu0 }
 0x867   :  { %v8787_v2 = vpop.f32.mrb[111].mxu0 }
 0x868   :  { %v12741_v41 = vadd.f32 %v8787_v2, %v8786_v60  ;;  %v12763_v60 = vpop.permute.xlu1 %6667 }
 0x86c   :  { %v8789_v1 = vpop.f32.mrb[112].mxu0 }
 0x86d   :  { %v8790_v43 = vpop.f32.mrb[113].mxu0 }
 0x86e   :  { %v12747_v7 = vadd.f32 %v8790_v43, %v8789_v1  ;;  %v8792_v5 = vpop.f32.mrb[114].mxu0 }
 0x86f   :  { %v8793_v42 = vpop.f32.mrb[115].mxu0 }
 0x870   :  { %13295 = vst [vmem:[#allocation79_spill] sm:$0xff] %v12747_v7  ;;  %v12749_v36 = vadd.f32 %v8793_v42, %v8792_v5  ;;  %v12767_v5 = vpop.permute.xlu0 %6672 }
 0x872   :  { %13296 = vst [vmem:[#allocation80_spill] sm:$0xff] %v12749_v36 }
 0x874   :  { %v8795_v28 = vpop.f32.mrb[116].mxu0 }
 0x875   :  { %v8796_v45 = vpop.f32.mrb[117].mxu0 }
 0x876   :  { %v12755_v51 = vadd.f32 %v8796_v45, %v8795_v28  ;;  %v8798_v61 = vpop.f32.mrb[118].mxu0  ;;  %v12771_v28 = vpop.permute.xlu1 %6677 }
 0x877   :  { %v8799_v10 = vpop.f32.mrb[119].mxu0  ;;  %13301 = vst [vmem:[#allocation102_spill] sm:$0xff] %v12771_v28 }
 0x878   :  { %13297 = vst [vmem:[#allocation101_spill] sm:$0xff] %v12755_v51  ;;  %v12759_v24 = vadd.f32 %v8799_v10, %v8798_v61  ;;  %v12773_v61 = vpop.permute.xlu0 %6682 }
 0x87a   :  { %13298 = vst [vmem:[#allocation103_spill] sm:$0xff] %v12759_v24 }
 0x87c   :  { %v8801_v15 = vpop.f32.mrb[120].mxu0 }
 0x87d   :  { %v8802_v22 = vpop.f32.mrb[121].mxu0 }
 0x87e   :  { %v12765_v2 = vadd.f32 %v8802_v22, %v8801_v15  ;;  %v8804_v1 = vpop.f32.mrb[122].mxu0  ;;  %v12779_v15 = vpop.permute.xlu1 %6687 }
 0x87f   :  { %v8805_v43 = vpop.f32.mrb[123].mxu0  ;;  %13304 = vst [vmem:[#allocation107_spill] sm:$0xff] %v12779_v15  ;;  %v12781_v22 = vpop.permute.xlu0 %6692 }
 0x880   :  { %13299 = vst [vmem:[#allocation81_spill] sm:$0xff] %v12765_v2  ;;  %v12769_v42 = vadd.f32 %v8805_v43, %v8804_v1  ;;  %13305 = vst [vmem:[#allocation83_spill] sm:$0xff] %v12781_v22  ;;  %v7070_v1 = vadd.f32 %v12661_v31, %v12687_v54  ;;  %v7078_v31 = vadd.f32 %v12665_v63, %v12695_v13 }
 0x881   :  { %v7086_v13 = vadd.f32 %v12669_v47, %v12701_v50 }
 0x882   :  { %13300 = vst [vmem:[#allocation100_spill] sm:$0xff] %v12769_v42  ;;  %v12785_v28 = vpop.permute.xlu1 %6697 }
 0x883   :  { %13306 = vst [vmem:[#allocation104_spill] sm:$0xff] %v12785_v28 }
 0x884   :  { %v8807_v45 = vpop.f32.mrb[124].mxu0 }
 0x885   :  { %v8808_v51 = vpop.f32.mrb[125].mxu0 }
 0x886   :  { %v12775_v10 = vadd.f32 %v8808_v51, %v8807_v45  ;;  %v8810_v24 = vpop.f32.mrb[126].mxu0  ;;  %v7073_v51 = vadd.f32 %v12663_v37, %v12689_v33  ;;  %v12791_v15 = vpop.permute.xlu1 %6707  ;;  %v7081_v37 = vadd.f32 %v12667_v30, %v12697_v11  ;;  %v7089_v11 = vadd.f32 %v12671_v46, %v12705_v20 }
 0x887   :  { %v8811_v25 = vpop.f32.mrb[127].mxu0  ;;  %v7094_v46 = vadd.f32 %v12673_v39, %v12707_v58 }
 0x888   :  { %13302 = vst [vmem:[#allocation82_spill] sm:$0xff] %v12775_v10  ;;  %v12777_v16 = vadd.f32 %v8811_v25, %v8810_v24  ;;  %v12789_v24 = vpop.permute.xlu0 %6702 }
 0x88a   :  { %13303 = vst [vmem:[#allocation105_spill] sm:$0xff] %v12777_v16 }
 0x88c   :  { %v8829_v2 = vpop.f32.mrb[128].mxu0  ;;  %v12795_v28 = vpop.permute.xlu0 %6712 }
 0x88d   :  { %v8830_v36 = vpop.f32.mrb[129].mxu0  ;;  %13307 = vst [vmem:[#allocation106_spill] sm:$0xff] %v12795_v28 }
 0x88e   :  { %v8831_v43 = vadd.f32 %v8830_v36, %v8829_v2  ;;  %v8832_v42 = vpop.f32.mrb[130].mxu0 }
 0x88f   :  { %v8833_v7 = vpop.f32.mrb[131].mxu0 }
 0x890   :  { %v7231_v45 = vadd.f32 %v8831_v43, %v7070_v1  ;;  %v8834_v25 = vadd.f32 %v8833_v7, %v8832_v42  ;;  %v7424_v1 = vpop.permute.xlu1 %7423  ;;  %v7429_v63 = vpop.permute.xlu0 %7428 }
 0x892   :  { %10459 = vtanh.f32 %v7231_v45  ;;  %v7234_v16 = vadd.f32 %v8834_v25, %v7073_v51 }
 0x894   :  { %10461 = vtanh.f32 %v7234_v16  ;;  %v8835_v10 = vpop.f32.mrb[132].mxu0 }
 0x895   :  { %v8836_v22 = vpop.f32.mrb[133].mxu0 }
 0x896   :  { %v8837_v54 = vadd.f32 %v8836_v22, %v8835_v10  ;;  %v8838_v36 = vpop.f32.mrb[134].mxu0 }
 0x897   :  { %v8839_v2 = vpop.f32.mrb[135].mxu0 }
 0x898   :  { %v7239_v33 = vadd.f32 %v8837_v54, %v7078_v31  ;;  %v8840_v7 = vadd.f32 %v8839_v2, %v8838_v36 }
 0x89a   :  { %10463 = vtanh.f32 %v7239_v33  ;;  %v7242_v42 = vadd.f32 %v8840_v7, %v7081_v37 }
 0x89c   :  { %v10460_v16 = vpop.eup %10459  ;;  %10465 = vtanh.f32 %v7242_v42  ;;  %v8841_v43 = vpop.f32.mrb[136].mxu0 }
 0x89d   :  { %v7581_v51 = vmul.f32 %v10460_v16, %v7424_v1  ;;  %v8842_v45 = vpop.f32.mrb[137].mxu0  ;;  %v7434_v42 = vpop.permute.xlu1 %7433 }
 0x89e   :  { %v10462_v25 = vpop.eup %10461  ;;  %v8843_v10 = vadd.f32 %v8842_v45, %v8841_v43  ;;  %v8844_v22 = vpop.f32.mrb[138].mxu0 }
 0x89f   :  { %v7582_v28 = vmul.f32 %v10462_v25, %v7429_v63  ;;  %v8845_v30 = vpop.f32.mrb[139].mxu0  ;;  %v7614_v36 = vsel %vm7613_vm2, %v7581_v51, 0.0  ;;  %v7439_v43 = vpop.permute.xlu0 %7438  ;;  %v7097_v63 = vadd.f32 %v12675_v38, %v12711_v9 }
 0x8a0   :  { %v7247_v31 = vadd.f32 %v8843_v10, %v7086_v13  ;;  %v8846_v54 = vadd.f32 %v8845_v30, %v8844_v22 }
 0x8a1   :  { %v7615_v2 = vsel %vm7613_vm2, %v7582_v28, 0.0 }
 0x8a2   :  { %v7616_v37 = vadd.f32 %v7615_v2, %v7614_v36  ;;  %10467 = vtanh.f32 %v7247_v31  ;;  %v7250_v33 = vadd.f32 %v8846_v54, %v7089_v11  ;;  %v7444_v11 = vpop.permute.xlu1 %7443 }
 0x8a4   :  { %v10464_v7 = vpop.eup %10463  ;;  %10469 = vtanh.f32 %v7250_v33  ;;  %v8847_v47 = vpop.f32.mrb[140].mxu0 }
 0x8a5   :  { %v7583_v50 = vmul.f32 %v10464_v7, %v7434_v42  ;;  %v8848_v16 = vpop.f32.mrb[141].mxu0  ;;  %v7449_v7 = vpop.permute.xlu0 %7448  ;;  %v7102_v42 = vadd.f32 %v12677_v8, %v12715_v34 }
 0x8a6   :  { %v10466_v1 = vpop.eup %10465  ;;  %v8849_v20 = vadd.f32 %v8848_v16, %v8847_v47  ;;  %v8850_v45 = vpop.f32.mrb[142].mxu0 }
 0x8a7   :  { %v7617_v51 = vsel %vm7613_vm2, %v7583_v50, 0.0  ;;  %v7584_v25 = vmul.f32 %v10466_v1, %v7439_v43  ;;  %v8851_v28 = vpop.f32.mrb[143].mxu0  ;;  %v7454_v16 = vpop.permute.xlu1 %7453  ;;  %v7105_v1 = vadd.f32 %v12679_v55, %v12717_v57 }
 0x8a8   :  { %v7618_v13 = vadd.f32 %v7617_v51, %v7616_v37  ;;  %v7255_v10 = vadd.f32 %v8849_v20, %v7094_v46  ;;  %v8852_v22 = vadd.f32 %v8851_v28, %v8850_v45 }
 0x8a9   :  { %v7619_v30 = vsel %vm7613_vm2, %v7584_v25, 0.0  ;;  %v7459_v34 = vpop.permute.xlu0 %7458 }
 0x8aa   :  { %v7620_v31 = vadd.f32 %v7619_v30, %v7618_v13  ;;  %10471 = vtanh.f32 %v7255_v10  ;;  %v7258_v54 = vadd.f32 %v8852_v22, %v7097_v63  ;;  %v7110_v30 = vadd.f32 %v12681_v62, %v12723_v0 }
 0x8ab   :  { %v7464_v22 = vpop.permute.xlu1 %7463 }
 0x8ac   :  { %v10468_v36 = vpop.eup %10467  ;;  %10473 = vtanh.f32 %v7258_v54  ;;  %v8853_v39 = vpop.f32.mrb[144].mxu0 }
 0x8ad   :  { %v7585_v58 = vmul.f32 %v10468_v36, %v7444_v11  ;;  %v8854_v2 = vpop.f32.mrb[145].mxu0  ;;  %v7113_v36 = vadd.f32 %v12685_v23, %v12725_v49 }
 0x8ae   :  { %v10470_v33 = vpop.eup %10469  ;;  %v8855_v38 = vadd.f32 %v8854_v2, %v8853_v39  ;;  %v8856_v9 = vpop.f32.mrb[146].mxu0 }
 0x8af   :  { %v7621_v37 = vsel %vm7613_vm2, %v7585_v58, 0.0  ;;  %v7586_v47 = vmul.f32 %v10470_v33, %v7449_v7  ;;  %v8857_v50 = vpop.f32.mrb[147].mxu0 }
 0x8b0   :  { %v7622_v43 = vadd.f32 %v7621_v37, %v7620_v31  ;;  %v7263_v46 = vadd.f32 %v8855_v38, %v7102_v42  ;;  %v8858_v20 = vadd.f32 %v8857_v50, %v8856_v9  ;;  %v7474_v9 = vpop.permute.xlu1 %7473  ;;  %v7469_v50 = vpop.permute.xlu0 %7468 }
 0x8b1   :  { %v7623_v45 = vsel %vm7613_vm2, %v7586_v47, 0.0 }
 0x8b2   :  { %v7624_v51 = vadd.f32 %v7623_v45, %v7622_v43  ;;  %10475 = vtanh.f32 %v7263_v46  ;;  %v7266_v25 = vadd.f32 %v8858_v20, %v7105_v1  ;;  %v7121_v20 = vadd.f32 %v12693_v44, %v12733_v59 }
 0x8b4   :  { %v10472_v28 = vpop.eup %10471  ;;  %10477 = vtanh.f32 %v7266_v25  ;;  %v8859_v8 = vpop.f32.mrb[148].mxu0 }
 0x8b5   :  { %v7587_v63 = vmul.f32 %v10472_v28, %v7454_v16  ;;  %v8860_v13 = vpop.f32.mrb[149].mxu0  ;;  %v7118_v16 = vadd.f32 %v12691_v29, %v12729_v6 }
 0x8b6   :  { %v10474_v10 = vpop.eup %10473  ;;  %v8861_v55 = vadd.f32 %v8860_v13, %v8859_v8  ;;  %v8862_v57 = vpop.f32.mrb[150].mxu0 }
 0x8b7   :  { %v7625_v11 = vsel %vm7613_vm2, %v7587_v63, 0.0  ;;  %v7588_v31 = vmul.f32 %v10474_v10, %v7459_v34  ;;  %v8863_v54 = vpop.f32.mrb[151].mxu0  ;;  %v7484_v8 = vpop.permute.xlu1 %7483 }
 0x8b8   :  { %v7626_v39 = vadd.f32 %v7625_v11, %v7624_v51  ;;  %v7271_v58 = vadd.f32 %v8861_v55, %v7110_v30  ;;  %v8864_v2 = vadd.f32 %v8863_v54, %v8862_v57  ;;  %v7479_v30 = vpop.permute.xlu0 %7478  ;;  %v7126_v55 = vadd.f32 %v12699_v21, %v12735_v14 }
 0x8b9   :  { %v7627_v33 = vsel %vm7613_vm2, %v7588_v31, 0.0 }
 0x8ba   :  { %v7628_v7 = vadd.f32 %v7627_v33, %v7626_v39  ;;  %10479 = vtanh.f32 %v7271_v58  ;;  %v7274_v42 = vadd.f32 %v8864_v2, %v7113_v36  ;;  %v7129_v36 = vadd.f32 %v12703_v27, %v12739_v53 }
 0x8bb   :  { %v7494_v54 = vpop.permute.xlu1 %7493 }
 0x8bc   :  { %v10476_v38 = vpop.eup %10475  ;;  %10481 = vtanh.f32 %v7274_v42  ;;  %v8865_v62 = vpop.f32.mrb[152].mxu0 }
 0x8bd   :  { %v7589_v0 = vmul.f32 %v10476_v38, %v7464_v22  ;;  %v8866_v37 = vpop.f32.mrb[153].mxu0  ;;  %v7489_v14 = vpop.permute.xlu0 %7488 }
 0x8be   :  { %v10478_v47 = vpop.eup %10477  ;;  %v8867_v23 = vadd.f32 %v8866_v37, %v8865_v62  ;;  %v8868_v49 = vpop.f32.mrb[154].mxu0 }
 0x8bf   :  { %v7629_v1 = vsel %vm7613_vm2, %v7589_v0, 0.0  ;;  %v7590_v43 = vmul.f32 %v10478_v47, %v7469_v50  ;;  %v8869_v46 = vpop.f32.mrb[155].mxu0  ;;  %v7504_v37 = vpop.permute.xlu1 %7503  ;;  %v7134_v47 = vadd.f32 %v12709_v48, %v12743_v12 }
 0x8c0   :  { %v7630_v45 = vadd.f32 %v7629_v1, %v7628_v7  ;;  %v7279_v51 = vadd.f32 %v8867_v23, %v7118_v16  ;;  %v8870_v25 = vadd.f32 %v8869_v46, %v8868_v49  ;;  %v7137_v49 = vadd.f32 %v12713_v18, %v12745_v52 }
 0x8c1   :  { %v7631_v28 = vsel %vm7613_vm2, %v7590_v43, 0.0 }
 0x8c2   :  { %v7632_v34 = vadd.f32 %v7631_v28, %v7630_v45  ;;  %10483 = vtanh.f32 %v7279_v51  ;;  %v7282_v63 = vadd.f32 %v8870_v25, %v7121_v20 }
 0x8c3   :  { %v7514_v28 = vpop.permute.xlu1 %7513 }
 0x8c4   :  { %v10480_v13 = vpop.eup %10479  ;;  %10485 = vtanh.f32 %v7282_v63  ;;  %v8871_v29 = vpop.f32.mrb[156].mxu0 }
 0x8c5   :  { %v7591_v6 = vmul.f32 %v10480_v13, %v7474_v9  ;;  %v8872_v10 = vpop.f32.mrb[157].mxu0  ;;  %v7499_v63 = vpop.permute.xlu0 %7498  ;;  %v7142_v13 = vadd.f32 %v12719_v4, %v12751_v3 }
 0x8c6   :  { %v10482_v22 = vpop.eup %10481  ;;  %v8873_v44 = vadd.f32 %v8872_v10, %v8871_v29  ;;  %v8874_v59 = vpop.f32.mrb[158].mxu0 }
 0x8c7   :  { %v7633_v57 = vsel %vm7613_vm2, %v7591_v6, 0.0  ;;  %v7592_v11 = vmul.f32 %v10482_v22, %v7479_v30  ;;  %v8875_v31 = vpop.f32.mrb[159].mxu0  ;;  %v7145_v22 = vadd.f32 %v12721_v26, %v12753_v17 }
 0x8c8   :  { %v7634_v39 = vadd.f32 %v7633_v57, %v7632_v34  ;;  %v7287_v58 = vadd.f32 %v8873_v44, %v7126_v55  ;;  %v8876_v2 = vadd.f32 %v8875_v31, %v8874_v59  ;;  %v7524_v57 = vpop.permute.xlu1 %7523 }
 0x8c9   :  { %v7635_v33 = vsel %vm7613_vm2, %v7592_v11, 0.0 }
 0x8ca   :  { %v7636_v7 = vadd.f32 %v7635_v33, %v7634_v39  ;;  %10487 = vtanh.f32 %v7287_v58  ;;  %v7290_v42 = vadd.f32 %v8876_v2, %v7129_v36  ;;  %v7509_v58 = vpop.permute.xlu0 %7508  ;;  %v7150_v2 = vadd.f32 %v12727_v40, %v12757_v35 }
 0x8cc   :  { %v10484_v38 = vpop.eup %10483  ;;  %10489 = vtanh.f32 %v7290_v42  ;;  %v8877_v21 = vpop.f32.mrb[160].mxu0 }
 0x8cd   :  { %v7593_v9 = vmul.f32 %v10484_v38, %v7484_v8  ;;  %v8878_v62 = vpop.f32.mrb[161].mxu0  ;;  %v7534_v38 = vpop.permute.xlu1 %7533 }
 0x8ce   :  { %v10486_v0 = vpop.eup %10485  ;;  %v8879_v27 = vadd.f32 %v8878_v62, %v8877_v21  ;;  %v8880_v53 = vpop.f32.mrb[162].mxu0  ;;  %v7153_v21 = vadd.f32 %v12731_v19, %v12761_v56  ;;  %v7158_v19 = vadd.f32 %v12737_v32, %v12763_v60 }
 0x8cf   :  { %v7637_v50 = vsel %vm7613_vm2, %v7593_v9, 0.0  ;;  %v7594_v16 = vmul.f32 %v10486_v0, %v7489_v14  ;;  %v8881_v23 = vpop.f32.mrb[163].mxu0  ;;  %v7519_v35 = vpop.permute.xlu0 %7518 }
 0x8d0   :  { %v7638_v1 = vadd.f32 %v7637_v50, %v7636_v7  ;;  %v7295_v43 = vadd.f32 %v8879_v27, %v7134_v47  ;;  %v8882_v46 = vadd.f32 %v8881_v23, %v8880_v53 }
 0x8d1   :  { %v7639_v20 = vsel %vm7613_vm2, %v7594_v16, 0.0  ;;  %v12853_v23 = vpop.permute.xlu1 %7543 }
 0x8d2   :  { %v7640_v45 = vadd.f32 %v7639_v20, %v7638_v1  ;;  %10491 = vtanh.f32 %v7295_v43  ;;  %v7298_v51 = vadd.f32 %v8882_v46, %v7137_v49  ;;  %v7161_v20 = vadd.f32 %v12741_v41, %v12767_v5 }
 0x8d4   :  { %v10488_v25 = vpop.eup %10487  ;;  %10493 = vtanh.f32 %v7298_v51  ;;  %v8883_v48 = vpop.f32.mrb[164].mxu0 }
 0x8d5   :  { %v7595_v12 = vmul.f32 %v10488_v25, %v7494_v54  ;;  %v8884_v8 = vpop.f32.mrb[165].mxu0 }
 0x8d6   :  { %v10490_v34 = vpop.eup %10489  ;;  %v8885_v18 = vadd.f32 %v8884_v8, %v8883_v48  ;;  %v8886_v52 = vpop.f32.mrb[166].mxu0 }
 0x8d7   :  { %v7641_v29 = vsel %vm7613_vm2, %v7595_v12, 0.0  ;;  %v7596_v6 = vmul.f32 %v10490_v34, %v7499_v63  ;;  %v8887_v10 = vpop.f32.mrb[167].mxu0  ;;  %v12861_v34 = vpop.permute.xlu1 %7553 }
 0x8d8   :  { %v7642_v30 = vadd.f32 %v7641_v29, %v7640_v45  ;;  %v7303_v55 = vadd.f32 %v8885_v18, %v7142_v13  ;;  %v8888_v44 = vadd.f32 %v8887_v10, %v8886_v52  ;;  %v7529_v18 = vpop.permute.xlu0 %7528  ;;  %v13308_v52 = vld [vmem:[#allocation102_spill] sm:$0xff]  ;;  %v13309_v29 = vld [vmem:[#allocation79_spill] sm:$0xff] }
 0x8d9   :  { %v7643_v59 = vsel %vm7613_vm2, %v7596_v6, 0.0  ;;  %v7166_v41 = vadd.f32 %v13309_v29, %v13308_v52 }
 0x8da   :  { %v7644_v11 = vadd.f32 %v7643_v59, %v7642_v30  ;;  %10495 = vtanh.f32 %v7303_v55  ;;  %v7306_v31 = vadd.f32 %v8888_v44, %v7145_v22  ;;  %v13310_v55 = vld [vmem:[#allocation80_spill] sm:$0xff] }
 0x8db   :  { %v7169_v44 = vadd.f32 %v13310_v55, %v12773_v61 }
 0x8dc   :  { %v10492_v54 = vpop.eup %10491  ;;  %10497 = vtanh.f32 %v7306_v31  ;;  %v8889_v4 = vpop.f32.mrb[168].mxu0 }
 0x8dd   :  { %v7597_v3 = vmul.f32 %v10492_v54, %v7504_v37  ;;  %v8890_v36 = vpop.f32.mrb[169].mxu0  ;;  %v12869_v54 = vpop.permute.xlu1 %7563 }
 0x8de   :  { %v10494_v39 = vpop.eup %10493  ;;  %v8891_v26 = vadd.f32 %v8890_v36, %v8889_v4  ;;  %v8892_v17 = vpop.f32.mrb[170].mxu0  ;;  %v13311_v36 = vld [vmem:[#allocation78_spill] sm:$0xff] }
 0x8df   :  { %v7645_v33 = vsel %vm7613_vm2, %v7597_v3, 0.0  ;;  %v7598_v7 = vmul.f32 %v10494_v39, %v7509_v58  ;;  %v8893_v42 = vpop.f32.mrb[171].mxu0  ;;  %v13312_v39 = vld [vmem:[#allocation77_spill] sm:$0xff]  ;;  %v7539_v61 = vpop.permute.xlu0 %7538 }
 0x8e0   :  { %v7646_v14 = vadd.f32 %v7645_v33, %v7644_v11  ;;  %v7311_v9 = vadd.f32 %v8891_v26, %v7150_v2  ;;  %v8894_v62 = vadd.f32 %v8893_v42, %v8892_v17  ;;  %v3219_v58 = vadd.f32 %v13312_v39, %v13311_v36  ;;  %v13313_v42 = vld [vmem:[#allocation107_spill] sm:$0xff] }
 0x8e1   :  { %v7647_v0 = vsel %vm7613_vm2, %v7598_v7, 0.0 }
 0x8e2   :  { %v7648_v37 = vadd.f32 %v7647_v0, %v7646_v14  ;;  %10499 = vtanh.f32 %v7311_v9  ;;  %v7314_v47 = vadd.f32 %v8894_v62, %v7153_v21  ;;  %v13314_v21 = vld [vmem:[#allocation101_spill] sm:$0xff] }
 0x8e3   :  { %v7174_v14 = vadd.f32 %v13314_v21, %v13313_v42 }
 0x8e4   :  { %v10496_v27 = vpop.eup %10495  ;;  %10501 = vtanh.f32 %v7314_v47  ;;  %v8895_v40 = vpop.f32.mrb[172].mxu0 }
 0x8e5   :  { %v7599_v53 = vmul.f32 %v10496_v27, %v7514_v28  ;;  %v8896_v50 = vpop.f32.mrb[173].mxu0  ;;  %v12876_v27 = vpop.permute.xlu1 %7573 }
 0x8e6   :  { %v10498_v16 = vpop.eup %10497  ;;  %v8897_v56 = vadd.f32 %v8896_v50, %v8895_v40  ;;  %v8898_v49 = vpop.f32.mrb[174].mxu0  ;;  %v13315_v40 = vld [vmem:[#allocation83_spill] sm:$0xff] }
 0x8e7   :  { %v7649_v1 = vsel %vm7613_vm2, %v7599_v53, 0.0  ;;  %v7600_v43 = vmul.f32 %v10498_v16, %v7519_v35  ;;  %v8899_v46 = vpop.f32.mrb[175].mxu0  ;;  %v13316_v35 = vld [vmem:[#allocation103_spill] sm:$0xff] }
 0x8e8   :  { %v7650_v45 = vadd.f32 %v7649_v1, %v7648_v37  ;;  %v7319_v51 = vadd.f32 %v8897_v56, %v7158_v19  ;;  %v8900_v25 = vadd.f32 %v8899_v46, %v8898_v49  ;;  %v7177_v53 = vadd.f32 %v13316_v35, %v13315_v40  ;;  %v7549_v46 = vpop.permute.xlu0 %7548 }
 0x8e9   :  { %v7651_v28 = vsel %vm7613_vm2, %v7600_v43, 0.0 }
 0x8ea   :  { %v7652_v48 = vadd.f32 %v7651_v28, %v7650_v45  ;;  %10503 = vtanh.f32 %v7319_v51  ;;  %v7322_v12 = vadd.f32 %v8900_v25, %v7161_v20  ;;  %v7733_v25 = vpop.permute.xlu1 %7732  ;;  %v13317_v28 = vld [vmem:[#allocation104_spill] sm:$0xff] }
 0x8ec   :  { %v10500_v8 = vpop.eup %10499  ;;  %10505 = vtanh.f32 %v7322_v12  ;;  %v8901_v32 = vpop.f32.mrb[176].mxu0 }
 0x8ed   :  { %v7601_v60 = vmul.f32 %v10500_v8, %v7524_v57  ;;  %v8902_v63 = vpop.f32.mrb[177].mxu0 }
 0x8ee   :  { %v10502_v13 = vpop.eup %10501  ;;  %v8903_v5 = vadd.f32 %v8902_v63, %v8901_v32  ;;  %v8904_v6 = vpop.f32.mrb[178].mxu0 }
 0x8ef   :  { %v7653_v10 = vsel %vm7613_vm2, %v7601_v60, 0.0  ;;  %v7602_v22 = vmul.f32 %v10502_v13, %v7529_v18  ;;  %v8905_v30 = vpop.f32.mrb[179].mxu0  ;;  %v13319_v18 = vld [vmem:[#allocation100_spill] sm:$0xff] }
 0x8f0   :  { %v7654_v59 = vadd.f32 %v7653_v10, %v7652_v48  ;;  %v7327_v11 = vadd.f32 %v8903_v5, %v7166_v41  ;;  %v8906_v31 = vadd.f32 %v8905_v30, %v8904_v6  ;;  %v13318_v48 = vld [vmem:[#allocation81_spill] sm:$0xff]  ;;  %v7185_v52 = vadd.f32 %v13319_v18, %v12789_v24  ;;  %v7711_v10 = vpop.trf.xlu1  ;;  %v13320_v24 = vld [vmem:[#allocation82_spill] sm:$0xff] }
 0x8f1   :  { %v7655_v57 = vsel %vm7613_vm2, %v7602_v22, 0.0  ;;  %v7182_v12 = vadd.f32 %v13318_v48, %v13317_v28  ;;  %v7689_v28 = vlaneseq }
 0x8f2   :  { %v7656_v4 = vadd.f32 %v7655_v57, %v7654_v59  ;;  %10507 = vtanh.f32 %v7327_v11  ;;  %v7330_v3 = vadd.f32 %v8906_v31, %v7169_v44 }
 0x8f4   :  { %v10504_v2 = vpop.eup %10503  ;;  %10509 = vtanh.f32 %v7330_v3  ;;  %v8907_v26 = vpop.f32.mrb[180].mxu0  ;;  %v7190_v3 = vadd.f32 %v13320_v24, %v12791_v15 }
 0x8f5   :  { %v7603_v17 = vmul.f32 %v10504_v2, %v7534_v38  ;;  %v8908_v33 = vpop.f32.mrb[181].mxu0  ;;  %10511 = vtanh.f32 %v3219_v58 }
 0x8f6   :  { %v10506_v7 = vpop.eup %10505  ;;  %v8909_v9 = vadd.f32 %v8908_v33, %v8907_v26  ;;  %v8910_v62 = vpop.f32.mrb[182].mxu0  ;;  %v13322_v33 = vld [vmem:[#allocation105_spill] sm:$0xff] }
 0x8f7   :  { %v7657_v0 = vsel %vm7613_vm2, %v7603_v17, 0.0  ;;  %v7604_v37 = vmul.f32 %v10506_v7, %v7539_v61  ;;  %v8911_v47 = vpop.f32.mrb[183].mxu0  ;;  %v13321_v17 = vld [vmem:[#allocation106_spill] sm:$0xff] }
 0x8f8   :  { %v7658_v50 = vadd.f32 %v7657_v0, %v7656_v4  ;;  %v7335_v38 = vadd.f32 %v8909_v9, %v7174_v14  ;;  %v8912_v16 = vadd.f32 %v8911_v47, %v8910_v62  ;;  %v7559_v4 = vpop.permute.xlu0 %7558  ;;  %v7193_v7 = vadd.f32 %v13322_v33, %v13321_v17 }
 0x8f9   :  { %v7659_v19 = vsel %vm7613_vm2, %v7604_v37, 0.0 }
 0x8fa   :  { %v7660_v56 = vadd.f32 %v7659_v19, %v7658_v50  ;;  %10513 = vtanh.f32 %v7335_v38  ;;  %v7338_v49 = vadd.f32 %v8912_v16, %v7177_v53 }
 0x8fc   :  { %v10508_v1 = vpop.eup %10507  ;;  %10515 = vtanh.f32 %v7338_v49  ;;  %v8913_v43 = vpop.f32.mrb[184].mxu0 }
 0x8fd   :  { %v7605_v20 = vmul.f32 %v10508_v1, %v12853_v23  ;;  %v8914_v45 = vpop.f32.mrb[185].mxu0  ;;  %v7569_v40 = vpop.permute.xlu0 %7568 }
 0x8fe   :  { %v10510_v51 = vpop.eup %10509  ;;  %v8915_v8 = vadd.f32 %v8914_v45, %v8913_v43  ;;  %v8916_v32 = vpop.f32.mrb[186].mxu0 }
 0x8ff   :  { %v7661_v60 = vsel %vm7613_vm2, %v7605_v20, 0.0  ;;  %v7606_v63 = vmul.f32 %v10510_v51, %v7549_v46  ;;  %v8917_v13 = vpop.f32.mrb[187].mxu0  ;;  %v10512_v6 = vpop.eup %10511 }
 0x900   :  { %v7662_v29 = vadd.f32 %v7661_v60, %v7660_v56  ;;  %v7343_v41 = vadd.f32 %v8915_v8, %v7182_v12  ;;  %v8918_v5 = vadd.f32 %v8917_v13, %v8916_v32  ;;  %v7727_v59 = vsub.f32 %v7711_v10, %v10512_v6 }
 0x901   :  { %v7663_v23 = vsel %vm7613_vm2, %v7606_v63, 0.0  ;;  %v7579_v46 = vpop.permute.xlu0 %7578  ;;  %v7690_v32 = vshrl.u32 %v7689_v28, 7 }
 0x902   :  { %v7664_v22 = vadd.f32 %v7663_v23, %v7662_v29  ;;  %10517 = vtanh.f32 %v7343_v41  ;;  %v7346_v30 = vadd.f32 %v8918_v5, %v7185_v52  ;;  %v7728_v14 = vmul.f32 %v7727_v59, %v7727_v59 }
 0x903   :  { %v7691_v18 = vsub.s32 0, %v7690_v32 }
 0x904   :  { %v10514_v55 = vpop.eup %10513  ;;  %10519 = vtanh.f32 %v7346_v30  ;;  %v8919_v44 = vpop.f32.mrb[188].mxu0  ;;  %v7735_v15 = vmul.f32 %v7733_v25, %v7728_v14 }
 0x905   :  { %v7607_v11 = vmul.f32 %v10514_v55, %v12861_v34  ;;  %v8920_v31 = vpop.f32.mrb[189].mxu0 }
 0x906   :  { %v10516_v57 = vpop.eup %10515  ;;  %v8921_v36 = vadd.f32 %v8920_v31, %v8919_v44  ;;  %v8922_v39 = vpop.f32.mrb[190].mxu0  ;;  %v7737_v38 = vsel %vm7736_vm3, %v7735_v15, 0.0 }
 0x907   :  { %v7665_v58 = vsel %vm7613_vm2, %v7607_v11, 0.0  ;;  %v7608_v2 = vmul.f32 %v10516_v57, %v7559_v4  ;;  %v8923_v26 = vpop.f32.mrb[191].mxu0  ;;  %v7738_v49 = vrot.slane %v7737_v38, 4 }
 0x908   :  { %v7666_v61 = vadd.f32 %v7665_v58, %v7664_v22  ;;  %v7351_v42 = vadd.f32 %v8921_v36, %v7190_v3  ;;  %v8924_v21 = vadd.f32 %v8923_v26, %v8922_v39 }
 0x909   :  { %v7667_v34 = vsel %vm7613_vm2, %v7608_v2, 0.0  ;;  %v7739_v45 = vadd.f32 %v7738_v49, %v7737_v38 }
 0x90a   :  { %v7668_v9 = vadd.f32 %v7667_v34, %v7666_v61  ;;  %10521 = vtanh.f32 %v7351_v42  ;;  %v7354_v62 = vadd.f32 %v8924_v21, %v7193_v7 }
 0x90b   :  { %v7740_v12 = vrot.slane %v7739_v45, 2 }
 0x90c   :  { %v10518_v0 = vpop.eup %10517  ;;  %10523 = vtanh.f32 %v7354_v62 }
 0x90d   :  { %v7609_v37 = vmul.f32 %v10518_v0, %v12869_v54  ;;  %v7741_v63 = vadd.f32 %v7740_v12, %v7739_v45 }
 0x90e   :  { %v10520_v47 = vpop.eup %10519 }
 0x90f   :  { %v7669_v35 = vsel %vm7613_vm2, %v7609_v37, 0.0  ;;  %v7610_v53 = vmul.f32 %v10520_v47, %v7569_v40  ;;  %v7742_v29 = vrot.slane %v7741_v63, 1 }
 0x910   :  { %v7670_v50 = vadd.f32 %v7669_v35, %v7668_v9 }
 0x911   :  { %v7671_v16 = vsel %vm7613_vm2, %v7610_v53, 0.0  ;;  %v7743_v10 = vadd.f32 %v7742_v29, %v7741_v63 }
 0x912   :  { %v7672_v19 = vadd.f32 %v7671_v16, %v7670_v50 }
 0x914   :  { %v10522_v56 = vpop.eup %10521 }
 0x915   :  { %v7611_v1 = vmul.f32 %v10522_v56, %v12876_v27  ;;  %v7687_v27 = vpop.permute.xlu0 %7686 }
 0x916   :  { %v10524_v43 = vpop.eup %10523  ;;  %v7692_v5 = vrot.slane %v7687_v27, %v7691_v18 }
 0x917   :  { %v7673_v20 = vsel %vm7613_vm2, %v7611_v1, 0.0  ;;  %v7612_v54 = vmul.f32 %v10524_v43, %v7579_v46 }
 0x918   :  { %v7674_v51 = vadd.f32 %v7673_v20, %v7672_v19 }
 0x919   :  { %v7675_v25 = vsel %vm7613_vm2, %v7612_v54, 0.0 }
 0x91a   :  { %v7676_v48 = vadd.f32 %v7675_v25, %v7674_v51 }
 0x91c   :  { %v7677_v8 = vrot.slane %v7676_v48, 4 }
 0x91e   :  { %v7678_v60 = vadd.f32 %v7677_v8, %v7676_v48 }
 0x920   :  { %v7679_v13 = vrot.slane %v7678_v60, 2 }
 0x922   :  { %v7680_v52 = vadd.f32 %v7679_v13, %v7678_v60 }
 0x924   :  { %v7681_v41 = vrot.slane %v7680_v52, 1 }
 0x926   :  { %v7682_v6 = vadd.f32 %v7681_v41, %v7680_v52 }
 0x928   :  { %v7693_v23 = vadd.f32 %v7692_v5, %v7682_v6 }
 0x92a   :  { %v7745_v22 = vsel %vm7744_vm4, %v7743_v10, %v7693_v23 }
 0x92b   :  { %7747 = vst.msk [vmem:[#allocation24] sm:$0x3] %vm7746_vm5, %v7745_v22 }
 0x92c   :  { %10822 = shalt.err (!%p10819_p10)
}
 0x92d   :  { %s10823_s19 = scalar_lea.hbm %s12927_s14, 32 }
 0x92e   :  { %p10824_p11 = scmp.ne.s32.totalorder %s12927_s14, %s10823_s19  ;;  %p10827_p12 = scmp.lt.u32.totalorder %s10823_s19, %s12927_s14 }
 0x930   :  { %p10829_p13 = pnand %p10827_p12, %p10824_p11 }
 0x932   :  { %10832 = shalt.err (!%p10829_p13)
}
 0x933   :  { %7757 = dma.vmem_to_hbm [thread:$0]  %s7755_s3, 32, %s12927_s14, [#allocation5]  }
 0x934   :  { %10847 = dma.done.wait [#allocation5], 32  }
 0x935   :  { %10848 = vsyncadd [#allocation5], 4294967264 }
 0x936   :  { %7761 = vsyncpa [#allocation4], 1 }
 0x937   :  { %7762 = vsyncpa [#allocation7], 1 }
 0x938   :  { %7763 = vsyncpa [#allocation10], 1 }
 0x939   :  { %7764 = vsyncpa [#allocation13], 1 }
 0x93a   :  { %7765 = vsyncpa [#allocation16], 1 }
 0x93b   :  { %7766 = vsyncpa [#allocation19], 1 }
 0x93c   :  { %7767 = vsyncpa [#allocation22], 1 }
 0x93d   :  { %7768 = vsyncpa [#allocation5], 1 }

</bundles_post_ra>
